<compile_context>
chip_gen: v7x
topology: tpu7x:2x2x1
jax: 0.10.0
libtpu: 0.0.40
codegen_flags: <defaults>
</compile_context>

<pallas_src>
import functools

import numpy as np
import jax
import jax.numpy as jnp
from jax.experimental import pallas as pl
from jax.experimental.pallas import tpu as pltpu

EPS = 1e-5              # BatchNorm eps
D = 128                 # feature width
HW = 7                  # spatial size of the BabyAI grid / feature map
PW = HW + 2             # zero-padded spatial size (conv padding = 1)
BLK = PW * PW           # padded-flat rows per batch element (81)
GUARD = 10              # max |tap offset| in padded-flat space: (kh-1)*PW + (kw-1) in [-10, 10]
N_IMG_CH = 3
V_RAW = N_IMG_CH * 255  # BOW embedding table rows (765)
V_CH = 256              # per-channel table block padded to an MXU/lane-friendly K
SENT = V_CH - 1         # pad rows index a guaranteed-zero row of their channel block
TAPS = tuple((kh - 1) * PW + (kw - 1) for kh in range(3) for kw in range(3))


# ----------------------------------------------------------------------------
# Fused kernel: one grid step = one block of `bb` batch elements, fully in VMEM
# ----------------------------------------------------------------------------
def fused_forward_kernel(bb, cdt,
                         idx_ref, table_ref,
                         w1_ref, shift1_ref, w2_ref, shift2_ref,
                         mask1_ref, mask2_ref,
                         hw1_ref, hb1_ref, hw2_ref, hb2_ref,
                         mseg_ref, pmask_ref, maxbias_ref,
                         o_ref,
                         x0_ref, x1_ref, x2_ref, emb_ref):
    R2 = bb * BLK            # conv2 output rows (padded-flat indices 0 .. 81*bb)
    R1 = R2 + 2 * GUARD      # conv1 output rows
    R0 = R1 + 2 * GUARD      # BOW output rows (guard rows so every tap slice is in-bounds)

    # ---- ImageBOWEmbedding: three per-channel one-hot matmuls against the (3,256,D) table ----
    # (pad/guard rows carry SENT -> they hit a zero table row, i.e. the spatial zero padding.)
    idx = idx_ref[0]                                                    # (R0, 3) int32
    iota = jax.lax.broadcasted_iota(jnp.int32, (R0, V_CH), 1)
    x0 = None
    for c in range(N_IMG_CH):
        onehot = (iota == idx[:, c:c + 1]).astype(cdt)                  # (R0, 256)
        term = jnp.dot(onehot, table_ref[c], preferred_element_type=jnp.float32)
        x0 = term if x0 is None else x0 + term
    x0_ref[...] = x0.astype(cdt)

    # ---- conv1: 3x3 / pad 1 as 9 shifted matmuls; BN scale folded into the weights ----
    acc = None
    for k, d in enumerate(TAPS):
        term = jnp.dot(x0_ref[pl.ds(GUARD + d, R1), :], w1_ref[k],
                       preferred_element_type=jnp.float32)
        acc = term if acc is None else acc + term
    x1 = jnp.maximum(acc + shift1_ref[...], 0.0) * mask1_ref[...]        # re-zero pad rows
    x1_ref[...] = x1.astype(cdt)

    # ---- conv2 ----
    acc = None
    for k, d in enumerate(TAPS):
        term = jnp.dot(x1_ref[pl.ds(GUARD + d, R2), :], w2_ref[k],
                       preferred_element_type=jnp.float32)
        acc = term if acc is None else acc + term
    x2_ref[...] = jnp.maximum(acc + shift2_ref[...], 0.0) * mask2_ref[...]

    # ---- relu(MaxPool(7,7)) == per-batch max over its 81 masked padded-flat rows ----
    for b in range(bb):
        emb_ref[pl.ds(b, 1), :] = jnp.max(x2_ref[pl.ds(b * BLK, BLK), :],
                                          axis=0, keepdims=True)

    # ---- actor / talker / critic heads (weights padded to a lane-dense 128-wide output) ----
    emb = emb_ref[...]
    h = jnp.tanh(jnp.dot(emb.astype(cdt), hw1_ref[...],
                         preferred_element_type=jnp.float32) + hb1_ref[...])
    logits = jnp.dot(h.astype(cdt), hw2_ref[...],
                     preferred_element_type=jnp.float32) + hb2_ref[...]   # (bb, 128)

    # Lane-dense per-head log-softmax: masked max over policy lanes, exp of the *masked* logits
    # (value/pad lanes -> exactly 0, no inf*0 hazard), one (bb,128)@(128,128) "same-head" matmul
    # broadcasts the per-head sums back per lane.
    zb = logits + maxbias_ref[...]                                       # -1e9 on non-policy lanes
    zmax = jnp.max(zb, axis=1, keepdims=True)
    e = jnp.exp(zb - zmax)                                               # 0 on value/pad lanes
    sums = jnp.dot(e, mseg_ref[...], preferred_element_type=jnp.float32)
    pmask = pmask_ref[...]
    sums = sums + (1.0 - pmask)          # keep log() finite on value / pad lanes (discarded)
    out = jnp.where(pmask > 0.5, logits - zmax - jnp.log(sums), logits)
    o_ref[0] = out.astype(o_ref.dtype)


# ----------------------------------------------------------------------------
# Wrapper: index/mask plumbing (tiny), constant folding, one pallas_call
# ----------------------------------------------------------------------------
def _interior_mask(q, bb):
    """1.0 where padded-flat index q is an interior (non-pad) pixel of some batch block."""
    q = np.asarray(q)
    valid = (q >= 0) & (q < bb * BLK)
    p = np.mod(q, BLK)
    pi, pj = p // PW, p % PW
    return (valid & (pi >= 1) & (pi <= HW) & (pj >= 1) & (pj <= HW)).astype(np.float32)


def forward(params, image, memory, *, batch_block=None, compute_dtype=jnp.float32):
    """image: (B, 7, 7, 3) int BabyAI grid (NHWC); memory: (B, 2*memory_dim) f32.

    Returns ([log_probs per head], value, memory) — Categorical dists are represented by their
    log-probability tensors, exactly as the module's forward().
    """
    B, H, W, C = image.shape
    assert H == HW and W == HW and C == N_IMG_CH, "endpool arch assumes a 7x7x3 BabyAI grid"
    cdt = compute_dtype
    head_sizes = params['head_sizes']
    total = sum(head_sizes)                           # 34 policy lanes; value at lane 34

    bb = min(B, 8) if batch_block is None else int(batch_block)
    G = -(-B // bb)
    B_pad = G * bb
    R2, R1, R0 = bb * BLK, bb * BLK + 2 * GUARD, bb * BLK + 4 * GUARD

    img = image.astype(jnp.int32)
    if B_pad != B:
        img = jnp.concatenate([img, jnp.zeros((B_pad - B, H, W, C), jnp.int32)], axis=0)

    # ---- per-block per-channel BOW indices over the padded-flat row space (SENT -> zero row) ----
    # NOTE: like nn.Embedding with channel offsets, a pixel value of 255 would alias into the next
    # channel's table block; BabyAI grids stay well below 255 so this is not guarded here.
    r = np.arange(R0)
    q = r - 2 * GUARD
    valid = (q >= 0) & (q < bb * BLK)
    qc = np.clip(q, 0, bb * BLK - 1)
    b_loc, p = qc // BLK, qc % BLK
    pi, pj = p // PW, p % PW
    interior = valid & (pi >= 1) & (pi <= HW) & (pj >= 1) & (pj <= HW)
    yy = np.clip(pi - 1, 0, HW - 1).astype(np.int32)
    xx = np.clip(pj - 1, 0, HW - 1).astype(np.int32)
    gb = (np.arange(G)[:, None] * bb + b_loc[None, :]).astype(np.int32)          # (G, R0)
    pix = img[jnp.asarray(gb), jnp.asarray(yy)[None, :], jnp.asarray(xx)[None, :], :]
    idx = jnp.where(jnp.asarray(interior)[None, :, None],
                    pix, SENT).astype(jnp.int32)                                 # (G, R0, 3)

    # ---- interior masks used to re-zero the spatial padding between the convs ----
    mask1 = jnp.asarray(_interior_mask(np.arange(R1) - GUARD, bb)[:, None])
    mask2 = jnp.asarray(_interior_mask(np.arange(R2), bb)[:, None])

    # ---- constant folding: per-channel BOW table, BN-into-conv-weights, padded head weights ----
    tbl = params['emb_table'].astype(cdt)                                        # (765, 128)
    table = jnp.zeros((N_IMG_CH, V_CH, D), cdt).at[:, :255, :].set(
        tbl.reshape(N_IMG_CH, 255, D))                                           # row 255 stays 0

    def fold_conv(w_hwio, bias, bn):
        gamma, beta, mean, var = bn
        scale = gamma / jnp.sqrt(var + EPS)
        shift = (beta + (bias - mean) * scale)[None, :].astype(jnp.float32)
        w = (w_hwio.reshape(9, D, D) * scale[None, None, :]).astype(cdt)
        return w, shift

    w1f, shift1 = fold_conv(params['conv1_w'], params['conv1_b'], params['bn1'])
    w2f, shift2 = fold_conv(params['conv2_w'], params['conv2_b'], params['bn2'])

    hw1 = params['heads_w1'].astype(cdt)                                         # (128, 320)
    hb1 = params['heads_b1'].astype(jnp.float32)                                 # (1, 320)
    hw2 = jnp.zeros((hw1.shape[1], D), jnp.float32).at[:, :total + 1].set(
        params['heads_w2']).astype(cdt)                                          # (320, 128)
    hb2 = jnp.zeros((1, D), jnp.float32).at[:, :total + 1].set(params['heads_b2'])

    mseg = np.zeros((D, D), np.float32)
    off = 0
    for n in head_sizes:
        mseg[off:off + n, off:off + n] = 1.0
        off += n
    pmask = np.zeros((1, D), np.float32); pmask[0, :total] = 1.0
    maxbias = np.full((1, D), -1e9, np.float32); maxbias[0, :total] = 0.0
    mseg, pmask, maxbias = map(jnp.asarray, (mseg, pmask, maxbias))

    full = lambda a: pl.BlockSpec(a.shape, lambda g, nd=a.ndim: (0,) * nd)
    out = pl.pallas_call(
        functools.partial(fused_forward_kernel, bb, cdt),
        grid=(G,),
        in_specs=[pl.BlockSpec((1, R0, N_IMG_CH), lambda g: (g, 0, 0)),
                  full(table), full(w1f), full(shift1), full(w2f), full(shift2),
                  full(mask1), full(mask2),
                  full(hw1), full(hb1), full(hw2), full(hb2),
                  full(mseg), full(pmask), full(maxbias)],
        out_specs=pl.BlockSpec((1, bb, D), lambda g: (g, 0, 0)),
        out_shape=jax.ShapeDtypeStruct((G, bb, D), jnp.float32),
        scratch_shapes=[pltpu.VMEM((R0, D), cdt),            # BOW / conv1 input
                        pltpu.VMEM((R1, D), cdt),            # conv1 output (zero-padded)
                        pltpu.VMEM((R2, D), jnp.float32),    # conv2 output (masked)
                        pltpu.VMEM((bb, D), jnp.float32)],   # pooled embedding
        compiler_params=pltpu.CompilerParams(
            dimension_semantics=("parallel",),
            vmem_limit_bytes=32 * 1024 * 1024),
    )(idx, table, w1f, shift1, w2f, shift2, mask1, mask2,
      hw1, hb1, hw2, hb2, mseg, pmask, maxbias)

    out = out.reshape(G * bb, D)[:B]
    log_probs, off = [], 0
    for n in head_sizes:
        log_probs.append(out[:, off:off + n])
        off += n
    value = out[:, off]
    return log_probs, value, memory          # use_memory=False -> memory passes through


# ----------------------------------------------------------------------------
# Parameter construction (mirrors the module's init) and a pure-JAX reference
# ----------------------------------------------------------------------------
def init_params(key):
    head_sizes = (8, 2, 8, 16)          # [n_primitive_actions] + n_utterance_actions
    n_heads = len(head_sizes) + 1       # + critic
    ks = jax.random.split(key, 20)

    emb_table = jax.random.normal(ks[0], (V_RAW, D), dtype=jnp.float32)   # nn.Embedding default

    conv1_w = jax.random.normal(ks[1], (3, 3, D, D), dtype=jnp.float32) / np.sqrt(9 * D)  # HWIO
    conv2_w = jax.random.normal(ks[2], (3, 3, D, D), dtype=jnp.float32) / np.sqrt(9 * D)
    conv1_b = jnp.zeros((D,), jnp.float32)
    conv2_b = jnp.zeros((D,), jnp.float32)
    bn1 = (jnp.ones((D,)), jnp.zeros((D,)), jnp.zeros((D,)), jnp.ones((D,)))  # gamma,beta,mean,var
    bn2 = (jnp.ones((D,)), jnp.zeros((D,)), jnp.zeros((D,)), jnp.ones((D,)))

    def linear(k, out_f, in_f):
        # initialize_parameters: N(0,1) rows, L2-row-normalized, zero bias
        w = jax.random.normal(k, (out_f, in_f), dtype=jnp.float32)
        return w / jnp.sqrt(jnp.sum(w * w, axis=1, keepdims=True))

    outs = list(head_sizes) + [1]
    w1_list = [linear(ks[3 + 2 * i], 64, D) for i in range(n_heads)]
    w2_list = [linear(ks[4 + 2 * i], outs[i], 64) for i in range(n_heads)]

    heads_w1 = jnp.concatenate([w.T for w in w1_list], axis=1)       # (128, n_heads*64)
    heads_b1 = jnp.zeros((1, 64 * n_heads), jnp.float32)
    total_out = sum(outs)
    w2_blk = np.zeros((64 * n_heads, total_out), np.float32)
    off = 0
    for i, w2 in enumerate(w2_list):
        w2_blk[i * 64:(i + 1) * 64, off:off + outs[i]] = np.asarray(w2.T)
        off += outs[i]
    heads_w2 = jnp.asarray(w2_blk)                                   # block-diagonal (320, 35)
    heads_b2 = jnp.zeros((1, total_out), jnp.float32)

    return dict(emb_table=emb_table,
                conv1_w=conv1_w, conv1_b=conv1_b, bn1=bn1,
                conv2_w=conv2_w, conv2_b=conv2_b, bn2=bn2,
                heads_w1=heads_w1, heads_b1=heads_b1,
                heads_w2=heads_w2, heads_b2=heads_b2,
                head_sizes=head_sizes)


def reference_forward(params, image, memory):
    B, H, W, C = image.shape
    HI = jax.lax.Precision.HIGHEST
    offsets = jnp.arange(C, dtype=jnp.int32) * 255
    idx = image.astype(jnp.int32) + offsets[None, None, None, :]
    x = jnp.take(params['emb_table'], idx, axis=0).sum(axis=3)      # (B,H,W,128)

    def conv_block(x, w_hwio, bias, bn):
        gamma, beta, mean, var = bn
        y = jax.lax.conv_general_dilated(x, w_hwio, (1, 1), 'SAME',
                                         dimension_numbers=('NHWC', 'HWIO', 'NHWC'),
                                         precision=HI) + bias
        y = (y - mean) / jnp.sqrt(var + EPS) * gamma + beta
        return jnp.maximum(y, 0.0)

    x = conv_block(x, params['conv1_w'], params['conv1_b'], params['bn1'])
    x = conv_block(x, params['conv2_w'], params['conv2_b'], params['bn2'])
    pooled = jnp.maximum(jnp.max(x, axis=(1, 2)), 0.0)
    h = jnp.tanh(jnp.dot(pooled, params['heads_w1'], precision=HI) + params['heads_b1'])
    logits = jnp.dot(h, params['heads_w2'], precision=HI) + params['heads_b2']
    log_probs, off = [], 0
    for n in params['head_sizes']:
        log_probs.append(jax.nn.log_softmax(logits[:, off:off + n], axis=1))
        off += n
    return log_probs, logits[:, off], memory


# ----------------------------------------------------------------------------
if __name__ == "__main__":
    key = jax.random.PRNGKey(0)
    k_img, k_mem, k_par = jax.random.split(key, 3)

    B = 2
    image = jax.random.randint(k_img, (B, HW, HW, N_IMG_CH), 0, 12, dtype=jnp.int32)
    memory = jax.random.normal(k_mem, (B, 256), dtype=jnp.float32)   # 2 * memory_dim
    params = init_params(k_par)

    # 1) single fused kernel invocation, f32 operands (tight check vs the JAX reference)
    dists, value, mem_out = forward(params, image, memory)
    jax.block_until_ready((dists, value, mem_out))
    ref_dists, ref_value, _ = reference_forward(params, image, memory)
    for a, b in zip(dists, ref_dists):
        np.testing.assert_allclose(np.asarray(a), np.asarray(b), rtol=5e-2, atol=5e-2)
    np.testing.assert_allclose(np.asarray(value), np.asarray(ref_value), rtol=5e-2, atol=5e-2)

    # 2) multi-block grid path (the "parallel" grid that engages both v7x TensorCores)
    B2 = 5
    image2 = jax.random.randint(k_img, (B2, HW, HW, N_IMG_CH), 0, 12, dtype=jnp.int32)
    memory2 = jnp.zeros((B2, 256), jnp.float32)
    d2, v2, _ = forward(params, image2, memory2, batch_block=2)
    jax.block_until_ready((d2, v2))
    rd2, rv2, _ = reference_forward(params, image2, memory2)
    for a, b in zip(d2, rd2):
        np.testing.assert_allclose(np.asarray(a), np.asarray(b), rtol=5e-2, atol=5e-2)
    np.testing.assert_allclose(np.asarray(v2), np.asarray(rv2), rtol=5e-2, atol=5e-2)

    # 3) bf16 operands with f32 accumulation (v6e/v7x MXU-native path); loose sanity check
    d3, v3, _ = forward(params, image, memory, compute_dtype=jnp.bfloat16)
    jax.block_until_ready((d3, v3))
    for a, b in zip(d3, ref_dists):
        np.testing.assert_allclose(np.asarray(a), np.asarray(b), rtol=1e-1, atol=5e-1)
    np.testing.assert_allclose(np.asarray(v3), np.asarray(ref_value), rtol=1e-1, atol=5e-1)

    print("KERNEL_OK")
</pallas_src>

<mosaic_0001>
module attributes {stable_mosaic.version = 11 : i64} {
  func.func @fused_forward_kernel(%arg0: i32, %arg1: memref<1x202x3xi32, #tpu.memory_space<vmem>>, %arg2: memref<3x256x128xf32, #tpu.memory_space<vmem>>, %arg3: memref<9x128x128xf32, #tpu.memory_space<vmem>>, %arg4: memref<1x128xf32, #tpu.memory_space<vmem>>, %arg5: memref<9x128x128xf32, #tpu.memory_space<vmem>>, %arg6: memref<1x128xf32, #tpu.memory_space<vmem>>, %arg7: memref<182x1xf32, #tpu.memory_space<vmem>>, %arg8: memref<162x1xf32, #tpu.memory_space<vmem>>, %arg9: memref<128x320xf32, #tpu.memory_space<vmem>>, %arg10: memref<1x320xf32, #tpu.memory_space<vmem>>, %arg11: memref<320x128xf32, #tpu.memory_space<vmem>>, %arg12: memref<1x128xf32, #tpu.memory_space<vmem>>, %arg13: memref<128x128xf32, #tpu.memory_space<vmem>>, %arg14: memref<1x128xf32, #tpu.memory_space<vmem>>, %arg15: memref<1x128xf32, #tpu.memory_space<vmem>>, %arg16: memref<1x2x128xf32, #tpu.memory_space<vmem>>, %arg17: memref<202x128xf32, #tpu.memory_space<vmem>>, %arg18: memref<182x128xf32, #tpu.memory_space<vmem>>, %arg19: memref<162x128xf32, #tpu.memory_space<vmem>>, %arg20: memref<2x128xf32, #tpu.memory_space<vmem>>) attributes {dimension_semantics = [#tpu.dimension_semantics<parallel>], iteration_bounds = array<i64: 1>, scalar_prefetch = 0 : i64, scratch_operands = 4 : i64, tpu.core_type = #tpu.core_type<tc>, window_params = [{transform_indices = @transform_0, window_bounds = array<i64: 1, 202, 3>}, {pipeline_mode = #tpu.pipeline_mode<synchronous>, transform_indices = @transform_1, window_bounds = array<i64: 3, 256, 128>}, {pipeline_mode = #tpu.pipeline_mode<synchronous>, transform_indices = @transform_2, window_bounds = array<i64: 9, 128, 128>}, {pipeline_mode = #tpu.pipeline_mode<synchronous>, transform_indices = @transform_3, window_bounds = array<i64: 1, 128>}, {pipeline_mode = #tpu.pipeline_mode<synchronous>, transform_indices = @transform_4, window_bounds = array<i64: 9, 128, 128>}, {pipeline_mode = #tpu.pipeline_mode<synchronous>, transform_indices = @transform_5, window_bounds = array<i64: 1, 128>}, {pipeline_mode = #tpu.pipeline_mode<synchronous>, transform_indices = @transform_6, window_bounds = array<i64: 182, 1>}, {pipeline_mode = #tpu.pipeline_mode<synchronous>, transform_indices = @transform_7, window_bounds = array<i64: 162, 1>}, {pipeline_mode = #tpu.pipeline_mode<synchronous>, transform_indices = @transform_8, window_bounds = array<i64: 128, 320>}, {pipeline_mode = #tpu.pipeline_mode<synchronous>, transform_indices = @transform_9, window_bounds = array<i64: 1, 320>}, {pipeline_mode = #tpu.pipeline_mode<synchronous>, transform_indices = @transform_10, window_bounds = array<i64: 320, 128>}, {pipeline_mode = #tpu.pipeline_mode<synchronous>, transform_indices = @transform_11, window_bounds = array<i64: 1, 128>}, {pipeline_mode = #tpu.pipeline_mode<synchronous>, transform_indices = @transform_12, window_bounds = array<i64: 128, 128>}, {pipeline_mode = #tpu.pipeline_mode<synchronous>, transform_indices = @transform_13, window_bounds = array<i64: 1, 128>}, {pipeline_mode = #tpu.pipeline_mode<synchronous>, transform_indices = @transform_14, window_bounds = array<i64: 1, 128>}, {transform_indices = @transform_15, window_bounds = array<i64: 1, 2, 128>}]} {
    %c0 = arith.constant 0 : index
    %c0_0 = arith.constant 0 : index
    %c0_1 = arith.constant 0 : index
    %0 = vector.load %arg1[%c0, %c0_0, %c0_1] : memref<1x202x3xi32, #tpu.memory_space<vmem>>, vector<1x202x3xi32>
    %1 = vector.shape_cast %0 : vector<1x202x3xi32> to vector<202x3xi32>
    %2 = tpu.iota {dimensions = array<i32: 1>} : vector<202x256xi32>
    %3 = vector.extract_strided_slice %1 {offsets = [0, 0], sizes = [202, 1], strides = [1, 1]} : vector<202x3xi32> to vector<202x1xi32>
    %4 = vector.broadcast %3 : vector<202x1xi32> to vector<202x256xi32>
    %5 = arith.cmpi eq, %2, %4 : vector<202x256xi32>
    %6 = arith.extui %5 : vector<202x256xi1> to vector<202x256xi32>
    %7 = arith.sitofp %6 : vector<202x256xi32> to vector<202x256xf32>
    %c0_2 = arith.constant 0 : index
    %c0_3 = arith.constant 0 : index
    %c0_4 = arith.constant 0 : index
    %8 = vector.load %arg2[%c0_2, %c0_3, %c0_4] : memref<3x256x128xf32, #tpu.memory_space<vmem>>, vector<1x256x128xf32>
    %9 = vector.shape_cast %8 : vector<1x256x128xf32> to vector<256x128xf32>
    %cst = arith.constant dense<0.000000e+00> : vector<202x128xf32>
    %10 = tpu.matmul %7, %9, %cst {dimension_numbers = #tpu.dot_dimension_numbers<[1], [0], [0], [1], [0, 0, 1, 1], [], []>} : vector<202x256xf32>, vector<256x128xf32>, vector<202x128xf32> -> vector<202x128xf32>
    %11 = vector.extract_strided_slice %1 {offsets = [0, 1], sizes = [202, 1], strides = [1, 1]} : vector<202x3xi32> to vector<202x1xi32>
    %12 = vector.broadcast %11 : vector<202x1xi32> to vector<202x256xi32>
    %13 = arith.cmpi eq, %2, %12 : vector<202x256xi32>
    %14 = arith.extui %13 : vector<202x256xi1> to vector<202x256xi32>
    %15 = arith.sitofp %14 : vector<202x256xi32> to vector<202x256xf32>
    %c1 = arith.constant 1 : index
    %c0_5 = arith.constant 0 : index
    %c0_6 = arith.constant 0 : index
    %16 = vector.load %arg2[%c1, %c0_5, %c0_6] : memref<3x256x128xf32, #tpu.memory_space<vmem>>, vector<1x256x128xf32>
    %17 = vector.shape_cast %16 : vector<1x256x128xf32> to vector<256x128xf32>
    %cst_7 = arith.constant dense<0.000000e+00> : vector<202x128xf32>
    %18 = tpu.matmul %15, %17, %cst_7 {dimension_numbers = #tpu.dot_dimension_numbers<[1], [0], [0], [1], [0, 0, 1, 1], [], []>} : vector<202x256xf32>, vector<256x128xf32>, vector<202x128xf32> -> vector<202x128xf32>
    %19 = arith.addf %10, %18 : vector<202x128xf32>
    %20 = vector.extract_strided_slice %1 {offsets = [0, 2], sizes = [202, 1], strides = [1, 1]} : vector<202x3xi32> to vector<202x1xi32>
    %21 = vector.broadcast %20 : vector<202x1xi32> to vector<202x256xi32>
    %22 = arith.cmpi eq, %2, %21 : vector<202x256xi32>
    %23 = arith.extui %22 : vector<202x256xi1> to vector<202x256xi32>
    %24 = arith.sitofp %23 : vector<202x256xi32> to vector<202x256xf32>
    %c2 = arith.constant 2 : index
    %c0_8 = arith.constant 0 : index
    %c0_9 = arith.constant 0 : index
    %25 = vector.load %arg2[%c2, %c0_8, %c0_9] : memref<3x256x128xf32, #tpu.memory_space<vmem>>, vector<1x256x128xf32>
    %26 = vector.shape_cast %25 : vector<1x256x128xf32> to vector<256x128xf32>
    %cst_10 = arith.constant dense<0.000000e+00> : vector<202x128xf32>
    %27 = tpu.matmul %24, %26, %cst_10 {dimension_numbers = #tpu.dot_dimension_numbers<[1], [0], [0], [1], [0, 0, 1, 1], [], []>} : vector<202x256xf32>, vector<256x128xf32>, vector<202x128xf32> -> vector<202x128xf32>
    %28 = arith.addf %19, %27 : vector<202x128xf32>
    %c0_11 = arith.constant 0 : index
    %c0_12 = arith.constant 0 : index
    %29 = vector.load %arg17[%c0_11, %c0_12] : memref<202x128xf32, #tpu.memory_space<vmem>>, vector<202x128xf32>
    tpu.vector_store %arg17[%c0_11, %c0_12], %28 {strides = array<i32>} : memref<202x128xf32, #tpu.memory_space<vmem>>, vector<202x128xf32>,
    %c0_13 = arith.constant 0 : index
    %c0_14 = arith.constant 0 : index
    %30 = vector.load %arg17[%c0_13, %c0_14] : memref<202x128xf32, #tpu.memory_space<vmem>>, vector<182x128xf32>
    %c0_15 = arith.constant 0 : index
    %c0_16 = arith.constant 0 : index
    %c0_17 = arith.constant 0 : index
    %31 = vector.load %arg3[%c0_15, %c0_16, %c0_17] : memref<9x128x128xf32, #tpu.memory_space<vmem>>, vector<1x128x128xf32>
    %32 = vector.shape_cast %31 : vector<1x128x128xf32> to vector<128x128xf32>
    %cst_18 = arith.constant dense<0.000000e+00> : vector<182x128xf32>
    %33 = tpu.matmul %30, %32, %cst_18 {dimension_numbers = #tpu.dot_dimension_numbers<[1], [0], [0], [1], [0, 0, 1, 1], [], []>} : vector<182x128xf32>, vector<128x128xf32>, vector<182x128xf32> -> vector<182x128xf32>
    %c1_19 = arith.constant 1 : index
    %c0_20 = arith.constant 0 : index
    %34 = vector.load %arg17[%c1_19, %c0_20] : memref<202x128xf32, #tpu.memory_space<vmem>>, vector<182x128xf32>
    %c1_21 = arith.constant 1 : index
    %c0_22 = arith.constant 0 : index
    %c0_23 = arith.constant 0 : index
    %35 = vector.load %arg3[%c1_21, %c0_22, %c0_23] : memref<9x128x128xf32, #tpu.memory_space<vmem>>, vector<1x128x128xf32>
    %36 = vector.shape_cast %35 : vector<1x128x128xf32> to vector<128x128xf32>
    %cst_24 = arith.constant dense<0.000000e+00> : vector<182x128xf32>
    %37 = tpu.matmul %34, %36, %cst_24 {dimension_numbers = #tpu.dot_dimension_numbers<[1], [0], [0], [1], [0, 0, 1, 1], [], []>} : vector<182x128xf32>, vector<128x128xf32>, vector<182x128xf32> -> vector<182x128xf32>
    %38 = arith.addf %33, %37 : vector<182x128xf32>
    %c2_25 = arith.constant 2 : index
    %c0_26 = arith.constant 0 : index
    %39 = vector.load %arg17[%c2_25, %c0_26] : memref<202x128xf32, #tpu.memory_space<vmem>>, vector<182x128xf32>
    %c2_27 = arith.constant 2 : index
    %c0_28 = arith.constant 0 : index
    %c0_29 = arith.constant 0 : index
    %40 = vector.load %arg3[%c2_27, %c0_28, %c0_29] : memref<9x128x128xf32, #tpu.memory_space<vmem>>, vector<1x128x128xf32>
    %41 = vector.shape_cast %40 : vector<1x128x128xf32> to vector<128x128xf32>
    %cst_30 = arith.constant dense<0.000000e+00> : vector<182x128xf32>
    %42 = tpu.matmul %39, %41, %cst_30 {dimension_numbers = #tpu.dot_dimension_numbers<[1], [0], [0], [1], [0, 0, 1, 1], [], []>} : vector<182x128xf32>, vector<128x128xf32>, vector<182x128xf32> -> vector<182x128xf32>
    %43 = arith.addf %38, %42 : vector<182x128xf32>
    %c9 = arith.constant 9 : index
    %c0_31 = arith.constant 0 : index
    %44 = vector.load %arg17[%c9, %c0_31] : memref<202x128xf32, #tpu.memory_space<vmem>>, vector<182x128xf32>
    %c3 = arith.constant 3 : index
    %c0_32 = arith.constant 0 : index
    %c0_33 = arith.constant 0 : index
    %45 = vector.load %arg3[%c3, %c0_32, %c0_33] : memref<9x128x128xf32, #tpu.memory_space<vmem>>, vector<1x128x128xf32>
    %46 = vector.shape_cast %45 : vector<1x128x128xf32> to vector<128x128xf32>
    %cst_34 = arith.constant dense<0.000000e+00> : vector<182x128xf32>
    %47 = tpu.matmul %44, %46, %cst_34 {dimension_numbers = #tpu.dot_dimension_numbers<[1], [0], [0], [1], [0, 0, 1, 1], [], []>} : vector<182x128xf32>, vector<128x128xf32>, vector<182x128xf32> -> vector<182x128xf32>
    %48 = arith.addf %43, %47 : vector<182x128xf32>
    %c10 = arith.constant 10 : index
    %c0_35 = arith.constant 0 : index
    %49 = vector.load %arg17[%c10, %c0_35] : memref<202x128xf32, #tpu.memory_space<vmem>>, vector<182x128xf32>
    %c4 = arith.constant 4 : index
    %c0_36 = arith.constant 0 : index
    %c0_37 = arith.constant 0 : index
    %50 = vector.load %arg3[%c4, %c0_36, %c0_37] : memref<9x128x128xf32, #tpu.memory_space<vmem>>, vector<1x128x128xf32>
    %51 = vector.shape_cast %50 : vector<1x128x128xf32> to vector<128x128xf32>
    %cst_38 = arith.constant dense<0.000000e+00> : vector<182x128xf32>
    %52 = tpu.matmul %49, %51, %cst_38 {dimension_numbers = #tpu.dot_dimension_numbers<[1], [0], [0], [1], [0, 0, 1, 1], [], []>} : vector<182x128xf32>, vector<128x128xf32>, vector<182x128xf32> -> vector<182x128xf32>
    %53 = arith.addf %48, %52 : vector<182x128xf32>
    %c11 = arith.constant 11 : index
    %c0_39 = arith.constant 0 : index
    %54 = vector.load %arg17[%c11, %c0_39] : memref<202x128xf32, #tpu.memory_space<vmem>>, vector<182x128xf32>
    %c5 = arith.constant 5 : index
    %c0_40 = arith.constant 0 : index
    %c0_41 = arith.constant 0 : index
    %55 = vector.load %arg3[%c5, %c0_40, %c0_41] : memref<9x128x128xf32, #tpu.memory_space<vmem>>, vector<1x128x128xf32>
    %56 = vector.shape_cast %55 : vector<1x128x128xf32> to vector<128x128xf32>
    %cst_42 = arith.constant dense<0.000000e+00> : vector<182x128xf32>
    %57 = tpu.matmul %54, %56, %cst_42 {dimension_numbers = #tpu.dot_dimension_numbers<[1], [0], [0], [1], [0, 0, 1, 1], [], []>} : vector<182x128xf32>, vector<128x128xf32>, vector<182x128xf32> -> vector<182x128xf32>
    %58 = arith.addf %53, %57 : vector<182x128xf32>
    %c18 = arith.constant 18 : index
    %c0_43 = arith.constant 0 : index
    %59 = vector.load %arg17[%c18, %c0_43] : memref<202x128xf32, #tpu.memory_space<vmem>>, vector<182x128xf32>
    %c6 = arith.constant 6 : index
    %c0_44 = arith.constant 0 : index
    %c0_45 = arith.constant 0 : index
    %60 = vector.load %arg3[%c6, %c0_44, %c0_45] : memref<9x128x128xf32, #tpu.memory_space<vmem>>, vector<1x128x128xf32>
    %61 = vector.shape_cast %60 : vector<1x128x128xf32> to vector<128x128xf32>
    %cst_46 = arith.constant dense<0.000000e+00> : vector<182x128xf32>
    %62 = tpu.matmul %59, %61, %cst_46 {dimension_numbers = #tpu.dot_dimension_numbers<[1], [0], [0], [1], [0, 0, 1, 1], [], []>} : vector<182x128xf32>, vector<128x128xf32>, vector<182x128xf32> -> vector<182x128xf32>
    %63 = arith.addf %58, %62 : vector<182x128xf32>
    %c19 = arith.constant 19 : index
    %c0_47 = arith.constant 0 : index
    %64 = vector.load %arg17[%c19, %c0_47] : memref<202x128xf32, #tpu.memory_space<vmem>>, vector<182x128xf32>
    %c7 = arith.constant 7 : index
    %c0_48 = arith.constant 0 : index
    %c0_49 = arith.constant 0 : index
    %65 = vector.load %arg3[%c7, %c0_48, %c0_49] : memref<9x128x128xf32, #tpu.memory_space<vmem>>, vector<1x128x128xf32>
    %66 = vector.shape_cast %65 : vector<1x128x128xf32> to vector<128x128xf32>
    %cst_50 = arith.constant dense<0.000000e+00> : vector<182x128xf32>
    %67 = tpu.matmul %64, %66, %cst_50 {dimension_numbers = #tpu.dot_dimension_numbers<[1], [0], [0], [1], [0, 0, 1, 1], [], []>} : vector<182x128xf32>, vector<128x128xf32>, vector<182x128xf32> -> vector<182x128xf32>
    %68 = arith.addf %63, %67 : vector<182x128xf32>
    %c20 = arith.constant 20 : index
    %c0_51 = arith.constant 0 : index
    %69 = vector.load %arg17[%c20, %c0_51] : memref<202x128xf32, #tpu.memory_space<vmem>>, vector<182x128xf32>
    %c8 = arith.constant 8 : index
    %c0_52 = arith.constant 0 : index
    %c0_53 = arith.constant 0 : index
    %70 = vector.load %arg3[%c8, %c0_52, %c0_53] : memref<9x128x128xf32, #tpu.memory_space<vmem>>, vector<1x128x128xf32>
    %71 = vector.shape_cast %70 : vector<1x128x128xf32> to vector<128x128xf32>
    %cst_54 = arith.constant dense<0.000000e+00> : vector<182x128xf32>
    %72 = tpu.matmul %69, %71, %cst_54 {dimension_numbers = #tpu.dot_dimension_numbers<[1], [0], [0], [1], [0, 0, 1, 1], [], []>} : vector<182x128xf32>, vector<128x128xf32>, vector<182x128xf32> -> vector<182x128xf32>
    %73 = arith.addf %68, %72 : vector<182x128xf32>
    %c0_55 = arith.constant 0 : index
    %c0_56 = arith.constant 0 : index
    %74 = vector.load %arg4[%c0_55, %c0_56] : memref<1x128xf32, #tpu.memory_space<vmem>>, vector<1x128xf32>
    %75 = vector.broadcast %74 : vector<1x128xf32> to vector<182x128xf32>
    %76 = arith.addf %73, %75 : vector<182x128xf32>
    %cst_57 = arith.constant 0.000000e+00 : f32
    %77 = vector.broadcast %cst_57 : f32 to vector<182x128xf32>
    %78 = arith.maximumf %76, %77 : vector<182x128xf32>
    %c0_58 = arith.constant 0 : index
    %c0_59 = arith.constant 0 : index
    %79 = vector.load %arg7[%c0_58, %c0_59] : memref<182x1xf32, #tpu.memory_space<vmem>>, vector<182x1xf32>
    %80 = vector.broadcast %79 : vector<182x1xf32> to vector<182x128xf32>
    %81 = arith.mulf %78, %80 : vector<182x128xf32>
    %c0_60 = arith.constant 0 : index
    %c0_61 = arith.constant 0 : index
    %82 = vector.load %arg18[%c0_60, %c0_61] : memref<182x128xf32, #tpu.memory_space<vmem>>, vector<182x128xf32>
    tpu.vector_store %arg18[%c0_60, %c0_61], %81 {strides = array<i32>} : memref<182x128xf32, #tpu.memory_space<vmem>>, vector<182x128xf32>,
    %c0_62 = arith.constant 0 : index
    %c0_63 = arith.constant 0 : index
    %83 = vector.load %arg18[%c0_62, %c0_63] : memref<182x128xf32, #tpu.memory_space<vmem>>, vector<162x128xf32>
    %c0_64 = arith.constant 0 : index
    %c0_65 = arith.constant 0 : index
    %c0_66 = arith.constant 0 : index
    %84 = vector.load %arg5[%c0_64, %c0_65, %c0_66] : memref<9x128x128xf32, #tpu.memory_space<vmem>>, vector<1x128x128xf32>
    %85 = vector.shape_cast %84 : vector<1x128x128xf32> to vector<128x128xf32>
    %cst_67 = arith.constant dense<0.000000e+00> : vector<162x128xf32>
    %86 = tpu.matmul %83, %85, %cst_67 {dimension_numbers = #tpu.dot_dimension_numbers<[1], [0], [0], [1], [0, 0, 1, 1], [], []>} : vector<162x128xf32>, vector<128x128xf32>, vector<162x128xf32> -> vector<162x128xf32>
    %c1_68 = arith.constant 1 : index
    %c0_69 = arith.constant 0 : index
    %87 = vector.load %arg18[%c1_68, %c0_69] : memref<182x128xf32, #tpu.memory_space<vmem>>, vector<162x128xf32>
    %c1_70 = arith.constant 1 : index
    %c0_71 = arith.constant 0 : index
    %c0_72 = arith.constant 0 : index
    %88 = vector.load %arg5[%c1_70, %c0_71, %c0_72] : memref<9x128x128xf32, #tpu.memory_space<vmem>>, vector<1x128x128xf32>
    %89 = vector.shape_cast %88 : vector<1x128x128xf32> to vector<128x128xf32>
    %cst_73 = arith.constant dense<0.000000e+00> : vector<162x128xf32>
    %90 = tpu.matmul %87, %89, %cst_73 {dimension_numbers = #tpu.dot_dimension_numbers<[1], [0], [0], [1], [0, 0, 1, 1], [], []>} : vector<162x128xf32>, vector<128x128xf32>, vector<162x128xf32> -> vector<162x128xf32>
    %91 = arith.addf %86, %90 : vector<162x128xf32>
    %c2_74 = arith.constant 2 : index
    %c0_75 = arith.constant 0 : index
    %92 = vector.load %arg18[%c2_74, %c0_75] : memref<182x128xf32, #tpu.memory_space<vmem>>, vector<162x128xf32>
    %c2_76 = arith.constant 2 : index
    %c0_77 = arith.constant 0 : index
    %c0_78 = arith.constant 0 : index
    %93 = vector.load %arg5[%c2_76, %c0_77, %c0_78] : memref<9x128x128xf32, #tpu.memory_space<vmem>>, vector<1x128x128xf32>
    %94 = vector.shape_cast %93 : vector<1x128x128xf32> to vector<128x128xf32>
    %cst_79 = arith.constant dense<0.000000e+00> : vector<162x128xf32>
    %95 = tpu.matmul %92, %94, %cst_79 {dimension_numbers = #tpu.dot_dimension_numbers<[1], [0], [0], [1], [0, 0, 1, 1], [], []>} : vector<162x128xf32>, vector<128x128xf32>, vector<162x128xf32> -> vector<162x128xf32>
    %96 = arith.addf %91, %95 : vector<162x128xf32>
    %c9_80 = arith.constant 9 : index
    %c0_81 = arith.constant 0 : index
    %97 = vector.load %arg18[%c9_80, %c0_81] : memref<182x128xf32, #tpu.memory_space<vmem>>, vector<162x128xf32>
    %c3_82 = arith.constant 3 : index
    %c0_83 = arith.constant 0 : index
    %c0_84 = arith.constant 0 : index
    %98 = vector.load %arg5[%c3_82, %c0_83, %c0_84] : memref<9x128x128xf32, #tpu.memory_space<vmem>>, vector<1x128x128xf32>
    %99 = vector.shape_cast %98 : vector<1x128x128xf32> to vector<128x128xf32>
    %cst_85 = arith.constant dense<0.000000e+00> : vector<162x128xf32>
    %100 = tpu.matmul %97, %99, %cst_85 {dimension_numbers = #tpu.dot_dimension_numbers<[1], [0], [0], [1], [0, 0, 1, 1], [], []>} : vector<162x128xf32>, vector<128x128xf32>, vector<162x128xf32> -> vector<162x128xf32>
    %101 = arith.addf %96, %100 : vector<162x128xf32>
    %c10_86 = arith.constant 10 : index
    %c0_87 = arith.constant 0 : index
    %102 = vector.load %arg18[%c10_86, %c0_87] : memref<182x128xf32, #tpu.memory_space<vmem>>, vector<162x128xf32>
    %c4_88 = arith.constant 4 : index
    %c0_89 = arith.constant 0 : index
    %c0_90 = arith.constant 0 : index
    %103 = vector.load %arg5[%c4_88, %c0_89, %c0_90] : memref<9x128x128xf32, #tpu.memory_space<vmem>>, vector<1x128x128xf32>
    %104 = vector.shape_cast %103 : vector<1x128x128xf32> to vector<128x128xf32>
    %cst_91 = arith.constant dense<0.000000e+00> : vector<162x128xf32>
    %105 = tpu.matmul %102, %104, %cst_91 {dimension_numbers = #tpu.dot_dimension_numbers<[1], [0], [0], [1], [0, 0, 1, 1], [], []>} : vector<162x128xf32>, vector<128x128xf32>, vector<162x128xf32> -> vector<162x128xf32>
    %106 = arith.addf %101, %105 : vector<162x128xf32>
    %c11_92 = arith.constant 11 : index
    %c0_93 = arith.constant 0 : index
    %107 = vector.load %arg18[%c11_92, %c0_93] : memref<182x128xf32, #tpu.memory_space<vmem>>, vector<162x128xf32>
    %c5_94 = arith.constant 5 : index
    %c0_95 = arith.constant 0 : index
    %c0_96 = arith.constant 0 : index
    %108 = vector.load %arg5[%c5_94, %c0_95, %c0_96] : memref<9x128x128xf32, #tpu.memory_space<vmem>>, vector<1x128x128xf32>
    %109 = vector.shape_cast %108 : vector<1x128x128xf32> to vector<128x128xf32>
    %cst_97 = arith.constant dense<0.000000e+00> : vector<162x128xf32>
    %110 = tpu.matmul %107, %109, %cst_97 {dimension_numbers = #tpu.dot_dimension_numbers<[1], [0], [0], [1], [0, 0, 1, 1], [], []>} : vector<162x128xf32>, vector<128x128xf32>, vector<162x128xf32> -> vector<162x128xf32>
    %111 = arith.addf %106, %110 : vector<162x128xf32>
    %c18_98 = arith.constant 18 : index
    %c0_99 = arith.constant 0 : index
    %112 = vector.load %arg18[%c18_98, %c0_99] : memref<182x128xf32, #tpu.memory_space<vmem>>, vector<162x128xf32>
    %c6_100 = arith.constant 6 : index
    %c0_101 = arith.constant 0 : index
    %c0_102 = arith.constant 0 : index
    %113 = vector.load %arg5[%c6_100, %c0_101, %c0_102] : memref<9x128x128xf32, #tpu.memory_space<vmem>>, vector<1x128x128xf32>
    %114 = vector.shape_cast %113 : vector<1x128x128xf32> to vector<128x128xf32>
    %cst_103 = arith.constant dense<0.000000e+00> : vector<162x128xf32>
    %115 = tpu.matmul %112, %114, %cst_103 {dimension_numbers = #tpu.dot_dimension_numbers<[1], [0], [0], [1], [0, 0, 1, 1], [], []>} : vector<162x128xf32>, vector<128x128xf32>, vector<162x128xf32> -> vector<162x128xf32>
    %116 = arith.addf %111, %115 : vector<162x128xf32>
    %c19_104 = arith.constant 19 : index
    %c0_105 = arith.constant 0 : index
    %117 = vector.load %arg18[%c19_104, %c0_105] : memref<182x128xf32, #tpu.memory_space<vmem>>, vector<162x128xf32>
    %c7_106 = arith.constant 7 : index
    %c0_107 = arith.constant 0 : index
    %c0_108 = arith.constant 0 : index
    %118 = vector.load %arg5[%c7_106, %c0_107, %c0_108] : memref<9x128x128xf32, #tpu.memory_space<vmem>>, vector<1x128x128xf32>
    %119 = vector.shape_cast %118 : vector<1x128x128xf32> to vector<128x128xf32>
    %cst_109 = arith.constant dense<0.000000e+00> : vector<162x128xf32>
    %120 = tpu.matmul %117, %119, %cst_109 {dimension_numbers = #tpu.dot_dimension_numbers<[1], [0], [0], [1], [0, 0, 1, 1], [], []>} : vector<162x128xf32>, vector<128x128xf32>, vector<162x128xf32> -> vector<162x128xf32>
    %121 = arith.addf %116, %120 : vector<162x128xf32>
    %c20_110 = arith.constant 20 : index
    %c0_111 = arith.constant 0 : index
    %122 = vector.load %arg18[%c20_110, %c0_111] : memref<182x128xf32, #tpu.memory_space<vmem>>, vector<162x128xf32>
    %c8_112 = arith.constant 8 : index
    %c0_113 = arith.constant 0 : index
    %c0_114 = arith.constant 0 : index
    %123 = vector.load %arg5[%c8_112, %c0_113, %c0_114] : memref<9x128x128xf32, #tpu.memory_space<vmem>>, vector<1x128x128xf32>
    %124 = vector.shape_cast %123 : vector<1x128x128xf32> to vector<128x128xf32>
    %cst_115 = arith.constant dense<0.000000e+00> : vector<162x128xf32>
    %125 = tpu.matmul %122, %124, %cst_115 {dimension_numbers = #tpu.dot_dimension_numbers<[1], [0], [0], [1], [0, 0, 1, 1], [], []>} : vector<162x128xf32>, vector<128x128xf32>, vector<162x128xf32> -> vector<162x128xf32>
    %126 = arith.addf %121, %125 : vector<162x128xf32>
    %c0_116 = arith.constant 0 : index
    %c0_117 = arith.constant 0 : index
    %127 = vector.load %arg6[%c0_116, %c0_117] : memref<1x128xf32, #tpu.memory_space<vmem>>, vector<1x128xf32>
    %128 = vector.broadcast %127 : vector<1x128xf32> to vector<162x128xf32>
    %129 = arith.addf %126, %128 : vector<162x128xf32>
    %cst_118 = arith.constant 0.000000e+00 : f32
    %130 = vector.broadcast %cst_118 : f32 to vector<162x128xf32>
    %131 = arith.maximumf %129, %130 : vector<162x128xf32>
    %c0_119 = arith.constant 0 : index
    %c0_120 = arith.constant 0 : index
    %132 = vector.load %arg8[%c0_119, %c0_120] : memref<162x1xf32, #tpu.memory_space<vmem>>, vector<162x1xf32>
    %133 = vector.broadcast %132 : vector<162x1xf32> to vector<162x128xf32>
    %134 = arith.mulf %131, %133 : vector<162x128xf32>
    %c0_121 = arith.constant 0 : index
    %c0_122 = arith.constant 0 : index
    %135 = vector.load %arg19[%c0_121, %c0_122] : memref<162x128xf32, #tpu.memory_space<vmem>>, vector<162x128xf32>
    tpu.vector_store %arg19[%c0_121, %c0_122], %134 {strides = array<i32>} : memref<162x128xf32, #tpu.memory_space<vmem>>, vector<162x128xf32>,
    %c0_123 = arith.constant 0 : index
    %c0_124 = arith.constant 0 : index
    %136 = vector.load %arg19[%c0_123, %c0_124] : memref<162x128xf32, #tpu.memory_space<vmem>>, vector<81x128xf32>
    %cst_125 = arith.constant dense<0xFF800000> : vector<128xf32>
    %137 = vector.multi_reduction <maximumf>, %136, %cst_125 [0] : vector<81x128xf32> to vector<128xf32>
    %138 = vector.shape_cast %137 : vector<128xf32> to vector<1x128xf32>
    %c0_126 = arith.constant 0 : index
    %c0_127 = arith.constant 0 : index
    %139 = vector.load %arg20[%c0_126, %c0_127] : memref<2x128xf32, #tpu.memory_space<vmem>>, vector<1x128xf32>
    tpu.vector_store %arg20[%c0_126, %c0_127], %138 {strides = array<i32>} : memref<2x128xf32, #tpu.memory_space<vmem>>, vector<1x128xf32>,
    %c81 = arith.constant 81 : index
    %c0_128 = arith.constant 0 : index
    %140 = vector.load %arg19[%c81, %c0_128] : memref<162x128xf32, #tpu.memory_space<vmem>>, vector<81x128xf32>
    %cst_129 = arith.constant dense<0xFF800000> : vector<128xf32>
    %141 = vector.multi_reduction <maximumf>, %140, %cst_129 [0] : vector<81x128xf32> to vector<128xf32>
    %142 = vector.shape_cast %141 : vector<128xf32> to vector<1x128xf32>
    %c1_130 = arith.constant 1 : index
    %c0_131 = arith.constant 0 : index
    %143 = vector.load %arg20[%c1_130, %c0_131] : memref<2x128xf32, #tpu.memory_space<vmem>>, vector<1x128xf32>
    tpu.vector_store %arg20[%c1_130, %c0_131], %142 {strides = array<i32>} : memref<2x128xf32, #tpu.memory_space<vmem>>, vector<1x128xf32>,
    %c0_132 = arith.constant 0 : index
    %c0_133 = arith.constant 0 : index
    %144 = vector.load %arg20[%c0_132, %c0_133] : memref<2x128xf32, #tpu.memory_space<vmem>>, vector<2x128xf32>
    %c0_134 = arith.constant 0 : index
    %c0_135 = arith.constant 0 : index
    %145 = vector.load %arg9[%c0_134, %c0_135] : memref<128x320xf32, #tpu.memory_space<vmem>>, vector<128x320xf32>
    %cst_136 = arith.constant dense<0.000000e+00> : vector<2x320xf32>
    %146 = tpu.matmul %144, %145, %cst_136 {dimension_numbers = #tpu.dot_dimension_numbers<[1], [0], [0], [1], [0, 0, 1, 1], [], []>} : vector<2x128xf32>, vector<128x320xf32>, vector<2x320xf32> -> vector<2x320xf32>
    %c0_137 = arith.constant 0 : index
    %c0_138 = arith.constant 0 : index
    %147 = vector.load %arg10[%c0_137, %c0_138] : memref<1x320xf32, #tpu.memory_space<vmem>>, vector<1x320xf32>
    %148 = vector.broadcast %147 : vector<1x320xf32> to vector<2x320xf32>
    %149 = arith.addf %146, %148 : vector<2x320xf32>
    %150 = math.tanh %149 : vector<2x320xf32>
    %c0_139 = arith.constant 0 : index
    %c0_140 = arith.constant 0 : index
    %151 = vector.load %arg11[%c0_139, %c0_140] : memref<320x128xf32, #tpu.memory_space<vmem>>, vector<320x128xf32>
    %cst_141 = arith.constant dense<0.000000e+00> : vector<2x128xf32>
    %152 = tpu.matmul %150, %151, %cst_141 {dimension_numbers = #tpu.dot_dimension_numbers<[1], [0], [0], [1], [0, 0, 1, 1], [], []>} : vector<2x320xf32>, vector<320x128xf32>, vector<2x128xf32> -> vector<2x128xf32>
    %c0_142 = arith.constant 0 : index
    %c0_143 = arith.constant 0 : index
    %153 = vector.load %arg12[%c0_142, %c0_143] : memref<1x128xf32, #tpu.memory_space<vmem>>, vector<1x128xf32>
    %154 = vector.broadcast %153 : vector<1x128xf32> to vector<2x128xf32>
    %155 = arith.addf %152, %154 : vector<2x128xf32>
    %c0_144 = arith.constant 0 : index
    %c0_145 = arith.constant 0 : index
    %156 = vector.load %arg15[%c0_144, %c0_145] : memref<1x128xf32, #tpu.memory_space<vmem>>, vector<1x128xf32>
    %157 = vector.broadcast %156 : vector<1x128xf32> to vector<2x128xf32>
    %158 = arith.addf %155, %157 : vector<2x128xf32>
    %cst_146 = arith.constant dense<0xFF800000> : vector<2xf32>
    %159 = vector.multi_reduction <maximumf>, %158, %cst_146 [1] : vector<2x128xf32> to vector<2xf32>
    %160 = vector.shape_cast %159 : vector<2xf32> to vector<2x1xf32>
    %161 = vector.broadcast %160 : vector<2x1xf32> to vector<2x128xf32>
    %162 = arith.subf %158, %161 : vector<2x128xf32>
    %163 = math.exp %162 : vector<2x128xf32>
    %c0_147 = arith.constant 0 : index
    %c0_148 = arith.constant 0 : index
    %164 = vector.load %arg13[%c0_147, %c0_148] : memref<128x128xf32, #tpu.memory_space<vmem>>, vector<128x128xf32>
    %cst_149 = arith.constant dense<0.000000e+00> : vector<2x128xf32>
    %165 = tpu.matmul %163, %164, %cst_149 {dimension_numbers = #tpu.dot_dimension_numbers<[1], [0], [0], [1], [0, 0, 1, 1], [], []>} : vector<2x128xf32>, vector<128x128xf32>, vector<2x128xf32> -> vector<2x128xf32>
    %c0_150 = arith.constant 0 : index
    %c0_151 = arith.constant 0 : index
    %166 = vector.load %arg14[%c0_150, %c0_151] : memref<1x128xf32, #tpu.memory_space<vmem>>, vector<1x128xf32>
    %cst_152 = arith.constant 1.000000e+00 : f32
    %167 = vector.broadcast %cst_152 : f32 to vector<1x128xf32>
    %168 = arith.subf %167, %166 : vector<1x128xf32>
    %169 = vector.broadcast %168 : vector<1x128xf32> to vector<2x128xf32>
    %170 = arith.addf %165, %169 : vector<2x128xf32>
    %cst_153 = arith.constant 5.000000e-01 : f32
    %171 = vector.broadcast %cst_153 : f32 to vector<1x128xf32>
    %172 = arith.cmpf ogt, %166, %171 : vector<1x128xf32>
    %173 = vector.broadcast %160 : vector<2x1xf32> to vector<2x128xf32>
    %174 = arith.subf %155, %173 : vector<2x128xf32>
    %175 = math.log %170 : vector<2x128xf32>
    %176 = arith.subf %174, %175 : vector<2x128xf32>
    %177 = vector.shape_cast %172 : vector<1x128xi1> to vector<1x128xi1>
    %178 = vector.broadcast %177 : vector<1x128xi1> to vector<2x128xi1>
    %179 = arith.select %178, %176, %155 : vector<2x128xi1>, vector<2x128xf32>
    %c0_154 = arith.constant 0 : index
    %c0_155 = arith.constant 0 : index
    %c0_156 = arith.constant 0 : index
    %180 = vector.load %arg16[%c0_154, %c0_155, %c0_156] : memref<1x2x128xf32, #tpu.memory_space<vmem>>, vector<1x2x128xf32>
    %181 = vector.shape_cast %180 : vector<1x2x128xf32> to vector<2x128xf32>
    %182 = vector.shape_cast %179 : vector<2x128xf32> to vector<1x2x128xf32>
    tpu.vector_store %arg16[%c0_154, %c0_155, %c0_156], %182 {strides = array<i32>} : memref<1x2x128xf32, #tpu.memory_space<vmem>>, vector<1x2x128xf32>,
    return
  }
  func.func @transform_0(%arg0: i32) -> (i32, i32, i32) {
    %c0_i32 = arith.constant 0 : i32
    %c0_i32_0 = arith.constant 0 : i32
    %c0_i32_1 = arith.constant 0 : i32
    return %arg0, %c0_i32, %c0_i32_0 : i32, i32, i32
  }
  func.func @transform_1(%arg0: i32) -> (i32, i32, i32) {
    %c0_i32 = arith.constant 0 : i32
    %c0_i32_0 = arith.constant 0 : i32
    %c0_i32_1 = arith.constant 0 : i32
    %c0_i32_2 = arith.constant 0 : i32
    return %c0_i32, %c0_i32_0, %c0_i32_1 : i32, i32, i32
  }
  func.func @transform_2(%arg0: i32) -> (i32, i32, i32) {
    %c0_i32 = arith.constant 0 : i32
    %c0_i32_0 = arith.constant 0 : i32
    %c0_i32_1 = arith.constant 0 : i32
    %c0_i32_2 = arith.constant 0 : i32
    return %c0_i32, %c0_i32_0, %c0_i32_1 : i32, i32, i32
  }
  func.func @transform_3(%arg0: i32) -> (i32, i32) {
    %c0_i32 = arith.constant 0 : i32
    %c0_i32_0 = arith.constant 0 : i32
    %c0_i32_1 = arith.constant 0 : i32
    return %c0_i32, %c0_i32_0 : i32, i32
  }
  func.func @transform_4(%arg0: i32) -> (i32, i32, i32) {
    %c0_i32 = arith.constant 0 : i32
    %c0_i32_0 = arith.constant 0 : i32
    %c0_i32_1 = arith.constant 0 : i32
    %c0_i32_2 = arith.constant 0 : i32
    return %c0_i32, %c0_i32_0, %c0_i32_1 : i32, i32, i32
  }
  func.func @transform_5(%arg0: i32) -> (i32, i32) {
    %c0_i32 = arith.constant 0 : i32
    %c0_i32_0 = arith.constant 0 : i32
    %c0_i32_1 = arith.constant 0 : i32
    return %c0_i32, %c0_i32_0 : i32, i32
  }
  func.func @transform_6(%arg0: i32) -> (i32, i32) {
    %c0_i32 = arith.constant 0 : i32
    %c0_i32_0 = arith.constant 0 : i32
    %c0_i32_1 = arith.constant 0 : i32
    return %c0_i32, %c0_i32_0 : i32, i32
  }
  func.func @transform_7(%arg0: i32) -> (i32, i32) {
    %c0_i32 = arith.constant 0 : i32
    %c0_i32_0 = arith.constant 0 : i32
    %c0_i32_1 = arith.constant 0 : i32
    return %c0_i32, %c0_i32_0 : i32, i32
  }
  func.func @transform_8(%arg0: i32) -> (i32, i32) {
    %c0_i32 = arith.constant 0 : i32
    %c0_i32_0 = arith.constant 0 : i32
    %c0_i32_1 = arith.constant 0 : i32
    return %c0_i32, %c0_i32_0 : i32, i32
  }
  func.func @transform_9(%arg0: i32) -> (i32, i32) {
    %c0_i32 = arith.constant 0 : i32
    %c0_i32_0 = arith.constant 0 : i32
    %c0_i32_1 = arith.constant 0 : i32
    return %c0_i32, %c0_i32_0 : i32, i32
  }
  func.func @transform_10(%arg0: i32) -> (i32, i32) {
    %c0_i32 = arith.constant 0 : i32
    %c0_i32_0 = arith.constant 0 : i32
    %c0_i32_1 = arith.constant 0 : i32
    return %c0_i32, %c0_i32_0 : i32, i32
  }
  func.func @transform_11(%arg0: i32) -> (i32, i32) {
    %c0_i32 = arith.constant 0 : i32
    %c0_i32_0 = arith.constant 0 : i32
    %c0_i32_1 = arith.constant 0 : i32
    return %c0_i32, %c0_i32_0 : i32, i32
  }
  func.func @transform_12(%arg0: i32) -> (i32, i32) {
    %c0_i32 = arith.constant 0 : i32
    %c0_i32_0 = arith.constant 0 : i32
    %c0_i32_1 = arith.constant 0 : i32
    return %c0_i32, %c0_i32_0 : i32, i32
  }
  func.func @transform_13(%arg0: i32) -> (i32, i32) {
    %c0_i32 = arith.constant 0 : i32
    %c0_i32_0 = arith.constant 0 : i32
    %c0_i32_1 = arith.constant 0 : i32
    return %c0_i32, %c0_i32_0 : i32, i32
  }
  func.func @transform_14(%arg0: i32) -> (i32, i32) {
    %c0_i32 = arith.constant 0 : i32
    %c0_i32_0 = arith.constant 0 : i32
    %c0_i32_1 = arith.constant 0 : i32
    return %c0_i32, %c0_i32_0 : i32, i32
  }
  func.func @transform_15(%arg0: i32) -> (i32, i32, i32) {
    %c0_i32 = arith.constant 0 : i32
    %c0_i32_0 = arith.constant 0 : i32
    %c0_i32_1 = arith.constant 0 : i32
    return %arg0, %c0_i32, %c0_i32_0 : i32, i32, i32
  }
}

</mosaic_0001>

<bundles_post_ra>
// kernel: tpu_custom_call.1
= control target key start
LH: loop header
LB: loop body
LE: loop exit
PB: predicated region body
PF: predicated region fallthrough
CT: control target
= control target key end

     0   :  { %20 = vsyncpa [#allocation7], 0  ;;  %s14671_s0 = inlined_call_operand.vmem [shape: s32[1,202,3], index: 0, kind: input, shape index: {}]   ;;  %s14672_s1 = inlined_call_operand.hbm [shape: f32[3,256,128], index: 1, kind: input, shape index: {}]   ;;  %s14673_s2 = inlined_call_operand.vmem [shape: f32[9,128,128], index: 2, kind: input, shape index: {}]   ;;  %s14674_s3 = inlined_call_operand.vmem [shape: f32[1,128], index: 3, kind: input, shape index: {}]   ;;  %s14675_s4 = inlined_call_operand.hbm [shape: f32[9,128,128], index: 4, kind: input, shape index: {}]   ;;  %s14676_s5 = inlined_call_operand.vmem [shape: f32[1,128], index: 5, kind: input, shape index: {}]   ;;  %s14677_s6 = inlined_call_operand.vmem [shape: f32[182,1], index: 6, kind: input, shape index: {}]   ;;  %s14678_s7 = inlined_call_operand.vmem [shape: f32[162,1], index: 7, kind: input, shape index: {}]   ;;  %s14679_s8 = inlined_call_operand.vmem [shape: f32[128,320], index: 8, kind: input, shape index: {}]   ;;  %s14680_s9 = inlined_call_operand.vmem [shape: f32[1,320], index: 9, kind: input, shape index: {}]   ;;  %s14681_s10 = inlined_call_operand.hbm [shape: f32[320,128], index: 10, kind: input, shape index: {}]   ;;  %s14682_s11 = inlined_call_operand.vmem [shape: f32[1,128], index: 11, kind: input, shape index: {}]   ;;  %s14683_s12 = inlined_call_operand.vmem [shape: f32[128,128], index: 12, kind: input, shape index: {}]   ;;  %s14684_s13 = inlined_call_operand.vmem [shape: f32[1,128], index: 13, kind: input, shape index: {}]   ;;  %s14685_s14 = inlined_call_operand.vmem [shape: f32[1,128], index: 14, kind: input, shape index: {}]   ;;  %s14686_s15 = inlined_call_operand.hbm [shape: f32[1,2,128], index: 15, kind: output, shape index: {}]  }
   0x1   :  { %21 = vsyncpa [#allocation10], 0 }
   0x2   :  { %22 = vsyncpa [#allocation8], 0  ;;  %s10757_s18 = smov [#allocation9]   ;;  %s10758_s20 = smov [#allocation6]  }
   0x3   :  { %s46_s19 = sshll.u32 %s10757_s18, 4  ;;  %s30_s21 = sshll.u32 %s10758_s20, 4  ;;  %s47_s19 = int_to_ptr.vmem [resolvable:$true] %s46_s19  ;;  %s10850_s21 = int_to_ptr.vmem [resolvable:$true] %s30_s21 }
   0x4   :  { %s10663_s24 = scalar_lea.hbm %s14675_s4, 18432 }
   0x5   :  { %p10664_p0 = scmp.ne.s32.totalorder %s14675_s4, %s10663_s24  ;;  %p10667_p1 = scmp.lt.u32.totalorder %s10663_s24, %s14675_s4 }
   0x7   :  { %p10669_p2 = pnand %p10667_p1, %p10664_p0 }
   0x9   :  { %10672 = shalt.err (!%p10669_p2)
}
   0xa   :  { %s10673_s29 = scalar_lea.vmem %s47_s19, 18432  ;;  %p10678_p4 = scmp.lt.s32.totalorder %s47_s19, %s47_s19 }
   0xb   :  { %p10674_p3 = scmp.ne.s32.totalorder %s47_s19, %s10673_s29  ;;  %p10679_p5 = scmp.lt.s32.totalorder %s10673_s29, %s10673_s29 }
   0xd   :  { %p10680_p6 = por %p10679_p5, %p10678_p4 }
   0xf   :  { %p10681_p7 = pnand %p10680_p6, %p10674_p3 }
  0x11   :  { %10684 = shalt.err (!%p10681_p7)
}
  0x12   :  { %s10759_s30 = smov 128   ;;  %s10760_s16 = smov 8  }
  0x13   :  { %52 = dma.hbm_to_vmem [thread:$0]  %s14675_s4, 18432, %s47_s19, [#allocation10], %s10759_s30, %s10759_s30, %s10760_s16  }
  0x14   :  { %s10685_s23 = scalar_lea.hbm %s14672_s1, 12288 }
  0x15   :  { %p10686_p8 = scmp.ne.s32.totalorder %s14672_s1, %s10685_s23  ;;  %p10689_p9 = scmp.lt.u32.totalorder %s10685_s23, %s14672_s1 }
  0x17   :  { %p10691_p10 = pnand %p10689_p9, %p10686_p8 }
  0x19   :  { %10694 = shalt.err (!%p10691_p10)
}
  0x1a   :  { %s10695_s28 = scalar_lea.vmem %s10850_s21, 12288  ;;  %p10700_p12 = scmp.lt.s32.totalorder %s10850_s21, %s10850_s21 }
  0x1b   :  { %p10696_p11 = scmp.ne.s32.totalorder %s10850_s21, %s10695_s28  ;;  %p10701_p13 = scmp.lt.s32.totalorder %s10695_s28, %s10695_s28 }
  0x1d   :  { %p10702_p0 = por %p10701_p13, %p10700_p12 }
  0x1f   :  { %p10703_p1 = pnand %p10702_p0, %p10696_p11 }
  0x21   :  { %10706 = shalt.err (!%p10703_p1)
}
  0x22   :  { %36 = dma.hbm_to_vmem [thread:$0]  %s14672_s1, 12288, %s10850_s21, [#allocation7], %s10759_s30, %s10759_s30, %s10760_s16  }
  0x23   :  { %s10761_s29 = smov [#allocation11]   ;;  %s10707_s22 = scalar_lea.hbm %s14681_s10, 5120 }
  0x24   :  { %s68_s17 = sshll.u32 %s10761_s29, 4  ;;  %p10708_p2 = scmp.ne.s32.totalorder %s14681_s10, %s10707_s22  ;;  %s69_s17 = int_to_ptr.vmem [resolvable:$true] %s68_s17 }
  0x25   :  { %p10711_p3 = scmp.lt.u32.totalorder %s10707_s22, %s14681_s10 }
  0x27   :  { %p10713_p4 = pnand %p10711_p3, %p10708_p2 }
  0x29   :  { %10716 = shalt.err (!%p10713_p4)
}
  0x2a   :  { %s10717_s27 = scalar_lea.vmem %s69_s17, 5120  ;;  %p10722_p6 = scmp.lt.s32.totalorder %s69_s17, %s69_s17 }
  0x2b   :  { %p10718_p5 = scmp.ne.s32.totalorder %s69_s17, %s10717_s27  ;;  %p10723_p7 = scmp.lt.s32.totalorder %s10717_s27, %s10717_s27 }
  0x2d   :  { %p10724_p8 = por %p10723_p7, %p10722_p6 }
  0x2f   :  { %p10725_p9 = pnand %p10724_p8, %p10718_p5 }
  0x31   :  { %10728 = shalt.err (!%p10725_p9)
}
  0x32   :  { %74 = dma.hbm_to_vmem [thread:$0]  %s14681_s10, 5120, %s69_s17, [#allocation10], %s10759_s30, %s10759_s30, %s10760_s16  }
  0x33   :  { %10751 = dma.done.wait [#allocation7], 12288  }
  0x34   :  { %10752 = vsyncadd [#allocation7], 4294955008 }
  0x35   :  { %10753 = dma.done.wait [#allocation10], 23552  }
  0x36   :  { %10754 = vsyncadd [#allocation10], 4294943744  ;;  %v10762_v0 = vmov 1   ;;  %v14689_v1 = vmov 0.0|0.0   ;;  %v10907_v2 = vld [vmem:[%s14671_s0 + $0x10] sm:$0xff]  ;;  %v10912_v3 = vld [vmem:[%s14671_s0] sm:$0xff] }
  0x37   :  { %10646 = vset.pattern.permute.xlu1 %v10762_v0  ;;  %10645 = vset.pattern.permute.xlu0 %v10762_v0  ;;  %v10919_v4 = vld [vmem:[%s14671_s0 + $0x18] sm:$0xff]  ;;  %v10924_v5 = vld [vmem:[%s14671_s0 + $0x8] sm:$0xff]  ;;  %v10936_v7 = vld [vmem:[%s14671_s0 + $0x20] sm:$0xff]  ;;  %v14687_v0 = vmov 0  }
  0x38   :  { %9828 = vmatprep.subr.bf16.mxu0 %v14689_v1  ;;  %9972 = vmatprep.subr.bf16.mxu1 %v14689_v1  ;;  %v10931_v6 = vld [vmem:[%s14671_s0 + $0x28] sm:$0xff]  ;;  %v622_v8 = vld [vmem:[#allocation6 + $0x100] sm:$0xff]  ;;  %v623_v9 = vld [vmem:[#allocation6 + $0x108] sm:$0xff] }
  0x39   :  { %394 = vperm.xlu1 %10646, %v10907_v2   ;;  %388 = vperm.xlu0 %10645, %v10912_v3   ;;  %v624_v10 = vld [vmem:[#allocation6 + $0x110] sm:$0xff]  ;;  %v625_v11 = vld [vmem:[#allocation6 + $0x118] sm:$0xff]  ;;  %v10943_v12 = vld [vmem:[%s14671_s0 + $0x38] sm:$0xff]  ;;  %v9829_v14 = vpack.c.bf16 %v623_v9, %v622_v8 }
  0x3a   :  { %v10948_v13 = vld [vmem:[%s14671_s0 + $0x30] sm:$0xff]  ;;  %v9832_v15 = vpack.c.bf16 %v625_v11, %v624_v10  ;;  %v627_v17 = vld [vmem:[#allocation6 + $0x128] sm:$0xff]  ;;  %v10955_v18 = vld [vmem:[%s14671_s0 + $0x48] sm:$0xff] }
  0x3b   :  { %9830 = vmatpush1.bf16.msra.mxu0 %v9829_v14  ;;  %v626_v16 = vld [vmem:[#allocation6 + $0x120] sm:$0xff]  ;;  %v10960_v19 = vld [vmem:[%s14671_s0 + $0x40] sm:$0xff]  ;;  %v629_v22 = vld [vmem:[#allocation6 + $0x138] sm:$0xff] }
  0x3c   :  { %9831 = vmatprep.subr.bf16.mxu0 %v14689_v1  ;;  %v9835_v20 = vpack.c.bf16 %v627_v17, %v626_v16  ;;  %v628_v21 = vld [vmem:[#allocation6 + $0x130] sm:$0xff]  ;;  %v10968_v23 = vld [vmem:[%s14671_s0 + $0x58] sm:$0xff]  ;;  %v10973_v24 = vld [vmem:[%s14671_s0 + $0x50] sm:$0xff] }
  0x3d   :  { %397 = vperm.xlu1 %10646, %v10919_v4   ;;  %391 = vperm.xlu0 %10645, %v10924_v5   ;;  %v9838_v25 = vpack.c.bf16 %v629_v22, %v628_v21  ;;  %v630_v26 = vld [vmem:[#allocation6 + $0x140] sm:$0xff]  ;;  %v631_v27 = vld [vmem:[#allocation6 + $0x148] sm:$0xff]  ;;  %v10981_v28 = vld [vmem:[%s14671_s0 + $0x68] sm:$0xff] }
  0x3e   :  { %v10986_v29 = vld [vmem:[%s14671_s0 + $0x60] sm:$0xff]  ;;  %v9841_v30 = vpack.c.bf16 %v631_v27, %v630_v26  ;;  %v633_v32 = vld [vmem:[#allocation6 + $0x158] sm:$0xff]  ;;  %v10994_v33 = vld [vmem:[%s14671_s0 + $0x78] sm:$0xff]  ;;  %v10765_v26 = vmov 2   ;;  %v14688_v27 = vlaneseq }
  0x3f   :  { %9833 = vmatpush1.bf16.msra.mxu0 %v9832_v15  ;;  %v632_v31 = vld [vmem:[#allocation6 + $0x150] sm:$0xff]  ;;  %v10999_v34 = vld [vmem:[%s14671_s0 + $0x70] sm:$0xff]  ;;  %v635_v37 = vld [vmem:[#allocation6 + $0x168] sm:$0xff] }
  0x40   :  { %9834 = vmatprep.subr.bf16.mxu0 %v14689_v1  ;;  %v9844_v35 = vpack.c.bf16 %v633_v32, %v632_v31  ;;  %v634_v36 = vld [vmem:[#allocation6 + $0x160] sm:$0xff]  ;;  %v11007_v38 = vld [vmem:[%s14671_s0 + $0x88] sm:$0xff]  ;;  %v11012_v39 = vld [vmem:[%s14671_s0 + $0x80] sm:$0xff] }
  0x41   :  { %403 = vperm.xlu1 %10646, %v10931_v6   ;;  %400 = vperm.xlu0 %10645, %v10936_v7   ;;  %v9847_v40 = vpack.c.bf16 %v635_v37, %v634_v36  ;;  %v636_v41 = vld [vmem:[#allocation6 + $0x170] sm:$0xff]  ;;  %v637_v42 = vld [vmem:[#allocation6 + $0x178] sm:$0xff]  ;;  %v11020_v43 = vld [vmem:[%s14671_s0 + $0x98] sm:$0xff] }
  0x42   :  { %v11025_v44 = vld [vmem:[%s14671_s0 + $0x90] sm:$0xff]  ;;  %v9850_v45 = vpack.c.bf16 %v637_v42, %v636_v41  ;;  %v639_v47 = vld [vmem:[#allocation6 + $0x188] sm:$0xff]  ;;  %v11033_v48 = vld [vmem:[%s14671_s0 + $0xa8] sm:$0xff] }
  0x43   :  { %9836 = vmatpush1.bf16.msra.mxu0 %v9835_v20  ;;  %v638_v46 = vld [vmem:[#allocation6 + $0x180] sm:$0xff]  ;;  %v11038_v49 = vld [vmem:[%s14671_s0 + $0xa0] sm:$0xff]  ;;  %v641_v52 = vld [vmem:[#allocation6 + $0x198] sm:$0xff] }
  0x44   :  { %9837 = vmatprep.subr.bf16.mxu0 %v14689_v1  ;;  %v9853_v50 = vpack.c.bf16 %v639_v47, %v638_v46  ;;  %v640_v51 = vld [vmem:[#allocation6 + $0x190] sm:$0xff]  ;;  %v11046_v53 = vld [vmem:[%s14671_s0 + $0xb8] sm:$0xff]  ;;  %v11051_v54 = vld [vmem:[%s14671_s0 + $0xb0] sm:$0xff] }
  0x45   :  { %409 = vperm.xlu1 %10646, %v10943_v12   ;;  %406 = vperm.xlu0 %10645, %v10948_v13   ;;  %v9856_v55 = vpack.c.bf16 %v641_v52, %v640_v51  ;;  %v642_v56 = vld [vmem:[#allocation6 + $0x1a0] sm:$0xff]  ;;  %v643_v57 = vld [vmem:[#allocation6 + $0x1a8] sm:$0xff]  ;;  %v11059_v58 = vld [vmem:[%s14671_s0 + $0xc8] sm:$0x3] }
  0x46   :  { %v11064_v59 = vld [vmem:[%s14671_s0 + $0xc0] sm:$0xff]  ;;  %v9859_v60 = vpack.c.bf16 %v643_v57, %v642_v56  ;;  %v645_v62 = vld [vmem:[#allocation6 + $0x1b8] sm:$0xff]  ;;  %v646_v8 = vld [vmem:[#allocation6 + $0x1c0] sm:$0xff] }
  0x47   :  { %9839 = vmatpush1.bf16.msra.mxu0 %v9838_v25  ;;  %v644_v61 = vld [vmem:[#allocation6 + $0x1b0] sm:$0xff]  ;;  %v647_v9 = vld [vmem:[#allocation6 + $0x1c8] sm:$0xff]  ;;  %v649_v14 = vld [vmem:[#allocation6 + $0x1d8] sm:$0xff] }
  0x48   :  { %9840 = vmatprep.subr.bf16.mxu0 %v14689_v1  ;;  %v9862_v63 = vpack.c.bf16 %v645_v62, %v644_v61  ;;  %v9865_v10 = vpack.c.bf16 %v647_v9, %v646_v8  ;;  %v648_v11 = vld [vmem:[#allocation6 + $0x1d0] sm:$0xff]  ;;  %v650_v16 = vld [vmem:[#allocation6 + $0x1e0] sm:$0xff]  ;;  %v651_v17 = vld [vmem:[#allocation6 + $0x1e8] sm:$0xff] }
  0x49   :  { %415 = vperm.xlu1 %10646, %v10955_v18   ;;  %412 = vperm.xlu0 %10645, %v10960_v19   ;;  %v9868_v15 = vpack.c.bf16 %v649_v14, %v648_v11  ;;  %v9871_v20 = vpack.c.bf16 %v651_v17, %v650_v16  ;;  %v652_v21 = vld [vmem:[#allocation6 + $0x1f0] sm:$0xff]  ;;  %v653_v22 = vld [vmem:[#allocation6 + $0x1f8] sm:$0xff]  ;;  %v360_v31 = vld [vmem:[#allocation6 + $0x28] sm:$0xff] }
  0x4a   :  { %v9874_v25 = vpack.c.bf16 %v653_v22, %v652_v21  ;;  %v361_v32 = vld [vmem:[#allocation6 + $0x30] sm:$0xff]  ;;  %v363_v37 = vld [vmem:[#allocation6 + $0x40] sm:$0xff]  ;;  %v366_v42 = vld [vmem:[#allocation6 + $0x58] sm:$0xff] }
  0x4b   :  { %9842 = vmatpush1.bf16.msra.mxu0 %v9841_v30  ;;  %v11113_v30 = vand.u32 127, %v14688_v27  ;;  %v365_v41 = vld [vmem:[#allocation6 + $0x50] sm:$0xff]  ;;  %v368_v46 = vld [vmem:[#allocation6 + $0x68] sm:$0xff]  ;;  %v371_v52 = vld [vmem:[#allocation6 + $0x80] sm:$0xff] }
  0x4c   :  { %9843 = vmatprep.subr.bf16.mxu0 %v14689_v1  ;;  %v373_v56 = vld [vmem:[#allocation6 + $0x90] sm:$0xff]  ;;  %v374_v57 = vld [vmem:[#allocation6 + $0x98] sm:$0xff]  ;;  %v376_v61 = vld [vmem:[#allocation6 + $0xa8] sm:$0xff] }
  0x4d   :  { %421 = vperm.xlu1 %10646, %v10968_v23   ;;  %418 = vperm.xlu0 %10645, %v10973_v24   ;;  %v377_v8 = vld [vmem:[#allocation6 + $0xb0] sm:$0xff]  ;;  %v378_v9 = vld [vmem:[#allocation6 + $0xb8] sm:$0xff]  ;;  %v379_v14 = vld [vmem:[#allocation6 + $0xc0] sm:$0xff] }
  0x4e   :  { %v9910_v11 = vpack.c.bf16 %v378_v9, %v377_v8  ;;  %v382_v21 = vld [vmem:[#allocation6 + $0xd8] sm:$0xff] }
  0x4f   :  { %9845 = vmatpush1.bf16.msra.mxu0 %v9844_v35  ;;  %v1294_v8 = vld [vmem:[#allocation6 + $0x278] sm:$0xff] }
  0x50   :  { %9846 = vmatprep.subr.bf16.mxu0 %v14689_v1 }
  0x51   :  { %427 = vperm.xlu1 %10646, %v10981_v28   ;;  %424 = vperm.xlu0 %10645, %v10986_v29  }
  0x53   :  { %9848 = vmatpush1.bf16.msra.mxu0 %v9847_v40  ;;  %v364_v40 = vld [vmem:[#allocation6 + $0x48] sm:$0xff] }
  0x54   :  { %9849 = vmatprep.subr.bf16.mxu0 %v14689_v1 }
  0x55   :  { %433 = vperm.xlu1 %10646, %v10994_v33   ;;  %430 = vperm.xlu0 %10645, %v10999_v34  }
  0x57   :  { %9851 = vmatpush1.bf16.msra.mxu0 %v9850_v45  ;;  %v367_v45 = vld [vmem:[#allocation6 + $0x60] sm:$0xff] }
  0x58   :  { %9852 = vmatprep.subr.bf16.mxu0 %v14689_v1  ;;  %v9895_v47 = vpack.c.bf16 %v368_v46, %v367_v45  ;;  %v1284_v45 = vld [vmem:[#allocation6 + $0x228] sm:$0xff] }
  0x59   :  { %439 = vperm.xlu1 %10646, %v11007_v38   ;;  %436 = vperm.xlu0 %10645, %v11012_v39  }
  0x5b   :  { %9854 = vmatpush1.bf16.msra.mxu0 %v9853_v50  ;;  %v370_v50 = vld [vmem:[#allocation6 + $0x78] sm:$0xff] }
  0x5c   :  { %9855 = vmatprep.subr.bf16.mxu0 %v14689_v1 }
  0x5d   :  { %445 = vperm.xlu1 %10646, %v11020_v43   ;;  %442 = vperm.xlu0 %10645, %v11025_v44  }
  0x5f   :  { %9857 = vmatpush1.bf16.msra.mxu0 %v9856_v55 }
  0x60   :  { %9858 = vmatprep.subr.bf16.mxu0 %v14689_v1 }
  0x61   :  { %451 = vperm.xlu1 %10646, %v11033_v48   ;;  %448 = vperm.xlu0 %10645, %v11038_v49  }
  0x63   :  { %9860 = vmatpush1.bf16.msra.mxu0 %v9859_v60  ;;  %v375_v60 = vld [vmem:[#allocation6 + $0xa0] sm:$0xff] }
  0x64   :  { %9861 = vmatprep.subr.bf16.mxu0 %v14689_v1 }
  0x65   :  { %457 = vperm.xlu1 %10646, %v11046_v53   ;;  %454 = vperm.xlu0 %10645, %v11051_v54  }
  0x67   :  { %9863 = vmatpush1.bf16.msra.mxu0 %v9862_v63  ;;  %v9907_v63 = vpack.c.bf16 %v376_v61, %v375_v60  ;;  %v1292_v60 = vld [vmem:[#allocation6 + $0x268] sm:$0xff] }
  0x68   :  { %9864 = vmatprep.subr.bf16.mxu0 %v14689_v1 }
  0x69   :  { %463 = vperm.xlu1 %10646, %v11059_v58   ;;  %460 = vperm.xlu0 %10645, %v11064_v59  }
  0x6b   :  { %9866 = vmatpush1.bf16.msra.mxu0 %v9865_v10 }
  0x6c   :  { %9867 = vmatprep.subr.bf16.mxu0 %v14689_v1 }
  0x6d   :  { %10647 = vset.pattern.permute.xlu0 %v14687_v0  ;;  %10648 = vset.pattern.permute.xlu1 %v14687_v0 }
  0x6e   :  { %122 = vperm.xlu0 %10647, %v10912_v3   ;;  %125 = vperm.xlu1 %10648, %v10924_v5  }
  0x6f   :  { %9869 = vmatpush1.bf16.msra.mxu0 %v9868_v15  ;;  %v380_v15 = vld [vmem:[#allocation6 + $0xc8] sm:$0xff] }
  0x70   :  { %9870 = vmatprep.subr.bf16.mxu0 %v14689_v1  ;;  %v9913_v17 = vpack.c.bf16 %v380_v15, %v379_v14  ;;  %v1296_v14 = vld [vmem:[#allocation6 + $0x288] sm:$0xff] }
  0x72   :  { %131 = vperm.xlu0 %10647, %v10919_v4   ;;  %128 = vperm.xlu1 %10648, %v10907_v2  }
  0x73   :  { %9872 = vmatpush1.bf16.msra.mxu0 %v9871_v20  ;;  %v381_v20 = vld [vmem:[#allocation6 + $0xd0] sm:$0xff] }
  0x74   :  { %9873 = vmatprep.subr.bf16.mxu0 %v14689_v1 }
  0x76   :  { %137 = vperm.xlu0 %10647, %v10931_v6   ;;  %134 = vperm.xlu1 %10648, %v10936_v7  }
  0x77   :  { %9875 = vmatpush1.bf16.msra.mxu0 %v9874_v25  ;;  %v9916_v25 = vpack.c.bf16 %v382_v21, %v381_v20  ;;  %v1298_v20 = vld [vmem:[#allocation6 + $0x298] sm:$0xff] }
  0x78   :  { %9876 = vmatprep.subr.bf16.mxu0 %v14689_v1 }
  0x7a   :  { %143 = vperm.xlu0 %10647, %v10943_v12   ;;  %140 = vperm.xlu1 %10648, %v10948_v13  }
  0x7e   :  { %149 = vperm.xlu0 %10647, %v10955_v18   ;;  %146 = vperm.xlu1 %10648, %v10960_v19  }
  0x82   :  { %155 = vperm.xlu0 %10647, %v10968_v23   ;;  %152 = vperm.xlu1 %10648, %v10973_v24  }
  0x86   :  { %161 = vperm.xlu0 %10647, %v10981_v28   ;;  %158 = vperm.xlu1 %10648, %v10986_v29  }
  0x8a   :  { %167 = vperm.xlu0 %10647, %v10994_v33   ;;  %164 = vperm.xlu1 %10648, %v10999_v34  }
  0x8e   :  { %173 = vperm.xlu0 %10647, %v11007_v38   ;;  %170 = vperm.xlu1 %10648, %v11012_v39  }
  0x92   :  { %179 = vperm.xlu0 %10647, %v11020_v43   ;;  %176 = vperm.xlu1 %10648, %v11025_v44  }
  0x96   :  { %185 = vperm.xlu0 %10647, %v11033_v48   ;;  %182 = vperm.xlu1 %10648, %v11038_v49  }
  0x9a   :  { %191 = vperm.xlu0 %10647, %v11046_v53   ;;  %188 = vperm.xlu1 %10648, %v11051_v54  }
  0x9e   :  { %197 = vperm.xlu0 %10647, %v11059_v58   ;;  %194 = vperm.xlu1 %10648, %v11064_v59  }
  0xa2   :  { %10649 = vset.pattern.permute.xlu1 %v10765_v26  ;;  %10650 = vset.pattern.permute.xlu0 %v10765_v26  ;;  %v383_v26 = vld [vmem:[#allocation6 + $0xe0] sm:$0xff] }
  0xa3   :  { %1045 = vperm.xlu1 %10649, %v10912_v3   ;;  %1048 = vperm.xlu0 %10650, %v10924_v5   ;;  %v355_v3 = vld [vmem:[#allocation6] sm:$0xff]  ;;  %v356_v5 = vld [vmem:[#allocation6 + $0x8] sm:$0xff] }
  0xa7   :  { %1051 = vperm.xlu1 %10649, %v10907_v2   ;;  %1057 = vperm.xlu0 %10650, %v10936_v7   ;;  %v11118_v2 = vadd.s32 128, %v11113_v30  ;;  %v357_v7 = vld [vmem:[#allocation6 + $0x10] sm:$0xff] }
  0xab   :  { %1054 = vperm.xlu1 %10649, %v10919_v4   ;;  %1063 = vperm.xlu0 %10650, %v10948_v13   ;;  %v358_v13 = vld [vmem:[#allocation6 + $0x18] sm:$0xff] }
  0xaf   :  { %1060 = vperm.xlu1 %10649, %v10931_v6   ;;  %1069 = vperm.xlu0 %10650, %v10960_v19   ;;  %v9877_v6 = vpack.c.bf16 %v356_v5, %v355_v3  ;;  %v384_v3 = vld [vmem:[#allocation6 + $0xe8] sm:$0xff] }
  0xb3   :  { %1066 = vperm.xlu1 %10649, %v10943_v12   ;;  %1075 = vperm.xlu0 %10650, %v10973_v24   ;;  %v10766_v12 = vmov 1.0   ;;  %v9880_v24 = vpack.c.bf16 %v358_v13, %v357_v7  ;;  %v386_v7 = vld [vmem:[#allocation6 + $0xf8] sm:$0xff] }
  0xb7   :  { %1072 = vperm.xlu1 %10649, %v10955_v18   ;;  %1081 = vperm.xlu0 %10650, %v10986_v29   ;;  %v359_v29 = vld [vmem:[#allocation6 + $0x20] sm:$0xff] }
  0xb8   :  { %v389_v4 = vpop.permute.xlu0 %388  ;;  %v395_v19 = vpop.permute.xlu1 %394 }
  0xb9   :  { %vm466_vm0 = vcmp.eq.s32.totalorder %v11118_v2, %v389_v4  ;;  %vm465_vm1 = vcmp.eq.s32.totalorder %v11113_v30, %v389_v4  ;;  %vm470_vm4 = vcmp.eq.s32.totalorder %v11118_v2, %v395_v19  ;;  %vm469_vm5 = vcmp.eq.s32.totalorder %v11113_v30, %v395_v19 }
  0xba   :  { %6872 = vmatprep.mubr.msk.f32.mxu0 %vm466_vm0, %v10766_v12  ;;  %v9919_v4 = vpack.c.bf16 %v384_v3, %v383_v26  ;;  %v1300_v26 = vld [vmem:[#allocation6 + $0x2a8] sm:$0xff] }
  0xbb   :  { %6873 = vmatmul.mubr.msk.f32.vlgmr.msra.gmra.mrb[0].mxu0 %vm465_vm1, %v10766_v12  ;;  %1078 = vperm.xlu1 %10649, %v10968_v23   ;;  %v9883_v23 = vpack.c.bf16 %v360_v31, %v359_v29 }
  0xbc   :  { %9878 = vmatpush1.bf16.msra.mxu0 %v9877_v6  ;;  %v392_v18 = vpop.permute.xlu0 %391  ;;  %1087 = vperm.xlu0 %10650, %v10999_v34   ;;  %v362_v34 = vld [vmem:[#allocation6 + $0x38] sm:$0xff]  ;;  %v398_v35 = vpop.permute.xlu1 %397  ;;  %v385_v6 = vld [vmem:[#allocation6 + $0xf0] sm:$0xff] }
  0xbd   :  { %vm468_vm2 = vcmp.eq.s32.totalorder %v11118_v2, %v392_v18  ;;  %vm467_vm3 = vcmp.eq.s32.totalorder %v11113_v30, %v392_v18  ;;  %9879 = vmatprep.subr.bf16.mxu0 %v14689_v1  ;;  %vm472_vm6 = vcmp.eq.s32.totalorder %v11118_v2, %v398_v35  ;;  %v9886_v36 = vpack.c.bf16 %v362_v34, %v361_v32 }
  0xbe   :  { %6874 = vmatprep.mubr.msk.f32.mxu0 %vm468_vm2, %v10766_v12  ;;  %vm471_vm7 = vcmp.eq.s32.totalorder %v11113_v30, %v398_v35  ;;  %v9922_v19 = vpack.c.bf16 %v386_v7, %v385_v6  ;;  %v1302_v6 = vld [vmem:[#allocation6 + $0x2b8] sm:$0xff] }
  0xbf   :  { %6875 = vmatmul.mubr.msk.f32.gmra.mrb[2].mxu0 %vm467_vm3, %v10766_v12  ;;  %1084 = vperm.xlu1 %10649, %v10981_v28  }
  0xc0   :  { %6876 = vmatprep.mubr.msk.f32.mxu0 %vm470_vm4, %v10766_v12  ;;  %9881 = vmatpush1.bf16.msra.mxu0 %v9880_v24  ;;  %v401_v28 = vpop.permute.xlu0 %400 }
  0xc1   :  { %9882 = vmatprep.subr.bf16.mxu0 %v14689_v1  ;;  %1093 = vperm.xlu0 %10650, %v11012_v39   ;;  %vm474_vm8 = vcmp.eq.s32.totalorder %v11118_v2, %v401_v28  ;;  %v9889_v39 = vpack.c.bf16 %v364_v40, %v363_v37  ;;  %vm473_vm9 = vcmp.eq.s32.totalorder %v11113_v30, %v401_v28  ;;  %v1279_v37 = vld [vmem:[#allocation6 + $0x200] sm:$0xff]  ;;  %v1280_v40 = vld [vmem:[#allocation6 + $0x208] sm:$0xff] }
  0xc3   :  { %6877 = vmatmul.mubr.msk.f32.gmra.mrb[4].mxu0 %vm469_vm5, %v10766_v12  ;;  %1090 = vperm.xlu1 %10649, %v10994_v33   ;;  %v404_v33 = vpop.permute.xlu1 %403 }
  0xc4   :  { %6878 = vmatprep.mubr.msk.f32.mxu0 %vm472_vm6, %v10766_v12  ;;  %9884 = vmatpush1.bf16.msra.mxu0 %v9883_v23  ;;  %vm476_vm10 = vcmp.eq.s32.totalorder %v11118_v2, %v404_v33  ;;  %vm475_vm11 = vcmp.eq.s32.totalorder %v11113_v30, %v404_v33 }
  0xc5   :  { %9885 = vmatprep.subr.bf16.mxu0 %v14689_v1  ;;  %1099 = vperm.xlu0 %10650, %v11025_v44   ;;  %v9892_v44 = vpack.c.bf16 %v366_v42, %v365_v41  ;;  %v1281_v41 = vld [vmem:[#allocation6 + $0x210] sm:$0xff]  ;;  %v1282_v42 = vld [vmem:[#allocation6 + $0x218] sm:$0xff] }
  0xc7   :  { %6879 = vmatmul.mubr.msk.f32.gmra.mrb[6].mxu0 %vm471_vm7, %v10766_v12  ;;  %1096 = vperm.xlu1 %10649, %v11007_v38   ;;  %v407_v38 = vpop.permute.xlu0 %406 }
  0xc8   :  { %6880 = vmatprep.mubr.msk.f32.mxu0 %vm474_vm8, %v10766_v12  ;;  %9887 = vmatpush1.bf16.msra.mxu0 %v9886_v36  ;;  %vm478_vm12 = vcmp.eq.s32.totalorder %v11118_v2, %v407_v38  ;;  %vm477_vm13 = vcmp.eq.s32.totalorder %v11113_v30, %v407_v38  ;;  %v9928_v38 = vpack.c.bf16 %v1282_v42, %v1281_v41 }
  0xc9   :  { %9888 = vmatprep.subr.bf16.mxu0 %v14689_v1  ;;  %1105 = vperm.xlu0 %10650, %v11038_v49   ;;  %v369_v49 = vld [vmem:[#allocation6 + $0x70] sm:$0xff] }
  0xca   :  { %v9898_v51 = vpack.c.bf16 %v370_v50, %v369_v49  ;;  %v1286_v49 = vld [vmem:[#allocation6 + $0x238] sm:$0xff] }
  0xcb   :  { %6881 = vmatmul.mubr.msk.f32.gmra.mrb[8].mxu0 %vm473_vm9, %v10766_v12  ;;  %1102 = vperm.xlu1 %10649, %v11020_v43   ;;  %v410_v43 = vpop.permute.xlu1 %409 }
  0xcc   :  { %6882 = vmatprep.mubr.msk.f32.mxu0 %vm476_vm10, %v10766_v12  ;;  %9890 = vmatpush1.bf16.msra.mxu0 %v9889_v39  ;;  %vm480_vm14 = vcmp.eq.s32.totalorder %v11118_v2, %v410_v43  ;;  %vm479_vm15 = vcmp.eq.s32.totalorder %v11113_v30, %v410_v43  ;;  %v9925_v39 = vpack.c.bf16 %v1280_v40, %v1279_v37  ;;  %v1309_v40 = vld [vmem:[#allocation6 + $0x2f0] sm:$0xff] }
  0xcd   :  { %9891 = vmatprep.subr.bf16.mxu0 %v14689_v1  ;;  %1111 = vperm.xlu0 %10650, %v11051_v54   ;;  %v372_v54 = vld [vmem:[#allocation6 + $0x88] sm:$0xff] }
  0xce   :  { %v9901_v55 = vpack.c.bf16 %v372_v54, %v371_v52  ;;  %v1288_v52 = vld [vmem:[#allocation6 + $0x248] sm:$0xff] }
  0xcf   :  { %6883 = vmatmul.mubr.msk.f32.gmra.mrb[10].mxu0 %vm475_vm11, %v10766_v12  ;;  %1108 = vperm.xlu1 %10649, %v11033_v48   ;;  %v413_v48 = vpop.permute.xlu0 %412 }
  0xd0   :  { %6884 = vmatprep.mubr.msk.f32.mxu0 %vm478_vm12, %v10766_v12  ;;  %9893 = vmatpush1.bf16.msra.mxu0 %v9892_v44  ;;  %vm482_vm0 = vcmp.eq.s32.totalorder %v11118_v2, %v413_v48  ;;  %vm481_vm1 = vcmp.eq.s32.totalorder %v11113_v30, %v413_v48  ;;  %v1283_v44 = vld [vmem:[#allocation6 + $0x220] sm:$0xff] }
  0xd1   :  { %9894 = vmatprep.subr.bf16.mxu0 %v14689_v1  ;;  %1117 = vperm.xlu0 %10650, %v11064_v59   ;;  %v9931_v43 = vpack.c.bf16 %v1284_v45, %v1283_v44 }
  0xd3   :  { %6885 = vmatmul.mubr.msk.f32.gmra.mrb[12].mxu0 %vm477_vm13, %v10766_v12  ;;  %1114 = vperm.xlu1 %10649, %v11046_v53   ;;  %v416_v53 = vpop.permute.xlu1 %415  ;;  %v419_v59 = vpop.permute.xlu0 %418 }
  0xd4   :  { %6886 = vmatprep.mubr.msk.f32.mxu0 %vm480_vm14, %v10766_v12  ;;  %9896 = vmatpush1.bf16.msra.mxu0 %v9895_v47  ;;  %vm484_vm2 = vcmp.eq.s32.totalorder %v11118_v2, %v416_v53  ;;  %vm483_vm3 = vcmp.eq.s32.totalorder %v11113_v30, %v416_v53  ;;  %vm486_vm4 = vcmp.eq.s32.totalorder %v11118_v2, %v419_v59  ;;  %v1285_v47 = vld [vmem:[#allocation6 + $0x230] sm:$0xff] }
  0xd5   :  { %9897 = vmatprep.subr.bf16.mxu0 %v14689_v1  ;;  %10651 = vset.pattern.permute.xlu0 %v14687_v0  ;;  %vm485_vm5 = vcmp.eq.s32.totalorder %v11113_v30, %v419_v59  ;;  %v9934_v48 = vpack.c.bf16 %v1286_v49, %v1285_v47  ;;  %v7081_v47 = vld [vmem:[%s14673_s2 + $0x88] sm:$0xff]  ;;  %v7082_v49 = vld [vmem:[%s14673_s2 + $0x90] sm:$0xff] }
  0xd7   :  { %6887 = vmatmul.mubr.msk.f32.gmra.mrb[14].mxu0 %vm479_vm15, %v10766_v12  ;;  %1120 = vperm.xlu1 %10649, %v11059_v58   ;;  %v9904_v58 = vpack.c.bf16 %v374_v57, %v373_v56  ;;  %v422_v62 = vpop.permute.xlu1 %421  ;;  %v425_v10 = vpop.permute.xlu0 %424  ;;  %v1290_v56 = vld [vmem:[#allocation6 + $0x258] sm:$0xff] }
  0xd8   :  { %6888 = vmatprep.mubr.msk.f32.mxu0 %vm482_vm0, %v10766_v12  ;;  %9899 = vmatpush1.bf16.msra.mxu0 %v9898_v51  ;;  %vm488_vm6 = vcmp.eq.s32.totalorder %v11118_v2, %v422_v62  ;;  %vm487_vm7 = vcmp.eq.s32.totalorder %v11113_v30, %v422_v62  ;;  %vm490_vm8 = vcmp.eq.s32.totalorder %v11118_v2, %v425_v10  ;;  %v1287_v51 = vld [vmem:[#allocation6 + $0x240] sm:$0xff] }
  0xd9   :  { %9900 = vmatprep.subr.bf16.mxu0 %v14689_v1  ;;  %vm489_vm9 = vcmp.eq.s32.totalorder %v11113_v30, %v425_v10  ;;  %v9937_v53 = vpack.c.bf16 %v1288_v52, %v1287_v51 }
  0xdb   :  { %6889 = vmatmul.mubr.msk.f32.gmra.mrb[16].mxu0 %vm481_vm1, %v10766_v12  ;;  %10652 = vset.pattern.permute.xlu1 %v14687_v0  ;;  %v428_v16 = vpop.permute.xlu1 %427  ;;  %v431_v22 = vpop.permute.xlu0 %430 }
  0xdc   :  { %6890 = vmatprep.mubr.msk.f32.mxu0 %vm484_vm2, %v10766_v12  ;;  %9902 = vmatpush1.bf16.msra.mxu0 %v9901_v55  ;;  %vm492_vm10 = vcmp.eq.s32.totalorder %v11118_v2, %v428_v16  ;;  %vm491_vm11 = vcmp.eq.s32.totalorder %v11113_v30, %v428_v16  ;;  %vm494_vm12 = vcmp.eq.s32.totalorder %v11118_v2, %v431_v22  ;;  %v1289_v55 = vld [vmem:[#allocation6 + $0x250] sm:$0xff] }
  0xdd   :  { %9903 = vmatprep.subr.bf16.mxu0 %v14689_v1  ;;  %vm493_vm13 = vcmp.eq.s32.totalorder %v11113_v30, %v431_v22  ;;  %v9940_v59 = vpack.c.bf16 %v1290_v56, %v1289_v55 }
  0xdf   :  { %6891 = vmatmul.mubr.msk.f32.gmra.mrb[18].mxu0 %vm483_vm3, %v10766_v12  ;;  %v434_v5 = vpop.permute.xlu1 %433  ;;  %v437_v13 = vpop.permute.xlu0 %436 }
  0xe0   :  { %6892 = vmatprep.mubr.msk.f32.mxu0 %vm486_vm4, %v10766_v12  ;;  %9905 = vmatpush1.bf16.msra.mxu0 %v9904_v58  ;;  %vm496_vm14 = vcmp.eq.s32.totalorder %v11118_v2, %v434_v5  ;;  %vm495_vm15 = vcmp.eq.s32.totalorder %v11113_v30, %v434_v5  ;;  %vm498_vm0 = vcmp.eq.s32.totalorder %v11118_v2, %v437_v13  ;;  %v1291_v58 = vld [vmem:[#allocation6 + $0x260] sm:$0xff] }
  0xe1   :  { %9906 = vmatprep.subr.bf16.mxu0 %v14689_v1  ;;  %vm497_vm1 = vcmp.eq.s32.totalorder %v11113_v30, %v437_v13  ;;  %v9943_v62 = vpack.c.bf16 %v1292_v60, %v1291_v58 }
  0xe3   :  { %6893 = vmatmul.mubr.msk.f32.gmra.mrb[20].mxu0 %vm485_vm5, %v10766_v12  ;;  %v440_v18 = vpop.permute.xlu1 %439  ;;  %v443_v24 = vpop.permute.xlu0 %442 }
  0xe4   :  { %6894 = vmatprep.mubr.msk.f32.mxu0 %vm488_vm6, %v10766_v12  ;;  %9908 = vmatpush1.bf16.msra.mxu0 %v9907_v63  ;;  %vm500_vm2 = vcmp.eq.s32.totalorder %v11118_v2, %v440_v18  ;;  %vm499_vm3 = vcmp.eq.s32.totalorder %v11113_v30, %v440_v18  ;;  %vm502_vm4 = vcmp.eq.s32.totalorder %v11118_v2, %v443_v24  ;;  %v1293_v63 = vld [vmem:[#allocation6 + $0x270] sm:$0xff]  ;;  %v1304_v18 = vld [vmem:[#allocation6 + $0x2c8] sm:$0xff] }
  0xe5   :  { %9909 = vmatprep.subr.bf16.mxu0 %v14689_v1  ;;  %vm501_vm5 = vcmp.eq.s32.totalorder %v11113_v30, %v443_v24  ;;  %v9946_v10 = vpack.c.bf16 %v1294_v8, %v1293_v63 }
  0xe7   :  { %6895 = vmatmul.mubr.msk.f32.gmra.mrb[22].mxu0 %vm487_vm7, %v10766_v12  ;;  %v446_v29 = vpop.permute.xlu1 %445  ;;  %v449_v31 = vpop.permute.xlu0 %448 }
  0xe8   :  { %6896 = vmatprep.mubr.msk.f32.mxu0 %vm490_vm8, %v10766_v12  ;;  %9911 = vmatpush1.bf16.msra.mxu0 %v9910_v11  ;;  %vm504_vm6 = vcmp.eq.s32.totalorder %v11118_v2, %v446_v29  ;;  %vm503_vm7 = vcmp.eq.s32.totalorder %v11113_v30, %v446_v29  ;;  %vm506_vm8 = vcmp.eq.s32.totalorder %v11118_v2, %v449_v31  ;;  %v1295_v11 = vld [vmem:[#allocation6 + $0x280] sm:$0xff] }
  0xe9   :  { %9912 = vmatprep.subr.bf16.mxu0 %v14689_v1  ;;  %v9949_v16 = vpack.c.bf16 %v1296_v14, %v1295_v11  ;;  %v7128_v11 = vld [vmem:[%s14673_s2 + $0x200] sm:$0xff]  ;;  %v7129_v14 = vld [vmem:[%s14673_s2 + $0x208] sm:$0xff] }
  0xeb   :  { %6897 = vmatmul.mubr.msk.f32.gmra.mrb[24].mxu0 %vm489_vm9, %v10766_v12  ;;  %v452_v23 = vpop.permute.xlu1 %451  ;;  %vm505_vm9 = vcmp.eq.s32.totalorder %v11113_v30, %v449_v31  ;;  %v455_v32 = vpop.permute.xlu0 %454  ;;  %v1305_v31 = vld [vmem:[#allocation6 + $0x2d0] sm:$0xff] }
  0xec   :  { %6898 = vmatprep.mubr.msk.f32.mxu0 %vm492_vm10, %v10766_v12  ;;  %9914 = vmatpush1.bf16.msra.mxu0 %v9913_v17  ;;  %vm508_vm10 = vcmp.eq.s32.totalorder %v11118_v2, %v452_v23  ;;  %v1297_v17 = vld [vmem:[#allocation6 + $0x290] sm:$0xff] }
  0xed   :  { %9915 = vmatprep.subr.bf16.mxu0 %v14689_v1  ;;  %v9952_v22 = vpack.c.bf16 %v1298_v20, %v1297_v17  ;;  %v7130_v17 = vld [vmem:[%s14673_s2 + $0x210] sm:$0xff]  ;;  %v7131_v20 = vld [vmem:[%s14673_s2 + $0x218] sm:$0xff] }
  0xef   :  { %6899 = vmatmul.mubr.msk.f32.gmra.mrb[26].mxu0 %vm491_vm11, %v10766_v12  ;;  %vm507_vm11 = vcmp.eq.s32.totalorder %v11113_v30, %v452_v23  ;;  %v458_v34 = vpop.permute.xlu1 %457  ;;  %v461_v35 = vpop.permute.xlu0 %460  ;;  %v1306_v23 = vld [vmem:[#allocation6 + $0x2d8] sm:$0xff] }
  0xf0   :  { %6900 = vmatprep.mubr.msk.f32.mxu0 %vm494_vm12, %v10766_v12  ;;  %9917 = vmatpush1.bf16.msra.mxu0 %v9916_v25  ;;  %vm510_vm12 = vcmp.eq.s32.totalorder %v11118_v2, %v455_v32  ;;  %v1299_v25 = vld [vmem:[#allocation6 + $0x2a0] sm:$0xff] }
  0xf1   :  { %9918 = vmatprep.subr.bf16.mxu0 %v14689_v1  ;;  %v9955_v5 = vpack.c.bf16 %v1300_v26, %v1299_v25  ;;  %v7132_v25 = vld [vmem:[%s14673_s2 + $0x220] sm:$0xff]  ;;  %v7133_v26 = vld [vmem:[%s14673_s2 + $0x228] sm:$0xff] }
  0xf3   :  { %6901 = vmatmul.mubr.msk.f32.gmra.mrb[28].mxu0 %vm493_vm13, %v10766_v12  ;;  %vm509_vm13 = vcmp.eq.s32.totalorder %v11113_v30, %v455_v32  ;;  %v464_v28 = vpop.permute.xlu1 %463  ;;  %v123_v36 = vpop.permute.xlu0 %122 }
  0xf4   :  { %6902 = vmatprep.mubr.msk.f32.mxu0 %vm496_vm14, %v10766_v12  ;;  %9920 = vmatpush1.bf16.msra.mxu0 %v9919_v4  ;;  %vm512_vm14 = vcmp.eq.s32.totalorder %v11118_v2, %v458_v34  ;;  %v1301_v4 = vld [vmem:[#allocation6 + $0x2b0] sm:$0xff] }
  0xf5   :  { %9921 = vmatprep.subr.bf16.mxu0 %v14689_v1  ;;  %v9958_v13 = vpack.c.bf16 %v1302_v6, %v1301_v4  ;;  %v7135_v4 = vld [vmem:[%s14673_s2 + $0x238] sm:$0xff] }
  0xf7   :  { %6903 = vmatmul.mubr.msk.f32.gmra.mrb[30].mxu0 %vm495_vm15, %v10766_v12  ;;  %vm511_vm15 = vcmp.eq.s32.totalorder %v11113_v30, %v458_v34  ;;  %v126_v33 = vpop.permute.xlu1 %125  ;;  %v132_v50 = vpop.permute.xlu0 %131  ;;  %v9964_v34 = vpack.c.bf16 %v1306_v23, %v1305_v31 }
  0xf8   :  { %6904 = vmatprep.mubr.msk.f32.mxu0 %vm498_vm0, %v10766_v12  ;;  %9923 = vmatpush1.bf16.msra.mxu0 %v9922_v19  ;;  %vm514_vm0 = vcmp.eq.s32.totalorder %v11118_v2, %v461_v35  ;;  %v1303_v19 = vld [vmem:[#allocation6 + $0x2c0] sm:$0xff] }
  0xf9   :  { %9924 = vmatprep.subr.bf16.mxu0 %v14689_v1  ;;  %v9961_v29 = vpack.c.bf16 %v1304_v18, %v1303_v19 }
  0xfb   :  { %6905 = vmatmul.mubr.msk.f32.gmra.mrb[32].mxu0 %vm497_vm1, %v10766_v12  ;;  %vm513_vm1 = vcmp.eq.s32.totalorder %v11113_v30, %v461_v35  ;;  %v129_v46 = vpop.permute.xlu1 %128  ;;  %v138_v57 = vpop.permute.xlu0 %137  ;;  %v1307_v35 = vld [vmem:[#allocation6 + $0x2e0] sm:$0xff] }
  0xfc   :  { %6906 = vmatprep.mubr.msk.f32.mxu0 %vm500_vm2, %v10766_v12  ;;  %vm516_vm2 = vcmp.eq.s32.totalorder %v11118_v2, %v464_v28 }
  0xff   :  { %6907 = vmatmul.mubr.msk.f32.gmra.mrb[34].mxu0 %vm499_vm3, %v10766_v12  ;;  %vm200_vm3 = vcmp.eq.s32.totalorder %v11118_v2, %v123_v36  ;;  %v135_v54 = vpop.permute.xlu1 %134  ;;  %v144_v9 = vpop.permute.xlu0 %143 }
 0x100   :  { %6908 = vmatprep.mubr.msk.f32.mxu0 %vm502_vm4, %v10766_v12  ;;  %vm515_vm4 = vcmp.eq.s32.totalorder %v11113_v30, %v464_v28  ;;  %v1308_v28 = vld [vmem:[#allocation6 + $0x2e8] sm:$0xff] }
 0x101   :  { %v9967_v37 = vpack.c.bf16 %v1308_v28, %v1307_v35 }
 0x103   :  { %6909 = vmatmul.mubr.msk.f32.gmra.mrb[36].mxu0 %vm501_vm5, %v10766_v12  ;;  %vm199_vm5 = vcmp.eq.s32.totalorder %v11113_v30, %v123_v36  ;;  %v141_v61 = vpop.permute.xlu1 %140  ;;  %v150_v21 = vpop.permute.xlu0 %149 }
 0x104   :  { %6910 = vmatprep.mubr.msk.f32.mxu0 %vm504_vm6, %v10766_v12  ;;  %vm202_vm6 = vcmp.eq.s32.totalorder %v11118_v2, %v126_v33 }
 0x107   :  { %6911 = vmatmul.mubr.msk.f32.gmra.mrb[38].mxu0 %vm503_vm7, %v10766_v12  ;;  %vm201_vm7 = vcmp.eq.s32.totalorder %v11113_v30, %v126_v33  ;;  %v147_v15 = vpop.permute.xlu1 %146  ;;  %v156_v7 = vpop.permute.xlu0 %155  ;;  %v1310_v33 = vld [vmem:[#allocation6 + $0x2f8] sm:$0xff] }
 0x108   :  { %6912 = vmatprep.mubr.msk.f32.mxu0 %vm506_vm8, %v10766_v12  ;;  %vm204_vm8 = vcmp.eq.s32.totalorder %v11118_v2, %v129_v46  ;;  %v9970_v41 = vpack.c.bf16 %v1310_v33, %v1309_v40 }
 0x10b   :  { %6913 = vmatmul.mubr.msk.f32.gmra.mrb[40].mxu0 %vm505_vm9, %v10766_v12  ;;  %vm203_vm9 = vcmp.eq.s32.totalorder %v11113_v30, %v129_v46  ;;  %v153_v3 = vpop.permute.xlu1 %152  ;;  %v162_v32 = vpop.permute.xlu0 %161 }
 0x10c   :  { %6914 = vmatprep.mubr.msk.f32.mxu0 %vm508_vm10, %v10766_v12  ;;  %vm206_vm10 = vcmp.eq.s32.totalorder %v11118_v2, %v132_v50 }
 0x10f   :  { %6915 = vmatmul.mubr.msk.f32.gmra.mrb[42].mxu0 %vm507_vm11, %v10766_v12  ;;  %vm205_vm11 = vcmp.eq.s32.totalorder %v11113_v30, %v132_v50  ;;  %v159_v24 = vpop.permute.xlu1 %158 }
 0x110   :  { %6916 = vmatprep.mubr.msk.f32.mxu0 %vm510_vm12, %v10766_v12  ;;  %vm208_vm12 = vcmp.eq.s32.totalorder %v11118_v2, %v135_v54 }
 0x113   :  { %6917 = vmatmul.mubr.msk.f32.gmra.mrb[44].mxu0 %vm509_vm13, %v10766_v12  ;;  %vm207_vm13 = vcmp.eq.s32.totalorder %v11113_v30, %v135_v54  ;;  %v165_v36 = vpop.permute.xlu1 %164  ;;  %v7084_v54 = vld [vmem:[%s14673_s2 + $0xa0] sm:$0xff] }
 0x114   :  { %6918 = vmatprep.mubr.msk.f32.mxu0 %vm512_vm14, %v10766_v12  ;;  %vm210_vm14 = vcmp.eq.s32.totalorder %v11118_v2, %v138_v57 }
 0x117   :  { %6919 = vmatmul.mubr.msk.f32.gmra.mrb[46].mxu0 %vm511_vm15, %v10766_v12  ;;  %vm209_vm15 = vcmp.eq.s32.totalorder %v11113_v30, %v138_v57  ;;  %v171_v42 = vpop.permute.xlu1 %170  ;;  %v7086_v57 = vld [vmem:[%s14673_s2 + $0xb0] sm:$0xff] }
 0x118   :  { %6920 = vmatprep.mubr.msk.f32.mxu0 %vm514_vm0, %v10766_v12  ;;  %vm212_vm0 = vcmp.eq.s32.totalorder %v11118_v2, %v141_v61 }
 0x11b   :  { %6921 = vmatmul.mubr.msk.f32.gmra.mrb[48].mxu0 %vm513_vm1, %v10766_v12  ;;  %vm211_vm1 = vcmp.eq.s32.totalorder %v11113_v30, %v141_v61  ;;  %v177_v44 = vpop.permute.xlu1 %176  ;;  %v7088_v61 = vld [vmem:[%s14673_s2 + $0xc0] sm:$0xff] }
 0x11c   :  { %6922 = vmatprep.mubr.msk.f32.mxu0 %vm516_vm2, %v10766_v12  ;;  %vm214_vm2 = vcmp.eq.s32.totalorder %v11118_v2, %v144_v9 }
 0x11f   :  { %6923 = vmatmul.mubr.msk.f32.gmra.mrb[50].mxu0 %vm515_vm4, %v10766_v12  ;;  %vm216_vm4 = vcmp.eq.s32.totalorder %v11118_v2, %v147_v15  ;;  %v183_v46 = vpop.permute.xlu1 %182 }
 0x120   :  { %6924 = vmatprep.mubr.msk.f32.mxu0 %vm200_vm3, %v10766_v12  ;;  %vm213_vm3 = vcmp.eq.s32.totalorder %v11113_v30, %v144_v9 }
 0x123   :  { %6925 = vmatmul.mubr.msk.f32.vlgmr.msra.gmra.mrb[0].mxu0 %vm199_vm5, %v10766_v12  ;;  %vm215_vm5 = vcmp.eq.s32.totalorder %v11113_v30, %v147_v15  ;;  %v189_v55 = vpop.permute.xlu1 %188 }
 0x124   :  { %9926 = vmatpush1.bf16.msra.mxu0 %v9925_v39  ;;  %6926 = vmatprep.mubr.msk.f32.mxu0 %vm202_vm6, %v10766_v12  ;;  %vm218_vm6 = vcmp.eq.s32.totalorder %v11118_v2, %v150_v21  ;;  %v168_v39 = vpop.permute.xlu0 %167 }
 0x125   :  { %9927 = vmatprep.subr.bf16.mxu0 %v14689_v1 }
 0x127   :  { %6927 = vmatmul.mubr.msk.f32.gmra.mrb[2].mxu0 %vm201_vm7, %v10766_v12  ;;  %vm217_vm7 = vcmp.eq.s32.totalorder %v11113_v30, %v150_v21  ;;  %v195_v63 = vpop.permute.xlu1 %194 }
 0x128   :  { %6928 = vmatprep.mubr.msk.f32.mxu0 %vm204_vm8, %v10766_v12  ;;  %9929 = vmatpush1.bf16.msra.mxu0 %v9928_v38  ;;  %vm220_vm8 = vcmp.eq.s32.totalorder %v11118_v2, %v153_v3  ;;  %v174_v38 = vpop.permute.xlu0 %173 }
 0x129   :  { %9930 = vmatprep.subr.bf16.mxu0 %v14689_v1 }
 0x12b   :  { %6929 = vmatmul.mubr.msk.f32.gmra.mrb[4].mxu0 %vm203_vm9, %v10766_v12  ;;  %vm219_vm9 = vcmp.eq.s32.totalorder %v11113_v30, %v153_v3  ;;  %v10075_v3 = vpack.c.bf16 %v7133_v26, %v7132_v25  ;;  %v1584_v25 = vld [vmem:[%s14673_s2 + $0x18] sm:$0xff] }
 0x12c   :  { %6930 = vmatprep.mubr.msk.f32.mxu0 %vm206_vm10, %v10766_v12  ;;  %9932 = vmatpush1.bf16.msra.mxu0 %v9931_v43  ;;  %vm222_vm10 = vcmp.eq.s32.totalorder %v11118_v2, %v156_v7  ;;  %v180_v45 = vpop.permute.xlu0 %179  ;;  %v7080_v43 = vld [vmem:[%s14673_s2 + $0x80] sm:$0xff] }
 0x12d   :  { %9933 = vmatprep.subr.bf16.mxu0 %v14689_v1  ;;  %v9973_v50 = vpack.c.bf16 %v7081_v47, %v7080_v43  ;;  %v7137_v47 = vld [vmem:[%s14673_s2 + $0x248] sm:$0xff] }
 0x12f   :  { %6931 = vmatmul.mubr.msk.f32.gmra.mrb[6].mxu0 %vm205_vm11, %v10766_v12  ;;  %vm221_vm11 = vcmp.eq.s32.totalorder %v11113_v30, %v156_v7  ;;  %9974 = vmatpush3.bf16.msra.mxu1 %v9973_v50  ;;  %v7092_v50 = vld [vmem:[%s14673_s2 + $0xe0] sm:$0xff] }
 0x130   :  { %6932 = vmatprep.mubr.msk.f32.mxu0 %vm208_vm12, %v10766_v12  ;;  %9935 = vmatpush1.bf16.msra.mxu0 %v9934_v48  ;;  %vm224_vm12 = vcmp.eq.s32.totalorder %v11118_v2, %v159_v24  ;;  %v7083_v48 = vld [vmem:[%s14673_s2 + $0x98] sm:$0xff]  ;;  %v186_v51 = vpop.permute.xlu0 %185 }
 0x131   :  { %9936 = vmatprep.subr.bf16.mxu0 %v14689_v1  ;;  %v9976_v52 = vpack.c.bf16 %v7083_v48, %v7082_v49  ;;  %9975 = vmatprep.subr.bf16.mxu1 %v14689_v1  ;;  %v7093_v48 = vld [vmem:[%s14673_s2 + $0xe8] sm:$0xff] }
 0x133   :  { %6933 = vmatmul.mubr.msk.f32.gmra.mrb[8].mxu0 %vm207_vm13, %v10766_v12  ;;  %vm223_vm13 = vcmp.eq.s32.totalorder %v11113_v30, %v159_v24  ;;  %9977 = vmatpush3.bf16.msra.mxu1 %v9976_v52 }
 0x134   :  { %6934 = vmatprep.mubr.msk.f32.mxu0 %vm210_vm14, %v10766_v12  ;;  %9938 = vmatpush1.bf16.msra.mxu0 %v9937_v53  ;;  %vm226_vm14 = vcmp.eq.s32.totalorder %v11118_v2, %v162_v32  ;;  %v7085_v53 = vld [vmem:[%s14673_s2 + $0xa8] sm:$0xff]  ;;  %v192_v58 = vpop.permute.xlu0 %191 }
 0x135   :  { %9939 = vmatprep.subr.bf16.mxu0 %v14689_v1  ;;  %v9979_v56 = vpack.c.bf16 %v7085_v53, %v7084_v54  ;;  %9978 = vmatprep.subr.bf16.mxu1 %v14689_v1  ;;  %v9991_v54 = vpack.c.bf16 %v7093_v48, %v7092_v50  ;;  %v7139_v53 = vld [vmem:[%s14673_s2 + $0x258] sm:$0xff] }
 0x137   :  { %6935 = vmatmul.mubr.msk.f32.gmra.mrb[10].mxu0 %vm209_vm15, %v10766_v12  ;;  %vm225_vm15 = vcmp.eq.s32.totalorder %v11113_v30, %v162_v32  ;;  %9980 = vmatpush3.bf16.msra.mxu1 %v9979_v56 }
 0x138   :  { %6936 = vmatprep.mubr.msk.f32.mxu0 %vm212_vm0, %v10766_v12  ;;  %9941 = vmatpush1.bf16.msra.mxu0 %v9940_v59  ;;  %vm228_vm0 = vcmp.eq.s32.totalorder %v11118_v2, %v165_v36  ;;  %v7087_v59 = vld [vmem:[%s14673_s2 + $0xb8] sm:$0xff]  ;;  %v198_v9 = vpop.permute.xlu0 %197 }
 0x139   :  { %9942 = vmatprep.subr.bf16.mxu0 %v14689_v1  ;;  %v9982_v60 = vpack.c.bf16 %v7087_v59, %v7086_v57  ;;  %9981 = vmatprep.subr.bf16.mxu1 %v14689_v1  ;;  %v7094_v57 = vld [vmem:[%s14673_s2 + $0xf0] sm:$0xff]  ;;  %v7095_v59 = vld [vmem:[%s14673_s2 + $0xf8] sm:$0xff] }
 0x13b   :  { %6937 = vmatmul.mubr.msk.f32.gmra.mrb[12].mxu0 %vm211_vm1, %v10766_v12  ;;  %vm227_vm1 = vcmp.eq.s32.totalorder %v11113_v30, %v165_v36  ;;  %9983 = vmatpush3.bf16.msra.mxu1 %v9982_v60  ;;  %v9994_v60 = vpack.c.bf16 %v7095_v59, %v7094_v57  ;;  %v7168_v57 = vld [vmem:[%s14673_s2 + $0x340] sm:$0xff] }
 0x13c   :  { %6938 = vmatprep.mubr.msk.f32.mxu0 %vm214_vm2, %v10766_v12  ;;  %9944 = vmatpush1.bf16.msra.mxu0 %v9943_v62  ;;  %vm230_vm2 = vcmp.eq.s32.totalorder %v11118_v2, %v168_v39  ;;  %v7089_v62 = vld [vmem:[%s14673_s2 + $0xc8] sm:$0xff]  ;;  %v1049_v15 = vpop.permute.xlu0 %1048 }
 0x13d   :  { %9945 = vmatprep.subr.bf16.mxu0 %v14689_v1  ;;  %v9985_v8 = vpack.c.bf16 %v7089_v62, %v7088_v61  ;;  %9984 = vmatprep.subr.bf16.mxu1 %v14689_v1  ;;  %v7141_v61 = vld [vmem:[%s14673_s2 + $0x268] sm:$0xff] }
 0x13f   :  { %6939 = vmatmul.mubr.msk.f32.gmra.mrb[14].mxu0 %vm213_vm3, %v10766_v12  ;;  %vm229_vm3 = vcmp.eq.s32.totalorder %v11113_v30, %v168_v39  ;;  %9986 = vmatpush3.bf16.msra.mxu1 %v9985_v8  ;;  %v7142_v8 = vld [vmem:[%s14673_s2 + $0x270] sm:$0xff] }
 0x140   :  { %6940 = vmatprep.mubr.msk.f32.mxu0 %vm216_vm4, %v10766_v12  ;;  %9947 = vmatpush1.bf16.msra.mxu0 %v9946_v10  ;;  %vm232_vm4 = vcmp.eq.s32.totalorder %v11118_v2, %v171_v42  ;;  %v1046_v10 = vpop.permute.xlu1 %1045 }
 0x141   :  { %9948 = vmatprep.subr.bf16.mxu0 %v14689_v1  ;;  %9987 = vmatprep.subr.bf16.mxu1 %v14689_v1 }
 0x143   :  { %6941 = vmatmul.mubr.msk.f32.gmra.mrb[16].mxu0 %vm215_vm5, %v10766_v12  ;;  %vm231_vm5 = vcmp.eq.s32.totalorder %v11113_v30, %v171_v42 }
 0x144   :  { %6942 = vmatprep.mubr.msk.f32.mxu0 %vm218_vm6, %v10766_v12  ;;  %9950 = vmatpush1.bf16.msra.mxu0 %v9949_v16  ;;  %vm234_vm6 = vcmp.eq.s32.totalorder %v11118_v2, %v174_v38  ;;  %v10069_v16 = vpack.c.bf16 %v7129_v14, %v7128_v11  ;;  %v1052_v21 = vpop.permute.xlu1 %1051 }
 0x145   :  { %9951 = vmatprep.subr.bf16.mxu0 %v14689_v1 }
 0x147   :  { %6943 = vmatmul.mubr.msk.f32.gmra.mrb[18].mxu0 %vm217_vm7, %v10766_v12  ;;  %vm233_vm7 = vcmp.eq.s32.totalorder %v11113_v30, %v174_v38  ;;  %v7090_v38 = vld [vmem:[%s14673_s2 + $0xd0] sm:$0xff] }
 0x148   :  { %6944 = vmatprep.mubr.msk.f32.mxu0 %vm220_vm8, %v10766_v12  ;;  %9953 = vmatpush1.bf16.msra.mxu0 %v9952_v22  ;;  %vm236_vm8 = vcmp.eq.s32.totalorder %v11118_v2, %v177_v44  ;;  %v10072_v22 = vpack.c.bf16 %v7131_v20, %v7130_v17  ;;  %v1055_v6 = vpop.permute.xlu1 %1054 }
 0x149   :  { %9954 = vmatprep.subr.bf16.mxu0 %v14689_v1 }
 0x14b   :  { %6945 = vmatmul.mubr.msk.f32.gmra.mrb[20].mxu0 %vm219_vm9, %v10766_v12  ;;  %vm235_vm9 = vcmp.eq.s32.totalorder %v11113_v30, %v177_v44  ;;  %v7091_v44 = vld [vmem:[%s14673_s2 + $0xd8] sm:$0xff] }
 0x14c   :  { %6946 = vmatprep.mubr.msk.f32.mxu0 %vm222_vm10, %v10766_v12  ;;  %9956 = vmatpush1.bf16.msra.mxu0 %v9955_v5  ;;  %vm238_vm10 = vcmp.eq.s32.totalorder %v11118_v2, %v180_v45  ;;  %v7134_v5 = vld [vmem:[%s14673_s2 + $0x230] sm:$0xff]  ;;  %v1061_v19 = vpop.permute.xlu1 %1060  ;;  %v9988_v43 = vpack.c.bf16 %v7091_v44, %v7090_v38 }
 0x14d   :  { %9957 = vmatprep.subr.bf16.mxu0 %v14689_v1  ;;  %v10078_v7 = vpack.c.bf16 %v7135_v4, %v7134_v5  ;;  %v7160_v5 = vld [vmem:[%s14673_s2 + $0x300] sm:$0xff]  ;;  %v7161_v4 = vld [vmem:[%s14673_s2 + $0x308] sm:$0xff] }
 0x14e   :  { %9989 = vmatpush3.bf16.msra.mxu1 %v9988_v43 }
 0x14f   :  { %6947 = vmatmul.mubr.msk.f32.gmra.mrb[22].mxu0 %vm221_vm11, %v10766_v12  ;;  %vm237_vm11 = vcmp.eq.s32.totalorder %v11113_v30, %v180_v45  ;;  %v7136_v45 = vld [vmem:[%s14673_s2 + $0x240] sm:$0xff]  ;;  %9990 = vmatprep.subr.bf16.mxu1 %v14689_v1 }
 0x150   :  { %6948 = vmatprep.mubr.msk.f32.mxu0 %vm224_vm12, %v10766_v12  ;;  %9959 = vmatpush1.bf16.msra.mxu0 %v9958_v13  ;;  %vm240_vm12 = vcmp.eq.s32.totalorder %v11118_v2, %v183_v46  ;;  %v1058_v13 = vpop.permute.xlu0 %1057  ;;  %v1067_v24 = vpop.permute.xlu1 %1066  ;;  %v10081_v49 = vpack.c.bf16 %v7137_v47, %v7136_v45  ;;  %v1589_v45 = vld [vmem:[%s14673_s2 + $0x40] sm:$0xff]  ;;  %v7166_v47 = vld [vmem:[%s14673_s2 + $0x330] sm:$0xff] }
 0x151   :  { %9960 = vmatprep.subr.bf16.mxu0 %v14689_v1 }
 0x152   :  { %9992 = vmatpush3.bf16.msra.mxu1 %v9991_v54 }
 0x153   :  { %6949 = vmatmul.mubr.msk.f32.gmra.mrb[24].mxu0 %vm223_vm13, %v10766_v12  ;;  %vm239_vm13 = vcmp.eq.s32.totalorder %v11113_v30, %v183_v46  ;;  %9993 = vmatprep.subr.bf16.mxu1 %v14689_v1 }
 0x154   :  { %6950 = vmatprep.mubr.msk.f32.mxu0 %vm226_vm14, %v10766_v12  ;;  %9962 = vmatpush1.bf16.msra.mxu0 %v9961_v29  ;;  %vm242_vm14 = vcmp.eq.s32.totalorder %v11118_v2, %v186_v51  ;;  %v1064_v18 = vpop.permute.xlu0 %1063  ;;  %v1073_v31 = vpop.permute.xlu1 %1072 }
 0x155   :  { %9963 = vmatprep.subr.bf16.mxu0 %v14689_v1 }
 0x156   :  { %9995 = vmatpush3.bf16.msra.mxu1 %v9994_v60 }
 0x157   :  { %6951 = vmatmul.mubr.msk.f32.gmra.mrb[26].mxu0 %vm225_vm15, %v10766_v12  ;;  %vm241_vm15 = vcmp.eq.s32.totalorder %v11113_v30, %v186_v51  ;;  %v7138_v51 = vld [vmem:[%s14673_s2 + $0x250] sm:$0xff]  ;;  %9996 = vmatprep.subr.bf16.mxu1 %v14689_v1 }
 0x158   :  { %6952 = vmatprep.mubr.msk.f32.mxu0 %vm228_vm0, %v10766_v12  ;;  %9965 = vmatpush1.bf16.msra.mxu0 %v9964_v34  ;;  %vm244_vm0 = vcmp.eq.s32.totalorder %v11118_v2, %v189_v55  ;;  %v1070_v29 = vpop.permute.xlu0 %1069  ;;  %v1079_v32 = vpop.permute.xlu1 %1078 }
 0x159   :  { %9966 = vmatprep.subr.bf16.mxu0 %v14689_v1 }
 0x15b   :  { %6953 = vmatmul.mubr.msk.f32.gmra.mrb[28].mxu0 %vm227_vm1, %v10766_v12  ;;  %vm243_vm1 = vcmp.eq.s32.totalorder %v11113_v30, %v189_v55  ;;  %v10084_v55 = vpack.c.bf16 %v7139_v53, %v7138_v51  ;;  %v7167_v51 = vld [vmem:[%s14673_s2 + $0x338] sm:$0xff]  ;;  %v1591_v53 = vld [vmem:[%s14673_s2 + $0x50] sm:$0xff] }
 0x15c   :  { %6954 = vmatprep.mubr.msk.f32.mxu0 %vm230_vm2, %v10766_v12  ;;  %9968 = vmatpush1.bf16.msra.mxu0 %v9967_v37  ;;  %vm246_vm2 = vcmp.eq.s32.totalorder %v11118_v2, %v192_v58  ;;  %v1076_v23 = vpop.permute.xlu0 %1075  ;;  %v1085_v35 = vpop.permute.xlu1 %1084 }
 0x15d   :  { %9969 = vmatprep.subr.bf16.mxu0 %v14689_v1 }
 0x15f   :  { %6955 = vmatmul.mubr.msk.f32.gmra.mrb[30].mxu0 %vm229_vm3, %v10766_v12  ;;  %vm245_vm3 = vcmp.eq.s32.totalorder %v11113_v30, %v192_v58  ;;  %v7140_v58 = vld [vmem:[%s14673_s2 + $0x260] sm:$0xff] }
 0x160   :  { %6956 = vmatprep.mubr.msk.f32.mxu0 %vm232_vm4, %v10766_v12  ;;  %9971 = vmatpush1.bf16.msra.mxu0 %v9970_v41  ;;  %vm248_vm4 = vcmp.eq.s32.totalorder %v11118_v2, %v195_v63  ;;  %v1082_v34 = vpop.permute.xlu0 %1081  ;;  %v1091_v36 = vpop.permute.xlu1 %1090  ;;  %v10087_v62 = vpack.c.bf16 %v7141_v61, %v7140_v58  ;;  %v7169_v61 = vld [vmem:[%s14673_s2 + $0x348] sm:$0xff] }
 0x161   :  { %10068 = vmatprep.subr.bf16.mxu0 %v14689_v1 }
 0x163   :  { %6957 = vmatmul.mubr.msk.f32.gmra.mrb[32].mxu0 %vm231_vm5, %v10766_v12  ;;  %vm247_vm5 = vcmp.eq.s32.totalorder %v11113_v30, %v195_v63 }
 0x164   :  { %6958 = vmatprep.mubr.msk.f32.mxu0 %vm234_vm6, %v10766_v12  ;;  %vm250_vm6 = vcmp.eq.s32.totalorder %v11118_v2, %v198_v9  ;;  %v1088_v28 = vpop.permute.xlu0 %1087  ;;  %v1097_v40 = vpop.permute.xlu1 %1096 }
 0x167   :  { %6959 = vmatmul.mubr.msk.f32.gmra.mrb[34].mxu0 %vm233_vm7, %v10766_v12  ;;  %vm1123_vm7 = vcmp.eq.s32.totalorder %v11118_v2, %v1046_v10 }
 0x168   :  { %6960 = vmatprep.mubr.msk.f32.mxu0 %vm236_vm8, %v10766_v12  ;;  %vm249_vm8 = vcmp.eq.s32.totalorder %v11113_v30, %v198_v9  ;;  %v1094_v37 = vpop.permute.xlu0 %1093  ;;  %v1103_v39 = vpop.permute.xlu1 %1102  ;;  %v7143_v9 = vld [vmem:[%s14673_s2 + $0x278] sm:$0xff] }
 0x169   :  { %v10090_v11 = vpack.c.bf16 %v7143_v9, %v7142_v8  ;;  %v1593_v8 = vld [vmem:[%s14673_s2 + $0x60] sm:$0xff]  ;;  %v1594_v9 = vld [vmem:[%s14673_s2 + $0x68] sm:$0xff] }
 0x16b   :  { %6961 = vmatmul.mubr.msk.f32.gmra.mrb[36].mxu0 %vm235_vm9, %v10766_v12  ;;  %vm1122_vm9 = vcmp.eq.s32.totalorder %v11113_v30, %v1046_v10  ;;  %v14691_v10 = vmov 0.0  }
 0x16c   :  { %6962 = vmatprep.mubr.msk.f32.mxu0 %vm238_vm10, %v10766_v12  ;;  %vm1125_vm10 = vcmp.eq.s32.totalorder %v11118_v2, %v1049_v15  ;;  %v1100_v33 = vpop.permute.xlu0 %1099  ;;  %v1109_v42 = vpop.permute.xlu1 %1108 }
 0x16f   :  { %6963 = vmatmul.mubr.msk.f32.gmra.mrb[38].mxu0 %vm237_vm11, %v10766_v12  ;;  %vm1124_vm11 = vcmp.eq.s32.totalorder %v11113_v30, %v1049_v15 }
 0x170   :  { %6964 = vmatprep.mubr.msk.f32.mxu0 %vm240_vm12, %v10766_v12  ;;  %vm1127_vm12 = vcmp.eq.s32.totalorder %v11118_v2, %v1052_v21  ;;  %v1106_v41 = vpop.permute.xlu0 %1105  ;;  %v1115_v52 = vpop.permute.xlu1 %1114 }
 0x173   :  { %6965 = vmatmul.mubr.msk.f32.gmra.mrb[40].mxu0 %vm239_vm13, %v10766_v12  ;;  %vm1126_vm13 = vcmp.eq.s32.totalorder %v11113_v30, %v1052_v21 }
 0x174   :  { %6966 = vmatprep.mubr.msk.f32.mxu0 %vm242_vm14, %v10766_v12  ;;  %vm1129_vm14 = vcmp.eq.s32.totalorder %v11118_v2, %v1055_v6  ;;  %v1112_v46 = vpop.permute.xlu0 %1111  ;;  %v1121_v63 = vpop.permute.xlu1 %1120 }
 0x177   :  { %6967 = vmatmul.mubr.msk.f32.gmra.mrb[42].mxu0 %vm241_vm15, %v10766_v12  ;;  %vm1128_vm15 = vcmp.eq.s32.totalorder %v11113_v30, %v1055_v6 }
 0x178   :  { %6968 = vmatprep.mubr.msk.f32.mxu0 %vm244_vm0, %v10766_v12  ;;  %vm1131_vm0 = vcmp.eq.s32.totalorder %v11118_v2, %v1058_v13  ;;  %v1118_v56 = vpop.permute.xlu0 %1117 }
 0x17b   :  { %6969 = vmatmul.mubr.msk.f32.gmra.mrb[44].mxu0 %vm243_vm1, %v10766_v12  ;;  %vm1130_vm1 = vcmp.eq.s32.totalorder %v11113_v30, %v1058_v13  ;;  %v1585_v13 = vld [vmem:[%s14673_s2 + $0x20] sm:$0xff] }
 0x17c   :  { %6970 = vmatprep.mubr.msk.f32.mxu0 %vm246_vm2, %v10766_v12  ;;  %vm1133_vm2 = vcmp.eq.s32.totalorder %v11118_v2, %v1061_v19 }
 0x17f   :  { %6971 = vmatmul.mubr.msk.f32.gmra.mrb[46].mxu0 %vm245_vm3, %v10766_v12  ;;  %vm1132_vm3 = vcmp.eq.s32.totalorder %v11113_v30, %v1061_v19  ;;  %v1586_v19 = vld [vmem:[%s14673_s2 + $0x28] sm:$0xff] }
 0x180   :  { %6972 = vmatprep.mubr.msk.f32.mxu0 %vm248_vm4, %v10766_v12  ;;  %vm1135_vm4 = vcmp.eq.s32.totalorder %v11118_v2, %v1064_v18 }
 0x183   :  { %6973 = vmatmul.mubr.msk.f32.gmra.mrb[48].mxu0 %vm247_vm5, %v10766_v12  ;;  %vm1134_vm5 = vcmp.eq.s32.totalorder %v11113_v30, %v1064_v18  ;;  %v10117_v18 = vpack.c.bf16 %v7161_v4, %v7160_v5  ;;  %v7172_v4 = vld [vmem:[%s14673_s2 + $0x360] sm:$0xff] }
 0x184   :  { %6974 = vmatprep.mubr.msk.f32.mxu0 %vm250_vm6, %v10766_v12  ;;  %vm1137_vm6 = vcmp.eq.s32.totalorder %v11118_v2, %v1067_v24 }
 0x187   :  { %6975 = vmatmul.mubr.msk.f32.gmra.mrb[50].mxu0 %vm249_vm8, %v10766_v12  ;;  %vm1139_vm8 = vcmp.eq.s32.totalorder %v11118_v2, %v1070_v29 }
 0x188   :  { %7028 = vmatprep.mubr.msk.f32.mxu0 %vm1123_vm7, %v10766_v12  ;;  %vm1136_vm7 = vcmp.eq.s32.totalorder %v11113_v30, %v1067_v24  ;;  %v7162_v24 = vld [vmem:[%s14673_s2 + $0x310] sm:$0xff] }
 0x18b   :  { %7029 = vmatmul.mubr.msk.f32.vlgmr.msra.gmra.mrb[0].mxu0 %vm1122_vm9, %v10766_v12  ;;  %vm1138_vm9 = vcmp.eq.s32.totalorder %v11113_v30, %v1070_v29 }
 0x18c   :  { %7030 = vmatprep.mubr.msk.f32.mxu0 %vm1125_vm10, %v10766_v12  ;;  %10070 = vmatpush3.bf16.msra.mxu0 %v10069_v16  ;;  %vm1141_vm10 = vcmp.eq.s32.totalorder %v11118_v2, %v1073_v31 }
 0x18d   :  { %10071 = vmatprep.subr.bf16.mxu0 %v14689_v1 }
 0x18f   :  { %7031 = vmatmul.mubr.msk.f32.gmra.mrb[2].mxu0 %vm1124_vm11, %v10766_v12  ;;  %vm1140_vm11 = vcmp.eq.s32.totalorder %v11113_v30, %v1073_v31 }
 0x190   :  { %7032 = vmatprep.mubr.msk.f32.mxu0 %vm1127_vm12, %v10766_v12  ;;  %10073 = vmatpush3.bf16.msra.mxu0 %v10072_v22  ;;  %vm1143_vm12 = vcmp.eq.s32.totalorder %v11118_v2, %v1076_v23  ;;  %v1583_v22 = vld [vmem:[%s14673_s2 + $0x10] sm:$0xff] }
 0x191   :  { %10074 = vmatprep.subr.bf16.mxu0 %v14689_v1 }
 0x193   :  { %7033 = vmatmul.mubr.msk.f32.gmra.mrb[4].mxu0 %vm1126_vm13, %v10766_v12  ;;  %vm1142_vm13 = vcmp.eq.s32.totalorder %v11113_v30, %v1076_v23 }
 0x194   :  { %7034 = vmatprep.mubr.msk.f32.mxu0 %vm1129_vm14, %v10766_v12  ;;  %10076 = vmatpush3.bf16.msra.mxu0 %v10075_v3  ;;  %vm1145_vm14 = vcmp.eq.s32.totalorder %v11118_v2, %v1079_v32 }
 0x195   :  { %10077 = vmatprep.subr.bf16.mxu0 %v14689_v1 }
 0x197   :  { %7035 = vmatmul.mubr.msk.f32.gmra.mrb[6].mxu0 %vm1128_vm15, %v10766_v12  ;;  %vm1144_vm15 = vcmp.eq.s32.totalorder %v11113_v30, %v1079_v32  ;;  %v7163_v32 = vld [vmem:[%s14673_s2 + $0x318] sm:$0xff] }
 0x198   :  { %7036 = vmatprep.mubr.msk.f32.mxu0 %vm1131_vm0, %v10766_v12  ;;  %10079 = vmatpush3.bf16.msra.mxu0 %v10078_v7  ;;  %vm1147_vm0 = vcmp.eq.s32.totalorder %v11118_v2, %v1082_v34  ;;  %v10000_v7 = vpack.c.bf16 %v1584_v25, %v1583_v22  ;;  %v10015_v22 = vpack.c.bf16 %v1594_v9, %v1593_v8  ;;  %v1595_v25 = vld [vmem:[%s14673_s2 + $0x70] sm:$0xff] }
 0x199   :  { %10080 = vmatprep.subr.bf16.mxu0 %v14689_v1 }
 0x19b   :  { %7037 = vmatmul.mubr.msk.f32.gmra.mrb[8].mxu0 %vm1130_vm1, %v10766_v12  ;;  %vm1146_vm1 = vcmp.eq.s32.totalorder %v11113_v30, %v1082_v34 }
 0x19c   :  { %7038 = vmatprep.mubr.msk.f32.mxu0 %vm1133_vm2, %v10766_v12  ;;  %vm1149_vm2 = vcmp.eq.s32.totalorder %v11118_v2, %v1085_v35  ;;  %10082 = vmatpush3.bf16.msra.mxu0 %v10081_v49 }
 0x19d   :  { %10083 = vmatprep.subr.bf16.mxu0 %v14689_v1 }
 0x19f   :  { %7039 = vmatmul.mubr.msk.f32.gmra.mrb[10].mxu0 %vm1132_vm3, %v10766_v12  ;;  %vm1148_vm3 = vcmp.eq.s32.totalorder %v11113_v30, %v1085_v35  ;;  %v10003_v35 = vpack.c.bf16 %v1586_v19, %v1585_v13  ;;  %v7173_v19 = vld [vmem:[%s14673_s2 + $0x368] sm:$0xff] }
 0x1a0   :  { %7040 = vmatprep.mubr.msk.f32.mxu0 %vm1135_vm4, %v10766_v12  ;;  %vm1151_vm4 = vcmp.eq.s32.totalorder %v11118_v2, %v1088_v28  ;;  %10085 = vmatpush3.bf16.msra.mxu0 %v10084_v55  ;;  %v1592_v55 = vld [vmem:[%s14673_s2 + $0x58] sm:$0xff] }
 0x1a1   :  { %10086 = vmatprep.subr.bf16.mxu0 %v14689_v1 }
 0x1a3   :  { %7041 = vmatmul.mubr.msk.f32.gmra.mrb[12].mxu0 %vm1134_vm5, %v10766_v12  ;;  %vm1150_vm5 = vcmp.eq.s32.totalorder %v11113_v30, %v1088_v28  ;;  %v1587_v28 = vld [vmem:[%s14673_s2 + $0x30] sm:$0xff] }
 0x1a4   :  { %7042 = vmatprep.mubr.msk.f32.mxu0 %vm1137_vm6, %v10766_v12  ;;  %vm1153_vm6 = vcmp.eq.s32.totalorder %v11118_v2, %v1091_v36  ;;  %10088 = vmatpush3.bf16.msra.mxu0 %v10087_v62 }
 0x1a5   :  { %10089 = vmatprep.subr.bf16.mxu0 %v14689_v1 }
 0x1a7   :  { %7043 = vmatmul.mubr.msk.f32.gmra.mrb[14].mxu0 %vm1136_vm7, %v10766_v12  ;;  %vm1152_vm7 = vcmp.eq.s32.totalorder %v11113_v30, %v1091_v36  ;;  %v1588_v36 = vld [vmem:[%s14673_s2 + $0x38] sm:$0xff] }
 0x1a8   :  { %7044 = vmatprep.mubr.msk.f32.mxu0 %vm1139_vm8, %v10766_v12  ;;  %vm1155_vm8 = vcmp.eq.s32.totalorder %v11118_v2, %v1094_v37  ;;  %10091 = vmatpush3.bf16.msra.mxu0 %v10090_v11  ;;  %v10006_v44 = vpack.c.bf16 %v1588_v36, %v1587_v28  ;;  %v10129_v11 = vpack.c.bf16 %v7169_v61, %v7168_v57  ;;  %v7175_v36 = vld [vmem:[%s14673_s2 + $0x378] sm:$0xff] }
 0x1a9   :  { %10116 = vmatprep.subr.bf16.mxu0 %v14689_v1 }
 0x1ab   :  { %7045 = vmatmul.mubr.msk.f32.gmra.mrb[16].mxu0 %vm1138_vm9, %v10766_v12  ;;  %vm1154_vm9 = vcmp.eq.s32.totalorder %v11113_v30, %v1094_v37  ;;  %v10120_v37 = vpack.c.bf16 %v7163_v32, %v7162_v24  ;;  %v7174_v32 = vld [vmem:[%s14673_s2 + $0x370] sm:$0xff] }
 0x1ac   :  { %7046 = vmatprep.mubr.msk.f32.mxu0 %vm1141_vm10, %v10766_v12  ;;  %vm1157_vm10 = vcmp.eq.s32.totalorder %v11118_v2, %v1097_v40 }
 0x1af   :  { %7047 = vmatmul.mubr.msk.f32.gmra.mrb[18].mxu0 %vm1140_vm11, %v10766_v12  ;;  %vm1156_vm11 = vcmp.eq.s32.totalorder %v11113_v30, %v1097_v40  ;;  %v7164_v40 = vld [vmem:[%s14673_s2 + $0x320] sm:$0xff] }
 0x1b0   :  { %7048 = vmatprep.mubr.msk.f32.mxu0 %vm1143_vm12, %v10766_v12  ;;  %vm1159_vm12 = vcmp.eq.s32.totalorder %v11118_v2, %v1100_v33 }
 0x1b3   :  { %7049 = vmatmul.mubr.msk.f32.gmra.mrb[20].mxu0 %vm1142_vm13, %v10766_v12  ;;  %vm1158_vm13 = vcmp.eq.s32.totalorder %v11113_v30, %v1100_v33 }
 0x1b4   :  { %7050 = vmatprep.mubr.msk.f32.mxu0 %vm1145_vm14, %v10766_v12  ;;  %vm1161_vm14 = vcmp.eq.s32.totalorder %v11118_v2, %v1103_v39 }
 0x1b7   :  { %7051 = vmatmul.mubr.msk.f32.gmra.mrb[22].mxu0 %vm1144_vm15, %v10766_v12  ;;  %vm1160_vm15 = vcmp.eq.s32.totalorder %v11113_v30, %v1103_v39 }
 0x1b8   :  { %7052 = vmatprep.mubr.msk.f32.mxu0 %vm1147_vm0, %v10766_v12  ;;  %vm1163_vm0 = vcmp.eq.s32.totalorder %v11118_v2, %v1106_v41 }
 0x1bb   :  { %7053 = vmatmul.mubr.msk.f32.gmra.mrb[24].mxu0 %vm1146_vm1, %v10766_v12  ;;  %vm1162_vm1 = vcmp.eq.s32.totalorder %v11113_v30, %v1106_v41 }
 0x1bc   :  { %7054 = vmatprep.mubr.msk.f32.mxu0 %vm1149_vm2, %v10766_v12  ;;  %vm1165_vm2 = vcmp.eq.s32.totalorder %v11118_v2, %v1109_v42 }
 0x1bf   :  { %7055 = vmatmul.mubr.msk.f32.gmra.mrb[26].mxu0 %vm1148_vm3, %v10766_v12  ;;  %vm1164_vm3 = vcmp.eq.s32.totalorder %v11113_v30, %v1109_v42  ;;  %v7165_v42 = vld [vmem:[%s14673_s2 + $0x328] sm:$0xff] }
 0x1c0   :  { %7056 = vmatprep.mubr.msk.f32.mxu0 %vm1151_vm4, %v10766_v12  ;;  %vm1167_vm4 = vcmp.eq.s32.totalorder %v11118_v2, %v1112_v46  ;;  %v10123_v43 = vpack.c.bf16 %v7165_v42, %v7164_v40  ;;  %v10138_v40 = vpack.c.bf16 %v7175_v36, %v7174_v32 }
 0x1c3   :  { %7057 = vmatmul.mubr.msk.f32.gmra.mrb[28].mxu0 %vm1150_vm5, %v10766_v12  ;;  %vm1166_vm5 = vcmp.eq.s32.totalorder %v11113_v30, %v1112_v46  ;;  %v1590_v46 = vld [vmem:[%s14673_s2 + $0x48] sm:$0xff] }
 0x1c4   :  { %7058 = vmatprep.mubr.msk.f32.mxu0 %vm1153_vm6, %v10766_v12  ;;  %vm1169_vm6 = vcmp.eq.s32.totalorder %v11118_v2, %v1115_v52  ;;  %v10009_v54 = vpack.c.bf16 %v1590_v46, %v1589_v45 }
 0x1c7   :  { %7059 = vmatmul.mubr.msk.f32.gmra.mrb[30].mxu0 %vm1152_vm7, %v10766_v12  ;;  %vm1168_vm7 = vcmp.eq.s32.totalorder %v11113_v30, %v1115_v52 }
 0x1c8   :  { %7060 = vmatprep.mubr.msk.f32.mxu0 %vm1155_vm8, %v10766_v12  ;;  %vm1171_vm8 = vcmp.eq.s32.totalorder %v11118_v2, %v1118_v56 }
 0x1cb   :  { %7061 = vmatmul.mubr.msk.f32.gmra.mrb[32].mxu0 %vm1154_vm9, %v10766_v12  ;;  %vm1170_vm9 = vcmp.eq.s32.totalorder %v11113_v30, %v1118_v56  ;;  %v10126_v56 = vpack.c.bf16 %v7167_v51, %v7166_v47 }
 0x1cc   :  { %7062 = vmatprep.mubr.msk.f32.mxu0 %vm1157_vm10, %v10766_v12  ;;  %vm10767_vm10 = vmmov 0  }
 0x1cd   :  { %8007 = vmatprep.mubr.msk.f32.mxu1 %vm10767_vm10, %v14691_v10 }
 0x1cf   :  { %7063 = vmatmul.mubr.msk.f32.gmra.mrb[34].mxu0 %vm1156_vm11, %v10766_v12  ;;  %vm1173_vm11 = vcmp.eq.s32.totalorder %v11118_v2, %v1121_v63 }
 0x1d0   :  { %7064 = vmatprep.mubr.msk.f32.mxu0 %vm1159_vm12, %v10766_v12  ;;  %vm1172_vm12 = vcmp.eq.s32.totalorder %v11113_v30, %v1121_v63  ;;  %v1581_v30 = vld [vmem:[%s14673_s2] sm:$0xff]  ;;  %v10012_v63 = vpack.c.bf16 %v1592_v55, %v1591_v53 }
 0x1d3   :  { %7065 = vmatmul.mubr.msk.f32.gmra.mrb[36].mxu0 %vm1158_vm13, %v10766_v12  ;;  %vm6187_vm13 = vcmask 1040384  }
 0x1d4   :  { %7066 = vmatprep.mubr.msk.f32.mxu0 %vm1161_vm14, %v10766_v12  ;;  %vm6486_vm14 = vcmask 523264  }
 0x1d7   :  { %7067 = vmatmul.mubr.msk.f32.gmra.mrb[38].mxu0 %vm1160_vm15, %v10766_v12  ;;  %vm6638_vm15 = vcmask 1041408  }
 0x1d8   :  { %7068 = vmatprep.mubr.msk.f32.mxu0 %vm1163_vm0, %v10766_v12 }
 0x1db   :  { %7069 = vmatmul.mubr.msk.f32.gmra.mrb[40].mxu0 %vm1162_vm1, %v10766_v12 }
 0x1dc   :  { %7070 = vmatprep.mubr.msk.f32.mxu0 %vm1165_vm2, %v10766_v12 }
 0x1df   :  { %7071 = vmatmul.mubr.msk.f32.gmra.mrb[42].mxu0 %vm1164_vm3, %v10766_v12 }
 0x1e0   :  { %7072 = vmatprep.mubr.msk.f32.mxu0 %vm1167_vm4, %v10766_v12 }
 0x1e3   :  { %7073 = vmatmul.mubr.msk.f32.gmra.mrb[44].mxu0 %vm1166_vm5, %v10766_v12 }
 0x1e4   :  { %7074 = vmatprep.mubr.msk.f32.mxu0 %vm1169_vm6, %v10766_v12 }
 0x1e7   :  { %7075 = vmatmul.mubr.msk.f32.gmra.mrb[46].mxu0 %vm1168_vm7, %v10766_v12 }
 0x1e8   :  { %7076 = vmatprep.mubr.msk.f32.mxu0 %vm1171_vm8, %v10766_v12 }
 0x1eb   :  { %7077 = vmatmul.mubr.msk.f32.gmra.mrb[48].mxu0 %vm1170_vm9, %v10766_v12 }
 0x1ec   :  { %7078 = vmatprep.mubr.msk.f32.mxu0 %vm1173_vm11, %v10766_v12 }
 0x1ef   :  { %7079 = vmatmul.mubr.msk.f32.gmra.mrb[50].mxu0 %vm1172_vm12, %v10766_v12  ;;  %v1582_v12 = vld [vmem:[%s14673_s2 + $0x8] sm:$0xff] }
 0x1f0   :  { %8411 = vmatprep.mubr.msk.f32.mxu0 %vm10767_vm10, %v14691_v10  ;;  %v9997_v21 = vpack.c.bf16 %v1582_v12, %v1581_v30 }
 0x25e   :  { %v11598_v14 = vpop.f32.mrb[0].mxu0 }
 0x25f   :  { %1532 = vst [vmem:[#allocation2] sm:$0xff] %v11598_v14  ;;  %v1379_v15 = vpop.f32.mrb[1].mxu0 }
 0x260   :  { %v7170_v15 = vld [vmem:[%s14673_s2 + $0x350] sm:$0xff] }
 0x262   :  { %v11601_v2 = vpop.f32.mrb[2].mxu0 }
 0x263   :  { %1533 = vst [vmem:[#allocation2 + $0x8] sm:$0xff] %v11601_v2  ;;  %v1384_v16 = vpop.f32.mrb[3].mxu0 }
 0x266   :  { %v11610_v17 = vpop.f32.mrb[4].mxu0 }
 0x267   :  { %1534 = vst [vmem:[#allocation2 + $0x10] sm:$0xff] %v11610_v17  ;;  %v1389_v20 = vpop.f32.mrb[5].mxu0 }
 0x268   :  { %v7171_v20 = vld [vmem:[%s14673_s2 + $0x358] sm:$0xff] }
 0x269   :  { %v10132_v5 = vpack.c.bf16 %v7171_v20, %v7170_v15 }
 0x26a   :  { %v11619_v26 = vpop.f32.mrb[6].mxu0  ;;  %v1597_v3 = vld [vmem:[#allocation2 + $0x1] sm:$0xff] }
 0x26b   :  { %1535 = vst [vmem:[#allocation2 + $0x18] sm:$0xff] %v11619_v26  ;;  %v1394_v6 = vpop.f32.mrb[7].mxu0  ;;  %8008 = vmatmul.mubr.f32.vlgmr.msra.gmra.mrb[0].mxu1 %v1597_v3  ;;  %v1596_v3 = vld [vmem:[%s14673_s2 + $0x78] sm:$0xff] }
 0x26c   :  { %9998 = vmatpush3.bf16.msra.mxu1 %v9997_v21  ;;  %8010 = vmatprep.mubr.msk.f32.mxu1 %vm10767_vm10, %v14691_v10  ;;  %v10018_v24 = vpack.c.bf16 %v1596_v3, %v1595_v25 }
 0x26d   :  { %9999 = vmatprep.subr.bf16.mxu1 %v14689_v1 }
 0x26e   :  { %v11640_v29 = vpop.f32.mrb[8].mxu0  ;;  %v1598_v31 = vld [vmem:[#allocation2 + $0x9] sm:$0xff] }
 0x26f   :  { %v11642_v23 = vld [vmem:[#allocation2 + $0xa] sm:$0xff]  ;;  %1536 = vst [vmem:[#allocation2 + $0x20] sm:$0xff] %v11640_v29  ;;  %v1399_v34 = vpop.f32.mrb[9].mxu0  ;;  %8011 = vmatmul.mubr.f32.gmra.mrb[2].mxu1 %v1598_v31  ;;  %v10135_v31 = vpack.c.bf16 %v7173_v19, %v7172_v4 }
 0x270   :  { %8412 = vmatmul.mubr.f32.vlgmr.msra.gmra.mrb[52].mxu0 %v11642_v23  ;;  %8013 = vmatprep.mubr.msk.f32.mxu1 %vm10767_vm10, %v14691_v10 }
 0x271   :  { %8414 = vmatprep.mubr.msk.f32.mxu0 %vm10767_vm10, %v14691_v10  ;;  %10001 = vmatpush3.bf16.msra.mxu1 %v10000_v7 }
 0x272   :  { %10118 = vmatpush3.bf16.msra.mxu0 %v10117_v18  ;;  %v11662_v33 = vpop.f32.mrb[10].mxu0  ;;  %v1599_v39 = vld [vmem:[#allocation2 + $0x11] sm:$0xff]  ;;  %10002 = vmatprep.subr.bf16.mxu1 %v14689_v1 }
 0x273   :  { %v11664_v41 = vld [vmem:[#allocation2 + $0x12] sm:$0xff]  ;;  %10119 = vmatprep.subr.bf16.mxu0 %v14689_v1  ;;  %1537 = vst [vmem:[#allocation2 + $0x28] sm:$0xff] %v11662_v33  ;;  %v1404_v38 = vpop.f32.mrb[11].mxu0  ;;  %8014 = vmatmul.mubr.f32.gmra.mrb[4].mxu1 %v1599_v39 }
 0x274   :  { %8415 = vmatmul.mubr.f32.gmra.mrb[54].mxu0 %v11664_v41  ;;  %8016 = vmatprep.mubr.msk.f32.mxu1 %vm10767_vm10, %v14691_v10 }
 0x275   :  { %8417 = vmatprep.mubr.msk.f32.mxu0 %vm10767_vm10, %v14691_v10  ;;  %10004 = vmatpush3.bf16.msra.mxu1 %v10003_v35 }
 0x276   :  { %10121 = vmatpush3.bf16.msra.mxu0 %v10120_v37  ;;  %v11686_v49 = vpop.f32.mrb[12].mxu0  ;;  %v1600_v50 = vld [vmem:[#allocation2 + $0x19] sm:$0xff]  ;;  %10005 = vmatprep.subr.bf16.mxu1 %v14689_v1 }
 0x277   :  { %v11688_v48 = vld [vmem:[#allocation2 + $0x1a] sm:$0xff]  ;;  %10122 = vmatprep.subr.bf16.mxu0 %v14689_v1  ;;  %1538 = vst [vmem:[#allocation2 + $0x30] sm:$0xff] %v11686_v49  ;;  %v1409_v52 = vpop.f32.mrb[13].mxu0  ;;  %8017 = vmatmul.mubr.f32.gmra.mrb[6].mxu1 %v1600_v50 }
 0x278   :  { %8418 = vmatmul.mubr.f32.gmra.mrb[56].mxu0 %v11688_v48  ;;  %8019 = vmatprep.mubr.msk.f32.mxu1 %vm10767_vm10, %v14691_v10 }
 0x279   :  { %8420 = vmatprep.mubr.msk.f32.mxu0 %vm10767_vm10, %v14691_v10  ;;  %10007 = vmatpush3.bf16.msra.mxu1 %v10006_v44 }
 0x27a   :  { %10124 = vmatpush3.bf16.msra.mxu0 %v10123_v43  ;;  %v11710_v59 = vpop.f32.mrb[14].mxu0  ;;  %v1601_v58 = vld [vmem:[#allocation2 + $0x21] sm:$0xff]  ;;  %10008 = vmatprep.subr.bf16.mxu1 %v14689_v1 }
 0x27b   :  { %v11712_v60 = vld [vmem:[#allocation2 + $0x22] sm:$0xff]  ;;  %10125 = vmatprep.subr.bf16.mxu0 %v14689_v1  ;;  %1539 = vst [vmem:[#allocation2 + $0x38] sm:$0xff] %v11710_v59  ;;  %v1414_v62 = vpop.f32.mrb[15].mxu0  ;;  %8020 = vmatmul.mubr.f32.gmra.mrb[8].mxu1 %v1601_v58 }
 0x27c   :  { %8421 = vmatmul.mubr.f32.gmra.mrb[58].mxu0 %v11712_v60  ;;  %8022 = vmatprep.mubr.msk.f32.mxu1 %vm10767_vm10, %v14691_v10 }
 0x27d   :  { %8423 = vmatprep.mubr.msk.f32.mxu0 %vm10767_vm10, %v14691_v10  ;;  %10010 = vmatpush3.bf16.msra.mxu1 %v10009_v54 }
 0x27e   :  { %10127 = vmatpush3.bf16.msra.mxu0 %v10126_v56  ;;  %v11734_v16 = vpop.f32.mrb[16].mxu0  ;;  %v1602_v30 = vld [vmem:[#allocation2 + $0x29] sm:$0xff]  ;;  %10011 = vmatprep.subr.bf16.mxu1 %v14689_v1 }
 0x27f   :  { %v11736_v12 = vld [vmem:[#allocation2 + $0x2a] sm:$0xff]  ;;  %10128 = vmatprep.subr.bf16.mxu0 %v14689_v1  ;;  %1540 = vst [vmem:[#allocation2 + $0x40] sm:$0xff] %v11734_v16  ;;  %v1419_v21 = vpop.f32.mrb[17].mxu0  ;;  %8023 = vmatmul.mubr.f32.gmra.mrb[10].mxu1 %v1602_v30 }
 0x280   :  { %8424 = vmatmul.mubr.f32.gmra.mrb[60].mxu0 %v11736_v12  ;;  %8025 = vmatprep.mubr.msk.f32.mxu1 %vm10767_vm10, %v14691_v10 }
 0x281   :  { %8426 = vmatprep.mubr.msk.f32.mxu0 %vm10767_vm10, %v14691_v10  ;;  %10013 = vmatpush3.bf16.msra.mxu1 %v10012_v63 }
 0x282   :  { %10130 = vmatpush3.bf16.msra.mxu0 %v10129_v11  ;;  %v11758_v6 = vpop.f32.mrb[18].mxu0  ;;  %v1603_v7 = vld [vmem:[#allocation2 + $0x31] sm:$0xff]  ;;  %10014 = vmatprep.subr.bf16.mxu1 %v14689_v1 }
 0x283   :  { %v11760_v13 = vld [vmem:[#allocation2 + $0x32] sm:$0xff]  ;;  %10131 = vmatprep.subr.bf16.mxu0 %v14689_v1  ;;  %1541 = vst [vmem:[#allocation2 + $0x48] sm:$0xff] %v11758_v6  ;;  %v1424_v18 = vpop.f32.mrb[19].mxu0  ;;  %8026 = vmatmul.mubr.f32.gmra.mrb[12].mxu1 %v1603_v7 }
 0x284   :  { %8427 = vmatmul.mubr.f32.gmra.mrb[62].mxu0 %v11760_v13  ;;  %8028 = vmatprep.mubr.msk.f32.mxu1 %vm10767_vm10, %v14691_v10 }
 0x285   :  { %8429 = vmatprep.mubr.msk.f32.mxu0 %vm10767_vm10, %v14691_v10  ;;  %10016 = vmatpush3.bf16.msra.mxu1 %v10015_v22 }
 0x286   :  { %10133 = vmatpush3.bf16.msra.mxu0 %v10132_v5  ;;  %v11776_v34 = vpop.f32.mrb[20].mxu0  ;;  %v1604_v35 = vld [vmem:[#allocation2 + $0x39] sm:$0xff]  ;;  %10017 = vmatprep.subr.bf16.mxu1 %v14689_v1 }
 0x287   :  { %v11778_v28 = vld [vmem:[#allocation2 + $0x3a] sm:$0xff]  ;;  %10134 = vmatprep.subr.bf16.mxu0 %v14689_v1  ;;  %1542 = vst [vmem:[#allocation2 + $0x50] sm:$0xff] %v11776_v34  ;;  %v1429_v37 = vpop.f32.mrb[21].mxu0  ;;  %8029 = vmatmul.mubr.f32.gmra.mrb[14].mxu1 %v1604_v35 }
 0x288   :  { %8430 = vmatmul.mubr.f32.gmra.mrb[64].mxu0 %v11778_v28  ;;  %8031 = vmatprep.mubr.msk.f32.mxu1 %vm10767_vm10, %v14691_v10 }
 0x289   :  { %8432 = vmatprep.mubr.msk.f32.mxu0 %vm10767_vm10, %v14691_v10  ;;  %10019 = vmatpush3.bf16.msra.mxu1 %v10018_v24 }
 0x28a   :  { %10136 = vmatpush3.bf16.msra.mxu0 %v10135_v31  ;;  %v11791_v39 = vpop.f32.mrb[22].mxu0  ;;  %v1605_v42 = vld [vmem:[#allocation2 + $0x41] sm:$0xff]  ;;  %10020 = vmatprep.subr.bf16.mxu1 %v14689_v1 }
 0x28b   :  { %v11793_v38 = vld [vmem:[#allocation2 + $0x42] sm:$0xff]  ;;  %10137 = vmatprep.subr.bf16.mxu0 %v14689_v1  ;;  %1543 = vst [vmem:[#allocation2 + $0x58] sm:$0xff] %v11791_v39  ;;  %v1434_v44 = vpop.f32.mrb[23].mxu0  ;;  %8032 = vmatmul.mubr.f32.gmra.mrb[16].mxu1 %v1605_v42 }
 0x28c   :  { %8433 = vmatmul.mubr.f32.gmra.mrb[66].mxu0 %v11793_v38  ;;  %8034 = vmatprep.mubr.msk.f32.mxu1 %vm10767_vm10, %v14691_v10 }
 0x28d   :  { %8435 = vmatprep.mubr.msk.f32.mxu0 %vm10767_vm10, %v14691_v10 }
 0x28e   :  { %10139 = vmatpush3.bf16.msra.mxu0 %v10138_v40  ;;  %v11803_v45 = vpop.f32.mrb[24].mxu0  ;;  %v1606_v46 = vld [vmem:[#allocation2 + $0x49] sm:$0xff] }
 0x28f   :  { %v11805_v43 = vld [vmem:[#allocation2 + $0x4a] sm:$0xff]  ;;  %10164 = vmatprep.subr.bf16.mxu0 %v14689_v1  ;;  %1544 = vst [vmem:[#allocation2 + $0x60] sm:$0xff] %v11803_v45  ;;  %v1439_v47 = vpop.f32.mrb[25].mxu0  ;;  %8035 = vmatmul.mubr.f32.gmra.mrb[18].mxu1 %v1606_v46 }
 0x290   :  { %8436 = vmatmul.mubr.f32.gmra.mrb[68].mxu0 %v11805_v43  ;;  %8037 = vmatprep.mubr.msk.f32.mxu1 %vm10767_vm10, %v14691_v10 }
 0x291   :  { %8438 = vmatprep.mubr.msk.f32.mxu0 %vm10767_vm10, %v14691_v10 }
 0x292   :  { %v11814_v50 = vpop.f32.mrb[26].mxu0  ;;  %v1607_v51 = vld [vmem:[#allocation2 + $0x51] sm:$0xff] }
 0x293   :  { %v11816_v52 = vld [vmem:[#allocation2 + $0x52] sm:$0xff]  ;;  %1545 = vst [vmem:[#allocation2 + $0x68] sm:$0xff] %v11814_v50  ;;  %v1444_v54 = vpop.f32.mrb[27].mxu0  ;;  %8038 = vmatmul.mubr.f32.gmra.mrb[20].mxu1 %v1607_v51 }
 0x294   :  { %8439 = vmatmul.mubr.f32.gmra.mrb[70].mxu0 %v11816_v52  ;;  %8040 = vmatprep.mubr.msk.f32.mxu1 %vm10767_vm10, %v14691_v10 }
 0x295   :  { %8441 = vmatprep.mubr.msk.f32.mxu0 %vm10767_vm10, %v14691_v10 }
 0x296   :  { %v11824_v53 = vpop.f32.mrb[28].mxu0  ;;  %v1608_v55 = vld [vmem:[#allocation2 + $0x59] sm:$0xff] }
 0x297   :  { %v11826_v56 = vld [vmem:[#allocation2 + $0x5a] sm:$0xff]  ;;  %1546 = vst [vmem:[#allocation2 + $0x70] sm:$0xff] %v11824_v53  ;;  %v1449_v57 = vpop.f32.mrb[29].mxu0  ;;  %8041 = vmatmul.mubr.f32.gmra.mrb[22].mxu1 %v1608_v55 }
 0x298   :  { %8442 = vmatmul.mubr.f32.gmra.mrb[72].mxu0 %v11826_v56  ;;  %8043 = vmatprep.mubr.msk.f32.mxu1 %vm10767_vm10, %v14691_v10 }
 0x299   :  { %8444 = vmatprep.mubr.msk.f32.mxu0 %vm10767_vm10, %v14691_v10 }
 0x29a   :  { %v11834_v58 = vpop.f32.mrb[30].mxu0  ;;  %v1609_v61 = vld [vmem:[#allocation2 + $0x61] sm:$0xff] }
 0x29b   :  { %v11836_v62 = vld [vmem:[#allocation2 + $0x62] sm:$0xff]  ;;  %1547 = vst [vmem:[#allocation2 + $0x78] sm:$0xff] %v11834_v58  ;;  %v1454_v63 = vpop.f32.mrb[31].mxu0  ;;  %8044 = vmatmul.mubr.f32.gmra.mrb[24].mxu1 %v1609_v61 }
 0x29c   :  { %8445 = vmatmul.mubr.f32.gmra.mrb[74].mxu0 %v11836_v62  ;;  %8046 = vmatprep.mubr.msk.f32.mxu1 %vm10767_vm10, %v14691_v10 }
 0x29d   :  { %8447 = vmatprep.mubr.msk.f32.mxu0 %vm10767_vm10, %v14691_v10 }
 0x29e   :  { %v11844_v8 = vpop.f32.mrb[32].mxu0  ;;  %v1610_v9 = vld [vmem:[#allocation2 + $0x69] sm:$0xff] }
 0x29f   :  { %v11846_v11 = vld [vmem:[#allocation2 + $0x6a] sm:$0xff]  ;;  %1548 = vst [vmem:[#allocation2 + $0x80] sm:$0xff] %v11844_v8  ;;  %v1459_v15 = vpop.f32.mrb[33].mxu0  ;;  %8047 = vmatmul.mubr.f32.gmra.mrb[26].mxu1 %v1610_v9 }
 0x2a0   :  { %8448 = vmatmul.mubr.f32.gmra.mrb[76].mxu0 %v11846_v11  ;;  %8049 = vmatprep.mubr.msk.f32.mxu1 %vm10767_vm10, %v14691_v10 }
 0x2a1   :  { %8450 = vmatprep.mubr.msk.f32.mxu0 %vm10767_vm10, %v14691_v10 }
 0x2a2   :  { %v11854_v30 = vpop.f32.mrb[34].mxu0  ;;  %v1611_v20 = vld [vmem:[#allocation2 + $0x71] sm:$0xff] }
 0x2a3   :  { %v11856_v21 = vld [vmem:[#allocation2 + $0x72] sm:$0xff]  ;;  %1549 = vst [vmem:[#allocation2 + $0x88] sm:$0xff] %v11854_v30  ;;  %v1464_v22 = vpop.f32.mrb[35].mxu0  ;;  %8050 = vmatmul.mubr.f32.gmra.mrb[28].mxu1 %v1611_v20 }
 0x2a4   :  { %8451 = vmatmul.mubr.f32.gmra.mrb[78].mxu0 %v11856_v21  ;;  %8052 = vmatprep.mubr.msk.f32.mxu1 %vm10767_vm10, %v14691_v10 }
 0x2a5   :  { %8453 = vmatprep.mubr.msk.f32.mxu0 %vm10767_vm10, %v14691_v10 }
 0x2a6   :  { %v11864_v25 = vpop.f32.mrb[36].mxu0  ;;  %v1612_v3 = vld [vmem:[#allocation2 + $0x79] sm:$0xff] }
 0x2a7   :  { %v11866_v5 = vld [vmem:[#allocation2 + $0x7a] sm:$0xff]  ;;  %1550 = vst [vmem:[#allocation2 + $0x90] sm:$0xff] %v11864_v25  ;;  %v1469_v4 = vpop.f32.mrb[37].mxu0  ;;  %8053 = vmatmul.mubr.f32.gmra.mrb[30].mxu1 %v1612_v3 }
 0x2a8   :  { %8454 = vmatmul.mubr.f32.gmra.mrb[80].mxu0 %v11866_v5  ;;  %8055 = vmatprep.mubr.msk.f32.mxu1 %vm10767_vm10, %v14691_v10  ;;  %v7096_v3 = vld [vmem:[%s14673_s2 + $0x100] sm:$0xff]  ;;  %v7097_v4 = vld [vmem:[%s14673_s2 + $0x108] sm:$0xff] }
 0x2a9   :  { %8456 = vmatprep.mubr.msk.f32.mxu0 %vm10767_vm10, %v14691_v10 }
 0x2aa   :  { %v11874_v7 = vpop.f32.mrb[38].mxu0  ;;  %v1613_v19 = vld [vmem:[#allocation2 + $0x81] sm:$0xff] }
 0x2ab   :  { %v11876_v18 = vld [vmem:[#allocation2 + $0x82] sm:$0xff]  ;;  %1551 = vst [vmem:[#allocation2 + $0x98] sm:$0xff] %v11874_v7  ;;  %v1474_v24 = vpop.f32.mrb[39].mxu0  ;;  %8056 = vmatmul.mubr.f32.gmra.mrb[32].mxu1 %v1613_v19 }
 0x2ac   :  { %8457 = vmatmul.mubr.f32.gmra.mrb[82].mxu0 %v11876_v18  ;;  %8058 = vmatprep.mubr.msk.f32.mxu1 %vm10767_vm10, %v14691_v10 }
 0x2ad   :  { %8459 = vmatprep.mubr.msk.f32.mxu0 %vm10767_vm10, %v14691_v10 }
 0x2ae   :  { %v11884_v31 = vpop.f32.mrb[40].mxu0  ;;  %v1614_v32 = vld [vmem:[#allocation2 + $0x89] sm:$0xff] }
 0x2af   :  { %v11886_v35 = vld [vmem:[#allocation2 + $0x8a] sm:$0xff]  ;;  %1552 = vst [vmem:[#allocation2 + $0xa0] sm:$0xff] %v11884_v31  ;;  %v1479_v36 = vpop.f32.mrb[41].mxu0  ;;  %8059 = vmatmul.mubr.f32.gmra.mrb[34].mxu1 %v1614_v32 }
 0x2b0   :  { %8460 = vmatmul.mubr.f32.gmra.mrb[84].mxu0 %v11886_v35  ;;  %8061 = vmatprep.mubr.msk.f32.mxu1 %vm10767_vm10, %v14691_v10 }
 0x2b1   :  { %8462 = vmatprep.mubr.msk.f32.mxu0 %vm10767_vm10, %v14691_v10 }
 0x2b2   :  { %v11894_v37 = vpop.f32.mrb[42].mxu0  ;;  %v1615_v40 = vld [vmem:[#allocation2 + $0x91] sm:$0xff] }
 0x2b3   :  { %v11896_v42 = vld [vmem:[#allocation2 + $0x92] sm:$0xff]  ;;  %1553 = vst [vmem:[#allocation2 + $0xa8] sm:$0xff] %v11894_v37  ;;  %v1484_v44 = vpop.f32.mrb[43].mxu0  ;;  %8062 = vmatmul.mubr.f32.gmra.mrb[36].mxu1 %v1615_v40  ;;  %v10021_v40 = vpack.c.bf16 %v7097_v4, %v7096_v3 }
 0x2b4   :  { %8463 = vmatmul.mubr.f32.gmra.mrb[86].mxu0 %v11896_v42  ;;  %8064 = vmatprep.mubr.msk.f32.mxu1 %vm10767_vm10, %v14691_v10  ;;  %v7098_v44 = vld [vmem:[%s14673_s2 + $0x110] sm:$0xff] }
 0x2b5   :  { %8465 = vmatprep.mubr.msk.f32.mxu0 %vm10767_vm10, %v14691_v10  ;;  %v7102_v4 = vld [vmem:[%s14673_s2 + $0x130] sm:$0xff] }
 0x2b6   :  { %v1487_v46 = vpop.f32.mrb[44].mxu0  ;;  %v1616_v47 = vld [vmem:[#allocation2 + $0x99] sm:$0xff] }
 0x2b7   :  { %v11904_v51 = vld [vmem:[#allocation2 + $0x9a] sm:$0xff]  ;;  %1554 = vst [vmem:[#allocation2 + $0xb0] sm:$0xff] %v1487_v46  ;;  %v1489_v54 = vpop.f32.mrb[45].mxu0  ;;  %8065 = vmatmul.mubr.f32.gmra.mrb[38].mxu1 %v1616_v47 }
 0x2b8   :  { %8466 = vmatmul.mubr.f32.gmra.mrb[88].mxu0 %v11904_v51  ;;  %8067 = vmatprep.mubr.msk.f32.mxu1 %vm10767_vm10, %v14691_v10  ;;  %v7099_v46 = vld [vmem:[%s14673_s2 + $0x118] sm:$0xff]  ;;  %v7192_v54 = vld [vmem:[%s14673_s2 + $0x400] sm:$0xff] }
 0x2b9   :  { %8468 = vmatprep.mubr.msk.f32.mxu0 %vm10767_vm10, %v14691_v10 }
 0x2ba   :  { %v1492_v55 = vpop.f32.mrb[46].mxu0  ;;  %v1617_v57 = vld [vmem:[#allocation2 + $0xa1] sm:$0xff] }
 0x2bb   :  { %v11911_v61 = vld [vmem:[#allocation2 + $0xa2] sm:$0xff]  ;;  %1555 = vst [vmem:[#allocation2 + $0xb8] sm:$0xff] %v1492_v55  ;;  %v1494_v63 = vpop.f32.mrb[47].mxu0  ;;  %8068 = vmatmul.mubr.f32.gmra.mrb[40].mxu1 %v1617_v57  ;;  %v10024_v57 = vpack.c.bf16 %v7099_v46, %v7098_v44 }
 0x2bc   :  { %8469 = vmatmul.mubr.f32.gmra.mrb[90].mxu0 %v11911_v61  ;;  %8070 = vmatprep.mubr.msk.f32.mxu1 %vm10767_vm10, %v14691_v10  ;;  %v7193_v55 = vld [vmem:[%s14673_s2 + $0x408] sm:$0xff]  ;;  %v7100_v63 = vld [vmem:[%s14673_s2 + $0x120] sm:$0xff] }
 0x2bd   :  { %8471 = vmatprep.mubr.msk.f32.mxu0 %vm10767_vm10, %v14691_v10  ;;  %v7104_v44 = vld [vmem:[%s14673_s2 + $0x140] sm:$0xff] }
 0x2be   :  { %v1497_v9 = vpop.f32.mrb[48].mxu0  ;;  %v1618_v15 = vld [vmem:[#allocation2 + $0xa9] sm:$0xff]  ;;  %v1619_v24 = vld [vmem:[#allocation2 + $0xb1] sm:$0x3f] }
 0x2bf   :  { %v11918_v20 = vld [vmem:[#allocation2 + $0xaa] sm:$0xff]  ;;  %1556 = vst [vmem:[#allocation2 + $0xc0] sm:$0xff] %v1497_v9  ;;  %v1499_v22 = vpop.f32.mrb[49].mxu0  ;;  %8071 = vmatmul.mubr.f32.gmra.mrb[42].mxu1 %v1618_v15  ;;  %v10165_v9 = vpack.c.bf16 %v7193_v55, %v7192_v54  ;;  %v7199_v54 = vld [vmem:[%s14673_s2 + $0x438] sm:$0xff] }
 0x2c0   :  { %8472 = vmatmul.mubr.f32.gmra.mrb[92].mxu0 %v11918_v20  ;;  %8073 = vmatprep.mubr.msk.f32.mxu1 %vm10767_vm10, %v14691_v10  ;;  %v7194_v15 = vld [vmem:[%s14673_s2 + $0x410] sm:$0xff]  ;;  %v7195_v22 = vld [vmem:[%s14673_s2 + $0x418] sm:$0xff] }
 0x2c1   :  { %8474 = vmatprep.mubr.msk.f32.mxu0 %vm10767_vm10, %v14691_v10 }
 0x2c2   :  { %v1502_v19 = vpop.f32.mrb[50].mxu0  ;;  %v11931_v32 = vld [vmem:[#allocation2 + $0xb2] sm:$0xff]  ;;  %v2505_v47 = vld [vmem:[#allocation2 + $0xba] sm:$0x3f] }
 0x2c3   :  { %1557 = vst [vmem:[#allocation2 + $0xc8] sm:$0x3] %v1502_v19  ;;  %v1504_v36 = vpop.f32.mrb[51].mxu0  ;;  %8074 = vmatmul.mubr.f32.gmra.mrb[44].mxu1 %v1619_v24  ;;  %v10168_v19 = vpack.c.bf16 %v7195_v22, %v7194_v15  ;;  %v7196_v24 = vld [vmem:[%s14673_s2 + $0x420] sm:$0xff] }
 0x2c4   :  { %8475 = vmatmul.mubr.f32.gmra.mrb[94].mxu0 %v11931_v32  ;;  %8108 = vmatprep.mubr.msk.f32.mxu1 %vm10767_vm10, %v14691_v10  ;;  %v7197_v36 = vld [vmem:[%s14673_s2 + $0x428] sm:$0xff]  ;;  %v7108_v22 = vld [vmem:[%s14673_s2 + $0x160] sm:$0xff] }
 0x2c5   :  { %8477 = vmatprep.mubr.msk.f32.mxu0 %vm10767_vm10, %v14691_v10  ;;  %v10171_v46 = vpack.c.bf16 %v7197_v36, %v7196_v24  ;;  %v7110_v24 = vld [vmem:[%s14673_s2 + $0x170] sm:$0xff] }
 0x2c7   :  { %8109 = vmatmul.mubr.f32.vlgmr.msra.gmra.mrb[46].mxu1 %v11598_v14  ;;  %v7101_v14 = vld [vmem:[%s14673_s2 + $0x128] sm:$0xff] }
 0x2c8   :  { %8478 = vmatmul.mubr.f32.gmra.mrb[96].mxu0 %v2505_v47  ;;  %10022 = vmatpush3.bf16.msra.mxu1 %v10021_v40  ;;  %v10027_v3 = vpack.c.bf16 %v7101_v14, %v7100_v63  ;;  %v7198_v47 = vld [vmem:[%s14673_s2 + $0x430] sm:$0xff]  ;;  %v7201_v14 = vld [vmem:[%s14673_s2 + $0x448] sm:$0xff] }
 0x2c9   :  { %8111 = vmatprep.mubr.msk.f32.mxu1 %vm10767_vm10, %v14691_v10  ;;  %8613 = vmatprep.mubr.msk.f32.mxu0 %vm10767_vm10, %v14691_v10  ;;  %v10174_v63 = vpack.c.bf16 %v7199_v54, %v7198_v47  ;;  %v7207_v47 = vld [vmem:[%s14673_s2 + $0x478] sm:$0xff] }
 0x2ca   :  { %10023 = vmatprep.subr.bf16.mxu1 %v14689_v1 }
 0x2cb   :  { %8112 = vmatmul.mubr.f32.gmra.mrb[48].mxu1 %v11601_v2  ;;  %v7103_v2 = vld [vmem:[%s14673_s2 + $0x138] sm:$0xff] }
 0x2cc   :  { %8614 = vmatmul.mubr.f32.vlgmr.msra.gmra.mrb[98].mxu0 %v11664_v41  ;;  %8114 = vmatprep.mubr.msk.f32.mxu1 %vm10767_vm10, %v14691_v10  ;;  %v10030_v40 = vpack.c.bf16 %v7103_v2, %v7102_v4  ;;  %v7202_v4 = vld [vmem:[%s14673_s2 + $0x450] sm:$0xff] }
 0x2cd   :  { %8616 = vmatprep.mubr.msk.f32.mxu0 %vm10767_vm10, %v14691_v10  ;;  %10025 = vmatpush3.bf16.msra.mxu1 %v10024_v57  ;;  %v7106_v57 = vld [vmem:[%s14673_s2 + $0x150] sm:$0xff] }
 0x2ce   :  { %10166 = vmatpush3.bf16.msra.mxu0 %v10165_v9  ;;  %10026 = vmatprep.subr.bf16.mxu1 %v14689_v1  ;;  %v7200_v9 = vld [vmem:[%s14673_s2 + $0x440] sm:$0xff] }
 0x2cf   :  { %10167 = vmatprep.subr.bf16.mxu0 %v14689_v1  ;;  %8115 = vmatmul.mubr.f32.gmra.mrb[50].mxu1 %v11610_v17  ;;  %v7105_v17 = vld [vmem:[%s14673_s2 + $0x148] sm:$0xff] }
 0x2d0   :  { %8617 = vmatmul.mubr.f32.gmra.mrb[100].mxu0 %v11688_v48  ;;  %8117 = vmatprep.mubr.msk.f32.mxu1 %vm10767_vm10, %v14691_v10  ;;  %v10033_v55 = vpack.c.bf16 %v7105_v17, %v7104_v44  ;;  %v7205_v44 = vld [vmem:[%s14673_s2 + $0x468] sm:$0xff] }
 0x2d1   :  { %8619 = vmatprep.mubr.msk.f32.mxu0 %vm10767_vm10, %v14691_v10  ;;  %10028 = vmatpush3.bf16.msra.mxu1 %v10027_v3  ;;  %v10177_v3 = vpack.c.bf16 %v7201_v14, %v7200_v9  ;;  %v3458_v9 = vld [vmem:[#allocation2 + $0x2c] sm:$0xff] }
 0x2d2   :  { %10169 = vmatpush3.bf16.msra.mxu0 %v10168_v19  ;;  %10029 = vmatprep.subr.bf16.mxu1 %v14689_v1  ;;  %v7203_v19 = vld [vmem:[%s14673_s2 + $0x458] sm:$0xff]  ;;  %v7122_v14 = vld [vmem:[%s14673_s2 + $0x1d0] sm:$0xff] }
 0x2d3   :  { %10170 = vmatprep.subr.bf16.mxu0 %v14689_v1  ;;  %8118 = vmatmul.mubr.f32.gmra.mrb[52].mxu1 %v11619_v26  ;;  %v7107_v26 = vld [vmem:[%s14673_s2 + $0x158] sm:$0xff]  ;;  %v10180_v36 = vpack.c.bf16 %v7203_v19, %v7202_v4  ;;  %v7126_v19 = vld [vmem:[%s14673_s2 + $0x1f0] sm:$0xff] }
 0x2d4   :  { %8620 = vmatmul.mubr.f32.gmra.mrb[102].mxu0 %v11712_v60  ;;  %8120 = vmatprep.mubr.msk.f32.mxu1 %vm10767_vm10, %v14691_v10  ;;  %v10036_v15 = vpack.c.bf16 %v7107_v26, %v7106_v57  ;;  %v3457_v57 = vld [vmem:[#allocation2 + $0x24] sm:$0xff]  ;;  %v3460_v4 = vld [vmem:[#allocation2 + $0x3c] sm:$0xff] }
 0x2d5   :  { %8622 = vmatprep.mubr.msk.f32.mxu0 %vm10767_vm10, %v14691_v10  ;;  %10031 = vmatpush3.bf16.msra.mxu1 %v10030_v40  ;;  %v7204_v40 = vld [vmem:[%s14673_s2 + $0x460] sm:$0xff] }
 0x2d6   :  { %10172 = vmatpush3.bf16.msra.mxu0 %v10171_v46  ;;  %10032 = vmatprep.subr.bf16.mxu1 %v14689_v1  ;;  %v10183_v17 = vpack.c.bf16 %v7205_v44, %v7204_v40  ;;  %v3462_v44 = vld [vmem:[#allocation2 + $0x4c] sm:$0xff] }
 0x2d7   :  { %10173 = vmatprep.subr.bf16.mxu0 %v14689_v1  ;;  %8121 = vmatmul.mubr.f32.gmra.mrb[54].mxu1 %v11640_v29  ;;  %v7109_v29 = vld [vmem:[%s14673_s2 + $0x168] sm:$0xff] }
 0x2d8   :  { %8623 = vmatmul.mubr.f32.gmra.mrb[104].mxu0 %v11736_v12  ;;  %8123 = vmatprep.mubr.msk.f32.mxu1 %vm10767_vm10, %v14691_v10  ;;  %v10039_v2 = vpack.c.bf16 %v7109_v29, %v7108_v22  ;;  %v3459_v22 = vld [vmem:[#allocation2 + $0x34] sm:$0xff] }
 0x2d9   :  { %8625 = vmatprep.mubr.msk.f32.mxu0 %vm10767_vm10, %v14691_v10  ;;  %10034 = vmatpush3.bf16.msra.mxu1 %v10033_v55 }
 0x2da   :  { %10175 = vmatpush3.bf16.msra.mxu0 %v10174_v63  ;;  %10035 = vmatprep.subr.bf16.mxu1 %v14689_v1  ;;  %v7120_v63 = vld [vmem:[%s14673_s2 + $0x1c0] sm:$0xff] }
 0x2db   :  { %10176 = vmatprep.subr.bf16.mxu0 %v14689_v1  ;;  %8124 = vmatmul.mubr.f32.gmra.mrb[56].mxu1 %v11662_v33  ;;  %v7111_v33 = vld [vmem:[%s14673_s2 + $0x178] sm:$0xff] }
 0x2dc   :  { %8626 = vmatmul.mubr.f32.gmra.mrb[106].mxu0 %v11760_v13  ;;  %8126 = vmatprep.mubr.msk.f32.mxu1 %vm10767_vm10, %v14691_v10  ;;  %v10042_v46 = vpack.c.bf16 %v7111_v33, %v7110_v24 }
 0x2dd   :  { %8628 = vmatprep.mubr.msk.f32.mxu0 %vm10767_vm10, %v14691_v10  ;;  %10037 = vmatpush3.bf16.msra.mxu1 %v10036_v15 }
 0x2de   :  { %10178 = vmatpush3.bf16.msra.mxu0 %v10177_v3  ;;  %10038 = vmatprep.subr.bf16.mxu1 %v14689_v1  ;;  %v7124_v3 = vld [vmem:[%s14673_s2 + $0x1e0] sm:$0xff] }
 0x2df   :  { %10179 = vmatprep.subr.bf16.mxu0 %v14689_v1  ;;  %8127 = vmatmul.mubr.f32.gmra.mrb[58].mxu1 %v11686_v49  ;;  %v7206_v49 = vld [vmem:[%s14673_s2 + $0x470] sm:$0xff] }
 0x2e0   :  { %8629 = vmatmul.mubr.f32.gmra.mrb[108].mxu0 %v11778_v28  ;;  %8129 = vmatprep.mubr.msk.f32.mxu1 %vm10767_vm10, %v14691_v10  ;;  %v10186_v54 = vpack.c.bf16 %v7207_v47, %v7206_v49  ;;  %v3463_v47 = vld [vmem:[#allocation2 + $0x54] sm:$0xff] }
 0x2e1   :  { %8631 = vmatprep.mubr.msk.f32.mxu0 %vm10767_vm10, %v14691_v10  ;;  %10040 = vmatpush3.bf16.msra.mxu1 %v10039_v2 }
 0x2e2   :  { %10181 = vmatpush3.bf16.msra.mxu0 %v10180_v36  ;;  %10041 = vmatprep.subr.bf16.mxu1 %v14689_v1  ;;  %v3461_v36 = vld [vmem:[#allocation2 + $0x44] sm:$0xff] }
 0x2e3   :  { %10182 = vmatprep.subr.bf16.mxu0 %v14689_v1  ;;  %8130 = vmatmul.mubr.f32.gmra.mrb[60].mxu1 %v11710_v59  ;;  %v7112_v59 = vld [vmem:[%s14673_s2 + $0x180] sm:$0xff] }
 0x2e4   :  { %8632 = vmatmul.mubr.f32.gmra.mrb[110].mxu0 %v11793_v38  ;;  %8132 = vmatprep.mubr.msk.f32.mxu1 %vm10767_vm10, %v14691_v10 }
 0x2e5   :  { %8634 = vmatprep.mubr.msk.f32.mxu0 %vm10767_vm10, %v14691_v10  ;;  %10043 = vmatpush3.bf16.msra.mxu1 %v10042_v46 }
 0x2e6   :  { %10184 = vmatpush3.bf16.msra.mxu0 %v10183_v17  ;;  %10044 = vmatprep.subr.bf16.mxu1 %v14689_v1 }
 0x2e7   :  { %10185 = vmatprep.subr.bf16.mxu0 %v14689_v1  ;;  %8133 = vmatmul.mubr.f32.gmra.mrb[62].mxu1 %v11734_v16  ;;  %v7113_v16 = vld [vmem:[%s14673_s2 + $0x188] sm:$0xff] }
 0x2e8   :  { %8635 = vmatmul.mubr.f32.gmra.mrb[112].mxu0 %v11805_v43  ;;  %8135 = vmatprep.mubr.msk.f32.mxu1 %vm10767_vm10, %v14691_v10 }
 0x2e9   :  { %8637 = vmatprep.mubr.msk.f32.mxu0 %vm10767_vm10, %v14691_v10 }
 0x2ea   :  { %10187 = vmatpush3.bf16.msra.mxu0 %v10186_v54 }
 0x2eb   :  { %10212 = vmatprep.subr.bf16.mxu0 %v14689_v1  ;;  %8136 = vmatmul.mubr.f32.gmra.mrb[64].mxu1 %v11758_v6  ;;  %v1580_v6 = vld [vmem:[#allocation2 + $0xb0] sm:$0x3f] }
 0x2ec   :  { %8638 = vmatmul.mubr.f32.gmra.mrb[114].mxu0 %v11816_v52  ;;  %8138 = vmatprep.mubr.msk.f32.mxu1 %vm10767_vm10, %v14691_v10 }
 0x2ed   :  { %8640 = vmatprep.mubr.msk.f32.mxu0 %vm10767_vm10, %v14691_v10 }
 0x2ef   :  { %8139 = vmatmul.mubr.f32.gmra.mrb[66].mxu1 %v11776_v34  ;;  %v2990_v34 = vld [vmem:[#allocation2 + $0xba] sm:$0xff] }
 0x2f0   :  { %8641 = vmatmul.mubr.f32.gmra.mrb[116].mxu0 %v11826_v56  ;;  %8141 = vmatprep.mubr.msk.f32.mxu1 %vm10767_vm10, %v14691_v10 }
 0x2f1   :  { %8643 = vmatprep.mubr.msk.f32.mxu0 %vm10767_vm10, %v14691_v10 }
 0x2f3   :  { %8142 = vmatmul.mubr.f32.gmra.mrb[68].mxu1 %v11791_v39  ;;  %v10045_v39 = vpack.c.bf16 %v7113_v16, %v7112_v59 }
 0x2f4   :  { %8644 = vmatmul.mubr.f32.gmra.mrb[118].mxu0 %v11836_v62  ;;  %8144 = vmatprep.mubr.msk.f32.mxu1 %vm10767_vm10, %v14691_v10 }
 0x2f5   :  { %8646 = vmatprep.mubr.msk.f32.mxu0 %vm10767_vm10, %v14691_v10 }
 0x2f7   :  { %8145 = vmatmul.mubr.f32.gmra.mrb[70].mxu1 %v11803_v45  ;;  %v1997_v45 = vld [vmem:[#allocation2 + $0x2] sm:$0xff] }
 0x2f8   :  { %8647 = vmatmul.mubr.f32.gmra.mrb[120].mxu0 %v11846_v11  ;;  %8147 = vmatprep.mubr.msk.f32.mxu1 %vm10767_vm10, %v14691_v10 }
 0x2f9   :  { %8649 = vmatprep.mubr.msk.f32.mxu0 %vm10767_vm10, %v14691_v10 }
 0x2fb   :  { %8148 = vmatmul.mubr.f32.gmra.mrb[72].mxu1 %v11814_v50  ;;  %v2991_v50 = vld [vmem:[#allocation2 + $0xc2] sm:$0x3f] }
 0x2fc   :  { %8650 = vmatmul.mubr.f32.gmra.mrb[122].mxu0 %v11856_v21  ;;  %8150 = vmatprep.mubr.msk.f32.mxu1 %vm10767_vm10, %v14691_v10 }
 0x2fd   :  { %8652 = vmatprep.mubr.msk.f32.mxu0 %vm10767_vm10, %v14691_v10 }
 0x2ff   :  { %8151 = vmatmul.mubr.f32.gmra.mrb[74].mxu1 %v11824_v53  ;;  %v7114_v53 = vld [vmem:[%s14673_s2 + $0x190] sm:$0xff] }
 0x300   :  { %8653 = vmatmul.mubr.f32.gmra.mrb[124].mxu0 %v11866_v5  ;;  %8153 = vmatprep.mubr.msk.f32.mxu1 %vm10767_vm10, %v14691_v10 }
 0x301   :  { %8655 = vmatprep.mubr.msk.f32.mxu0 %vm10767_vm10, %v14691_v10 }
 0x303   :  { %8154 = vmatmul.mubr.f32.gmra.mrb[76].mxu1 %v11834_v58  ;;  %v7115_v58 = vld [vmem:[%s14673_s2 + $0x198] sm:$0xff] }
 0x304   :  { %8656 = vmatmul.mubr.f32.gmra.mrb[126].mxu0 %v11876_v18  ;;  %8156 = vmatprep.mubr.msk.f32.mxu1 %vm10767_vm10, %v14691_v10 }
 0x305   :  { %8658 = vmatprep.mubr.msk.f32.mxu0 %vm10767_vm10, %v14691_v10 }
 0x307   :  { %8157 = vmatmul.mubr.f32.gmra.mrb[78].mxu1 %v11844_v8  ;;  %v10048_v8 = vpack.c.bf16 %v7115_v58, %v7114_v53 }
 0x308   :  { %8659 = vmatmul.mubr.f32.gmra.mrb[128].mxu0 %v11886_v35  ;;  %8159 = vmatprep.mubr.msk.f32.mxu1 %vm10767_vm10, %v14691_v10 }
 0x309   :  { %8661 = vmatprep.mubr.msk.f32.mxu0 %vm10767_vm10, %v14691_v10 }
 0x30b   :  { %8160 = vmatmul.mubr.f32.gmra.mrb[80].mxu1 %v11854_v30  ;;  %v3455_v30 = vld [vmem:[#allocation2 + $0x14] sm:$0xff] }
 0x30c   :  { %8662 = vmatmul.mubr.f32.gmra.mrb[130].mxu0 %v11896_v42  ;;  %8162 = vmatprep.mubr.msk.f32.mxu1 %vm10767_vm10, %v14691_v10 }
 0x30d   :  { %8664 = vmatprep.mubr.msk.f32.mxu0 %vm10767_vm10, %v14691_v10 }
 0x30f   :  { %8163 = vmatmul.mubr.f32.gmra.mrb[82].mxu1 %v11864_v25  ;;  %v7116_v25 = vld [vmem:[%s14673_s2 + $0x1a0] sm:$0xff] }
 0x310   :  { %8665 = vmatmul.mubr.f32.gmra.mrb[132].mxu0 %v11904_v51  ;;  %8165 = vmatprep.mubr.msk.f32.mxu1 %vm10767_vm10, %v14691_v10 }
 0x311   :  { %8667 = vmatprep.mubr.msk.f32.mxu0 %vm10767_vm10, %v14691_v10 }
 0x313   :  { %8166 = vmatmul.mubr.f32.gmra.mrb[84].mxu1 %v11874_v7  ;;  %v7117_v7 = vld [vmem:[%s14673_s2 + $0x1a8] sm:$0xff] }
 0x314   :  { %8668 = vmatmul.mubr.f32.gmra.mrb[134].mxu0 %v11911_v61  ;;  %8168 = vmatprep.mubr.msk.f32.mxu1 %vm10767_vm10, %v14691_v10 }
 0x315   :  { %8670 = vmatprep.mubr.msk.f32.mxu0 %vm10767_vm10, %v14691_v10 }
 0x317   :  { %8169 = vmatmul.mubr.f32.gmra.mrb[86].mxu1 %v11884_v31  ;;  %v10051_v31 = vpack.c.bf16 %v7117_v7, %v7116_v25 }
 0x318   :  { %8671 = vmatmul.mubr.f32.gmra.mrb[136].mxu0 %v11918_v20  ;;  %8171 = vmatprep.mubr.msk.f32.mxu1 %vm10767_vm10, %v14691_v10 }
 0x319   :  { %8673 = vmatprep.mubr.msk.f32.mxu0 %vm10767_vm10, %v14691_v10 }
 0x31b   :  { %8172 = vmatmul.mubr.f32.gmra.mrb[88].mxu1 %v11894_v37  ;;  %v3456_v37 = vld [vmem:[#allocation2 + $0x1c] sm:$0xff] }
 0x31c   :  { %8674 = vmatmul.mubr.f32.gmra.mrb[138].mxu0 %v11931_v32  ;;  %8174 = vmatprep.mubr.msk.f32.mxu1 %vm10767_vm10, %v14691_v10  ;;  %v7118_v32 = vld [vmem:[%s14673_s2 + $0x1b0] sm:$0xff] }
 0x31d   :  { %8676 = vmatprep.mubr.msk.f32.mxu0 %vm10767_vm10, %v14691_v10 }
 0x31f   :  { %8175 = vmatmul.mubr.f32.gmra.mrb[90].mxu1 %v1580_v6  ;;  %v3464_v6 = vld [vmem:[#allocation2 + $0x5c] sm:$0xff] }
 0x320   :  { %8677 = vmatmul.mubr.f32.gmra.mrb[140].mxu0 %v2990_v34  ;;  %8209 = vmatprep.mubr.msk.f32.mxu1 %vm10767_vm10, %v14691_v10 }
 0x321   :  { %8679 = vmatprep.mubr.msk.f32.mxu0 %vm10767_vm10, %v14691_v10 }
 0x323   :  { %8210 = vmatmul.mubr.f32.vlgmr.msra.gmra.mrb[92].mxu1 %v1997_v45 }
 0x324   :  { %8680 = vmatmul.mubr.f32.gmra.mrb[142].mxu0 %v2991_v50  ;;  %10046 = vmatpush3.bf16.msra.mxu1 %v10045_v39  ;;  %v3465_v50 = vld [vmem:[#allocation2 + $0x64] sm:$0xff] }
 0x325   :  { %8212 = vmatprep.mubr.msk.f32.mxu1 %vm10767_vm10, %v14691_v10  ;;  %8815 = vmatprep.mubr.msk.f32.mxu0 %vm10767_vm10, %v14691_v10 }
 0x326   :  { %10047 = vmatprep.subr.bf16.mxu1 %v14689_v1 }
 0x327   :  { %8213 = vmatmul.mubr.f32.gmra.mrb[94].mxu1 %v11642_v23  ;;  %v7119_v23 = vld [vmem:[%s14673_s2 + $0x1b8] sm:$0xff] }
 0x328   :  { %8816 = vmatmul.mubr.f32.vlgmr.msra.gmra.mrb[144].mxu0 %v3455_v30  ;;  %8215 = vmatprep.mubr.msk.f32.mxu1 %vm10767_vm10, %v14691_v10  ;;  %v10054_v55 = vpack.c.bf16 %v7119_v23, %v7118_v32  ;;  %v3466_v30 = vld [vmem:[#allocation2 + $0x6c] sm:$0xff] }
 0x329   :  { %8818 = vmatprep.mubr.msk.f32.mxu0 %vm10767_vm10, %v14691_v10  ;;  %10049 = vmatpush3.bf16.msra.mxu1 %v10048_v8 }
 0x32a   :  { %10050 = vmatprep.subr.bf16.mxu1 %v14689_v1 }
 0x32b   :  { %8216 = vmatmul.mubr.f32.gmra.mrb[96].mxu1 %v11664_v41  ;;  %v7121_v41 = vld [vmem:[%s14673_s2 + $0x1c8] sm:$0xff] }
 0x32c   :  { %8819 = vmatmul.mubr.f32.gmra.mrb[146].mxu0 %v3456_v37  ;;  %8218 = vmatprep.mubr.msk.f32.mxu1 %vm10767_vm10, %v14691_v10  ;;  %v10057_v26 = vpack.c.bf16 %v7121_v41, %v7120_v63  ;;  %v3467_v37 = vld [vmem:[#allocation2 + $0x74] sm:$0xff] }
 0x32d   :  { %8821 = vmatprep.mubr.msk.f32.mxu0 %vm10767_vm10, %v14691_v10  ;;  %10052 = vmatpush3.bf16.msra.mxu1 %v10051_v31 }
 0x32e   :  { %10053 = vmatprep.subr.bf16.mxu1 %v14689_v1 }
 0x32f   :  { %8219 = vmatmul.mubr.f32.gmra.mrb[98].mxu1 %v11688_v48  ;;  %v7123_v48 = vld [vmem:[%s14673_s2 + $0x1d8] sm:$0xff] }
 0x330   :  { %8822 = vmatmul.mubr.f32.gmra.mrb[148].mxu0 %v3457_v57  ;;  %8221 = vmatprep.mubr.msk.f32.mxu1 %vm10767_vm10, %v14691_v10  ;;  %v10060_v15 = vpack.c.bf16 %v7123_v48, %v7122_v14  ;;  %v3468_v57 = vld [vmem:[#allocation2 + $0x7c] sm:$0xff] }
 0x331   :  { %8824 = vmatprep.mubr.msk.f32.mxu0 %vm10767_vm10, %v14691_v10  ;;  %10055 = vmatpush3.bf16.msra.mxu1 %v10054_v55 }
 0x332   :  { %10056 = vmatprep.subr.bf16.mxu1 %v14689_v1 }
 0x333   :  { %8222 = vmatmul.mubr.f32.gmra.mrb[100].mxu1 %v11712_v60  ;;  %v7125_v60 = vld [vmem:[%s14673_s2 + $0x1e8] sm:$0xff] }
 0x334   :  { %8825 = vmatmul.mubr.f32.gmra.mrb[150].mxu0 %v3458_v9  ;;  %8224 = vmatprep.mubr.msk.f32.mxu1 %vm10767_vm10, %v14691_v10  ;;  %v10063_v29 = vpack.c.bf16 %v7125_v60, %v7124_v3  ;;  %v3469_v9 = vld [vmem:[#allocation2 + $0x84] sm:$0xff] }
 0x335   :  { %8827 = vmatprep.mubr.msk.f32.mxu0 %vm10767_vm10, %v14691_v10  ;;  %10058 = vmatpush3.bf16.msra.mxu1 %v10057_v26 }
 0x336   :  { %10059 = vmatprep.subr.bf16.mxu1 %v14689_v1 }
 0x337   :  { %8225 = vmatmul.mubr.f32.gmra.mrb[102].mxu1 %v11736_v12  ;;  %v7127_v12 = vld [vmem:[%s14673_s2 + $0x1f8] sm:$0xff] }
 0x338   :  { %8828 = vmatmul.mubr.f32.gmra.mrb[152].mxu0 %v3459_v22  ;;  %8227 = vmatprep.mubr.msk.f32.mxu1 %vm10767_vm10, %v14691_v10  ;;  %v10066_v2 = vpack.c.bf16 %v7127_v12, %v7126_v19  ;;  %v3470_v22 = vld [vmem:[#allocation2 + $0x8c] sm:$0xff] }
 0x339   :  { %8830 = vmatprep.mubr.msk.f32.mxu0 %vm10767_vm10, %v14691_v10  ;;  %10061 = vmatpush3.bf16.msra.mxu1 %v10060_v15 }
 0x33a   :  { %10062 = vmatprep.subr.bf16.mxu1 %v14689_v1 }
 0x33b   :  { %8228 = vmatmul.mubr.f32.gmra.mrb[104].mxu1 %v11760_v13 }
 0x33c   :  { %8831 = vmatmul.mubr.f32.gmra.mrb[154].mxu0 %v3460_v4  ;;  %8230 = vmatprep.mubr.msk.f32.mxu1 %vm10767_vm10, %v14691_v10  ;;  %v3471_v4 = vld [vmem:[#allocation2 + $0x94] sm:$0xff] }
 0x33d   :  { %8833 = vmatprep.mubr.msk.f32.mxu0 %vm10767_vm10, %v14691_v10  ;;  %10064 = vmatpush3.bf16.msra.mxu1 %v10063_v29 }
 0x33e   :  { %v12267_v24 = vpop.f32.mrb[0].mxu1  ;;  %10065 = vmatprep.subr.bf16.mxu1 %v14689_v1 }
 0x33f   :  { %v8009_v33 = vpop.f32.mrb[1].mxu1  ;;  %8231 = vmatmul.mubr.f32.gmra.mrb[106].mxu1 %v11778_v28 }
 0x340   :  { %8834 = vmatmul.mubr.f32.gmra.mrb[156].mxu0 %v3461_v36  ;;  %8233 = vmatprep.mubr.msk.f32.mxu1 %vm10767_vm10, %v14691_v10  ;;  %v3472_v36 = vld [vmem:[#allocation2 + $0x9c] sm:$0xff] }
 0x341   :  { %8836 = vmatprep.mubr.msk.f32.mxu0 %vm10767_vm10, %v14691_v10  ;;  %10067 = vmatpush3.bf16.msra.mxu1 %v10066_v2 }
 0x342   :  { %v12275_v13 = vpop.f32.mrb[2].mxu1  ;;  %10092 = vmatprep.subr.bf16.mxu1 %v14689_v1 }
 0x343   :  { %v12277_v40 = vpop.f32.mrb[52].mxu0  ;;  %v8012_v46 = vpop.f32.mrb[3].mxu1  ;;  %8234 = vmatmul.mubr.f32.gmra.mrb[108].mxu1 %v11793_v38 }
 0x344   :  { %v8413_v17 = vpop.f32.mrb[53].mxu0  ;;  %8837 = vmatmul.mubr.f32.gmra.mrb[158].mxu0 %v3462_v44  ;;  %8236 = vmatprep.mubr.msk.f32.mxu1 %vm10767_vm10, %v14691_v10 }
 0x345   :  { %8839 = vmatprep.mubr.msk.f32.mxu0 %vm10767_vm10, %v14691_v10  ;;  %v3473_v17 = vld [vmem:[#allocation2 + $0xa4] sm:$0xff] }
 0x346   :  { %v12285_v28 = vpop.f32.mrb[4].mxu1 }
 0x347   :  { %v12287_v49 = vpop.f32.mrb[54].mxu0  ;;  %v8015_v54 = vpop.f32.mrb[5].mxu1  ;;  %8237 = vmatmul.mubr.f32.gmra.mrb[110].mxu1 %v11805_v43 }
 0x348   :  { %v8416_v59 = vpop.f32.mrb[55].mxu0  ;;  %8840 = vmatmul.mubr.f32.gmra.mrb[160].mxu0 %v3463_v47  ;;  %8239 = vmatprep.mubr.msk.f32.mxu1 %vm10767_vm10, %v14691_v10 }
 0x349   :  { %8842 = vmatprep.mubr.msk.f32.mxu0 %vm10767_vm10, %v14691_v10 }
 0x34a   :  { %v12294_v38 = vpop.f32.mrb[6].mxu1 }
 0x34b   :  { %v12296_v16 = vpop.f32.mrb[56].mxu0  ;;  %v8018_v34 = vpop.f32.mrb[7].mxu1  ;;  %8240 = vmatmul.mubr.f32.gmra.mrb[112].mxu1 %v11816_v52 }
 0x34c   :  { %v8419_v39 = vpop.f32.mrb[57].mxu0  ;;  %8843 = vmatmul.mubr.f32.gmra.mrb[162].mxu0 %v3464_v6  ;;  %8242 = vmatprep.mubr.msk.f32.mxu1 %vm10767_vm10, %v14691_v10  ;;  %v3474_v6 = vld [vmem:[#allocation2 + $0xac] sm:$0xff] }
 0x34d   :  { %8845 = vmatprep.mubr.msk.f32.mxu0 %vm10767_vm10, %v14691_v10 }
 0x34e   :  { %v12303_v43 = vpop.f32.mrb[8].mxu1 }
 0x34f   :  { %v12305_v45 = vpop.f32.mrb[58].mxu0  ;;  %v8021_v53 = vpop.f32.mrb[9].mxu1  ;;  %8243 = vmatmul.mubr.f32.gmra.mrb[114].mxu1 %v11826_v56 }
 0x350   :  { %v8422_v58 = vpop.f32.mrb[59].mxu0  ;;  %8846 = vmatmul.mubr.f32.gmra.mrb[164].mxu0 %v3465_v50  ;;  %8245 = vmatprep.mubr.msk.f32.mxu1 %vm10767_vm10, %v14691_v10  ;;  %v3475_v53 = vld [vmem:[#allocation2 + $0xb4] sm:$0xff] }
 0x351   :  { %8848 = vmatprep.mubr.msk.f32.mxu0 %vm10767_vm10, %v14691_v10 }
 0x352   :  { %v12312_v52 = vpop.f32.mrb[10].mxu1 }
 0x353   :  { %v12314_v8 = vpop.f32.mrb[60].mxu0  ;;  %v8024_v25 = vpop.f32.mrb[11].mxu1  ;;  %8246 = vmatmul.mubr.f32.gmra.mrb[116].mxu1 %v11836_v62 }
 0x354   :  { %v8425_v7 = vpop.f32.mrb[61].mxu0  ;;  %8849 = vmatmul.mubr.f32.gmra.mrb[166].mxu0 %v3466_v30  ;;  %8248 = vmatprep.mubr.msk.f32.mxu1 %vm10767_vm10, %v14691_v10  ;;  %v7145_v25 = vld [vmem:[%s14673_s2 + $0x288] sm:$0xff] }
 0x355   :  { %8851 = vmatprep.mubr.msk.f32.mxu0 %vm10767_vm10, %v14691_v10 }
 0x356   :  { %v12321_v56 = vpop.f32.mrb[12].mxu1 }
 0x357   :  { %v12323_v31 = vpop.f32.mrb[62].mxu0  ;;  %v8027_v32 = vpop.f32.mrb[13].mxu1  ;;  %8249 = vmatmul.mubr.f32.gmra.mrb[118].mxu1 %v11846_v11 }
 0x358   :  { %v8428_v23 = vpop.f32.mrb[63].mxu0  ;;  %8852 = vmatmul.mubr.f32.gmra.mrb[168].mxu0 %v3467_v37  ;;  %8251 = vmatprep.mubr.msk.f32.mxu1 %vm10767_vm10, %v14691_v10  ;;  %v3476_v32 = vld [vmem:[#allocation2 + $0xbc] sm:$0xff] }
 0x359   :  { %8854 = vmatprep.mubr.msk.f32.mxu0 %vm10767_vm10, %v14691_v10 }
 0x35a   :  { %v12330_v62 = vpop.f32.mrb[14].mxu1 }
 0x35b   :  { %v12332_v55 = vpop.f32.mrb[64].mxu0  ;;  %v8030_v63 = vpop.f32.mrb[15].mxu1  ;;  %8252 = vmatmul.mubr.f32.gmra.mrb[120].mxu1 %v11856_v21 }
 0x35c   :  { %v8431_v41 = vpop.f32.mrb[65].mxu0  ;;  %8855 = vmatmul.mubr.f32.gmra.mrb[170].mxu0 %v3468_v57  ;;  %8254 = vmatprep.mubr.msk.f32.mxu1 %vm10767_vm10, %v14691_v10 }
 0x35d   :  { %8857 = vmatprep.mubr.msk.f32.mxu0 %vm10767_vm10, %v14691_v10  ;;  %v7146_v41 = vld [vmem:[%s14673_s2 + $0x290] sm:$0xff] }
 0x35e   :  { %v12339_v11 = vpop.f32.mrb[16].mxu1 }
 0x35f   :  { %v12341_v26 = vpop.f32.mrb[66].mxu0  ;;  %v8033_v14 = vpop.f32.mrb[17].mxu1  ;;  %8255 = vmatmul.mubr.f32.gmra.mrb[122].mxu1 %v11866_v5 }
 0x360   :  { %v8434_v48 = vpop.f32.mrb[67].mxu0  ;;  %8858 = vmatmul.mubr.f32.gmra.mrb[172].mxu0 %v3469_v9  ;;  %8257 = vmatprep.mubr.msk.f32.mxu1 %vm10767_vm10, %v14691_v10  ;;  %v7147_v9 = vld [vmem:[%s14673_s2 + $0x298] sm:$0xff] }
 0x361   :  { %8860 = vmatprep.mubr.msk.f32.mxu0 %vm10767_vm10, %v14691_v10 }
 0x362   :  { %v12348_v21 = vpop.f32.mrb[18].mxu1 }
 0x363   :  { %v12350_v15 = vpop.f32.mrb[68].mxu0  ;;  %v8036_v3 = vpop.f32.mrb[19].mxu1  ;;  %8258 = vmatmul.mubr.f32.gmra.mrb[124].mxu1 %v11876_v18 }
 0x364   :  { %v8437_v60 = vpop.f32.mrb[69].mxu0  ;;  %8861 = vmatmul.mubr.f32.gmra.mrb[174].mxu0 %v3470_v22  ;;  %8260 = vmatprep.mubr.msk.f32.mxu1 %vm10767_vm10, %v14691_v10  ;;  %v2240_v22 = vld [vmem:[#allocation2 + $0x9] sm:$0xff] }
 0x365   :  { %8863 = vmatprep.mubr.msk.f32.mxu0 %vm10767_vm10, %v14691_v10  ;;  %v3477_v3 = vld [vmem:[#allocation2 + $0xc4] sm:$0x3f] }
 0x366   :  { %v12357_v5 = vpop.f32.mrb[20].mxu1 }
 0x367   :  { %v12359_v29 = vpop.f32.mrb[70].mxu0  ;;  %v8039_v19 = vpop.f32.mrb[21].mxu1  ;;  %8261 = vmatmul.mubr.f32.gmra.mrb[126].mxu1 %v11886_v35 }
 0x368   :  { %v8440_v12 = vpop.f32.mrb[71].mxu0  ;;  %8864 = vmatmul.mubr.f32.gmra.mrb[176].mxu0 %v3471_v4  ;;  %8263 = vmatprep.mubr.msk.f32.mxu1 %vm10767_vm10, %v14691_v10  ;;  %v10096_v19 = vpack.c.bf16 %v7147_v9, %v7146_v41  ;;  %v2243_v41 = vld [vmem:[#allocation2 + $0x21] sm:$0xff] }
 0x369   :  { %8866 = vmatprep.mubr.msk.f32.mxu0 %vm10767_vm10, %v14691_v10  ;;  %v7148_v12 = vld [vmem:[%s14673_s2 + $0x2a0] sm:$0xff] }
 0x36a   :  { %v12366_v18 = vpop.f32.mrb[22].mxu1 }
 0x36b   :  { %v12368_v2 = vpop.f32.mrb[72].mxu0  ;;  %v8042_v33 = vpop.f32.mrb[23].mxu1  ;;  %8264 = vmatmul.mubr.f32.gmra.mrb[128].mxu1 %v11896_v42 }
 0x36c   :  { %v8443_v44 = vpop.f32.mrb[73].mxu0  ;;  %8867 = vmatmul.mubr.f32.gmra.mrb[178].mxu0 %v3472_v36  ;;  %8266 = vmatprep.mubr.msk.f32.mxu1 %vm10767_vm10, %v14691_v10  ;;  %v7149_v36 = vld [vmem:[%s14673_s2 + $0x2a8] sm:$0xff] }
 0x36d   :  { %8869 = vmatprep.mubr.msk.f32.mxu0 %vm10767_vm10, %v14691_v10 }
 0x36e   :  { %v12375_v35 = vpop.f32.mrb[24].mxu1 }
 0x36f   :  { %v12377_v46 = vpop.f32.mrb[74].mxu0  ;;  %v8045_v47 = vpop.f32.mrb[25].mxu1  ;;  %8267 = vmatmul.mubr.f32.gmra.mrb[130].mxu1 %v11904_v51 }
 0x370   :  { %14695 = vst [vmem:[#allocation16_spill] sm:$0xff] %v12377_v46  ;;  %v8446_v54 = vpop.f32.mrb[75].mxu0  ;;  %8870 = vmatmul.mubr.f32.gmra.mrb[180].mxu0 %v3473_v17  ;;  %8269 = vmatprep.mubr.msk.f32.mxu1 %vm10767_vm10, %v14691_v10  ;;  %v2241_v17 = vld [vmem:[#allocation2 + $0x11] sm:$0xff] }
 0x371   :  { %8872 = vmatprep.mubr.msk.f32.mxu0 %vm10767_vm10, %v14691_v10 }
 0x372   :  { %v12384_v42 = vpop.f32.mrb[26].mxu1 }
 0x373   :  { %v12386_v59 = vpop.f32.mrb[76].mxu0  ;;  %v8048_v34 = vpop.f32.mrb[27].mxu1  ;;  %8270 = vmatmul.mubr.f32.gmra.mrb[132].mxu1 %v11911_v61  ;;  %v7144_v61 = vld [vmem:[%s14673_s2 + $0x280] sm:$0xff] }
 0x374   :  { %14696 = vst [vmem:[#allocation17_spill] sm:$0xff] %v12386_v59  ;;  %v8449_v39 = vpop.f32.mrb[77].mxu0  ;;  %8873 = vmatmul.mubr.f32.gmra.mrb[182].mxu0 %v3474_v6  ;;  %8272 = vmatprep.mubr.msk.f32.mxu1 %vm10767_vm10, %v14691_v10  ;;  %v10093_v63 = vpack.c.bf16 %v7145_v25, %v7144_v61  ;;  %v10099_v6 = vpack.c.bf16 %v7149_v36, %v7148_v12  ;;  %v7150_v34 = vld [vmem:[%s14673_s2 + $0x2b0] sm:$0xff] }
 0x375   :  { %8875 = vmatprep.mubr.msk.f32.mxu0 %vm10767_vm10, %v14691_v10  ;;  %v7151_v39 = vld [vmem:[%s14673_s2 + $0x2b8] sm:$0xff]  ;;  %v2244_v36 = vld [vmem:[#allocation2 + $0x29] sm:$0xff] }
 0x376   :  { %v12393_v51 = vpop.f32.mrb[28].mxu1 }
 0x377   :  { %v12395_v50 = vpop.f32.mrb[78].mxu0  ;;  %v8051_v58 = vpop.f32.mrb[29].mxu1  ;;  %8273 = vmatmul.mubr.f32.gmra.mrb[134].mxu1 %v11918_v20  ;;  %v2019_v20 = vld [vmem:[#allocation2 + $0xb2] sm:$0x3f] }
 0x378   :  { %14697 = vst [vmem:[#allocation18_spill] sm:$0xff] %v12395_v50  ;;  %v8452_v30 = vpop.f32.mrb[79].mxu0  ;;  %8876 = vmatmul.mubr.f32.gmra.mrb[184].mxu0 %v3475_v53  ;;  %8275 = vmatprep.mubr.msk.f32.mxu1 %vm10767_vm10, %v14691_v10 }
 0x379   :  { %8878 = vmatprep.mubr.msk.f32.mxu0 %vm10767_vm10, %v14691_v10  ;;  %v2242_v30 = vld [vmem:[#allocation2 + $0x19] sm:$0xff] }
 0x37a   :  { %v12408_v7 = vpop.f32.mrb[30].mxu1 }
 0x37b   :  { %v12410_v37 = vpop.f32.mrb[80].mxu0  ;;  %v8054_v23 = vpop.f32.mrb[31].mxu1  ;;  %8276 = vmatmul.mubr.f32.gmra.mrb[136].mxu1 %v2019_v20  ;;  %v10102_v20 = vpack.c.bf16 %v7151_v39, %v7150_v34  ;;  %v7157_v34 = vld [vmem:[%s14673_s2 + $0x2e8] sm:$0xff] }
 0x37c   :  { %14698 = vst [vmem:[#allocation19_spill] sm:$0xff] %v12410_v37  ;;  %v8455_v57 = vpop.f32.mrb[81].mxu0  ;;  %8879 = vmatmul.mubr.f32.gmra.mrb[186].mxu0 %v3476_v32  ;;  %8310 = vmatprep.mubr.msk.f32.mxu1 %vm10767_vm10, %v14691_v10  ;;  %v7152_v32 = vld [vmem:[%s14673_s2 + $0x2c0] sm:$0xff]  ;;  %v7153_v23 = vld [vmem:[%s14673_s2 + $0x2c8] sm:$0xff] }
 0x37d   :  { %8881 = vmatprep.mubr.msk.f32.mxu0 %vm10767_vm10, %v14691_v10 }
 0x37e   :  { %v12422_v14 = vpop.f32.mrb[32].mxu1 }
 0x37f   :  { %v12424_v48 = vpop.f32.mrb[82].mxu0  ;;  %v8057_v60 = vpop.f32.mrb[33].mxu1  ;;  %8311 = vmatmul.mubr.f32.vlgmr.msra.gmra.mrb[138].mxu1 %v2240_v22 }
 0x380   :  { %14699 = vst [vmem:[#allocation20_spill] sm:$0xff] %v12424_v48  ;;  %v8458_v4 = vpop.f32.mrb[83].mxu0  ;;  %8882 = vmatmul.mubr.f32.gmra.mrb[188].mxu0 %v3477_v3  ;;  %10094 = vmatpush3.bf16.msra.mxu1 %v10093_v63  ;;  %v10105_v3 = vpack.c.bf16 %v7153_v23, %v7152_v32  ;;  %v7154_v60 = vld [vmem:[%s14673_s2 + $0x2d0] sm:$0xff] }
 0x381   :  { %8313 = vmatprep.mubr.msk.f32.mxu1 %vm10767_vm10, %v14691_v10  ;;  %10095 = vmatprep.subr.bf16.mxu1 %v14689_v1  ;;  %v7155_v4 = vld [vmem:[%s14673_s2 + $0x2d8] sm:$0xff]  ;;  %v7158_v23 = vld [vmem:[%s14673_s2 + $0x2f0] sm:$0xff] }
 0x382   :  { %9011 = vmatprep.mubr.msk.f32.mxu0 %vm10767_vm10, %v14691_v10  ;;  %v12437_v33 = vpop.f32.mrb[34].mxu1 }
 0x383   :  { %v12439_v44 = vpop.f32.mrb[84].mxu0  ;;  %v8060_v47 = vpop.f32.mrb[35].mxu1  ;;  %8314 = vmatmul.mubr.f32.gmra.mrb[140].mxu1 %v2241_v17 }
 0x384   :  { %14700 = vst [vmem:[#allocation21_spill] sm:$0xff] %v12439_v44  ;;  %v8461_v54 = vpop.f32.mrb[85].mxu0  ;;  %8316 = vmatprep.mubr.msk.f32.mxu1 %vm10767_vm10, %v14691_v10  ;;  %10097 = vmatpush3.bf16.msra.mxu1 %v10096_v19  ;;  %v6020_v44 = vld [vmem:[%s14678_s7 + $0x90] sm:$0xff] }
 0x385   :  { %10098 = vmatprep.subr.bf16.mxu1 %v14689_v1  ;;  %v10108_v54 = vpack.c.bf16 %v7155_v4, %v7154_v60 }
 0x386   :  { %v12450_v53 = vpop.f32.mrb[36].mxu1 }
 0x387   :  { %v12452_v58 = vpop.f32.mrb[86].mxu0  ;;  %v8063_v61 = vpop.f32.mrb[37].mxu1  ;;  %8317 = vmatmul.mubr.f32.gmra.mrb[142].mxu1 %v2242_v30 }
 0x388   :  { %14701 = vst [vmem:[#allocation22_spill] sm:$0xff] %v12452_v58  ;;  %v8464_v25 = vpop.f32.mrb[87].mxu0  ;;  %8319 = vmatprep.mubr.msk.f32.mxu1 %vm10767_vm10, %v14691_v10  ;;  %10100 = vmatpush3.bf16.msra.mxu1 %v10099_v6  ;;  %v7156_v6 = vld [vmem:[%s14673_s2 + $0x2e0] sm:$0xff]  ;;  %v2245_v61 = vld [vmem:[#allocation2 + $0x31] sm:$0xff] }
 0x389   :  { %10101 = vmatprep.subr.bf16.mxu1 %v14689_v1  ;;  %v10111_v32 = vpack.c.bf16 %v7157_v34, %v7156_v6  ;;  %v6010_v58 = vld [vmem:[%s14678_s7 + $0x40] sm:$0xff] }
 0x38a   :  { %v12463_v57 = vpop.f32.mrb[38].mxu1 }
 0x38b   :  { %v12465_v63 = vpop.f32.mrb[88].mxu0  ;;  %v8066_v9 = vpop.f32.mrb[39].mxu1  ;;  %8320 = vmatmul.mubr.f32.gmra.mrb[144].mxu1 %v2243_v41  ;;  %v7159_v41 = vld [vmem:[%s14673_s2 + $0x2f8] sm:$0xff] }
 0x38c   :  { %14702 = vst [vmem:[#allocation23_spill] sm:$0xff] %v12465_v63  ;;  %v8467_v22 = vpop.f32.mrb[89].mxu0  ;;  %8322 = vmatprep.mubr.msk.f32.mxu1 %vm10767_vm10, %v14691_v10  ;;  %10103 = vmatpush3.bf16.msra.mxu1 %v10102_v20  ;;  %v6005_v63 = vld [vmem:[%s14678_s7 + $0x18] sm:$0xff] }
 0x38d   :  { %10104 = vmatprep.subr.bf16.mxu1 %v14689_v1 }
 0x38e   :  { %v12476_v19 = vpop.f32.mrb[40].mxu1 }
 0x38f   :  { %v12478_v12 = vpop.f32.mrb[90].mxu0  ;;  %v8069_v17 = vpop.f32.mrb[41].mxu1  ;;  %8323 = vmatmul.mubr.f32.gmra.mrb[146].mxu1 %v2244_v36  ;;  %v10114_v36 = vpack.c.bf16 %v7159_v41, %v7158_v23 }
 0x390   :  { %14703 = vst [vmem:[#allocation24_spill] sm:$0xff] %v12478_v12  ;;  %v8470_v47 = vpop.f32.mrb[91].mxu0  ;;  %8325 = vmatprep.mubr.msk.f32.mxu1 %vm10767_vm10, %v14691_v10  ;;  %10106 = vmatpush3.bf16.msra.mxu1 %v10105_v3  ;;  %v2246_v3 = vld [vmem:[#allocation2 + $0x39] sm:$0xff]  ;;  %v6019_v12 = vld [vmem:[%s14678_s7 + $0x88] sm:$0xff] }
 0x391   :  { %10107 = vmatprep.subr.bf16.mxu1 %v14689_v1 }
 0x392   :  { %v12489_v39 = vpop.f32.mrb[42].mxu1 }
 0x393   :  { %v12491_v30 = vpop.f32.mrb[92].mxu0  ;;  %v8072_v25 = vpop.f32.mrb[43].mxu1  ;;  %8326 = vmatmul.mubr.f32.gmra.mrb[148].mxu1 %v2245_v61 }
 0x394   :  { %14704 = vst [vmem:[#allocation25_spill] sm:$0xff] %v12491_v30  ;;  %v8473_v20 = vpop.f32.mrb[93].mxu0  ;;  %8328 = vmatprep.mubr.msk.f32.mxu1 %vm10767_vm10, %v14691_v10  ;;  %10109 = vmatpush3.bf16.msra.mxu1 %v10108_v54  ;;  %v2247_v54 = vld [vmem:[#allocation2 + $0x41] sm:$0xff]  ;;  %v6017_v30 = vld [vmem:[%s14678_s7 + $0x78] sm:$0xff] }
 0x395   :  { %10110 = vmatprep.subr.bf16.mxu1 %v14689_v1 }
 0x396   :  { %v12502_v9 = vpop.f32.mrb[44].mxu1 }
 0x397   :  { %v12504_v22 = vpop.f32.mrb[94].mxu0  ;;  %v8075_v60 = vpop.f32.mrb[45].mxu1  ;;  %8329 = vmatmul.mubr.f32.gmra.mrb[150].mxu1 %v2246_v3 }
 0x398   :  { %14705 = vst [vmem:[#allocation26_spill] sm:$0xff] %v12504_v22  ;;  %v8476_v4 = vpop.f32.mrb[95].mxu0  ;;  %8331 = vmatprep.mubr.msk.f32.mxu1 %vm10767_vm10, %v14691_v10  ;;  %10112 = vmatpush3.bf16.msra.mxu1 %v10111_v32  ;;  %v2248_v32 = vld [vmem:[#allocation2 + $0x49] sm:$0xff] }
 0x399   :  { %10113 = vmatprep.subr.bf16.mxu1 %v14689_v1  ;;  %v2249_v4 = vld [vmem:[#allocation2 + $0x51] sm:$0xff] }
 0x39a   :  { %v1883_v17 = vpop.f32.mrb[46].mxu1 }
 0x39b   :  { %v12509_v47 = vpop.f32.mrb[96].mxu0  ;;  %v12512_v6 = vadd.f32 %v1883_v17, %v12267_v24  ;;  %v8110_v34 = vpop.f32.mrb[47].mxu1  ;;  %8332 = vmatmul.mubr.f32.gmra.mrb[152].mxu1 %v2247_v54 }
 0x39c   :  { %14706 = vst [vmem:[#allocation27_spill] sm:$0xff] %v12509_v47  ;;  %v8479_v61 = vpop.f32.mrb[97].mxu0  ;;  %8334 = vmatprep.mubr.msk.f32.mxu1 %vm10767_vm10, %v14691_v10  ;;  %10115 = vmatpush3.bf16.msra.mxu1 %v10114_v36  ;;  %v6003_v47 = vld [vmem:[%s14678_s7 + $0x8] sm:$0xff] }
 0x39d   :  { %10140 = vmatprep.subr.bf16.mxu1 %v14689_v1  ;;  %v2250_v61 = vld [vmem:[#allocation2 + $0x59] sm:$0xff] }
 0x39e   :  { %v1888_v25 = vpop.f32.mrb[48].mxu1 }
 0x39f   :  { %v12517_v20 = vpop.f32.mrb[98].mxu0  ;;  %v12520_v23 = vadd.f32 %v1888_v25, %v12275_v13  ;;  %v8113_v41 = vpop.f32.mrb[49].mxu1  ;;  %8335 = vmatmul.mubr.f32.gmra.mrb[154].mxu1 %v2248_v32 }
 0x3a0   :  { %14707 = vst [vmem:[#allocation28_spill] sm:$0xff] %v12517_v20  ;;  %v8615_v24 = vpop.f32.mrb[99].mxu0  ;;  %8337 = vmatprep.mubr.msk.f32.mxu1 %vm10767_vm10, %v14691_v10  ;;  %v3773_v20 = vld [vmem:[%s14677_s6 + $0xb0] sm:$0x3f] }
 0x3a2   :  { %v1893_v3 = vpop.f32.mrb[50].mxu1 }
 0x3a3   :  { %v12524_v60 = vpop.f32.mrb[100].mxu0  ;;  %v12527_v36 = vadd.f32 %v1893_v3, %v12285_v28  ;;  %v8116_v17 = vpop.f32.mrb[51].mxu1  ;;  %8338 = vmatmul.mubr.f32.gmra.mrb[156].mxu1 %v2249_v4  ;;  %v2251_v3 = vld [vmem:[#allocation2 + $0x61] sm:$0xff] }
 0x3a4   :  { %14708 = vst [vmem:[#allocation29_spill] sm:$0xff] %v12524_v60  ;;  %v8618_v54 = vpop.f32.mrb[101].mxu0  ;;  %8340 = vmatprep.mubr.msk.f32.mxu1 %vm10767_vm10, %v14691_v10  ;;  %v3771_v60 = vld [vmem:[%s14677_s6 + $0xa0] sm:$0xff] }
 0x3a6   :  { %v1898_v13 = vpop.f32.mrb[52].mxu1 }
 0x3a7   :  { %v12531_v34 = vpop.f32.mrb[102].mxu0  ;;  %v12534_v25 = vadd.f32 %v1898_v13, %v12294_v38  ;;  %v8119_v32 = vpop.f32.mrb[53].mxu1  ;;  %8341 = vmatmul.mubr.f32.gmra.mrb[158].mxu1 %v2250_v61  ;;  %v2252_v61 = vld [vmem:[#allocation2 + $0x69] sm:$0xff] }
 0x3a8   :  { %14709 = vst [vmem:[#allocation30_spill] sm:$0xff] %v12531_v34  ;;  %v8621_v41 = vpop.f32.mrb[103].mxu0  ;;  %8343 = vmatprep.mubr.msk.f32.mxu1 %vm10767_vm10, %v14691_v10  ;;  %v3769_v34 = vld [vmem:[%s14677_s6 + $0x90] sm:$0xff] }
 0x3aa   :  { %v1903_v28 = vpop.f32.mrb[54].mxu1 }
 0x3ab   :  { %v12538_v24 = vpop.f32.mrb[104].mxu0  ;;  %v12541_v4 = vadd.f32 %v1903_v28, %v12303_v43  ;;  %v8122_v17 = vpop.f32.mrb[55].mxu1  ;;  %8344 = vmatmul.mubr.f32.gmra.mrb[160].mxu1 %v2251_v3  ;;  %v2253_v3 = vld [vmem:[#allocation2 + $0x71] sm:$0xff] }
 0x3ac   :  { %14710 = vst [vmem:[#allocation31_spill] sm:$0xff] %v12538_v24  ;;  %v8624_v54 = vpop.f32.mrb[105].mxu0  ;;  %8346 = vmatprep.mubr.msk.f32.mxu1 %vm10767_vm10, %v14691_v10  ;;  %v3767_v24 = vld [vmem:[%s14677_s6 + $0x80] sm:$0xff] }
 0x3ae   :  { %v1908_v38 = vpop.f32.mrb[56].mxu1 }
 0x3af   :  { %v12545_v13 = vpop.f32.mrb[106].mxu0  ;;  %v12548_v32 = vadd.f32 %v1908_v38, %v12312_v52  ;;  %v8125_v41 = vpop.f32.mrb[57].mxu1  ;;  %8347 = vmatmul.mubr.f32.gmra.mrb[162].mxu1 %v2252_v61 }
 0x3b0   :  { %14711 = vst [vmem:[#allocation32_spill] sm:$0xff] %v12545_v13  ;;  %v8627_v0 = vpop.f32.mrb[107].mxu0  ;;  %8349 = vmatprep.mubr.msk.f32.mxu1 %vm10767_vm10, %v14691_v10  ;;  %v3765_v13 = vld [vmem:[%s14677_s6 + $0x70] sm:$0xff] }
 0x3b1   :  { %v2254_v0 = vld [vmem:[#allocation2 + $0x79] sm:$0xff] }
 0x3b2   :  { %v1913_v43 = vpop.f32.mrb[58].mxu1 }
 0x3b3   :  { %v12552_v28 = vpop.f32.mrb[108].mxu0  ;;  %v12555_v17 = vadd.f32 %v1913_v43, %v12321_v56  ;;  %v8128_v54 = vpop.f32.mrb[59].mxu1  ;;  %8350 = vmatmul.mubr.f32.gmra.mrb[164].mxu1 %v2253_v3 }
 0x3b4   :  { %14712 = vst [vmem:[#allocation33_spill] sm:$0xff] %v12552_v28  ;;  %v8630_v27 = vpop.f32.mrb[109].mxu0  ;;  %8352 = vmatprep.mubr.msk.f32.mxu1 %vm10767_vm10, %v14691_v10 }
 0x3b5   :  { %v2255_v27 = vld [vmem:[#allocation2 + $0x81] sm:$0xff] }
 0x3b6   :  { %v1918_v52 = vpop.f32.mrb[60].mxu1 }
 0x3b7   :  { %v12559_v38 = vpop.f32.mrb[110].mxu0  ;;  %v12562_v61 = vadd.f32 %v1918_v52, %v12330_v62  ;;  %v8131_v41 = vpop.f32.mrb[61].mxu1  ;;  %8353 = vmatmul.mubr.f32.gmra.mrb[166].mxu1 %v2254_v0 }
 0x3b8   :  { %14713 = vst [vmem:[#allocation34_spill] sm:$0xff] %v12559_v38  ;;  %v8633_v1 = vpop.f32.mrb[111].mxu0  ;;  %8355 = vmatprep.mubr.msk.f32.mxu1 %vm10767_vm10, %v14691_v10 }
 0x3b9   :  { %v2256_v1 = vld [vmem:[#allocation2 + $0x89] sm:$0xff] }
 0x3ba   :  { %v1923_v56 = vpop.f32.mrb[62].mxu1 }
 0x3bb   :  { %v12566_v43 = vpop.f32.mrb[112].mxu0  ;;  %v12569_v3 = vadd.f32 %v1923_v56, %v12339_v11  ;;  %v8134_v54 = vpop.f32.mrb[63].mxu1  ;;  %8356 = vmatmul.mubr.f32.gmra.mrb[168].mxu1 %v2255_v27 }
 0x3bc   :  { %14714 = vst [vmem:[#allocation35_spill] sm:$0xff] %v12566_v43  ;;  %v8636_v38 = vpop.f32.mrb[113].mxu0  ;;  %8358 = vmatprep.mubr.msk.f32.mxu1 %vm10767_vm10, %v14691_v10 }
 0x3bd   :  { %v2257_v38 = vld [vmem:[#allocation2 + $0x91] sm:$0xff] }
 0x3be   :  { %v1928_v62 = vpop.f32.mrb[64].mxu1 }
 0x3bf   :  { %v12573_v52 = vpop.f32.mrb[114].mxu0  ;;  %v12576_v0 = vadd.f32 %v1928_v62, %v12348_v21  ;;  %v8137_v41 = vpop.f32.mrb[65].mxu1  ;;  %8359 = vmatmul.mubr.f32.gmra.mrb[170].mxu1 %v2256_v1  ;;  %v3752_v21 = vld [vmem:[%s14677_s6 + $0x8] sm:$0xff] }
 0x3c0   :  { %14715 = vst [vmem:[#allocation36_spill] sm:$0xff] %v12573_v52  ;;  %v8639_v43 = vpop.f32.mrb[115].mxu0  ;;  %8361 = vmatprep.mubr.msk.f32.mxu1 %vm10767_vm10, %v14691_v10  ;;  %3781 = vperm.xlu1 %10652, %v3752_v21  }
 0x3c1   :  { %v3751_v43 = vld [vmem:[%s14677_s6] sm:$0xff] }
 0x3c2   :  { %v1933_v11 = vpop.f32.mrb[66].mxu1  ;;  %3776 = vperm.xlu0 %10651, %v3751_v43  }
 0x3c3   :  { %v12580_v56 = vpop.f32.mrb[116].mxu0  ;;  %v12583_v27 = vadd.f32 %v1933_v11, %v12357_v5  ;;  %v8140_v54 = vpop.f32.mrb[67].mxu1  ;;  %8362 = vmatmul.mubr.f32.gmra.mrb[172].mxu1 %v2257_v38  ;;  %v2258_v5 = vld [vmem:[#allocation2 + $0x99] sm:$0xff]  ;;  %v3753_v38 = vld [vmem:[%s14677_s6 + $0x10] sm:$0xff] }
 0x3c4   :  { %14716 = vst [vmem:[#allocation37_spill] sm:$0xff] %v12580_v56  ;;  %v8642_v52 = vpop.f32.mrb[117].mxu0  ;;  %8364 = vmatprep.mubr.msk.f32.mxu1 %vm10767_vm10, %v14691_v10  ;;  %v3754_v54 = vld [vmem:[%s14677_s6 + $0x18] sm:$0xff]  ;;  %3786 = vperm.xlu1 %10652, %v3753_v38   ;;  %v14719_v38 = vmov 0.0  }
 0x3c5   :  { %v3762_v56 = vld [vmem:[%s14677_s6 + $0x58] sm:$0xff] }
 0x3c6   :  { %v1938_v62 = vpop.f32.mrb[68].mxu1  ;;  %3791 = vperm.xlu0 %10651, %v3754_v54  }
 0x3c7   :  { %v12593_v1 = vpop.f32.mrb[118].mxu0  ;;  %v12596_v41 = vadd.f32 %v1938_v62, %v12366_v18  ;;  %v8143_v52 = vpop.f32.mrb[69].mxu1  ;;  %8365 = vmatmul.mubr.f32.gmra.mrb[174].mxu1 %v2258_v5  ;;  %v2259_v18 = vld [vmem:[#allocation2 + $0xa1] sm:$0xff] }
 0x3c8   :  { %14717 = vst [vmem:[#allocation38_spill] sm:$0xff] %v12593_v1  ;;  %v8645_v11 = vpop.f32.mrb[119].mxu0  ;;  %8367 = vmatprep.mubr.msk.f32.mxu1 %vm10767_vm10, %v14691_v10  ;;  %v3756_v10 = vld [vmem:[%s14677_s6 + $0x28] sm:$0xff]  ;;  %v3758_v1 = vld [vmem:[%s14677_s6 + $0x38] sm:$0xff] }
 0x3c9   :  { %v3755_v11 = vld [vmem:[%s14677_s6 + $0x20] sm:$0xff] }
 0x3ca   :  { %v1943_v21 = vpop.f32.mrb[70].mxu1  ;;  %3796 = vperm.xlu1 %10652, %v3755_v11   ;;  %3801 = vperm.xlu0 %10651, %v3756_v10  }
 0x3cb   :  { %v12606_v43 = vpop.f32.mrb[120].mxu0  ;;  %v12609_v62 = vadd.f32 %v1943_v21, %v12375_v35  ;;  %v8146_v5 = vpop.f32.mrb[71].mxu1  ;;  %8368 = vmatmul.mubr.f32.gmra.mrb[176].mxu1 %v2259_v18  ;;  %v2260_v35 = vld [vmem:[#allocation2 + $0xa9] sm:$0xff] }
 0x3cc   :  { %14718 = vst [vmem:[#allocation39_spill] sm:$0xff] %v12606_v43  ;;  %v8648_v52 = vpop.f32.mrb[121].mxu0  ;;  %8370 = vmatprep.mubr.msk.f32.mxu1 %vm10767_vm10, %v14719_v38 }
 0x3cd   :  { %v3757_v52 = vld [vmem:[%s14677_s6 + $0x30] sm:$0xff] }
 0x3ce   :  { %v1948_v54 = vpop.f32.mrb[72].mxu1  ;;  %3806 = vperm.xlu1 %10652, %v3757_v52   ;;  %3811 = vperm.xlu0 %10651, %v3758_v1   ;;  %v7177_v1 = vld [vmem:[%s14673_s2 + $0x388] sm:$0xff] }
 0x3cf   :  { %v12619_v43 = vpop.f32.mrb[122].mxu0  ;;  %v12622_v21 = vadd.f32 %v1948_v54, %v12384_v42  ;;  %v8149_v18 = vpop.f32.mrb[73].mxu1  ;;  %8371 = vmatmul.mubr.f32.gmra.mrb[178].mxu1 %v2260_v35  ;;  %v2261_v42 = vld [vmem:[#allocation2 + $0xb1] sm:$0xff] }
 0x3d0   :  { %14720 = vst [vmem:[#allocation40_spill] sm:$0xff] %v12619_v43  ;;  %v8651_v5 = vpop.f32.mrb[123].mxu0  ;;  %8373 = vmatprep.mubr.msk.f32.mxu1 %vm10767_vm10, %v14719_v38  ;;  %v3760_v43 = vld [vmem:[%s14677_s6 + $0x48] sm:$0xff] }
 0x3d1   :  { %v3759_v5 = vld [vmem:[%s14677_s6 + $0x40] sm:$0xff] }
 0x3d2   :  { %v1953_v10 = vpop.f32.mrb[74].mxu1  ;;  %3816 = vperm.xlu1 %10652, %v3759_v5   ;;  %3821 = vperm.xlu0 %10651, %v3760_v43   ;;  %v3761_v5 = vld [vmem:[%s14677_s6 + $0x50] sm:$0xff] }
 0x3d3   :  { %v12632_v11 = vpop.f32.mrb[124].mxu0  ;;  %v12635_v54 = vadd.f32 %v1953_v10, %v12393_v51  ;;  %v8152_v35 = vpop.f32.mrb[75].mxu1  ;;  %8374 = vmatmul.mubr.f32.gmra.mrb[180].mxu1 %v2261_v42  ;;  %v7176_v51 = vld [vmem:[%s14673_s2 + $0x380] sm:$0xff]  ;;  %v2262_v42 = vld [vmem:[#allocation2 + $0xb9] sm:$0x3f] }
 0x3d4   :  { %14721 = vst [vmem:[#allocation41_spill] sm:$0xff] %v12632_v11  ;;  %v8654_v18 = vpop.f32.mrb[125].mxu0  ;;  %8376 = vmatprep.mubr.msk.f32.mxu1 %vm10767_vm10, %v14719_v38  ;;  %v10141_v43 = vpack.c.bf16 %v7177_v1, %v7176_v51  ;;  %v3763_v1 = vld [vmem:[%s14677_s6 + $0x60] sm:$0xff] }
 0x3d6   :  { %v1958_v52 = vpop.f32.mrb[76].mxu1  ;;  %3826 = vperm.xlu1 %10652, %v3761_v5   ;;  %3831 = vperm.xlu0 %10651, %v3762_v56   ;;  %v3764_v5 = vld [vmem:[%s14677_s6 + $0x68] sm:$0xff] }
 0x3d7   :  { %v12651_v10 = vpop.f32.mrb[126].mxu0  ;;  %v12654_v35 = vadd.f32 %v1958_v52, %v12408_v7  ;;  %v8155_v18 = vpop.f32.mrb[77].mxu1  ;;  %8377 = vmatmul.mubr.f32.gmra.mrb[182].mxu1 %v2262_v42  ;;  %v7178_v7 = vld [vmem:[%s14673_s2 + $0x390] sm:$0xff] }
 0x3d8   :  { %14722 = vst [vmem:[#allocation42_spill] sm:$0xff] %v12651_v10  ;;  %v8657_v11 = vpop.f32.mrb[127].mxu0  ;;  %8512 = vmatprep.mubr.msk.f32.mxu1 %vm10767_vm10, %v14719_v38  ;;  %v2726_v18 = vld [vmem:[#allocation2 + $0xb] sm:$0xff] }
 0x3d9   :  { %v7179_v11 = vld [vmem:[%s14673_s2 + $0x398] sm:$0xff] }
 0x3da   :  { %v1963_v52 = vpop.f32.mrb[78].mxu1  ;;  %v10144_v56 = vpack.c.bf16 %v7179_v11, %v7178_v7  ;;  %3836 = vperm.xlu1 %10652, %v3763_v1   ;;  %3841 = vperm.xlu0 %10651, %v3764_v5   ;;  %v3766_v1 = vld [vmem:[%s14677_s6 + $0x78] sm:$0xff] }
 0x3db   :  { %v12670_v42 = vpop.f32.mrb[128].mxu0  ;;  %v12673_v10 = vadd.f32 %v1963_v52, %v12422_v14  ;;  %v8158_v28 = vpop.f32.mrb[79].mxu1  ;;  %8513 = vmatmul.mubr.f32.vlgmr.msra.gmra.mrb[184].mxu1 %v2726_v18  ;;  %v7180_v14 = vld [vmem:[%s14673_s2 + $0x3a0] sm:$0xff] }
 0x3dc   :  { %14723 = vst [vmem:[#allocation43_spill] sm:$0xff] %v12670_v42  ;;  %v8660_v51 = vpop.f32.mrb[129].mxu0  ;;  %10142 = vmatpush3.bf16.msra.mxu1 %v10141_v43  ;;  %8515 = vmatprep.mubr.msk.f32.mxu1 %vm10767_vm10, %v14719_v38  ;;  %v14724_v42 = vmov 0.0|0.0   ;;  %v7181_v28 = vld [vmem:[%s14673_s2 + $0x3a8] sm:$0xff] }
 0x3dd   :  { %10143 = vmatprep.subr.bf16.mxu1 %v14724_v42  ;;  %v12692_v51 = vld [vmem:[#allocation2 + $0x13] sm:$0xff]  ;;  %v10147_v5 = vpack.c.bf16 %v7181_v28, %v7180_v14 }
 0x3de   :  { %v1968_v52 = vpop.f32.mrb[80].mxu1  ;;  %3846 = vperm.xlu1 %10652, %v3765_v13   ;;  %3851 = vperm.xlu0 %10651, %v3766_v1   ;;  %v3768_v13 = vld [vmem:[%s14677_s6 + $0x88] sm:$0xff] }
 0x3df   :  { %v12690_v18 = vpop.f32.mrb[130].mxu0  ;;  %v12695_v43 = vadd.f32 %v1968_v52, %v12437_v33  ;;  %v8161_v7 = vpop.f32.mrb[81].mxu1  ;;  %8516 = vmatmul.mubr.f32.gmra.mrb[186].mxu1 %v12692_v51  ;;  %v7182_v33 = vld [vmem:[%s14673_s2 + $0x3b0] sm:$0xff]  ;;  %v7183_v52 = vld [vmem:[%s14673_s2 + $0x3b8] sm:$0xff] }
 0x3e0   :  { %14725 = vst [vmem:[#allocation44_spill] sm:$0xff] %v12690_v18  ;;  %v8663_v11 = vpop.f32.mrb[131].mxu0  ;;  %8518 = vmatprep.mubr.msk.f32.mxu1 %vm10767_vm10, %v14719_v38  ;;  %10145 = vmatpush3.bf16.msra.mxu1 %v10144_v56  ;;  %v12715_v18 = vld [vmem:[#allocation2 + $0x1b] sm:$0xff]  ;;  %v10150_v1 = vpack.c.bf16 %v7183_v52, %v7182_v33 }
 0x3e1   :  { %10146 = vmatprep.subr.bf16.mxu1 %v14724_v42 }
 0x3e2   :  { %v1973_v7 = vpop.f32.mrb[82].mxu1  ;;  %3856 = vperm.xlu1 %10652, %v3767_v24   ;;  %3861 = vperm.xlu0 %10651, %v3768_v13   ;;  %v3770_v24 = vld [vmem:[%s14677_s6 + $0x98] sm:$0xff] }
 0x3e3   :  { %v12713_v11 = vpop.f32.mrb[132].mxu0  ;;  %v12718_v56 = vadd.f32 %v1973_v7, %v12450_v53  ;;  %v8164_v14 = vpop.f32.mrb[83].mxu1  ;;  %8519 = vmatmul.mubr.f32.gmra.mrb[188].mxu1 %v12715_v18  ;;  %v7184_v53 = vld [vmem:[%s14673_s2 + $0x3c0] sm:$0xff]  ;;  %v7185_v7 = vld [vmem:[%s14673_s2 + $0x3c8] sm:$0xff] }
 0x3e4   :  { %14726 = vst [vmem:[#allocation45_spill] sm:$0xff] %v12713_v11  ;;  %v8666_v28 = vpop.f32.mrb[133].mxu0  ;;  %8521 = vmatprep.mubr.msk.f32.mxu1 %vm10767_vm10, %v14719_v38  ;;  %10148 = vmatpush3.bf16.msra.mxu1 %v10147_v5  ;;  %v12738_v11 = vld [vmem:[#allocation2 + $0x23] sm:$0xff]  ;;  %v10153_v13 = vpack.c.bf16 %v7185_v7, %v7184_v53 }
 0x3e5   :  { %10149 = vmatprep.subr.bf16.mxu1 %v14724_v42 }
 0x3e6   :  { %v1978_v14 = vpop.f32.mrb[84].mxu1  ;;  %3866 = vperm.xlu1 %10652, %v3769_v34   ;;  %3871 = vperm.xlu0 %10651, %v3770_v24   ;;  %v3772_v34 = vld [vmem:[%s14677_s6 + $0xa8] sm:$0xff] }
 0x3e7   :  { %v12736_v28 = vpop.f32.mrb[134].mxu0  ;;  %v12741_v5 = vadd.f32 %v1978_v14, %v12463_v57  ;;  %v8167_v33 = vpop.f32.mrb[85].mxu1  ;;  %8522 = vmatmul.mubr.f32.gmra.mrb[190].mxu1 %v12738_v11  ;;  %v7186_v57 = vld [vmem:[%s14673_s2 + $0x3d0] sm:$0xff]  ;;  %v7187_v14 = vld [vmem:[%s14673_s2 + $0x3d8] sm:$0xff] }
 0x3e8   :  { %14727 = vst [vmem:[#allocation46_spill] sm:$0xff] %v12736_v28  ;;  %v8669_v52 = vpop.f32.mrb[135].mxu0  ;;  %8524 = vmatprep.mubr.msk.f32.mxu1 %vm10767_vm10, %v14719_v38  ;;  %10151 = vmatpush3.bf16.msra.mxu1 %v10150_v1  ;;  %v12761_v28 = vld [vmem:[#allocation2 + $0x2b] sm:$0xff]  ;;  %v10156_v24 = vpack.c.bf16 %v7187_v14, %v7186_v57 }
 0x3e9   :  { %10152 = vmatprep.subr.bf16.mxu1 %v14724_v42 }
 0x3ea   :  { %v1983_v33 = vpop.f32.mrb[86].mxu1  ;;  %3876 = vperm.xlu1 %10652, %v3771_v60   ;;  %3881 = vperm.xlu0 %10651, %v3772_v34   ;;  %v6002_v60 = vld [vmem:[%s14678_s7] sm:$0xff] }
 0x3eb   :  { %v12759_v52 = vpop.f32.mrb[136].mxu0  ;;  %v12764_v1 = vadd.f32 %v1983_v33, %v12476_v19  ;;  %v8170_v53 = vpop.f32.mrb[87].mxu1  ;;  %8525 = vmatmul.mubr.f32.gmra.mrb[192].mxu1 %v12761_v28  ;;  %v7188_v19 = vld [vmem:[%s14673_s2 + $0x3e0] sm:$0xff]  ;;  %v7189_v33 = vld [vmem:[%s14673_s2 + $0x3e8] sm:$0xff] }
 0x3ec   :  { %14728 = vst [vmem:[#allocation47_spill] sm:$0xff] %v12759_v52  ;;  %v8672_v7 = vpop.f32.mrb[137].mxu0  ;;  %8527 = vmatprep.mubr.msk.f32.mxu1 %vm10767_vm10, %v14719_v38  ;;  %10154 = vmatpush3.bf16.msra.mxu1 %v10153_v13  ;;  %v12784_v52 = vld [vmem:[#allocation2 + $0x33] sm:$0xff]  ;;  %v10159_v34 = vpack.c.bf16 %v7189_v33, %v7188_v19 }
 0x3ed   :  { %10155 = vmatprep.subr.bf16.mxu1 %v14724_v42 }
 0x3ee   :  { %v1988_v53 = vpop.f32.mrb[88].mxu1  ;;  %3886 = vperm.xlu1 %10652, %v3773_v20   ;;  %6025 = vperm.xlu0 %10651, %v6002_v60   ;;  %v6004_v20 = vld [vmem:[%s14678_s7 + $0x10] sm:$0xff] }
 0x3ef   :  { %v12782_v7 = vpop.f32.mrb[138].mxu0  ;;  %v12787_v13 = vadd.f32 %v1988_v53, %v12489_v39  ;;  %v8173_v57 = vpop.f32.mrb[89].mxu1  ;;  %8528 = vmatmul.mubr.f32.gmra.mrb[194].mxu1 %v12784_v52  ;;  %v7190_v39 = vld [vmem:[%s14673_s2 + $0x3f0] sm:$0xff]  ;;  %v7191_v53 = vld [vmem:[%s14673_s2 + $0x3f8] sm:$0xff] }
 0x3f0   :  { %14729 = vst [vmem:[#allocation48_spill] sm:$0xff] %v12782_v7  ;;  %v8675_v14 = vpop.f32.mrb[139].mxu0  ;;  %8530 = vmatprep.mubr.msk.f32.mxu1 %vm10767_vm10, %v14719_v38  ;;  %10157 = vmatpush3.bf16.msra.mxu1 %v10156_v24  ;;  %v12807_v7 = vld [vmem:[#allocation2 + $0x3b] sm:$0xff]  ;;  %v10162_v60 = vpack.c.bf16 %v7191_v53, %v7190_v39  ;;  %v12841_v53 = vld [vmem:[#allocation2 + $0x4b] sm:$0xff] }
 0x3f1   :  { %10158 = vmatprep.subr.bf16.mxu1 %v14724_v42 }
 0x3f2   :  { %v1993_v57 = vpop.f32.mrb[90].mxu1  ;;  %6030 = vperm.xlu1 %10652, %v6003_v47   ;;  %6035 = vperm.xlu0 %10651, %v6004_v20   ;;  %v6007_v47 = vld [vmem:[%s14678_s7 + $0x28] sm:$0xff] }
 0x3f3   :  { %v12805_v14 = vpop.f32.mrb[140].mxu0  ;;  %v12810_v24 = vadd.f32 %v1993_v57, %v12502_v9  ;;  %v8176_v19 = vpop.f32.mrb[91].mxu1  ;;  %8531 = vmatmul.mubr.f32.gmra.mrb[196].mxu1 %v12807_v7 }
 0x3f4   :  { %14730 = vst [vmem:[#allocation49_spill] sm:$0xff] %v12805_v14  ;;  %v8678_v33 = vpop.f32.mrb[141].mxu0  ;;  %8533 = vmatprep.mubr.msk.f32.mxu1 %vm10767_vm10, %v14719_v38  ;;  %10160 = vmatpush3.bf16.msra.mxu1 %v10159_v34  ;;  %v12824_v19 = vld [vmem:[#allocation2 + $0x43] sm:$0xff] }
 0x3f5   :  { %10161 = vmatprep.subr.bf16.mxu1 %v14724_v42  ;;  %v6006_v34 = vld [vmem:[%s14678_s7 + $0x20] sm:$0xff] }
 0x3f6   :  { %v2103_v9 = vpop.f32.mrb[92].mxu1  ;;  %6045 = vperm.xlu1 %10652, %v6006_v34   ;;  %6050 = vperm.xlu0 %10651, %v6007_v47  }
 0x3f7   :  { %v12822_v57 = vpop.f32.mrb[142].mxu0  ;;  %v12827_v33 = vadd.f32 %v2103_v9, %v12512_v6  ;;  %v8211_v14 = vpop.f32.mrb[93].mxu1  ;;  %8534 = vmatmul.mubr.f32.gmra.mrb[198].mxu1 %v12824_v19  ;;  %v6012_v9 = vld [vmem:[%s14678_s7 + $0x50] sm:$0xff] }
 0x3f8   :  { %14731 = vst [vmem:[#allocation50_spill] sm:$0xff] %v12822_v57  ;;  %v8681_v22 = vpop.f32.mrb[143].mxu0  ;;  %8536 = vmatprep.mubr.msk.f32.mxu1 %vm10767_vm10, %v14719_v38  ;;  %10163 = vmatpush3.bf16.msra.mxu1 %v10162_v60  ;;  %v6008_v60 = vld [vmem:[%s14678_s7 + $0x30] sm:$0xff]  ;;  %v6015_v57 = vld [vmem:[%s14678_s7 + $0x68] sm:$0xff] }
 0x3f9   :  { %10188 = vmatprep.subr.bf16.mxu1 %v14724_v42 }
 0x3fa   :  { %v2108_v6 = vpop.f32.mrb[94].mxu1  ;;  %6055 = vperm.xlu1 %10652, %v6008_v60   ;;  %6075 = vperm.xlu0 %10651, %v6012_v9   ;;  %v6014_v60 = vld [vmem:[%s14678_s7 + $0x60] sm:$0xff] }
 0x3fb   :  { %v12839_v39 = vpop.f32.mrb[144].mxu0  ;;  %v12844_v22 = vadd.f32 %v2108_v6, %v12520_v23  ;;  %v8214_v14 = vpop.f32.mrb[95].mxu1  ;;  %8537 = vmatmul.mubr.f32.gmra.mrb[200].mxu1 %v12841_v53  ;;  %v12857_v23 = vld [vmem:[#allocation2 + $0x53] sm:$0xff] }
 0x3fc   :  { %14732 = vst [vmem:[#allocation51_spill] sm:$0xff] %v12839_v39  ;;  %v8817_v20 = vpop.f32.mrb[145].mxu0  ;;  %8539 = vmatprep.mubr.msk.f32.mxu1 %vm10767_vm10, %v14719_v38  ;;  %v6013_v39 = vld [vmem:[%s14678_s7 + $0x58] sm:$0xff] }
 0x3fe   :  { %v2113_v34 = vpop.f32.mrb[96].mxu1  ;;  %6080 = vperm.xlu1 %10652, %v6013_v39   ;;  %6085 = vperm.xlu0 %10651, %v6014_v60   ;;  %v6016_v39 = vld [vmem:[%s14678_s7 + $0x70] sm:$0xff] }
 0x3ff   :  { %v12855_v47 = vpop.f32.mrb[146].mxu0  ;;  %v12860_v6 = vadd.f32 %v2113_v34, %v12527_v36  ;;  %v8217_v14 = vpop.f32.mrb[97].mxu1  ;;  %8540 = vmatmul.mubr.f32.gmra.mrb[202].mxu1 %v12857_v23  ;;  %v12873_v36 = vld [vmem:[#allocation2 + $0x5b] sm:$0xff] }
 0x400   :  { %14733 = vst [vmem:[#allocation52_spill] sm:$0xff] %v12855_v47  ;;  %v8820_v20 = vpop.f32.mrb[147].mxu0  ;;  %8542 = vmatprep.mubr.msk.f32.mxu1 %vm10767_vm10, %v14719_v38 }
 0x402   :  { %v2118_v9 = vpop.f32.mrb[98].mxu1  ;;  %6090 = vperm.xlu1 %10652, %v6015_v57   ;;  %6095 = vperm.xlu0 %10651, %v6016_v39   ;;  %v6018_v57 = vld [vmem:[%s14678_s7 + $0x80] sm:$0xff] }
 0x403   :  { %v12871_v47 = vpop.f32.mrb[148].mxu0  ;;  %v12876_v34 = vadd.f32 %v2118_v9, %v12534_v25  ;;  %v8220_v14 = vpop.f32.mrb[99].mxu1  ;;  %8543 = vmatmul.mubr.f32.gmra.mrb[204].mxu1 %v12873_v36  ;;  %v12889_v25 = vld [vmem:[#allocation2 + $0x63] sm:$0xff] }
 0x404   :  { %14734 = vst [vmem:[#allocation53_spill] sm:$0xff] %v12871_v47  ;;  %v8823_v20 = vpop.f32.mrb[149].mxu0  ;;  %8545 = vmatprep.mubr.msk.f32.mxu1 %vm10767_vm10, %v14719_v38 }
 0x406   :  { %v2123_v60 = vpop.f32.mrb[100].mxu1  ;;  %6100 = vperm.xlu1 %10652, %v6017_v30   ;;  %6105 = vperm.xlu0 %10651, %v6018_v57   ;;  %v6022_v30 = vld [vmem:[%s14678_s7 + $0xa0] sm:$0x3] }
 0x407   :  { %v12887_v47 = vpop.f32.mrb[150].mxu0  ;;  %v12892_v9 = vadd.f32 %v2123_v60, %v12541_v4  ;;  %v8223_v14 = vpop.f32.mrb[101].mxu1  ;;  %8546 = vmatmul.mubr.f32.gmra.mrb[206].mxu1 %v12889_v25  ;;  %v12905_v4 = vld [vmem:[#allocation2 + $0x6b] sm:$0xff] }
 0x408   :  { %14735 = vst [vmem:[#allocation54_spill] sm:$0xff] %v12887_v47  ;;  %v8826_v20 = vpop.f32.mrb[151].mxu0  ;;  %8548 = vmatprep.mubr.msk.f32.mxu1 %vm10767_vm10, %v14719_v38 }
 0x40a   :  { %v2128_v39 = vpop.f32.mrb[102].mxu1  ;;  %6110 = vperm.xlu1 %10652, %v6019_v12   ;;  %6125 = vperm.xlu0 %10651, %v6022_v30   ;;  %v6009_v12 = vld [vmem:[%s14678_s7 + $0x38] sm:$0xff] }
 0x40b   :  { %v12903_v47 = vpop.f32.mrb[152].mxu0  ;;  %v12908_v60 = vadd.f32 %v2128_v39, %v12548_v32  ;;  %v8226_v14 = vpop.f32.mrb[103].mxu1  ;;  %8549 = vmatmul.mubr.f32.gmra.mrb[208].mxu1 %v12905_v4  ;;  %v12921_v32 = vld [vmem:[#allocation2 + $0x73] sm:$0xff] }
 0x40c   :  { %14736 = vst [vmem:[#allocation55_spill] sm:$0xff] %v12903_v47  ;;  %v8829_v20 = vpop.f32.mrb[153].mxu0  ;;  %8551 = vmatprep.mubr.msk.f32.mxu1 %vm10767_vm10, %v14719_v38 }
 0x40e   :  { %v2133_v57 = vpop.f32.mrb[104].mxu1  ;;  %6040 = vperm.xlu1 %10652, %v6005_v63   ;;  %6060 = vperm.xlu0 %10651, %v6009_v12   ;;  %v6011_v63 = vld [vmem:[%s14678_s7 + $0x48] sm:$0xff] }
 0x40f   :  { %v12919_v47 = vpop.f32.mrb[154].mxu0  ;;  %v12924_v39 = vadd.f32 %v2133_v57, %v12555_v17  ;;  %v8229_v14 = vpop.f32.mrb[105].mxu1  ;;  %8552 = vmatmul.mubr.f32.gmra.mrb[210].mxu1 %v12921_v32  ;;  %v12937_v17 = vld [vmem:[#allocation2 + $0x7b] sm:$0xff] }
 0x410   :  { %14737 = vst [vmem:[#allocation56_spill] sm:$0xff] %v12919_v47  ;;  %v8832_v20 = vpop.f32.mrb[155].mxu0  ;;  %8554 = vmatprep.mubr.msk.f32.mxu1 %vm10767_vm10, %v14719_v38 }
 0x412   :  { %v2138_v30 = vpop.f32.mrb[106].mxu1  ;;  %6065 = vperm.xlu1 %10652, %v6010_v58   ;;  %6070 = vperm.xlu0 %10651, %v6011_v63   ;;  %v6021_v58 = vld [vmem:[%s14678_s7 + $0x98] sm:$0xff] }
 0x413   :  { %v12935_v47 = vpop.f32.mrb[156].mxu0  ;;  %v12940_v57 = vadd.f32 %v2138_v30, %v12562_v61  ;;  %v8232_v14 = vpop.f32.mrb[107].mxu1  ;;  %8555 = vmatmul.mubr.f32.gmra.mrb[212].mxu1 %v12937_v17  ;;  %v12953_v61 = vld [vmem:[#allocation2 + $0x83] sm:$0xff] }
 0x414   :  { %14738 = vst [vmem:[#allocation57_spill] sm:$0xff] %v12935_v47  ;;  %v8835_v20 = vpop.f32.mrb[157].mxu0  ;;  %8557 = vmatprep.mubr.msk.f32.mxu1 %vm10767_vm10, %v14719_v38 }
 0x416   :  { %v2143_v12 = vpop.f32.mrb[108].mxu1  ;;  %6115 = vperm.xlu1 %10652, %v6020_v44   ;;  %6120 = vperm.xlu0 %10651, %v6021_v58   ;;  %v12979_v44 = vld [vmem:[#allocation2 + $0x93] sm:$0xff] }
 0x417   :  { %v12951_v47 = vpop.f32.mrb[158].mxu0  ;;  %v12956_v30 = vadd.f32 %v2143_v12, %v12569_v3  ;;  %v8235_v14 = vpop.f32.mrb[109].mxu1  ;;  %8558 = vmatmul.mubr.f32.gmra.mrb[214].mxu1 %v12953_v61  ;;  %v12969_v3 = vld [vmem:[#allocation2 + $0x8b] sm:$0xff] }
 0x418   :  { %14739 = vst [vmem:[#allocation58_spill] sm:$0xff] %v12951_v47  ;;  %v8838_v20 = vpop.f32.mrb[159].mxu0  ;;  %8560 = vmatprep.mubr.msk.f32.mxu1 %vm10767_vm10, %v14719_v38 }
 0x41a   :  { %v2148_v63 = vpop.f32.mrb[110].mxu1 }
 0x41b   :  { %v12967_v47 = vpop.f32.mrb[160].mxu0  ;;  %v12972_v12 = vadd.f32 %v2148_v63, %v12576_v0  ;;  %v8238_v14 = vpop.f32.mrb[111].mxu1  ;;  %8561 = vmatmul.mubr.f32.gmra.mrb[216].mxu1 %v12969_v3 }
 0x41c   :  { %14740 = vst [vmem:[#allocation59_spill] sm:$0xff] %v12967_v47  ;;  %v8841_v20 = vpop.f32.mrb[161].mxu0  ;;  %8563 = vmatprep.mubr.msk.f32.mxu1 %vm10767_vm10, %v14719_v38  ;;  %v12989_v14 = vld [vmem:[#allocation2 + $0x9b] sm:$0xff] }
 0x41e   :  { %v2153_v48 = vpop.f32.mrb[112].mxu1 }
 0x41f   :  { %v12977_v37 = vpop.f32.mrb[162].mxu0  ;;  %v12982_v47 = vadd.f32 %v2153_v48, %v12583_v27  ;;  %v8241_v50 = vpop.f32.mrb[113].mxu1  ;;  %8564 = vmatmul.mubr.f32.gmra.mrb[218].mxu1 %v12979_v44 }
 0x420   :  { %14741 = vst [vmem:[#allocation60_spill] sm:$0xff] %v12977_v37  ;;  %v8844_v0 = vpop.f32.mrb[163].mxu0  ;;  %8566 = vmatprep.mubr.msk.f32.mxu1 %vm10767_vm10, %v14719_v38 }
 0x421   :  { %v12999_v0 = vld [vmem:[#allocation2 + $0xa3] sm:$0xff] }
 0x422   :  { %v2158_v58 = vpop.f32.mrb[114].mxu1 }
 0x423   :  { %v12987_v63 = vpop.f32.mrb[164].mxu0  ;;  %v12992_v20 = vadd.f32 %v2158_v58, %v12596_v41  ;;  %v8244_v37 = vpop.f32.mrb[115].mxu1  ;;  %8567 = vmatmul.mubr.f32.gmra.mrb[220].mxu1 %v12989_v14 }
 0x424   :  { %14742 = vst [vmem:[#allocation61_spill] sm:$0xff] %v12987_v63  ;;  %v8847_v48 = vpop.f32.mrb[165].mxu0  ;;  %8569 = vmatprep.mubr.msk.f32.mxu1 %vm10767_vm10, %v14719_v38 }
 0x425   :  { %v13009_v48 = vld [vmem:[#allocation2 + $0xab] sm:$0xff] }
 0x426   :  { %v2163_v50 = vpop.f32.mrb[116].mxu1  ;;  %14746 = vst [vmem:[#allocation65_spill] sm:$0xff] %v13009_v48 }
 0x427   :  { %v12997_v27 = vpop.f32.mrb[166].mxu0  ;;  %v13002_v59 = vadd.f32 %v2163_v50, %v12609_v62  ;;  %v8247_v63 = vpop.f32.mrb[117].mxu1  ;;  %8570 = vmatmul.mubr.f32.gmra.mrb[222].mxu1 %v12999_v0 }
 0x428   :  { %14743 = vst [vmem:[#allocation62_spill] sm:$0xff] %v12997_v27  ;;  %v8850_v41 = vpop.f32.mrb[167].mxu0  ;;  %8572 = vmatprep.mubr.msk.f32.mxu1 %vm10767_vm10, %v14719_v38 }
 0x429   :  { %14744 = vst [vmem:[#allocation63_spill] sm:$0xff] %v13002_v59  ;;  %v13019_v41 = vld [vmem:[#allocation2 + $0xb3] sm:$0xff] }
 0x42a   :  { %v2168_v37 = vpop.f32.mrb[118].mxu1 }
 0x42b   :  { %v13007_v58 = vpop.f32.mrb[168].mxu0  ;;  %v13012_v46 = vadd.f32 %v2168_v37, %v12622_v21  ;;  %v8250_v27 = vpop.f32.mrb[119].mxu1  ;;  %8573 = vmatmul.mubr.f32.gmra.mrb[224].mxu1 %v13009_v48 }
 0x42c   :  { %14745 = vst [vmem:[#allocation64_spill] sm:$0xff] %v13007_v58  ;;  %v8853_v62 = vpop.f32.mrb[169].mxu0  ;;  %8575 = vmatprep.mubr.msk.f32.mxu1 %vm10767_vm10, %v14719_v38 }
 0x42d   :  { %14747 = vst [vmem:[#allocation66_spill] sm:$0xff] %v13012_v46  ;;  %v2748_v62 = vld [vmem:[#allocation2 + $0xbb] sm:$0x3f] }
 0x42e   :  { %v2173_v63 = vpop.f32.mrb[120].mxu1 }
 0x42f   :  { %v13017_v50 = vpop.f32.mrb[170].mxu0  ;;  %v13022_v59 = vadd.f32 %v2173_v63, %v12635_v54  ;;  %v8253_v58 = vpop.f32.mrb[121].mxu1  ;;  %8576 = vmatmul.mubr.f32.gmra.mrb[226].mxu1 %v13019_v41 }
 0x430   :  { %14748 = vst [vmem:[#allocation67_spill] sm:$0xff] %v13017_v50  ;;  %v8856_v21 = vpop.f32.mrb[171].mxu0  ;;  %8578 = vmatprep.mubr.msk.f32.mxu1 %vm10767_vm10, %v14719_v38 }
 0x432   :  { %v2178_v27 = vpop.f32.mrb[122].mxu1 }
 0x433   :  { %v13027_v37 = vpop.f32.mrb[172].mxu0  ;;  %v13030_v46 = vadd.f32 %v2178_v27, %v12654_v35  ;;  %v8256_v50 = vpop.f32.mrb[123].mxu1  ;;  %8579 = vmatmul.mubr.f32.gmra.mrb[228].mxu1 %v2748_v62 }
 0x434   :  { %14749 = vst [vmem:[#allocation68_spill] sm:$0xff] %v13027_v37  ;;  %v8859_v48 = vpop.f32.mrb[173].mxu0  ;;  %8714 = vmatprep.mubr.msk.f32.mxu1 %vm10767_vm10, %v14719_v38 }
 0x436   :  { %v2183_v54 = vpop.f32.mrb[124].mxu1 }
 0x437   :  { %v13034_v58 = vpop.f32.mrb[174].mxu0  ;;  %v13037_v63 = vadd.f32 %v2183_v54, %v12673_v10  ;;  %v8259_v21 = vpop.f32.mrb[125].mxu1  ;;  %8715 = vmatmul.mubr.f32.vlgmr.msra.gmra.mrb[230].mxu1 %v12692_v51 }
 0x438   :  { %v8862_v37 = vpop.f32.mrb[175].mxu0  ;;  %8717 = vmatprep.mubr.msk.f32.mxu1 %vm10767_vm10, %v14719_v38 }
 0x43a   :  { %v2188_v35 = vpop.f32.mrb[126].mxu1 }
 0x43b   :  { %v13042_v50 = vpop.f32.mrb[176].mxu0  ;;  %v13045_v48 = vadd.f32 %v2188_v35, %v12695_v43  ;;  %v8262_v27 = vpop.f32.mrb[127].mxu1  ;;  %8718 = vmatmul.mubr.f32.gmra.mrb[232].mxu1 %v12715_v18 }
 0x43c   :  { %v8865_v62 = vpop.f32.mrb[177].mxu0  ;;  %8720 = vmatprep.mubr.msk.f32.mxu1 %vm10767_vm10, %v14719_v38 }
 0x43e   :  { %v2193_v10 = vpop.f32.mrb[128].mxu1 }
 0x43f   :  { %v13050_v54 = vpop.f32.mrb[178].mxu0  ;;  %v13053_v51 = vadd.f32 %v2193_v10, %v12718_v56  ;;  %v8265_v37 = vpop.f32.mrb[129].mxu1  ;;  %8721 = vmatmul.mubr.f32.gmra.mrb[234].mxu1 %v12738_v11  ;;  %v3995_v56 = vld [vmem:[#allocation9 + $0x88] sm:$0xff] }
 0x440   :  { %14750 = vst [vmem:[#allocation69_spill] sm:$0xff] %v13050_v54  ;;  %v8868_v21 = vpop.f32.mrb[179].mxu0  ;;  %8723 = vmatprep.mubr.msk.f32.mxu1 %vm10767_vm10, %v14719_v38  ;;  %v3994_v54 = vld [vmem:[#allocation9 + $0x80] sm:$0xff] }
 0x441   :  { %v10189_v11 = vpack.c.bf16 %v3995_v56, %v3994_v54 }
 0x442   :  { %v2198_v43 = vpop.f32.mrb[130].mxu1 }
 0x443   :  { %v13058_v35 = vpop.f32.mrb[180].mxu0  ;;  %v13061_v18 = vadd.f32 %v2198_v43, %v12741_v5  ;;  %v8268_v27 = vpop.f32.mrb[131].mxu1  ;;  %8724 = vmatmul.mubr.f32.gmra.mrb[236].mxu1 %v12761_v28 }
 0x444   :  { %14751 = vst [vmem:[#allocation70_spill] sm:$0xff] %v13058_v35  ;;  %v8871_v62 = vpop.f32.mrb[181].mxu0  ;;  %8726 = vmatprep.mubr.msk.f32.mxu1 %vm10767_vm10, %v14719_v38  ;;  %10190 = vmatpush3.bf16.msra.mxu1 %v10189_v11 }
 0x445   :  { %10191 = vmatprep.subr.bf16.mxu1 %v14724_v42 }
 0x446   :  { %v2203_v10 = vpop.f32.mrb[132].mxu1 }
 0x447   :  { %v13066_v37 = vpop.f32.mrb[182].mxu0  ;;  %v13069_v21 = vadd.f32 %v2203_v10, %v12764_v1  ;;  %v8271_v35 = vpop.f32.mrb[133].mxu1  ;;  %8727 = vmatmul.mubr.f32.gmra.mrb[238].mxu1 %v12784_v52  ;;  %v3996_v10 = vld [vmem:[#allocation9 + $0x90] sm:$0xff] }
 0x448   :  { %v8874_v5 = vpop.f32.mrb[183].mxu0  ;;  %8729 = vmatprep.mubr.msk.f32.mxu1 %vm10767_vm10, %v14719_v38 }
 0x44a   :  { %v2208_v28 = vpop.f32.mrb[134].mxu1 }
 0x44b   :  { %v13075_v43 = vpop.f32.mrb[184].mxu0  ;;  %v13078_v54 = vadd.f32 %v2208_v28, %v12787_v13  ;;  %v8274_v27 = vpop.f32.mrb[135].mxu1  ;;  %8730 = vmatmul.mubr.f32.gmra.mrb[240].mxu1 %v12807_v7  ;;  %v3997_v13 = vld [vmem:[#allocation9 + $0x98] sm:$0xff] }
 0x44c   :  { %v8877_v1 = vpop.f32.mrb[185].mxu0  ;;  %8732 = vmatprep.mubr.msk.f32.mxu1 %vm10767_vm10, %v14719_v38  ;;  %v10192_v7 = vpack.c.bf16 %v3997_v13, %v3996_v10 }
 0x44e   :  { %v2213_v52 = vpop.f32.mrb[136].mxu1  ;;  %10193 = vmatpush3.bf16.msra.mxu1 %v10192_v7  ;;  %v3999_v7 = vld [vmem:[#allocation9 + $0xa8] sm:$0xff] }
 0x44f   :  { %v13083_v35 = vpop.f32.mrb[186].mxu0  ;;  %v13086_v62 = vadd.f32 %v2213_v52, %v12810_v24  ;;  %v8277_v56 = vpop.f32.mrb[137].mxu1  ;;  %8733 = vmatmul.mubr.f32.gmra.mrb[242].mxu1 %v12824_v19  ;;  %10194 = vmatprep.subr.bf16.mxu1 %v14724_v42 }
 0x450   :  { %v8880_v11 = vpop.f32.mrb[187].mxu0  ;;  %8735 = vmatprep.mubr.msk.f32.mxu1 %vm10767_vm10, %v14719_v38 }
 0x452   :  { %v2346_v5 = vpop.f32.mrb[138].mxu1 }
 0x453   :  { %v13091_v28 = vpop.f32.mrb[188].mxu0  ;;  %v2460_v27 = vadd.f32 %v2346_v5, %v12827_v33  ;;  %v8312_v1 = vpop.f32.mrb[139].mxu1  ;;  %8736 = vmatmul.mubr.f32.gmra.mrb[244].mxu1 %v12841_v53 }
 0x454   :  { %v8883_v24 = vpop.f32.mrb[189].mxu0  ;;  %8738 = vmatprep.mubr.msk.f32.mxu1 %vm10767_vm10, %v14719_v38 }
 0x455   :  { %v13099_v19 = vadd.f32 %v12277_v40, %v2460_v27  ;;  %v3998_v40 = vld [vmem:[#allocation9 + $0xa0] sm:$0xff] }
 0x456   :  { %v2351_v52 = vpop.f32.mrb[140].mxu1 }
 0x457   :  { %v2461_v56 = vadd.f32 %v2351_v52, %v12844_v22  ;;  %v8315_v11 = vpop.f32.mrb[141].mxu1  ;;  %8739 = vmatmul.mubr.f32.gmra.mrb[246].mxu1 %v12857_v23  ;;  %v10195_v22 = vpack.c.bf16 %v3999_v7, %v3998_v40  ;;  %v4003_v7 = vld [vmem:[#allocation9 + $0xc8] sm:$0xff] }
 0x458   :  { %8741 = vmatprep.mubr.msk.f32.mxu1 %vm10767_vm10, %v14719_v38 }
 0x459   :  { %v13106_v33 = vadd.f32 %v12287_v49, %v2461_v56  ;;  %10196 = vmatpush3.bf16.msra.mxu1 %v10195_v22  ;;  %v4001_v56 = vld [vmem:[#allocation9 + $0xb8] sm:$0xff]  ;;  %v3956_v22 = vld [vmem:[#allocation9] sm:$0xff] }
 0x45a   :  { %v2356_v53 = vpop.f32.mrb[142].mxu1  ;;  %10197 = vmatprep.subr.bf16.mxu1 %v14724_v42 }
 0x45b   :  { %v2462_v10 = vadd.f32 %v2356_v53, %v12860_v6  ;;  %v8318_v13 = vpop.f32.mrb[143].mxu1  ;;  %8742 = vmatmul.mubr.f32.gmra.mrb[248].mxu1 %v12873_v36 }
 0x45c   :  { %8744 = vmatprep.mubr.msk.f32.mxu1 %vm10767_vm10, %v14719_v38 }
 0x45d   :  { %v13113_v23 = vadd.f32 %v12296_v16, %v2462_v10 }
 0x45e   :  { %v2361_v5 = vpop.f32.mrb[144].mxu1 }
 0x45f   :  { %v2463_v49 = vadd.f32 %v2361_v5, %v12876_v34  ;;  %v8321_v27 = vpop.f32.mrb[145].mxu1  ;;  %8745 = vmatmul.mubr.f32.gmra.mrb[250].mxu1 %v12889_v25  ;;  %v3957_v5 = vld [vmem:[#allocation9 + $0x8] sm:$0xff] }
 0x460   :  { %8747 = vmatprep.mubr.msk.f32.mxu1 %vm10767_vm10, %v14719_v38 }
 0x461   :  { %v13121_v6 = vadd.f32 %v12305_v45, %v2463_v49  ;;  %v4000_v45 = vld [vmem:[#allocation9 + $0xb0] sm:$0xff] }
 0x462   :  { %v2366_v36 = vpop.f32.mrb[146].mxu1 }
 0x463   :  { %v2464_v1 = vadd.f32 %v2366_v36, %v12892_v9  ;;  %v8324_v16 = vpop.f32.mrb[147].mxu1  ;;  %8748 = vmatmul.mubr.f32.gmra.mrb[252].mxu1 %v12905_v4  ;;  %v10198_v9 = vpack.c.bf16 %v4001_v56, %v4000_v45  ;;  %v3959_v36 = vld [vmem:[#allocation9 + $0x18] sm:$0xff] }
 0x464   :  { %8750 = vmatprep.mubr.msk.f32.mxu1 %vm10767_vm10, %v14719_v38 }
 0x465   :  { %v13128_v34 = vadd.f32 %v12314_v8, %v2464_v1  ;;  %10199 = vmatpush3.bf16.msra.mxu1 %v10198_v9 }
 0x466   :  { %v2371_v25 = vpop.f32.mrb[148].mxu1  ;;  %10200 = vmatprep.subr.bf16.mxu1 %v14724_v42 }
 0x467   :  { %v2465_v24 = vadd.f32 %v2371_v25, %v12908_v60  ;;  %v8327_v52 = vpop.f32.mrb[149].mxu1  ;;  %8751 = vmatmul.mubr.f32.gmra.mrb[254].mxu1 %v12921_v32 }
 0x468   :  { %8753 = vmatprep.mubr.msk.f32.mxu1 %vm10767_vm10, %v14719_v38 }
 0x469   :  { %v13135_v4 = vadd.f32 %v12323_v31, %v2465_v24  ;;  %v3961_v24 = vld [vmem:[#allocation9 + $0x28] sm:$0xff] }
 0x46a   :  { %v2376_v11 = vpop.f32.mrb[150].mxu1 }
 0x46b   :  { %v2466_v8 = vadd.f32 %v2376_v11, %v12924_v39  ;;  %v8330_v53 = vpop.f32.mrb[151].mxu1  ;;  %8754 = vmatmul.mubr.f32.gmra.mrb[0].mxu1 %v12937_v17 }
 0x46c   :  { %8756 = vmatprep.mubr.msk.f32.mxu1 %vm10767_vm10, %v14719_v38  ;;  %v3962_v53 = vld [vmem:[#allocation9 + $0x30] sm:$0xff] }
 0x46d   :  { %v13143_v60 = vadd.f32 %v12332_v55, %v2466_v8  ;;  %v4002_v55 = vld [vmem:[#allocation9 + $0xc0] sm:$0xff] }
 0x46e   :  { %v2381_v32 = vpop.f32.mrb[152].mxu1 }
 0x46f   :  { %v2467_v10 = vadd.f32 %v2381_v32, %v12940_v57  ;;  %v8333_v31 = vpop.f32.mrb[153].mxu1  ;;  %8757 = vmatmul.mubr.f32.gmra.mrb[2].mxu1 %v12953_v61  ;;  %v10201_v57 = vpack.c.bf16 %v4003_v7, %v4002_v55  ;;  %v3963_v32 = vld [vmem:[#allocation9 + $0x38] sm:$0xff]  ;;  %v3964_v7 = vld [vmem:[#allocation9 + $0x40] sm:$0xff] }
 0x470   :  { %8759 = vmatprep.mubr.msk.f32.mxu1 %vm10767_vm10, %v14719_v38  ;;  %v14753_v31 = vld [vmem:[#allocation63_spill] sm:$0xff] }
 0x471   :  { %v13150_v39 = vadd.f32 %v12341_v26, %v2467_v10  ;;  %10202 = vmatpush3.bf16.msra.mxu1 %v10201_v57  ;;  %v10213_v26 = vpack.c.bf16 %v3957_v5, %v3956_v22  ;;  %v3965_v57 = vld [vmem:[#allocation9 + $0x48] sm:$0xff] }
 0x472   :  { %v2386_v17 = vpop.f32.mrb[154].mxu1  ;;  %10203 = vmatprep.subr.bf16.mxu1 %v14724_v42  ;;  %v10225_v5 = vpack.c.bf16 %v3965_v57, %v3964_v7  ;;  %v4007_v7 = vld [vmem:[#allocation9 + $0xe8] sm:$0xff] }
 0x473   :  { %v2468_v13 = vadd.f32 %v2386_v17, %v12956_v30  ;;  %v8336_v40 = vpop.f32.mrb[155].mxu1  ;;  %8760 = vmatmul.mubr.f32.gmra.mrb[4].mxu1 %v12969_v3  ;;  %10214 = vmatpush3.bf16.msra.mxu0 %v10213_v26 }
 0x474   :  { %8762 = vmatprep.mubr.msk.f32.mxu1 %vm10767_vm10, %v14719_v38  ;;  %10215 = vmatprep.subr.bf16.mxu0 %v14724_v42  ;;  %v14755_v40 = vld [vmem:[#allocation17_spill] sm:$0xff] }
 0x475   :  { %v13157_v61 = vadd.f32 %v12350_v15, %v2468_v13  ;;  %v3958_v15 = vld [vmem:[#allocation9 + $0x10] sm:$0xff] }
 0x476   :  { %v2391_v49 = vpop.f32.mrb[156].mxu1  ;;  %v10216_v16 = vpack.c.bf16 %v3959_v36, %v3958_v15  ;;  %v14754_v13 = vld [vmem:[#allocation65_spill] sm:$0xff] }
 0x477   :  { %v2469_v27 = vadd.f32 %v2391_v49, %v12972_v12  ;;  %v8339_v30 = vpop.f32.mrb[157].mxu1  ;;  %8763 = vmatmul.mubr.f32.gmra.mrb[6].mxu1 %v12979_v44  ;;  %v14756_v49 = vld [vmem:[#allocation66_spill] sm:$0xff] }
 0x478   :  { %8765 = vmatprep.mubr.msk.f32.mxu1 %vm10767_vm10, %v14719_v38  ;;  %10217 = vmatpush3.bf16.msra.mxu0 %v10216_v16  ;;  %v14757_v30 = vld [vmem:[#allocation18_spill] sm:$0xff] }
 0x479   :  { %v13165_v3 = vadd.f32 %v12359_v29, %v2469_v27  ;;  %10218 = vmatprep.subr.bf16.mxu0 %v14724_v42  ;;  %v3960_v29 = vld [vmem:[#allocation9 + $0x20] sm:$0xff]  ;;  %v3966_v36 = vld [vmem:[#allocation9 + $0x50] sm:$0xff] }
 0x47a   :  { %v2396_v1 = vpop.f32.mrb[158].mxu1  ;;  %v10219_v45 = vpack.c.bf16 %v3961_v24, %v3960_v29 }
 0x47b   :  { %v2470_v12 = vadd.f32 %v2396_v1, %v12982_v47  ;;  %v8342_v25 = vpop.f32.mrb[159].mxu1  ;;  %8766 = vmatmul.mubr.f32.gmra.mrb[8].mxu1 %v12989_v14  ;;  %v4004_v47 = vld [vmem:[#allocation9 + $0xd0] sm:$0xff]  ;;  %v4005_v14 = vld [vmem:[#allocation9 + $0xd8] sm:$0xff] }
 0x47c   :  { %8768 = vmatprep.mubr.msk.f32.mxu1 %vm10767_vm10, %v14719_v38  ;;  %v10204_v11 = vpack.c.bf16 %v4005_v14, %v4004_v47  ;;  %10220 = vmatpush3.bf16.msra.mxu0 %v10219_v45  ;;  %v3967_v1 = vld [vmem:[#allocation9 + $0x58] sm:$0xff]  ;;  %v3968_v45 = vld [vmem:[#allocation9 + $0x60] sm:$0xff]  ;;  %v3234_v47 = vld [vmem:[#allocation2 + $0xc3] sm:$0x3f] }
 0x47d   :  { %v13173_v44 = vadd.f32 %v12368_v2, %v2470_v12  ;;  %v14752_v2 = vld [vmem:[#allocation16_spill] sm:$0xff]  ;;  %10221 = vmatprep.subr.bf16.mxu0 %v14724_v42  ;;  %v10228_v25 = vpack.c.bf16 %v3967_v1, %v3966_v36  ;;  %v14762_v1 = vld [vmem:[#allocation23_spill] sm:$0xff] }
 0x47e   :  { %v2401_v52 = vpop.f32.mrb[160].mxu1  ;;  %10205 = vmatpush3.bf16.msra.mxu1 %v10204_v11  ;;  %v3233_v12 = vld [vmem:[#allocation2 + $0xbb] sm:$0xff] }
 0x47f   :  { %v2471_v56 = vadd.f32 %v2401_v52, %v12992_v20  ;;  %v8345_v9 = vpop.f32.mrb[161].mxu1  ;;  %8769 = vmatmul.mubr.f32.gmra.mrb[10].mxu1 %v12999_v0  ;;  %v10222_v20 = vpack.c.bf16 %v3963_v32, %v3962_v53  ;;  %10206 = vmatprep.subr.bf16.mxu1 %v14724_v42  ;;  %v3970_v32 = vld [vmem:[#allocation9 + $0x70] sm:$0xff] }
 0x480   :  { %8771 = vmatprep.mubr.msk.f32.mxu1 %vm10767_vm10, %v14719_v38 }
 0x481   :  { %v13181_v8 = vadd.f32 %v14752_v2, %v2471_v56  ;;  %10223 = vmatpush3.bf16.msra.mxu0 %v10222_v20  ;;  %v3969_v56 = vld [vmem:[#allocation9 + $0x68] sm:$0xff] }
 0x482   :  { %v2406_v10 = vpop.f32.mrb[162].mxu1  ;;  %10224 = vmatprep.subr.bf16.mxu0 %v14724_v42  ;;  %v10231_v14 = vpack.c.bf16 %v3969_v56, %v3968_v45  ;;  %v14763_v45 = vld [vmem:[#allocation24_spill] sm:$0xff] }
 0x483   :  { %v2472_v17 = vadd.f32 %v2406_v10, %v14753_v31  ;;  %v8348_v0 = vpop.f32.mrb[163].mxu1  ;;  %8772 = vmatmul.mubr.f32.gmra.mrb[12].mxu1 %v14754_v13  ;;  %v3971_v10 = vld [vmem:[#allocation9 + $0x78] sm:$0xff] }
 0x484   :  { %8774 = vmatprep.mubr.msk.f32.mxu1 %vm10767_vm10, %v14719_v38  ;;  %v10234_v31 = vpack.c.bf16 %v3971_v10, %v3970_v32  ;;  %v14765_v10 = vld [vmem:[#allocation26_spill] sm:$0xff] }
 0x485   :  { %v13190_v55 = vadd.f32 %v14755_v40, %v2472_v17  ;;  %10226 = vmatpush3.bf16.msra.mxu0 %v10225_v5  ;;  %v4006_v40 = vld [vmem:[#allocation9 + $0xe0] sm:$0xff] }
 0x486   :  { %v2411_v22 = vpop.f32.mrb[164].mxu1  ;;  %10227 = vmatprep.subr.bf16.mxu0 %v14724_v42 }
 0x487   :  { %v2473_v26 = vadd.f32 %v2411_v22, %v14756_v49  ;;  %v8351_v27 = vpop.f32.mrb[165].mxu1  ;;  %8775 = vmatmul.mubr.f32.gmra.mrb[14].mxu1 %v13019_v41  ;;  %v14758_v41 = vld [vmem:[#allocation19_spill] sm:$0xff]  ;;  %v10207_v22 = vpack.c.bf16 %v4007_v7, %v4006_v40 }
 0x488   :  { %8777 = vmatprep.mubr.msk.f32.mxu1 %vm10767_vm10, %v14719_v38 }
 0x489   :  { %v13198_v15 = vadd.f32 %v14757_v30, %v2473_v26  ;;  %10229 = vmatpush3.bf16.msra.mxu0 %v10228_v25  ;;  %10208 = vmatpush3.bf16.msra.mxu1 %v10207_v22  ;;  %v14761_v26 = vld [vmem:[#allocation22_spill] sm:$0xff] }
 0x48a   :  { %v2416_v16 = vpop.f32.mrb[166].mxu1  ;;  %10230 = vmatprep.subr.bf16.mxu0 %v14724_v42  ;;  %10209 = vmatprep.subr.bf16.mxu1 %v14724_v42  ;;  %v4009_v25 = vld [vmem:[#allocation9 + $0xf8] sm:$0xff] }
 0x48b   :  { %v2474_v29 = vadd.f32 %v2416_v16, %v13022_v59  ;;  %v8354_v24 = vpop.f32.mrb[167].mxu1  ;;  %8778 = vmatmul.mubr.f32.gmra.mrb[16].mxu1 %v3233_v12  ;;  %v14759_v59 = vld [vmem:[#allocation20_spill] sm:$0xff]  ;;  %v4008_v12 = vld [vmem:[#allocation9 + $0xf0] sm:$0xff] }
 0x48c   :  { %8780 = vmatprep.mubr.msk.f32.mxu1 %vm10767_vm10, %v14719_v38  ;;  %v10210_v24 = vpack.c.bf16 %v4009_v25, %v4008_v12 }
 0x48d   :  { %v13205_v52 = vadd.f32 %v14758_v41, %v2474_v29  ;;  %10232 = vmatpush3.bf16.msra.mxu0 %v10231_v14  ;;  %v14764_v14 = vld [vmem:[#allocation25_spill] sm:$0xff] }
 0x48e   :  { %v2421_v9 = vpop.f32.mrb[168].mxu1  ;;  %10233 = vmatprep.subr.bf16.mxu0 %v14724_v42  ;;  %10211 = vmatpush3.bf16.msra.mxu1 %v10210_v24  ;;  %v14770_v24 = vld [vmem:[#allocation31_spill] sm:$0xff] }
 0x48f   :  { %v2475_v11 = vadd.f32 %v2421_v9, %v13030_v46  ;;  %v8357_v2 = vpop.f32.mrb[169].mxu1  ;;  %8781 = vmatmul.mubr.f32.gmra.mrb[18].mxu1 %v3234_v47  ;;  %v14760_v46 = vld [vmem:[#allocation21_spill] sm:$0xff]  ;;  %10236 = vmatprep.subr.bf16.mxu1 %v14724_v42 }
 0x490   :  { %8916 = vmatprep.mubr.msk.f32.mxu1 %vm10767_vm10, %v14719_v38 }
 0x491   :  { %v13212_v53 = vadd.f32 %v14759_v59, %v2475_v11  ;;  %10235 = vmatpush3.bf16.msra.mxu0 %v10234_v31 }
 0x492   :  { %v2426_v20 = vpop.f32.mrb[170].mxu1  ;;  %10260 = vmatprep.subr.bf16.mxu0 %v14724_v42 }
 0x493   :  { %v2476_v17 = vadd.f32 %v2426_v20, %v13037_v63  ;;  %v8360_v0 = vpop.f32.mrb[171].mxu1 }
 0x494   :  { %v14766_v0 = vld [vmem:[#allocation27_spill] sm:$0xff] }
 0x495   :  { %v13217_v13 = vadd.f32 %v14760_v46, %v2476_v17 }
 0x496   :  { %v2431_v57 = vpop.f32.mrb[172].mxu1 }
 0x497   :  { %v2477_v5 = vadd.f32 %v2431_v57, %v13045_v48  ;;  %v8363_v49 = vpop.f32.mrb[173].mxu1  ;;  %v14767_v57 = vld [vmem:[#allocation28_spill] sm:$0xff] }
 0x499   :  { %v13222_v27 = vadd.f32 %v14761_v26, %v2477_v5  ;;  %v14768_v26 = vld [vmem:[#allocation29_spill] sm:$0xff] }
 0x49a   :  { %v2436_v63 = vpop.f32.mrb[174].mxu1 }
 0x49b   :  { %v2478_v30 = vadd.f32 %v2436_v63, %v13053_v51  ;;  %v8366_v36 = vpop.f32.mrb[175].mxu1 }
 0x49d   :  { %v13227_v16 = vadd.f32 %v14762_v1, %v2478_v30  ;;  %v14769_v1 = vld [vmem:[#allocation30_spill] sm:$0xff] }
 0x49e   :  { %v2441_v29 = vpop.f32.mrb[176].mxu1 }
 0x49f   :  { %v2479_v48 = vadd.f32 %v2441_v29, %v13061_v18  ;;  %v8369_v41 = vpop.f32.mrb[177].mxu1 }
 0x4a1   :  { %v13231_v56 = vadd.f32 %v14763_v45, %v2479_v48 }
 0x4a2   :  { %v2446_v9 = vpop.f32.mrb[178].mxu1 }
 0x4a3   :  { %v2480_v51 = vadd.f32 %v2446_v9, %v13069_v21  ;;  %v8372_v47 = vpop.f32.mrb[179].mxu1  ;;  %v14771_v9 = vld [vmem:[#allocation32_spill] sm:$0xff] }
 0x4a5   :  { %v13236_v11 = vadd.f32 %v14764_v14, %v2480_v51 }
 0x4a6   :  { %v2451_v2 = vpop.f32.mrb[180].mxu1 }
 0x4a7   :  { %v2481_v59 = vadd.f32 %v2451_v2, %v13078_v54  ;;  %v8375_v32 = vpop.f32.mrb[181].mxu1  ;;  %v14772_v2 = vld [vmem:[#allocation33_spill] sm:$0xff] }
 0x4a9   :  { %v13240_v18 = vadd.f32 %v14765_v10, %v2481_v59 }
 0x4aa   :  { %v2456_v20 = vpop.f32.mrb[182].mxu1 }
 0x4ab   :  { %v2482_v31 = vadd.f32 %v2456_v20, %v13086_v62  ;;  %v8378_v17 = vpop.f32.mrb[183].mxu1  ;;  %v14773_v20 = vld [vmem:[#allocation34_spill] sm:$0xff] }
 0x4ad   :  { %v13244_v46 = vadd.f32 %v14766_v0, %v2482_v31 }
 0x4ae   :  { %v2832_v40 = vpop.f32.mrb[184].mxu1 }
 0x4af   :  { %v2946_v21 = vadd.f32 %v2832_v40, %v13099_v19  ;;  %v8514_v7 = vpop.f32.mrb[185].mxu1  ;;  %v14774_v40 = vld [vmem:[#allocation35_spill] sm:$0xff] }
 0x4b1   :  { %v13248_v22 = vadd.f32 %v14767_v57, %v2946_v21 }
 0x4b2   :  { %v2837_v5 = vpop.f32.mrb[186].mxu1 }
 0x4b3   :  { %v2947_v54 = vadd.f32 %v2837_v5, %v13106_v33  ;;  %v8517_v49 = vpop.f32.mrb[187].mxu1  ;;  %v14775_v5 = vld [vmem:[#allocation36_spill] sm:$0xff] }
 0x4b5   :  { %v13252_v63 = vadd.f32 %v14768_v26, %v2947_v54 }
 0x4b6   :  { %v2842_v30 = vpop.f32.mrb[188].mxu1 }
 0x4b7   :  { %v2948_v62 = vadd.f32 %v2842_v30, %v13113_v23  ;;  %v8520_v36 = vpop.f32.mrb[189].mxu1  ;;  %v14776_v30 = vld [vmem:[#allocation37_spill] sm:$0xff] }
 0x4b9   :  { %v13256_v12 = vadd.f32 %v14769_v1, %v2948_v62 }
 0x4ba   :  { %v2847_v25 = vpop.f32.mrb[190].mxu1 }
 0x4bb   :  { %v2949_v19 = vadd.f32 %v2847_v25, %v13121_v6  ;;  %v8523_v29 = vpop.f32.mrb[191].mxu1  ;;  %v14777_v25 = vld [vmem:[#allocation38_spill] sm:$0xff] }
 0x4bd   :  { %v13260_v48 = vadd.f32 %v14770_v24, %v2949_v19 }
 0x4be   :  { %v2852_v41 = vpop.f32.mrb[192].mxu1 }
 0x4bf   :  { %v2950_v33 = vadd.f32 %v2852_v41, %v13128_v34  ;;  %v8526_v45 = vpop.f32.mrb[193].mxu1  ;;  %v14778_v41 = vld [vmem:[#allocation39_spill] sm:$0xff] }
 0x4c1   :  { %v13264_v51 = vadd.f32 %v14771_v9, %v2950_v33 }
 0x4c2   :  { %v2857_v47 = vpop.f32.mrb[194].mxu1 }
 0x4c3   :  { %v2951_v23 = vadd.f32 %v2857_v47, %v13135_v4  ;;  %v8529_v14 = vpop.f32.mrb[195].mxu1  ;;  %v14779_v47 = vld [vmem:[#allocation40_spill] sm:$0xff] }
 0x4c5   :  { %v13268_v59 = vadd.f32 %v14772_v2, %v2951_v23 }
 0x4c6   :  { %v2862_v32 = vpop.f32.mrb[196].mxu1 }
 0x4c7   :  { %v2952_v6 = vadd.f32 %v2862_v32, %v13143_v60  ;;  %v8532_v10 = vpop.f32.mrb[197].mxu1  ;;  %v14780_v32 = vld [vmem:[#allocation41_spill] sm:$0xff] }
 0x4c9   :  { %v13272_v31 = vadd.f32 %v14773_v20, %v2952_v6 }
 0x4ca   :  { %v2867_v17 = vpop.f32.mrb[198].mxu1 }
 0x4cb   :  { %v2953_v34 = vadd.f32 %v2867_v17, %v13150_v39  ;;  %v8535_v0 = vpop.f32.mrb[199].mxu1  ;;  %v14781_v17 = vld [vmem:[#allocation42_spill] sm:$0xff] }
 0x4cd   :  { %v13276_v21 = vadd.f32 %v14774_v40, %v2953_v34 }
 0x4ce   :  { %v2872_v7 = vpop.f32.mrb[200].mxu1 }
 0x4cf   :  { %v2954_v4 = vadd.f32 %v2872_v7, %v13157_v61  ;;  %v8538_v57 = vpop.f32.mrb[201].mxu1  ;;  %v14782_v7 = vld [vmem:[#allocation43_spill] sm:$0xff] }
 0x4d1   :  { %v13280_v54 = vadd.f32 %v14775_v5, %v2954_v4 }
 0x4d2   :  { %v2877_v49 = vpop.f32.mrb[202].mxu1 }
 0x4d3   :  { %v2955_v60 = vadd.f32 %v2877_v49, %v13165_v3  ;;  %v8541_v26 = vpop.f32.mrb[203].mxu1  ;;  %v14783_v49 = vld [vmem:[#allocation44_spill] sm:$0xff] }
 0x4d5   :  { %v13284_v62 = vadd.f32 %v14776_v30, %v2955_v60 }
 0x4d6   :  { %v2882_v36 = vpop.f32.mrb[204].mxu1 }
 0x4d7   :  { %v2956_v39 = vadd.f32 %v2882_v36, %v13173_v44  ;;  %v8544_v1 = vpop.f32.mrb[205].mxu1  ;;  %v14784_v36 = vld [vmem:[#allocation45_spill] sm:$0xff] }
 0x4d9   :  { %v13288_v19 = vadd.f32 %v14777_v25, %v2956_v39 }
 0x4da   :  { %v2887_v29 = vpop.f32.mrb[206].mxu1 }
 0x4db   :  { %v2957_v61 = vadd.f32 %v2887_v29, %v13181_v8  ;;  %v8547_v24 = vpop.f32.mrb[207].mxu1  ;;  %v14785_v29 = vld [vmem:[#allocation46_spill] sm:$0xff] }
 0x4dd   :  { %v13292_v33 = vadd.f32 %v14778_v41, %v2957_v61 }
 0x4de   :  { %v2892_v45 = vpop.f32.mrb[208].mxu1 }
 0x4df   :  { %v2958_v3 = vadd.f32 %v2892_v45, %v13190_v55  ;;  %v8550_v9 = vpop.f32.mrb[209].mxu1  ;;  %v14786_v45 = vld [vmem:[#allocation47_spill] sm:$0xff] }
 0x4e1   :  { %v13296_v23 = vadd.f32 %v14779_v47, %v2958_v3 }
 0x4e2   :  { %v2897_v14 = vpop.f32.mrb[210].mxu1 }
 0x4e3   :  { %v2959_v44 = vadd.f32 %v2897_v14, %v13198_v15  ;;  %v8553_v2 = vpop.f32.mrb[211].mxu1  ;;  %v14787_v14 = vld [vmem:[#allocation48_spill] sm:$0xff] }
 0x4e5   :  { %v13300_v6 = vadd.f32 %v14780_v32, %v2959_v44 }
 0x4e6   :  { %v2902_v10 = vpop.f32.mrb[212].mxu1 }
 0x4e7   :  { %v2960_v8 = vadd.f32 %v2902_v10, %v13205_v52  ;;  %v8556_v20 = vpop.f32.mrb[213].mxu1  ;;  %v14788_v10 = vld [vmem:[#allocation49_spill] sm:$0xff] }
 0x4e9   :  { %v13304_v34 = vadd.f32 %v14781_v17, %v2960_v8 }
 0x4ea   :  { %v2907_v0 = vpop.f32.mrb[214].mxu1 }
 0x4eb   :  { %v2961_v55 = vadd.f32 %v2907_v0, %v13212_v53  ;;  %v8559_v40 = vpop.f32.mrb[215].mxu1  ;;  %v14789_v0 = vld [vmem:[#allocation50_spill] sm:$0xff] }
 0x4ed   :  { %v13308_v4 = vadd.f32 %v14782_v7, %v2961_v55 }
 0x4ee   :  { %v2912_v57 = vpop.f32.mrb[216].mxu1 }
 0x4ef   :  { %v2962_v15 = vadd.f32 %v2912_v57, %v13217_v13  ;;  %v8562_v5 = vpop.f32.mrb[217].mxu1  ;;  %v13342_v57 = vld [vmem:[%s14674_s3] ss:$0 sm:$0xff] }
 0x4f1   :  { %v13312_v60 = vadd.f32 %v14783_v49, %v2962_v15 }
 0x4f2   :  { %v2917_v26 = vpop.f32.mrb[218].mxu1 }
 0x4f3   :  { %v2963_v52 = vadd.f32 %v2917_v26, %v13222_v27  ;;  %v8565_v30 = vpop.f32.mrb[219].mxu1 }
 0x4f4   :  { %v4602_v30 = vld [vmem:[#allocation9 + $0x188] sm:$0xff] }
 0x4f5   :  { %v13316_v39 = vadd.f32 %v14784_v36, %v2963_v52  ;;  %v4601_v52 = vld [vmem:[#allocation9 + $0x180] sm:$0xff] }
 0x4f6   :  { %v2922_v1 = vpop.f32.mrb[220].mxu1 }
 0x4f7   :  { %v2964_v53 = vadd.f32 %v2922_v1, %v13227_v16  ;;  %v8568_v25 = vpop.f32.mrb[221].mxu1  ;;  %v14791_v1 = vld [vmem:[#allocation52_spill] sm:$0xff] }
 0x4f9   :  { %v13320_v61 = vadd.f32 %v14785_v29, %v2964_v53  ;;  %v10261_v29 = vpack.c.bf16 %v4602_v30, %v4601_v52  ;;  %v4372_v52 = vld [vmem:[#allocation9 + $0x100] sm:$0xff]  ;;  %v4373_v30 = vld [vmem:[#allocation9 + $0x108] sm:$0xff] }
 0x4fa   :  { %v2927_v24 = vpop.f32.mrb[222].mxu1 }
 0x4fb   :  { %v2965_v13 = vadd.f32 %v2927_v24, %v13231_v56  ;;  %v8571_v41 = vpop.f32.mrb[223].mxu1 }
 0x4fd   :  { %v13324_v3 = vadd.f32 %v14786_v45, %v2965_v13 }
 0x4fe   :  { %v2932_v9 = vpop.f32.mrb[224].mxu1 }
 0x4ff   :  { %v2966_v27 = vadd.f32 %v2932_v9, %v13236_v11  ;;  %v8574_v47 = vpop.f32.mrb[225].mxu1  ;;  %v4603_v9 = vld [vmem:[#allocation9 + $0x190] sm:$0xff] }
 0x500   :  { %v3782_v47 = vpop.permute.xlu1 %3781 }
 0x501   :  { %v13328_v44 = vadd.f32 %v14787_v14, %v2966_v27  ;;  %v4604_v27 = vld [vmem:[#allocation9 + $0x198] sm:$0xff]  ;;  %v14792_v14 = vld [vmem:[#allocation53_spill] sm:$0xff] }
 0x502   :  { %v2937_v2 = vpop.f32.mrb[226].mxu1 }
 0x503   :  { %v2967_v16 = vadd.f32 %v2937_v2, %v13240_v18  ;;  %v8577_v32 = vpop.f32.mrb[227].mxu1  ;;  %v14790_v18 = vld [vmem:[#allocation51_spill] sm:$0xff] }
 0x504   :  { %v10264_v32 = vpack.c.bf16 %v4604_v27, %v4603_v9  ;;  %v4374_v27 = vld [vmem:[#allocation9 + $0x110] sm:$0xff] }
 0x505   :  { %v13332_v8 = vadd.f32 %v14788_v10, %v2967_v16 }
 0x506   :  { %v2942_v20 = vpop.f32.mrb[228].mxu1 }
 0x507   :  { %v2968_v56 = vadd.f32 %v2942_v20, %v13244_v46  ;;  %v8580_v17 = vpop.f32.mrb[229].mxu1 }
 0x508   :  { %v4605_v17 = vld [vmem:[#allocation9 + $0x1a0] sm:$0xff] }
 0x509   :  { %v13336_v55 = vadd.f32 %v14789_v0, %v2968_v56  ;;  %v4606_v0 = vld [vmem:[#allocation9 + $0x1a8] sm:$0xff] }
 0x50a   :  { %v3318_v40 = vpop.f32.mrb[230].mxu1 }
 0x50b   :  { %v3432_v11 = vadd.f32 %v3318_v40, %v13248_v22  ;;  %v8716_v7 = vpop.f32.mrb[231].mxu1  ;;  %v3777_v22 = vpop.permute.xlu0 %3776 }
 0x50d   :  { %v3675_v15 = vadd.f32 %v14790_v18, %v3432_v11  ;;  %v14793_v11 = vld [vmem:[#allocation54_spill] sm:$0xff]  ;;  %v3787_v18 = vpop.permute.xlu1 %3786 }
 0x50e   :  { %v3323_v5 = vpop.f32.mrb[232].mxu1 }
 0x50f   :  { %v3705_v49 = vadd.f32 %v13342_v57, %v3675_v15  ;;  %v3433_v46 = vadd.f32 %v3323_v5, %v13252_v63  ;;  %v8719_v26 = vpop.f32.mrb[233].mxu1  ;;  %v10267_v5 = vpack.c.bf16 %v4606_v0, %v4605_v17 }
 0x511   :  { %v3728_v36 = vmax.f32 %v3705_v49, 0.0  ;;  %v3676_v53 = vadd.f32 %v14791_v1, %v3433_v46  ;;  %v14794_v1 = vld [vmem:[#allocation55_spill] sm:$0xff] }
 0x512   :  { %v3328_v25 = vpop.f32.mrb[234].mxu1 }
 0x513   :  { %v3889_v24 = vmul.f32 %v3777_v22, %v3728_v36  ;;  %v3706_v13 = vadd.f32 %v13342_v57, %v3676_v53  ;;  %v3434_v41 = vadd.f32 %v3328_v25, %v13256_v12  ;;  %v8722_v45 = vpop.f32.mrb[235].mxu1  ;;  %v4607_v22 = vld [vmem:[#allocation9 + $0x1b0] sm:$0xff]  ;;  %v4608_v25 = vld [vmem:[#allocation9 + $0x1b8] sm:$0xff] }
 0x515   :  { %3912 = vst [vmem:[#allocation3] sm:$0xff] %v3889_v24  ;;  %v3729_v63 = vmax.f32 %v3706_v13, 0.0  ;;  %v3677_v2 = vadd.f32 %v14792_v14, %v3434_v41  ;;  %9012 = vmatmul.mubr.f32.vlgmr.msra.gmra.mrb[190].mxu0 %v3889_v24  ;;  %v10237_v13 = vpack.c.bf16 %v4373_v30, %v4372_v52  ;;  %v10270_v14 = vpack.c.bf16 %v4608_v25, %v4607_v22  ;;  %v4378_v52 = vld [vmem:[#allocation9 + $0x130] sm:$0xff]  ;;  %v4379_v25 = vld [vmem:[#allocation9 + $0x138] sm:$0xff] }
 0x516   :  { %v3333_v16 = vpop.f32.mrb[236].mxu1  ;;  %9014 = vmatprep.mubr.msk.f32.mxu0 %vm10767_vm10, %v14719_v38  ;;  %10262 = vmatpush3.bf16.msra.mxu0 %v10261_v29  ;;  %v3792_v29 = vpop.permute.xlu0 %3791 }
 0x517   :  { %v3890_v10 = vmul.f32 %v3782_v47, %v3729_v63  ;;  %v3707_v20 = vadd.f32 %v13342_v57, %v3677_v2  ;;  %v3435_v12 = vadd.f32 %v3333_v16, %v13260_v48  ;;  %v8725_v56 = vpop.f32.mrb[237].mxu1  ;;  %10263 = vmatprep.subr.bf16.mxu0 %v14724_v42  ;;  %v4375_v47 = vld [vmem:[#allocation9 + $0x118] sm:$0xff]  ;;  %v14795_v16 = vld [vmem:[#allocation56_spill] sm:$0xff] }
 0x519   :  { %3913 = vst [vmem:[#allocation3 + $0x8] sm:$0xff] %v3890_v10  ;;  %v3730_v40 = vmax.f32 %v3707_v20, 0.0  ;;  %v3678_v7 = vadd.f32 %v14793_v11, %v3435_v12  ;;  %9015 = vmatmul.mubr.f32.gmra.mrb[192].mxu0 %v3890_v10  ;;  %v3797_v10 = vpop.permute.xlu1 %3796  ;;  %v4376_v12 = vld [vmem:[#allocation9 + $0x120] sm:$0xff]  ;;  %v4377_v11 = vld [vmem:[#allocation9 + $0x128] sm:$0xff] }
 0x51a   :  { %v3338_v15 = vpop.f32.mrb[238].mxu1  ;;  %9017 = vmatprep.mubr.msk.f32.mxu0 %vm10767_vm10, %v14719_v38  ;;  %10265 = vmatpush3.bf16.msra.mxu0 %v10264_v32 }
 0x51b   :  { %v3891_v49 = vmul.f32 %v3787_v18, %v3730_v40  ;;  %v3708_v48 = vadd.f32 %v13342_v57, %v3678_v7  ;;  %v3436_v46 = vadd.f32 %v3338_v15, %v13264_v51  ;;  %v8728_v26 = vpop.f32.mrb[239].mxu1  ;;  %10266 = vmatprep.subr.bf16.mxu0 %v14724_v42  ;;  %v4609_v7 = vld [vmem:[#allocation9 + $0x1c0] sm:$0xff]  ;;  %v4610_v18 = vld [vmem:[#allocation9 + $0x1c8] sm:$0xff] }
 0x51c   :  { %v10243_v26 = vpack.c.bf16 %v4377_v11, %v4376_v12  ;;  %v10273_v30 = vpack.c.bf16 %v4610_v18, %v4609_v7  ;;  %v4382_v7 = vld [vmem:[#allocation9 + $0x150] sm:$0xff] }
 0x51d   :  { %3914 = vst [vmem:[#allocation3 + $0x10] sm:$0xff] %v3891_v49  ;;  %v3731_v36 = vmax.f32 %v3708_v48, 0.0  ;;  %v3679_v53 = vadd.f32 %v14794_v1, %v3436_v46  ;;  %9018 = vmatmul.mubr.f32.gmra.mrb[194].mxu0 %v3891_v49  ;;  %v14796_v49 = vld [vmem:[#allocation57_spill] sm:$0xff] }
 0x51e   :  { %v3343_v24 = vpop.f32.mrb[240].mxu1  ;;  %9020 = vmatprep.mubr.msk.f32.mxu0 %vm10767_vm10, %v14719_v38  ;;  %10268 = vmatpush3.bf16.msra.mxu0 %v10267_v5 }
 0x51f   :  { %v3892_v51 = vmul.f32 %v3792_v29, %v3731_v36  ;;  %v3709_v41 = vadd.f32 %v13342_v57, %v3679_v53  ;;  %v3437_v45 = vadd.f32 %v3343_v24, %v13268_v59  ;;  %v8731_v9 = vpop.f32.mrb[241].mxu1  ;;  %10269 = vmatprep.subr.bf16.mxu0 %v14724_v42  ;;  %v10240_v59 = vpack.c.bf16 %v4375_v47, %v4374_v27  ;;  %v4611_v29 = vld [vmem:[#allocation9 + $0x1d0] sm:$0xff]  ;;  %v4612_v24 = vld [vmem:[#allocation9 + $0x1d8] sm:$0xff]  ;;  %v4380_v47 = vld [vmem:[#allocation9 + $0x140] sm:$0xff] }
 0x520   :  { %v3972_v63 = vld [vmem:[#allocation3 + $0x1] sm:$0xff]  ;;  %v10246_v27 = vpack.c.bf16 %v4379_v25, %v4378_v52 }
 0x521   :  { %3915 = vst [vmem:[#allocation3 + $0x18] sm:$0xff] %v3892_v51  ;;  %v3732_v2 = vmax.f32 %v3709_v41, 0.0  ;;  %v3680_v32 = vadd.f32 %v14795_v16, %v3437_v45  ;;  %8917 = vmatmul.mubr.f32.vlgmr.msra.gmra.mrb[20].mxu1 %v3972_v63  ;;  %9021 = vmatmul.mubr.f32.gmra.mrb[196].mxu0 %v3892_v51  ;;  %v14797_v41 = vld [vmem:[#allocation58_spill] sm:$0xff]  ;;  %v10276_v63 = vpack.c.bf16 %v4612_v24, %v4611_v29 }
 0x522   :  { %10238 = vmatpush3.bf16.msra.mxu1 %v10237_v13  ;;  %v3348_v20 = vpop.f32.mrb[242].mxu1  ;;  %8919 = vmatprep.mubr.msk.f32.mxu1 %vm10767_vm10, %v14719_v38  ;;  %v4616_v52 = vld [vmem:[#allocation9 + $0x1f8] sm:$0xff] }
 0x523   :  { %v3893_v56 = vmul.f32 %v3797_v10, %v3732_v2  ;;  %v3710_v17 = vadd.f32 %v13342_v57, %v3680_v32  ;;  %v3438_v0 = vadd.f32 %v3348_v20, %v13272_v31  ;;  %v8734_v40 = vpop.f32.mrb[243].mxu1  ;;  %10239 = vmatprep.subr.bf16.mxu1 %v14724_v42  ;;  %9023 = vmatprep.mubr.msk.f32.mxu0 %vm10767_vm10, %v14719_v38  ;;  %v3802_v31 = vpop.permute.xlu0 %3801  ;;  %v4381_v10 = vld [vmem:[#allocation9 + $0x148] sm:$0xff]  ;;  %v4613_v20 = vld [vmem:[#allocation9 + $0x1e0] sm:$0xff] }
 0x524   :  { %v13376_v15 = vld [vmem:[#allocation3 + $0x9] sm:$0xff]  ;;  %10271 = vmatpush3.bf16.msra.mxu0 %v10270_v14  ;;  %v10249_v11 = vpack.c.bf16 %v4381_v10, %v4380_v47 }
 0x525   :  { %3916 = vst [vmem:[#allocation3 + $0x20] sm:$0xff] %v3893_v56  ;;  %v3733_v5 = vmax.f32 %v3710_v17, 0.0  ;;  %v3681_v48 = vadd.f32 %v14796_v49, %v3438_v0  ;;  %8920 = vmatmul.mubr.f32.gmra.mrb[22].mxu1 %v13376_v15  ;;  %9024 = vmatmul.mubr.f32.gmra.mrb[198].mxu0 %v3893_v56  ;;  %v14798_v17 = vld [vmem:[#allocation59_spill] sm:$0xff] }
 0x526   :  { %v3353_v46 = vpop.f32.mrb[244].mxu1  ;;  %8922 = vmatprep.mubr.msk.f32.mxu1 %vm10767_vm10, %v14719_v38  ;;  %10241 = vmatpush3.bf16.msra.mxu1 %v10240_v59  ;;  %v4614_v59 = vld [vmem:[#allocation9 + $0x1e8] sm:$0xff] }
 0x527   :  { %v3894_v36 = vmul.f32 %v3802_v31, %v3733_v5  ;;  %v3711_v1 = vadd.f32 %v13342_v57, %v3681_v48  ;;  %v3439_v53 = vadd.f32 %v3353_v46, %v13276_v21  ;;  %v8737_v22 = vpop.f32.mrb[245].mxu1  ;;  %9026 = vmatprep.mubr.msk.f32.mxu0 %vm10767_vm10, %v14719_v38  ;;  %10242 = vmatprep.subr.bf16.mxu1 %v14724_v42  ;;  %v3807_v21 = vpop.permute.xlu1 %3806  ;;  %v4383_v46 = vld [vmem:[#allocation9 + $0x158] sm:$0xff] }
 0x528   :  { %v13387_v13 = vld [vmem:[#allocation3 + $0x11] sm:$0xff]  ;;  %10272 = vmatprep.subr.bf16.mxu0 %v14724_v42  ;;  %v10279_v18 = vpack.c.bf16 %v4614_v59, %v4613_v20  ;;  %v10252_v25 = vpack.c.bf16 %v4383_v46, %v4382_v7 }
 0x529   :  { %3917 = vst [vmem:[#allocation3 + $0x28] sm:$0xff] %v3894_v36  ;;  %v3734_v51 = vmax.f32 %v3711_v1, 0.0  ;;  %v3682_v45 = vadd.f32 %v14797_v41, %v3439_v53  ;;  %8923 = vmatmul.mubr.f32.gmra.mrb[24].mxu1 %v13387_v13  ;;  %9027 = vmatmul.mubr.f32.gmra.mrb[200].mxu0 %v3894_v36  ;;  %v14799_v1 = vld [vmem:[#allocation60_spill] sm:$0xff] }
 0x52a   :  { %v3358_v9 = vpop.f32.mrb[246].mxu1  ;;  %8925 = vmatprep.mubr.msk.f32.mxu1 %vm10767_vm10, %v14719_v38  ;;  %9029 = vmatprep.mubr.msk.f32.mxu0 %vm10767_vm10, %v14719_v38 }
 0x52b   :  { %v3895_v14 = vmul.f32 %v3807_v21, %v3734_v51  ;;  %v3712_v2 = vadd.f32 %v13342_v57, %v3682_v45  ;;  %v3440_v16 = vadd.f32 %v3358_v9, %v13280_v54  ;;  %v8740_v32 = vpop.f32.mrb[247].mxu1  ;;  %10244 = vmatpush3.bf16.msra.mxu1 %v10243_v26  ;;  %10274 = vmatpush3.bf16.msra.mxu0 %v10273_v30  ;;  %v3812_v54 = vpop.permute.xlu0 %3811  ;;  %v4615_v26 = vld [vmem:[#allocation9 + $0x1f0] sm:$0xff]  ;;  %v4384_v21 = vld [vmem:[#allocation9 + $0x160] sm:$0xff]  ;;  %v4385_v9 = vld [vmem:[#allocation9 + $0x168] sm:$0xff] }
 0x52c   :  { %v13398_v12 = vld [vmem:[#allocation3 + $0x19] sm:$0xff]  ;;  %10245 = vmatprep.subr.bf16.mxu1 %v14724_v42  ;;  %10275 = vmatprep.subr.bf16.mxu0 %v14724_v42  ;;  %v10282_v29 = vpack.c.bf16 %v4616_v52, %v4615_v26  ;;  %v14802_v52 = vld [vmem:[#allocation64_spill] sm:$0xff] }
 0x52d   :  { %3918 = vst [vmem:[#allocation3 + $0x30] sm:$0xff] %v3895_v14  ;;  %v3735_v56 = vmax.f32 %v3712_v2, 0.0  ;;  %v3683_v0 = vadd.f32 %v14798_v17, %v3440_v16  ;;  %8926 = vmatmul.mubr.f32.gmra.mrb[26].mxu1 %v13398_v12  ;;  %9030 = vmatmul.mubr.f32.gmra.mrb[202].mxu0 %v3895_v14  ;;  %v10255_v16 = vpack.c.bf16 %v4385_v9, %v4384_v21  ;;  %v4386_v17 = vld [vmem:[#allocation9 + $0x170] sm:$0xff] }
 0x52e   :  { %v3363_v40 = vpop.f32.mrb[248].mxu1  ;;  %8928 = vmatprep.mubr.msk.f32.mxu1 %vm10767_vm10, %v14719_v38  ;;  %9032 = vmatprep.mubr.msk.f32.mxu0 %vm10767_vm10, %v14719_v38 }
 0x52f   :  { %v3896_v5 = vmul.f32 %v3812_v54, %v3735_v56  ;;  %v3713_v49 = vadd.f32 %v13342_v57, %v3683_v0  ;;  %v3441_v48 = vadd.f32 %v3363_v40, %v13284_v62  ;;  %v8743_v31 = vpop.f32.mrb[249].mxu1  ;;  %10247 = vmatpush3.bf16.msra.mxu1 %v10246_v27  ;;  %10277 = vmatpush3.bf16.msra.mxu0 %v10276_v63  ;;  %v3817_v62 = vpop.permute.xlu1 %3816  ;;  %v14800_v63 = vld [vmem:[#allocation61_spill] sm:$0xff]  ;;  %v4387_v0 = vld [vmem:[#allocation9 + $0x178] sm:$0xff] }
 0x530   :  { %v13410_v30 = vld [vmem:[#allocation3 + $0x21] sm:$0xff]  ;;  %10248 = vmatprep.subr.bf16.mxu1 %v14724_v42  ;;  %10278 = vmatprep.subr.bf16.mxu0 %v14724_v42  ;;  %v3822_v2 = vpop.permute.xlu0 %3821  ;;  %v14801_v40 = vld [vmem:[#allocation62_spill] sm:$0xff]  ;;  %v10258_v31 = vpack.c.bf16 %v4387_v0, %v4386_v17 }
 0x531   :  { %3919 = vst [vmem:[#allocation3 + $0x38] sm:$0xff] %v3896_v5  ;;  %v3736_v36 = vmax.f32 %v3713_v49, 0.0  ;;  %v3684_v53 = vadd.f32 %v14799_v1, %v3441_v48  ;;  %8929 = vmatmul.mubr.f32.gmra.mrb[28].mxu1 %v13410_v30  ;;  %9033 = vmatmul.mubr.f32.gmra.mrb[204].mxu0 %v3896_v5 }
 0x532   :  { %v3368_v22 = vpop.f32.mrb[250].mxu1  ;;  %8931 = vmatprep.mubr.msk.f32.mxu1 %vm10767_vm10, %v14719_v38  ;;  %9035 = vmatprep.mubr.msk.f32.mxu0 %vm10767_vm10, %v14719_v38 }
 0x533   :  { %v3897_v24 = vmul.f32 %v3817_v62, %v3736_v36  ;;  %v3714_v51 = vadd.f32 %v13342_v57, %v3684_v53  ;;  %v3442_v41 = vadd.f32 %v3368_v22, %v13288_v19  ;;  %v8746_v45 = vpop.f32.mrb[251].mxu1  ;;  %10250 = vmatpush3.bf16.msra.mxu1 %v10249_v11  ;;  %10280 = vmatpush3.bf16.msra.mxu0 %v10279_v18  ;;  %v3827_v7 = vpop.permute.xlu1 %3826 }
 0x534   :  { %v13422_v27 = vld [vmem:[#allocation3 + $0x29] sm:$0xff]  ;;  %10251 = vmatprep.subr.bf16.mxu1 %v14724_v42  ;;  %10281 = vmatprep.subr.bf16.mxu0 %v14724_v42  ;;  %v3832_v1 = vpop.permute.xlu0 %3831 }
 0x535   :  { %3920 = vst [vmem:[#allocation3 + $0x40] sm:$0xff] %v3897_v24  ;;  %v3737_v47 = vmax.f32 %v3714_v51, 0.0  ;;  %v3685_v14 = vadd.f32 %v14800_v63, %v3442_v41  ;;  %8932 = vmatmul.mubr.f32.gmra.mrb[30].mxu1 %v13422_v27  ;;  %9036 = vmatmul.mubr.f32.gmra.mrb[206].mxu0 %v3897_v24  ;;  %v14803_v51 = vld [vmem:[#allocation67_spill] sm:$0xff] }
 0x536   :  { %v3373_v19 = vpop.f32.mrb[252].mxu1  ;;  %8934 = vmatprep.mubr.msk.f32.mxu1 %vm10767_vm10, %v14719_v38  ;;  %9038 = vmatprep.mubr.msk.f32.mxu0 %vm10767_vm10, %v14719_v38 }
 0x537   :  { %v3898_v32 = vmul.f32 %v3822_v2, %v3737_v47  ;;  %v3715_v10 = vadd.f32 %v13342_v57, %v3685_v14  ;;  %v3443_v20 = vadd.f32 %v3373_v19, %v13292_v33  ;;  %v8749_v59 = vpop.f32.mrb[253].mxu1  ;;  %10253 = vmatpush3.bf16.msra.mxu1 %v10252_v25  ;;  %10283 = vmatpush3.bf16.msra.mxu0 %v10282_v29  ;;  %v3837_v45 = vpop.permute.xlu1 %3836  ;;  %v14804_v19 = vld [vmem:[#allocation68_spill] sm:$0xff] }
 0x538   :  { %v13434_v56 = vld [vmem:[#allocation3 + $0x31] sm:$0xff]  ;;  %10254 = vmatprep.subr.bf16.mxu1 %v14724_v42  ;;  %10308 = vmatprep.subr.bf16.mxu0 %v14724_v42 }
 0x539   :  { %3921 = vst [vmem:[#allocation3 + $0x48] sm:$0xff] %v3898_v32  ;;  %v3738_v54 = vmax.f32 %v3715_v10, 0.0  ;;  %v3686_v11 = vadd.f32 %v14801_v40, %v3443_v20  ;;  %8935 = vmatmul.mubr.f32.gmra.mrb[32].mxu1 %v13434_v56  ;;  %9039 = vmatmul.mubr.f32.gmra.mrb[208].mxu0 %v3898_v32  ;;  %v3842_v32 = vpop.permute.xlu0 %3841 }
 0x53a   :  { %v3378_v33 = vpop.f32.mrb[254].mxu1  ;;  %8937 = vmatprep.mubr.msk.f32.mxu1 %vm10767_vm10, %v14719_v38  ;;  %9041 = vmatprep.mubr.msk.f32.mxu0 %vm10767_vm10, %v14719_v38 }
 0x53b   :  { %v3899_v18 = vmul.f32 %v3827_v7, %v3738_v54  ;;  %v3716_v5 = vadd.f32 %v13342_v57, %v3686_v11  ;;  %v3444_v49 = vadd.f32 %v3378_v33, %v13296_v23  ;;  %v8752_v48 = vpop.f32.mrb[255].mxu1  ;;  %10256 = vmatpush3.bf16.msra.mxu1 %v10255_v16  ;;  %v3847_v11 = vpop.permute.xlu1 %3846 }
 0x53c   :  { %v13446_v46 = vld [vmem:[#allocation3 + $0x39] sm:$0xff]  ;;  %10257 = vmatprep.subr.bf16.mxu1 %v14724_v42 }
 0x53d   :  { %3922 = vst [vmem:[#allocation3 + $0x50] sm:$0xff] %v3899_v18  ;;  %v3739_v26 = vmax.f32 %v3716_v5, 0.0  ;;  %v3687_v36 = vadd.f32 %v14802_v52, %v3444_v49  ;;  %8938 = vmatmul.mubr.f32.gmra.mrb[34].mxu1 %v13446_v46  ;;  %9042 = vmatmul.mubr.f32.gmra.mrb[210].mxu0 %v3899_v18 }
 0x53e   :  { %v3383_v53 = vpop.f32.mrb[0].mxu1  ;;  %8940 = vmatprep.mubr.msk.f32.mxu1 %vm10767_vm10, %v14719_v38  ;;  %9044 = vmatprep.mubr.msk.f32.mxu0 %vm10767_vm10, %v14719_v38 }
 0x53f   :  { %v3900_v23 = vmul.f32 %v3832_v1, %v3739_v26  ;;  %v3717_v62 = vadd.f32 %v13342_v57, %v3687_v36  ;;  %v3445_v22 = vadd.f32 %v3383_v53, %v13300_v6  ;;  %v8755_v25 = vpop.f32.mrb[1].mxu1  ;;  %10259 = vmatpush3.bf16.msra.mxu1 %v10258_v31  ;;  %v3852_v31 = vpop.permute.xlu0 %3851 }
 0x540   :  { %v13457_v29 = vld [vmem:[#allocation3 + $0x41] sm:$0xff]  ;;  %10284 = vmatprep.subr.bf16.mxu1 %v14724_v42 }
 0x541   :  { %3923 = vst [vmem:[#allocation3 + $0x58] sm:$0xff] %v3900_v23  ;;  %v3740_v24 = vmax.f32 %v3717_v62, 0.0  ;;  %v3688_v41 = vadd.f32 %v14803_v51, %v3445_v22  ;;  %8941 = vmatmul.mubr.f32.gmra.mrb[36].mxu1 %v13457_v29  ;;  %9045 = vmatmul.mubr.f32.gmra.mrb[212].mxu0 %v3900_v23  ;;  %v14805_v23 = vld [vmem:[#allocation69_spill] sm:$0xff]  ;;  %v3857_v22 = vpop.permute.xlu1 %3856 }
 0x542   :  { %v3388_v21 = vpop.f32.mrb[2].mxu1  ;;  %8943 = vmatprep.mubr.msk.f32.mxu1 %vm10767_vm10, %v14719_v38  ;;  %9047 = vmatprep.mubr.msk.f32.mxu0 %vm10767_vm10, %v14719_v38 }
 0x543   :  { %v3901_v6 = vmul.f32 %v3837_v45, %v3740_v24  ;;  %v3718_v9 = vadd.f32 %v13342_v57, %v3688_v41  ;;  %v3446_v47 = vadd.f32 %v3388_v21, %v13304_v34  ;;  %v8758_v63 = vpop.f32.mrb[3].mxu1 }
 0x544   :  { %v13468_v14 = vld [vmem:[#allocation3 + $0x49] sm:$0xff] }
 0x545   :  { %3924 = vst [vmem:[#allocation3 + $0x60] sm:$0xff] %v3901_v6  ;;  %v3741_v2 = vmax.f32 %v3718_v9, 0.0  ;;  %v3689_v16 = vadd.f32 %v14804_v19, %v3446_v47  ;;  %8944 = vmatmul.mubr.f32.gmra.mrb[38].mxu1 %v13468_v14  ;;  %9048 = vmatmul.mubr.f32.gmra.mrb[214].mxu0 %v3901_v6  ;;  %v14806_v6 = vld [vmem:[#allocation70_spill] sm:$0xff]  ;;  %v3862_v47 = vpop.permute.xlu0 %3861 }
 0x546   :  { %v3393_v10 = vpop.f32.mrb[4].mxu1  ;;  %8946 = vmatprep.mubr.msk.f32.mxu1 %vm10767_vm10, %v14719_v38  ;;  %9050 = vmatprep.mubr.msk.f32.mxu0 %vm10767_vm10, %v14719_v38 }
 0x547   :  { %v3902_v20 = vmul.f32 %v3842_v32, %v3741_v2  ;;  %v3719_v34 = vadd.f32 %v13342_v57, %v3689_v16  ;;  %v3447_v59 = vadd.f32 %v3393_v10, %v13308_v4  ;;  %v8761_v17 = vpop.f32.mrb[5].mxu1 }
 0x548   :  { %v13478_v0 = vld [vmem:[#allocation3 + $0x51] sm:$0xff] }
 0x549   :  { %3925 = vst [vmem:[#allocation3 + $0x68] sm:$0xff] %v3902_v20  ;;  %v3742_v54 = vmax.f32 %v3719_v34, 0.0  ;;  %v3690_v40 = vadd.f32 %v13034_v58, %v3447_v59  ;;  %8947 = vmatmul.mubr.f32.gmra.mrb[40].mxu1 %v13478_v0  ;;  %9051 = vmatmul.mubr.f32.gmra.mrb[216].mxu0 %v3902_v20  ;;  %v3867_v34 = vpop.permute.xlu1 %3866 }
 0x54a   :  { %v3398_v7 = vpop.f32.mrb[6].mxu1  ;;  %8949 = vmatprep.mubr.msk.f32.mxu1 %vm10767_vm10, %v14719_v38  ;;  %9053 = vmatprep.mubr.msk.f32.mxu0 %vm10767_vm10, %v14719_v38 }
 0x54b   :  { %v3903_v33 = vmul.f32 %v3847_v11, %v3742_v54  ;;  %v3720_v4 = vadd.f32 %v13342_v57, %v3690_v40  ;;  %v3448_v18 = vadd.f32 %v3398_v7, %v13312_v60  ;;  %v8764_v5 = vpop.f32.mrb[7].mxu1 }
 0x54c   :  { %v13488_v49 = vld [vmem:[#allocation3 + $0x59] sm:$0xff] }
 0x54d   :  { %3926 = vst [vmem:[#allocation3 + $0x70] sm:$0xff] %v3903_v33  ;;  %v3743_v58 = vmax.f32 %v3720_v4, 0.0  ;;  %v3691_v48 = vadd.f32 %v13042_v50, %v3448_v18  ;;  %8950 = vmatmul.mubr.f32.gmra.mrb[42].mxu1 %v13488_v49  ;;  %9054 = vmatmul.mubr.f32.gmra.mrb[218].mxu0 %v3903_v33  ;;  %v3872_v33 = vpop.permute.xlu0 %3871 }
 0x54e   :  { %v3403_v26 = vpop.f32.mrb[8].mxu1  ;;  %8952 = vmatprep.mubr.msk.f32.mxu1 %vm10767_vm10, %v14719_v38  ;;  %9056 = vmatprep.mubr.msk.f32.mxu0 %vm10767_vm10, %v14719_v38 }
 0x54f   :  { %v3904_v52 = vmul.f32 %v3852_v31, %v3743_v58  ;;  %v3721_v60 = vadd.f32 %v13342_v57, %v3691_v48  ;;  %v3449_v36 = vadd.f32 %v3403_v26, %v13316_v39  ;;  %v8767_v1 = vpop.f32.mrb[9].mxu1  ;;  %v3877_v26 = vpop.permute.xlu1 %3876 }
 0x550   :  { %v13498_v53 = vld [vmem:[#allocation3 + $0x61] sm:$0xff] }
 0x551   :  { %3927 = vst [vmem:[#allocation3 + $0x78] sm:$0xff] %v3904_v52  ;;  %v3744_v50 = vmax.f32 %v3721_v60, 0.0  ;;  %v3692_v62 = vadd.f32 %v14805_v23, %v3449_v36  ;;  %8953 = vmatmul.mubr.f32.gmra.mrb[44].mxu1 %v13498_v53  ;;  %9057 = vmatmul.mubr.f32.gmra.mrb[220].mxu0 %v3904_v52 }
 0x552   :  { %v3408_v25 = vpop.f32.mrb[10].mxu1  ;;  %8955 = vmatprep.mubr.msk.f32.mxu1 %vm10767_vm10, %v14719_v38  ;;  %9059 = vmatprep.mubr.msk.f32.mxu0 %vm10767_vm10, %v14719_v38 }
 0x553   :  { %v3905_v24 = vmul.f32 %v3857_v22, %v3744_v50  ;;  %v3722_v39 = vadd.f32 %v13342_v57, %v3692_v62  ;;  %v3450_v51 = vadd.f32 %v3408_v25, %v13320_v61  ;;  %v8770_v41 = vpop.f32.mrb[11].mxu1  ;;  %v3882_v62 = vpop.permute.xlu0 %3881 }
 0x554   :  { %v13508_v45 = vld [vmem:[#allocation3 + $0x69] sm:$0xff] }
 0x555   :  { %3928 = vst [vmem:[#allocation3 + $0x80] sm:$0xff] %v3905_v24  ;;  %v3745_v21 = vmax.f32 %v3722_v39, 0.0  ;;  %v3693_v9 = vadd.f32 %v14806_v6, %v3450_v51  ;;  %8956 = vmatmul.mubr.f32.gmra.mrb[46].mxu1 %v13508_v45  ;;  %9060 = vmatmul.mubr.f32.gmra.mrb[222].mxu0 %v3905_v24  ;;  %v3887_v39 = vpop.permute.xlu1 %3886  ;;  %v5059_v51 = vld [vmem:[#allocation9 + $0x280] sm:$0xff]  ;;  %v5060_v6 = vld [vmem:[#allocation9 + $0x288] sm:$0xff] }
 0x556   :  { %v3413_v63 = vpop.f32.mrb[12].mxu1  ;;  %8958 = vmatprep.mubr.msk.f32.mxu1 %vm10767_vm10, %v14719_v38  ;;  %9062 = vmatprep.mubr.msk.f32.mxu0 %vm10767_vm10, %v14719_v38 }
 0x557   :  { %v3906_v2 = vmul.f32 %v3862_v47, %v3745_v21  ;;  %v3723_v61 = vadd.f32 %v13342_v57, %v3693_v9  ;;  %v3451_v19 = vadd.f32 %v3413_v63, %v13324_v3  ;;  %v8773_v16 = vpop.f32.mrb[13].mxu1  ;;  %v4831_v9 = vld [vmem:[#allocation9 + $0x208] sm:$0xff]  ;;  %v10309_v47 = vpack.c.bf16 %v5060_v6, %v5059_v51  ;;  %v5073_v51 = vld [vmem:[#allocation9 + $0x2f0] sm:$0xff] }
 0x558   :  { %v13518_v32 = vld [vmem:[#allocation3 + $0x71] sm:$0xff]  ;;  %v4350_v16 = vld [vmem:[#allocation3 + $0x2] sm:$0xff] }
 0x559   :  { %3929 = vst [vmem:[#allocation3 + $0x88] sm:$0xff] %v3906_v2  ;;  %v3746_v10 = vmax.f32 %v3723_v61, 0.0  ;;  %v3694_v20 = vadd.f32 %v13066_v37, %v3451_v19  ;;  %8959 = vmatmul.mubr.f32.gmra.mrb[48].mxu1 %v13518_v32  ;;  %9063 = vmatmul.mubr.f32.gmra.mrb[224].mxu0 %v3906_v2  ;;  %v5061_v2 = vld [vmem:[#allocation9 + $0x290] sm:$0xff]  ;;  %v5062_v61 = vld [vmem:[#allocation9 + $0x298] sm:$0xff] }
 0x55a   :  { %v3418_v59 = vpop.f32.mrb[14].mxu1  ;;  %8961 = vmatprep.mubr.msk.f32.mxu1 %vm10767_vm10, %v14719_v38  ;;  %9065 = vmatprep.mubr.msk.f32.mxu0 %vm10767_vm10, %v14719_v38 }
 0x55b   :  { %v3907_v17 = vmul.f32 %v3867_v34, %v3746_v10  ;;  %v3724_v3 = vadd.f32 %v13342_v57, %v3694_v20  ;;  %v3452_v54 = vadd.f32 %v3418_v59, %v13328_v44  ;;  %v8776_v40 = vpop.f32.mrb[15].mxu1  ;;  %v4832_v10 = vld [vmem:[#allocation9 + $0x210] sm:$0xff]  ;;  %v4833_v20 = vld [vmem:[#allocation9 + $0x218] sm:$0xff]  ;;  %v10312_v34 = vpack.c.bf16 %v5062_v61, %v5061_v2  ;;  %v5064_v59 = vld [vmem:[#allocation9 + $0x2a8] sm:$0xff] }
 0x55c   :  { %v13528_v11 = vld [vmem:[#allocation3 + $0x79] sm:$0xff]  ;;  %v4835_v40 = vld [vmem:[#allocation9 + $0x228] sm:$0xff] }
 0x55d   :  { %3930 = vst [vmem:[#allocation3 + $0x90] sm:$0xff] %v3907_v17  ;;  %v3747_v37 = vmax.f32 %v3724_v3, 0.0  ;;  %v3695_v7 = vadd.f32 %v13075_v43, %v3452_v54  ;;  %8962 = vmatmul.mubr.f32.gmra.mrb[50].mxu1 %v13528_v11  ;;  %9066 = vmatmul.mubr.f32.gmra.mrb[226].mxu0 %v3907_v17  ;;  %v10288_v17 = vpack.c.bf16 %v4833_v20, %v4832_v10  ;;  %v13579_v3 = vld [vmem:[#allocation3 + $0xa] sm:$0xff]  ;;  %v4834_v54 = vld [vmem:[#allocation9 + $0x220] sm:$0xff]  ;;  %v13638_v2 = vld [vmem:[#allocation3 + $0x3a] sm:$0xff] }
 0x55e   :  { %v3423_v4 = vpop.f32.mrb[16].mxu1  ;;  %8964 = vmatprep.mubr.msk.f32.mxu1 %vm10767_vm10, %v14719_v38  ;;  %9068 = vmatprep.mubr.msk.f32.mxu0 %vm10767_vm10, %v14719_v38  ;;  %v13665_v61 = vld [vmem:[#allocation3 + $0x52] sm:$0xff]  ;;  %v5518_v10 = vld [vmem:[#allocation9 + $0x388] sm:$0xff]  ;;  %v5288_v20 = vld [vmem:[#allocation9 + $0x300] sm:$0xff] }
 0x55f   :  { %v3908_v18 = vmul.f32 %v3872_v33, %v3747_v37  ;;  %v3725_v44 = vadd.f32 %v13342_v57, %v3695_v7  ;;  %v3453_v5 = vadd.f32 %v3423_v4, %v13332_v8  ;;  %v8779_v58 = vpop.f32.mrb[17].mxu1  ;;  %v5066_v7 = vld [vmem:[#allocation9 + $0x2b8] sm:$0xff]  ;;  %v10291_v33 = vpack.c.bf16 %v4835_v40, %v4834_v54  ;;  %v13588_v4 = vld [vmem:[#allocation3 + $0x12] sm:$0xff] }
 0x560   :  { %v13538_v48 = vld [vmem:[#allocation3 + $0x81] sm:$0xff]  ;;  %v5068_v58 = vld [vmem:[#allocation9 + $0x2c8] sm:$0xff]  ;;  %v5519_v54 = vld [vmem:[#allocation9 + $0x390] sm:$0xff] }
 0x561   :  { %3931 = vst [vmem:[#allocation3 + $0x98] sm:$0xff] %v3908_v18  ;;  %v3748_v43 = vmax.f32 %v3725_v44, 0.0  ;;  %v3696_v31 = vadd.f32 %v13083_v35, %v3453_v5  ;;  %8965 = vmatmul.mubr.f32.gmra.mrb[52].mxu1 %v13538_v48  ;;  %9069 = vmatmul.mubr.f32.gmra.mrb[228].mxu0 %v3908_v18  ;;  %v4836_v18 = vld [vmem:[#allocation9 + $0x230] sm:$0xff]  ;;  %v4837_v44 = vld [vmem:[#allocation9 + $0x238] sm:$0xff]  ;;  %v5067_v5 = vld [vmem:[#allocation9 + $0x2c0] sm:$0xff] }
 0x562   :  { %v3428_v52 = vpop.f32.mrb[18].mxu1  ;;  %8967 = vmatprep.mubr.msk.f32.mxu1 %vm10767_vm10, %v14719_v38  ;;  %9071 = vmatprep.mubr.msk.f32.mxu0 %vm10767_vm10, %v14719_v38  ;;  %v5520_v40 = vld [vmem:[#allocation9 + $0x398] sm:$0xff] }
 0x563   :  { %v3909_v60 = vmul.f32 %v3877_v26, %v3748_v43  ;;  %v3726_v8 = vadd.f32 %v13342_v57, %v3696_v31  ;;  %v3454_v36 = vadd.f32 %v3428_v52, %v13336_v55  ;;  %v8782_v1 = vpop.f32.mrb[19].mxu1  ;;  %v10294_v43 = vpack.c.bf16 %v4837_v44, %v4836_v18  ;;  %v13598_v31 = vld [vmem:[#allocation3 + $0x1a] sm:$0xff]  ;;  %v4838_v26 = vld [vmem:[#allocation9 + $0x240] sm:$0xff]  ;;  %v4839_v52 = vld [vmem:[#allocation9 + $0x248] sm:$0xff] }
 0x564   :  { %v13548_v50 = vld [vmem:[#allocation3 + $0x89] sm:$0xff]  ;;  %v10360_v18 = vpack.c.bf16 %v5520_v40, %v5519_v54 }
 0x565   :  { %3932 = vst [vmem:[#allocation3 + $0xa0] sm:$0xff] %v3909_v60  ;;  %v3749_v35 = vmax.f32 %v3726_v8, 0.0  ;;  %v3697_v23 = vadd.f32 %v13091_v28, %v3454_v36  ;;  %8968 = vmatmul.mubr.f32.gmra.mrb[54].mxu1 %v13548_v50  ;;  %v5069_v60 = vld [vmem:[#allocation9 + $0x2d0] sm:$0xff]  ;;  %v5070_v8 = vld [vmem:[#allocation9 + $0x2d8] sm:$0xff]  ;;  %v10297_v36 = vpack.c.bf16 %v4839_v52, %v4838_v26  ;;  %v13608_v1 = vld [vmem:[#allocation3 + $0x22] sm:$0xff] }
 0x566   :  { %8970 = vmatprep.mubr.msk.f32.mxu1 %vm10767_vm10, %v14719_v38  ;;  %v5521_v44 = vld [vmem:[#allocation9 + $0x3a0] sm:$0xff]  ;;  %v5293_v26 = vld [vmem:[#allocation9 + $0x328] sm:$0xff]  ;;  %v5523_v52 = vld [vmem:[#allocation9 + $0x3b0] sm:$0xff] }
 0x567   :  { %v3910_v22 = vmul.f32 %v3882_v62, %v3749_v35  ;;  %v3727_v25 = vadd.f32 %v13342_v57, %v3697_v23  ;;  %v4830_v57 = vld [vmem:[#allocation9 + $0x200] sm:$0xff]  ;;  %v4840_v35 = vld [vmem:[#allocation9 + $0x250] sm:$0xff]  ;;  %v4841_v23 = vld [vmem:[#allocation9 + $0x258] sm:$0xff] }
 0x568   :  { %v13555_v24 = vld [vmem:[#allocation3 + $0x91] sm:$0xff]  ;;  %v10285_v19 = vpack.c.bf16 %v4831_v9, %v4830_v57  ;;  %v5071_v62 = vld [vmem:[#allocation9 + $0x2e0] sm:$0xff] }
 0x569   :  { %3933 = vst [vmem:[#allocation3 + $0xa8] sm:$0xff] %v3910_v22  ;;  %v3750_v55 = vmax.f32 %v3727_v25, 0.0  ;;  %8971 = vmatmul.mubr.f32.gmra.mrb[56].mxu1 %v13555_v24  ;;  %v5072_v22 = vld [vmem:[#allocation9 + $0x2e8] sm:$0xff]  ;;  %v10300_v25 = vpack.c.bf16 %v4841_v23, %v4840_v35  ;;  %v13628_v57 = vld [vmem:[#allocation3 + $0x32] sm:$0xff]  ;;  %v5295_v35 = vld [vmem:[#allocation9 + $0x338] sm:$0xff] }
 0x56a   :  { %8973 = vmatprep.mubr.msk.f32.mxu1 %vm10767_vm10, %v14719_v38  ;;  %v4844_v9 = vld [vmem:[#allocation9 + $0x270] sm:$0xff]  ;;  %v13806_v40 = vld [vmem:[#allocation3 + $0x43] sm:$0xff] }
 0x56b   :  { %v3911_v28 = vmul.f32 %v3887_v39, %v3750_v55  ;;  %v13618_v55 = vld [vmem:[#allocation3 + $0x2a] sm:$0xff]  ;;  %v4842_v39 = vld [vmem:[#allocation9 + $0x260] sm:$0xff] }
 0x56c   :  { %v13560_v41 = vld [vmem:[#allocation3 + $0x99] sm:$0xff]  ;;  %v3992_v63 = vld [vmem:[#allocation3 + $0xa1] sm:$0x3] }
 0x56d   :  { %v3955_v21 = vld [vmem:[#allocation3 + $0xa0] sm:$0x3]  ;;  %3934 = vst [vmem:[#allocation3 + $0xb0] sm:$0x3f] %v3911_v28  ;;  %8974 = vmatmul.mubr.f32.gmra.mrb[58].mxu1 %v13560_v41  ;;  %v4843_v28 = vld [vmem:[#allocation9 + $0x268] sm:$0xff] }
 0x56e   :  { %9072 = vmatmul.mubr.f32.gmra.mrb[230].mxu0 %v3955_v21  ;;  %8976 = vmatprep.mubr.msk.f32.mxu1 %vm10767_vm10, %v14719_v38  ;;  %v5074_v21 = vld [vmem:[#allocation9 + $0x2f8] sm:$0xff]  ;;  %v10303_v6 = vpack.c.bf16 %v4843_v28, %v4842_v39  ;;  %v5296_v39 = vld [vmem:[#allocation9 + $0x340] sm:$0xff]  ;;  %v5297_v28 = vld [vmem:[#allocation9 + $0x348] sm:$0xff] }
 0x56f   :  { %9201 = vmatprep.mubr.msk.f32.mxu0 %vm10767_vm10, %v14719_v38 }
 0x571   :  { %8977 = vmatmul.mubr.f32.gmra.mrb[60].mxu1 %v3992_v63 }
 0x572   :  { %9202 = vmatmul.mubr.f32.vlgmr.msra.gmra.mrb[232].mxu0 %v13376_v15  ;;  %9106 = vmatprep.mubr.msk.f32.mxu1 %vm10767_vm10, %v14719_v38  ;;  %v5063_v15 = vld [vmem:[#allocation9 + $0x2a0] sm:$0xff] }
 0x573   :  { %9204 = vmatprep.mubr.msk.f32.mxu0 %vm10767_vm10, %v14719_v38  ;;  %10310 = vmatpush3.bf16.msra.mxu0 %v10309_v47  ;;  %v10315_v37 = vpack.c.bf16 %v5064_v59, %v5063_v15  ;;  %v4845_v47 = vld [vmem:[#allocation9 + $0x278] sm:$0xff]  ;;  %v4370_v59 = vld [vmem:[#allocation3 + $0xa2] sm:$0x3] }
 0x574   :  { %10311 = vmatprep.subr.bf16.mxu0 %v14724_v42  ;;  %v10306_v63 = vpack.c.bf16 %v4845_v47, %v4844_v9  ;;  %v13786_v9 = vld [vmem:[#allocation3 + $0x33] sm:$0xff] }
 0x575   :  { %9107 = vmatmul.mubr.f32.vlgmr.msra.gmra.mrb[62].mxu1 %v4350_v16  ;;  %v5517_v16 = vld [vmem:[#allocation9 + $0x380] sm:$0xff]  ;;  %v5298_v47 = vld [vmem:[#allocation9 + $0x350] sm:$0xff] }
 0x576   :  { %9205 = vmatmul.mubr.f32.gmra.mrb[234].mxu0 %v13387_v13  ;;  %10286 = vmatpush3.bf16.msra.mxu1 %v10285_v19  ;;  %v5065_v13 = vld [vmem:[#allocation9 + $0x2b0] sm:$0xff]  ;;  %v13736_v19 = vld [vmem:[#allocation3 + $0x9a] sm:$0xff]  ;;  %v10357_v15 = vpack.c.bf16 %v5518_v10, %v5517_v16 }
 0x577   :  { %9109 = vmatprep.mubr.msk.f32.mxu1 %vm10767_vm10, %v14719_v38  ;;  %9207 = vmatprep.mubr.msk.f32.mxu0 %vm10767_vm10, %v14719_v38  ;;  %v13796_v10 = vld [vmem:[#allocation3 + $0x3b] sm:$0xff] }
 0x578   :  { %10287 = vmatprep.subr.bf16.mxu1 %v14724_v42  ;;  %10313 = vmatpush3.bf16.msra.mxu0 %v10312_v34  ;;  %v5289_v34 = vld [vmem:[#allocation9 + $0x308] sm:$0xff] }
 0x579   :  { %9110 = vmatmul.mubr.f32.gmra.mrb[64].mxu1 %v13579_v3  ;;  %10314 = vmatprep.subr.bf16.mxu0 %v14724_v42 }
 0x57a   :  { %9208 = vmatmul.mubr.f32.gmra.mrb[236].mxu0 %v13398_v12  ;;  %9112 = vmatprep.mubr.msk.f32.mxu1 %vm10767_vm10, %v14719_v38  ;;  %v10318_v12 = vpack.c.bf16 %v5066_v7, %v5065_v13  ;;  %v13747_v13 = vld [vmem:[#allocation3 + $0x13] sm:$0xff] }
 0x57b   :  { %9210 = vmatprep.mubr.msk.f32.mxu0 %vm10767_vm10, %v14719_v38  ;;  %10289 = vmatpush3.bf16.msra.mxu1 %v10288_v17  ;;  %v5037_v17 = vld [vmem:[#allocation3 + $0xb] sm:$0xff] }
 0x57c   :  { %10290 = vmatprep.subr.bf16.mxu1 %v14724_v42  ;;  %10316 = vmatpush3.bf16.msra.mxu0 %v10315_v37  ;;  %v10333_v37 = vpack.c.bf16 %v5289_v34, %v5288_v20  ;;  %v5290_v7 = vld [vmem:[#allocation9 + $0x310] sm:$0xff]  ;;  %v5300_v20 = vld [vmem:[#allocation9 + $0x360] sm:$0xff]  ;;  %v5301_v34 = vld [vmem:[#allocation9 + $0x368] sm:$0xff] }
 0x57d   :  { %9113 = vmatmul.mubr.f32.gmra.mrb[66].mxu1 %v13588_v4  ;;  %10317 = vmatprep.subr.bf16.mxu0 %v14724_v42  ;;  %v10351_v54 = vpack.c.bf16 %v5301_v34, %v5300_v20 }
 0x57e   :  { %9211 = vmatmul.mubr.f32.gmra.mrb[238].mxu0 %v13410_v30  ;;  %9115 = vmatprep.mubr.msk.f32.mxu1 %vm10767_vm10, %v14719_v38  ;;  %v10321_v30 = vpack.c.bf16 %v5068_v58, %v5067_v5  ;;  %v13757_v58 = vld [vmem:[#allocation3 + $0x1b] sm:$0xff] }
 0x57f   :  { %9213 = vmatprep.mubr.msk.f32.mxu0 %vm10767_vm10, %v14719_v38  ;;  %10292 = vmatpush3.bf16.msra.mxu1 %v10291_v33  ;;  %v5291_v33 = vld [vmem:[#allocation9 + $0x318] sm:$0xff] }
 0x580   :  { %10293 = vmatprep.subr.bf16.mxu1 %v14724_v42  ;;  %10319 = vmatpush3.bf16.msra.mxu0 %v10318_v12  ;;  %v5522_v12 = vld [vmem:[#allocation9 + $0x3a8] sm:$0xff]  ;;  %v10336_v5 = vpack.c.bf16 %v5291_v33, %v5290_v7  ;;  %v5303_v7 = vld [vmem:[#allocation9 + $0x378] sm:$0xff] }
 0x581   :  { %9116 = vmatmul.mubr.f32.gmra.mrb[68].mxu1 %v13598_v31  ;;  %10320 = vmatprep.subr.bf16.mxu0 %v14724_v42 }
 0x582   :  { %9214 = vmatmul.mubr.f32.gmra.mrb[240].mxu0 %v13422_v27  ;;  %9118 = vmatprep.mubr.msk.f32.mxu1 %vm10767_vm10, %v14719_v38  ;;  %v10324_v27 = vpack.c.bf16 %v5070_v8, %v5069_v60  ;;  %v13766_v8 = vld [vmem:[#allocation3 + $0x23] sm:$0xff] }
 0x583   :  { %9216 = vmatprep.mubr.msk.f32.mxu0 %vm10767_vm10, %v14719_v38  ;;  %10295 = vmatpush3.bf16.msra.mxu1 %v10294_v43  ;;  %v5292_v43 = vld [vmem:[#allocation9 + $0x320] sm:$0xff] }
 0x584   :  { %10296 = vmatprep.subr.bf16.mxu1 %v14724_v42  ;;  %10322 = vmatpush3.bf16.msra.mxu0 %v10321_v30  ;;  %v5524_v30 = vld [vmem:[#allocation9 + $0x3b8] sm:$0xff]  ;;  %v10339_v60 = vpack.c.bf16 %v5293_v26, %v5292_v43 }
 0x585   :  { %9119 = vmatmul.mubr.f32.gmra.mrb[70].mxu1 %v13608_v1  ;;  %10323 = vmatprep.subr.bf16.mxu0 %v14724_v42  ;;  %v10366_v23 = vpack.c.bf16 %v5524_v30, %v5523_v52  ;;  %v13834_v26 = vld [vmem:[#allocation3 + $0x5b] sm:$0xff]  ;;  %v13842_v30 = vld [vmem:[#allocation3 + $0x63] sm:$0xff] }
 0x586   :  { %9217 = vmatmul.mubr.f32.gmra.mrb[242].mxu0 %v13434_v56  ;;  %9121 = vmatprep.mubr.msk.f32.mxu1 %vm10767_vm10, %v14719_v38  ;;  %v10327_v56 = vpack.c.bf16 %v5072_v22, %v5071_v62  ;;  %v5526_v62 = vld [vmem:[#allocation9 + $0x3c8] sm:$0xff] }
 0x587   :  { %9219 = vmatprep.mubr.msk.f32.mxu0 %vm10767_vm10, %v14719_v38  ;;  %10298 = vmatpush3.bf16.msra.mxu1 %v10297_v36  ;;  %v5294_v36 = vld [vmem:[#allocation9 + $0x330] sm:$0xff] }
 0x588   :  { %10299 = vmatprep.subr.bf16.mxu1 %v14724_v42  ;;  %10325 = vmatpush3.bf16.msra.mxu0 %v10324_v27  ;;  %v5525_v27 = vld [vmem:[#allocation9 + $0x3c0] sm:$0xff]  ;;  %v10342_v22 = vpack.c.bf16 %v5295_v35, %v5294_v36 }
 0x589   :  { %9122 = vmatmul.mubr.f32.gmra.mrb[72].mxu1 %v13618_v55  ;;  %10326 = vmatprep.subr.bf16.mxu0 %v14724_v42 }
 0x58a   :  { %9220 = vmatmul.mubr.f32.gmra.mrb[244].mxu0 %v13446_v46  ;;  %9124 = vmatprep.mubr.msk.f32.mxu1 %vm10767_vm10, %v14719_v38  ;;  %v10330_v46 = vpack.c.bf16 %v5074_v21, %v5073_v51  ;;  %v5527_v51 = vld [vmem:[#allocation9 + $0x3d0] sm:$0xff]  ;;  %v5528_v21 = vld [vmem:[#allocation9 + $0x3d8] sm:$0xff] }
 0x58b   :  { %9222 = vmatprep.mubr.msk.f32.mxu0 %vm10767_vm10, %v14719_v38  ;;  %10301 = vmatpush3.bf16.msra.mxu1 %v10300_v25  ;;  %v13776_v25 = vld [vmem:[#allocation3 + $0x2b] sm:$0xff] }
 0x58c   :  { %10302 = vmatprep.subr.bf16.mxu1 %v14724_v42  ;;  %10328 = vmatpush3.bf16.msra.mxu0 %v10327_v56  ;;  %v10369_v56 = vpack.c.bf16 %v5526_v62, %v5525_v27 }
 0x58d   :  { %9125 = vmatmul.mubr.f32.gmra.mrb[74].mxu1 %v13628_v57  ;;  %10329 = vmatprep.subr.bf16.mxu0 %v14724_v42 }
 0x58e   :  { %9223 = vmatmul.mubr.f32.gmra.mrb[246].mxu0 %v13457_v29  ;;  %9127 = vmatprep.mubr.msk.f32.mxu1 %vm10767_vm10, %v14719_v38  ;;  %v13648_v29 = vld [vmem:[#allocation3 + $0x42] sm:$0xff] }
 0x58f   :  { %9225 = vmatprep.mubr.msk.f32.mxu0 %vm10767_vm10, %v14719_v38  ;;  %10304 = vmatpush3.bf16.msra.mxu1 %v10303_v6  ;;  %v10345_v6 = vpack.c.bf16 %v5297_v28, %v5296_v39 }
 0x590   :  { %10305 = vmatprep.subr.bf16.mxu1 %v14724_v42  ;;  %10331 = vmatpush3.bf16.msra.mxu0 %v10330_v46  ;;  %v5299_v46 = vld [vmem:[#allocation9 + $0x358] sm:$0xff] }
 0x591   :  { %9128 = vmatmul.mubr.f32.gmra.mrb[76].mxu1 %v13638_v2  ;;  %10356 = vmatprep.subr.bf16.mxu0 %v14724_v42  ;;  %v10348_v16 = vpack.c.bf16 %v5299_v46, %v5298_v47 }
 0x592   :  { %9226 = vmatmul.mubr.f32.gmra.mrb[248].mxu0 %v13468_v14  ;;  %9130 = vmatprep.mubr.msk.f32.mxu1 %vm10767_vm10, %v14719_v38  ;;  %v13657_v14 = vld [vmem:[#allocation3 + $0x4a] sm:$0xff] }
 0x593   :  { %9228 = vmatprep.mubr.msk.f32.mxu0 %vm10767_vm10, %v14719_v38  ;;  %10307 = vmatpush3.bf16.msra.mxu1 %v10306_v63  ;;  %v10372_v63 = vpack.c.bf16 %v5528_v21, %v5527_v51 }
 0x594   :  { %10332 = vmatprep.subr.bf16.mxu1 %v14724_v42 }
 0x595   :  { %9131 = vmatmul.mubr.f32.gmra.mrb[78].mxu1 %v13648_v29 }
 0x596   :  { %9229 = vmatmul.mubr.f32.gmra.mrb[250].mxu0 %v13478_v0  ;;  %9133 = vmatprep.mubr.msk.f32.mxu1 %vm10767_vm10, %v14719_v38  ;;  %v13673_v0 = vld [vmem:[#allocation3 + $0x5a] sm:$0xff] }
 0x597   :  { %9231 = vmatprep.mubr.msk.f32.mxu0 %vm10767_vm10, %v14719_v38 }
 0x599   :  { %9134 = vmatmul.mubr.f32.gmra.mrb[80].mxu1 %v13657_v14 }
 0x59a   :  { %9232 = vmatmul.mubr.f32.gmra.mrb[252].mxu0 %v13488_v49  ;;  %9136 = vmatprep.mubr.msk.f32.mxu1 %vm10767_vm10, %v14719_v38  ;;  %v13681_v49 = vld [vmem:[#allocation3 + $0x62] sm:$0xff] }
 0x59b   :  { %9234 = vmatprep.mubr.msk.f32.mxu0 %vm10767_vm10, %v14719_v38 }
 0x59d   :  { %9137 = vmatmul.mubr.f32.gmra.mrb[82].mxu1 %v13665_v61 }
 0x59e   :  { %9235 = vmatmul.mubr.f32.gmra.mrb[254].mxu0 %v13498_v53  ;;  %9139 = vmatprep.mubr.msk.f32.mxu1 %vm10767_vm10, %v14719_v38  ;;  %v13689_v53 = vld [vmem:[#allocation3 + $0x6a] sm:$0xff] }
 0x59f   :  { %9237 = vmatprep.mubr.msk.f32.mxu0 %vm10767_vm10, %v14719_v38 }
 0x5a1   :  { %9140 = vmatmul.mubr.f32.gmra.mrb[84].mxu1 %v13673_v0 }
 0x5a2   :  { %9238 = vmatmul.mubr.f32.gmra.mrb[0].mxu0 %v13508_v45  ;;  %9142 = vmatprep.mubr.msk.f32.mxu1 %vm10767_vm10, %v14719_v38  ;;  %v13697_v45 = vld [vmem:[#allocation3 + $0x72] sm:$0xff] }
 0x5a3   :  { %9240 = vmatprep.mubr.msk.f32.mxu0 %vm10767_vm10, %v14719_v38 }
 0x5a5   :  { %9143 = vmatmul.mubr.f32.gmra.mrb[86].mxu1 %v13681_v49 }
 0x5a6   :  { %9241 = vmatmul.mubr.f32.gmra.mrb[2].mxu0 %v13518_v32  ;;  %9145 = vmatprep.mubr.msk.f32.mxu1 %vm10767_vm10, %v14719_v38  ;;  %v13705_v32 = vld [vmem:[#allocation3 + $0x7a] sm:$0xff] }
 0x5a7   :  { %9243 = vmatprep.mubr.msk.f32.mxu0 %vm10767_vm10, %v14719_v38 }
 0x5a9   :  { %9146 = vmatmul.mubr.f32.gmra.mrb[88].mxu1 %v13689_v53 }
 0x5aa   :  { %9244 = vmatmul.mubr.f32.gmra.mrb[4].mxu0 %v13528_v11  ;;  %9148 = vmatprep.mubr.msk.f32.mxu1 %vm10767_vm10, %v14719_v38  ;;  %v13713_v11 = vld [vmem:[#allocation3 + $0x82] sm:$0xff] }
 0x5ab   :  { %9246 = vmatprep.mubr.msk.f32.mxu0 %vm10767_vm10, %v14719_v38 }
 0x5ad   :  { %9149 = vmatmul.mubr.f32.gmra.mrb[90].mxu1 %v13697_v45 }
 0x5ae   :  { %9247 = vmatmul.mubr.f32.gmra.mrb[6].mxu0 %v13538_v48  ;;  %9151 = vmatprep.mubr.msk.f32.mxu1 %vm10767_vm10, %v14719_v38  ;;  %v13721_v48 = vld [vmem:[#allocation3 + $0x8a] sm:$0xff] }
 0x5af   :  { %9249 = vmatprep.mubr.msk.f32.mxu0 %vm10767_vm10, %v14719_v38 }
 0x5b1   :  { %9152 = vmatmul.mubr.f32.gmra.mrb[92].mxu1 %v13705_v32 }
 0x5b2   :  { %9250 = vmatmul.mubr.f32.gmra.mrb[8].mxu0 %v13548_v50  ;;  %9154 = vmatprep.mubr.msk.f32.mxu1 %vm10767_vm10, %v14719_v38  ;;  %v13729_v50 = vld [vmem:[#allocation3 + $0x92] sm:$0xff] }
 0x5b3   :  { %9252 = vmatprep.mubr.msk.f32.mxu0 %vm10767_vm10, %v14719_v38 }
 0x5b5   :  { %9155 = vmatmul.mubr.f32.gmra.mrb[94].mxu1 %v13713_v11 }
 0x5b6   :  { %9253 = vmatmul.mubr.f32.gmra.mrb[10].mxu0 %v13555_v24  ;;  %9157 = vmatprep.mubr.msk.f32.mxu1 %vm10767_vm10, %v14719_v38  ;;  %v4598_v24 = vld [vmem:[#allocation3 + $0xa1] sm:$0xff] }
 0x5b7   :  { %9255 = vmatprep.mubr.msk.f32.mxu0 %vm10767_vm10, %v14719_v38 }
 0x5b9   :  { %9158 = vmatmul.mubr.f32.gmra.mrb[96].mxu1 %v13721_v48 }
 0x5ba   :  { %9256 = vmatmul.mubr.f32.gmra.mrb[12].mxu0 %v13560_v41  ;;  %9160 = vmatprep.mubr.msk.f32.mxu1 %vm10767_vm10, %v14719_v38  ;;  %v4599_v41 = vld [vmem:[#allocation3 + $0xa9] sm:$0x3] }
 0x5bb   :  { %9258 = vmatprep.mubr.msk.f32.mxu0 %vm10767_vm10, %v14719_v38 }
 0x5bd   :  { %9161 = vmatmul.mubr.f32.gmra.mrb[98].mxu1 %v13729_v50 }
 0x5be   :  { %9259 = vmatmul.mubr.f32.gmra.mrb[14].mxu0 %v4598_v24  ;;  %9163 = vmatprep.mubr.msk.f32.mxu1 %vm10767_vm10, %v14719_v38  ;;  %v5529_v24 = vld [vmem:[#allocation9 + $0x3e0] sm:$0xff] }
 0x5bf   :  { %9261 = vmatprep.mubr.msk.f32.mxu0 %vm10767_vm10, %v14719_v38 }
 0x5c1   :  { %9164 = vmatmul.mubr.f32.gmra.mrb[100].mxu1 %v13736_v19 }
 0x5c2   :  { %9262 = vmatmul.mubr.f32.gmra.mrb[16].mxu0 %v4599_v41  ;;  %9166 = vmatprep.mubr.msk.f32.mxu1 %vm10767_vm10, %v14719_v38  ;;  %v5530_v41 = vld [vmem:[#allocation9 + $0x3e8] sm:$0xff] }
 0x5c3   :  { %9391 = vmatprep.mubr.msk.f32.mxu0 %vm10767_vm10, %v14719_v38 }
 0x5c5   :  { %9167 = vmatmul.mubr.f32.gmra.mrb[102].mxu1 %v4370_v59  ;;  %v5531_v59 = vld [vmem:[#allocation9 + $0x3f0] sm:$0xff] }
 0x5c6   :  { %9392 = vmatmul.mubr.f32.vlgmr.msra.gmra.mrb[18].mxu0 %v5037_v17  ;;  %9296 = vmatprep.mubr.msk.f32.mxu1 %vm10767_vm10, %v14719_v38  ;;  %v5532_v17 = vld [vmem:[#allocation9 + $0x3f8] sm:$0xff] }
 0x5c7   :  { %9394 = vmatprep.mubr.msk.f32.mxu0 %vm10767_vm10, %v14719_v38  ;;  %10358 = vmatpush3.bf16.msra.mxu0 %v10357_v15  ;;  %v10375_v15 = vpack.c.bf16 %v5530_v41, %v5529_v24  ;;  %v10378_v33 = vpack.c.bf16 %v5532_v17, %v5531_v59 }
 0x5c8   :  { %10359 = vmatprep.subr.bf16.mxu0 %v14724_v42 }
 0x5c9   :  { %9297 = vmatmul.mubr.f32.vlgmr.msra.gmra.mrb[104].mxu1 %v13579_v3  ;;  %v10363_v3 = vpack.c.bf16 %v5522_v12, %v5521_v44  ;;  %v13816_v44 = vld [vmem:[#allocation3 + $0x4b] sm:$0xff]  ;;  %v13825_v12 = vld [vmem:[#allocation3 + $0x53] sm:$0xff] }
 0x5ca   :  { %9395 = vmatmul.mubr.f32.gmra.mrb[20].mxu0 %v13747_v13  ;;  %10334 = vmatpush3.bf16.msra.mxu1 %v10333_v37  ;;  %v5302_v37 = vld [vmem:[#allocation9 + $0x370] sm:$0xff] }
 0x5cb   :  { %9299 = vmatprep.mubr.msk.f32.mxu1 %vm10767_vm10, %v14719_v38  ;;  %9397 = vmatprep.mubr.msk.f32.mxu0 %vm10767_vm10, %v14719_v38 }
 0x5cc   :  { %10335 = vmatprep.subr.bf16.mxu1 %v14724_v42  ;;  %10361 = vmatpush3.bf16.msra.mxu0 %v10360_v18  ;;  %v10354_v18 = vpack.c.bf16 %v5303_v7, %v5302_v37 }
 0x5cd   :  { %9300 = vmatmul.mubr.f32.gmra.mrb[106].mxu1 %v13588_v4  ;;  %10362 = vmatprep.subr.bf16.mxu0 %v14724_v42 }
 0x5ce   :  { %9398 = vmatmul.mubr.f32.gmra.mrb[22].mxu0 %v13757_v58  ;;  %9302 = vmatprep.mubr.msk.f32.mxu1 %vm10767_vm10, %v14719_v38 }
 0x5cf   :  { %9400 = vmatprep.mubr.msk.f32.mxu0 %vm10767_vm10, %v14719_v38  ;;  %10337 = vmatpush3.bf16.msra.mxu1 %v10336_v5 }
 0x5d0   :  { %10338 = vmatprep.subr.bf16.mxu1 %v14724_v42  ;;  %10364 = vmatpush3.bf16.msra.mxu0 %v10363_v3 }
 0x5d1   :  { %9303 = vmatmul.mubr.f32.gmra.mrb[108].mxu1 %v13598_v31  ;;  %10365 = vmatprep.subr.bf16.mxu0 %v14724_v42 }
 0x5d2   :  { %9401 = vmatmul.mubr.f32.gmra.mrb[24].mxu0 %v13766_v8  ;;  %9305 = vmatprep.mubr.msk.f32.mxu1 %vm10767_vm10, %v14719_v38 }
 0x5d3   :  { %9403 = vmatprep.mubr.msk.f32.mxu0 %vm10767_vm10, %v14719_v38  ;;  %10340 = vmatpush3.bf16.msra.mxu1 %v10339_v60 }
 0x5d4   :  { %10341 = vmatprep.subr.bf16.mxu1 %v14724_v42  ;;  %10367 = vmatpush3.bf16.msra.mxu0 %v10366_v23  ;;  %v13850_v23 = vld [vmem:[#allocation3 + $0x6b] sm:$0xff] }
 0x5d5   :  { %9306 = vmatmul.mubr.f32.gmra.mrb[110].mxu1 %v13608_v1  ;;  %10368 = vmatprep.subr.bf16.mxu0 %v14724_v42 }
 0x5d6   :  { %9404 = vmatmul.mubr.f32.gmra.mrb[26].mxu0 %v13776_v25  ;;  %9308 = vmatprep.mubr.msk.f32.mxu1 %vm10767_vm10, %v14719_v38 }
 0x5d7   :  { %9406 = vmatprep.mubr.msk.f32.mxu0 %vm10767_vm10, %v14719_v38  ;;  %10343 = vmatpush3.bf16.msra.mxu1 %v10342_v22 }
 0x5d8   :  { %10344 = vmatprep.subr.bf16.mxu1 %v14724_v42  ;;  %10370 = vmatpush3.bf16.msra.mxu0 %v10369_v56  ;;  %v13860_v56 = vld [vmem:[#allocation3 + $0x73] sm:$0xff] }
 0x5d9   :  { %9309 = vmatmul.mubr.f32.gmra.mrb[112].mxu1 %v13618_v55  ;;  %10371 = vmatprep.subr.bf16.mxu0 %v14724_v42 }
 0x5da   :  { %9407 = vmatmul.mubr.f32.gmra.mrb[28].mxu0 %v13786_v9  ;;  %9311 = vmatprep.mubr.msk.f32.mxu1 %vm10767_vm10, %v14719_v38 }
 0x5db   :  { %9409 = vmatprep.mubr.msk.f32.mxu0 %vm10767_vm10, %v14719_v38  ;;  %10346 = vmatpush3.bf16.msra.mxu1 %v10345_v6 }
 0x5dc   :  { %10347 = vmatprep.subr.bf16.mxu1 %v14724_v42  ;;  %10373 = vmatpush3.bf16.msra.mxu0 %v10372_v63  ;;  %v13870_v63 = vld [vmem:[#allocation3 + $0x7b] sm:$0xff] }
 0x5dd   :  { %9312 = vmatmul.mubr.f32.gmra.mrb[114].mxu1 %v13628_v57  ;;  %10374 = vmatprep.subr.bf16.mxu0 %v14724_v42 }
 0x5de   :  { %9410 = vmatmul.mubr.f32.gmra.mrb[30].mxu0 %v13796_v10  ;;  %9314 = vmatprep.mubr.msk.f32.mxu1 %vm10767_vm10, %v14719_v38 }
 0x5df   :  { %9412 = vmatprep.mubr.msk.f32.mxu0 %vm10767_vm10, %v14719_v38  ;;  %10349 = vmatpush3.bf16.msra.mxu1 %v10348_v16 }
 0x5e0   :  { %10350 = vmatprep.subr.bf16.mxu1 %v14724_v42  ;;  %10376 = vmatpush3.bf16.msra.mxu0 %v10375_v15  ;;  %v13880_v15 = vld [vmem:[#allocation3 + $0x83] sm:$0xff] }
 0x5e1   :  { %9315 = vmatmul.mubr.f32.gmra.mrb[116].mxu1 %v13638_v2  ;;  %10377 = vmatprep.subr.bf16.mxu0 %v14724_v42 }
 0x5e2   :  { %9413 = vmatmul.mubr.f32.gmra.mrb[32].mxu0 %v13806_v40  ;;  %9317 = vmatprep.mubr.msk.f32.mxu1 %vm10767_vm10, %v14719_v38 }
 0x5e3   :  { %9415 = vmatprep.mubr.msk.f32.mxu0 %vm10767_vm10, %v14719_v38  ;;  %10352 = vmatpush3.bf16.msra.mxu1 %v10351_v54 }
 0x5e4   :  { %10353 = vmatprep.subr.bf16.mxu1 %v14724_v42  ;;  %10379 = vmatpush3.bf16.msra.mxu0 %v10378_v33  ;;  %v13890_v33 = vld [vmem:[#allocation3 + $0x8b] sm:$0xff] }
 0x5e5   :  { %9318 = vmatmul.mubr.f32.gmra.mrb[118].mxu1 %v13648_v29 }
 0x5e6   :  { %9416 = vmatmul.mubr.f32.gmra.mrb[34].mxu0 %v13816_v44  ;;  %9320 = vmatprep.mubr.msk.f32.mxu1 %vm10767_vm10, %v14719_v38 }
 0x5e7   :  { %9418 = vmatprep.mubr.msk.f32.mxu0 %vm10767_vm10, %v14719_v38  ;;  %10355 = vmatpush3.bf16.msra.mxu1 %v10354_v18 }
 0x5e8   :  { %v4246_v5 = vpop.f32.mrb[190].mxu0  ;;  %10380 = vmatprep.subr.bf16.mxu1 %v14724_v42 }
 0x5e9   :  { %9321 = vmatmul.mubr.f32.gmra.mrb[120].mxu1 %v13657_v14  ;;  %v9013_v43 = vpop.f32.mrb[191].mxu0 }
 0x5ea   :  { %9419 = vmatmul.mubr.f32.gmra.mrb[36].mxu0 %v13825_v12  ;;  %9323 = vmatprep.mubr.msk.f32.mxu1 %vm10767_vm10, %v14719_v38 }
 0x5eb   :  { %9421 = vmatprep.mubr.msk.f32.mxu0 %vm10767_vm10, %v14719_v38 }
 0x5ec   :  { %v4251_v3 = vpop.f32.mrb[192].mxu0 }
 0x5ed   :  { %9324 = vmatmul.mubr.f32.gmra.mrb[122].mxu1 %v13665_v61  ;;  %v9016_v52 = vpop.f32.mrb[193].mxu0 }
 0x5ee   :  { %9422 = vmatmul.mubr.f32.gmra.mrb[38].mxu0 %v13834_v26  ;;  %9326 = vmatprep.mubr.msk.f32.mxu1 %vm10767_vm10, %v14719_v38 }
 0x5ef   :  { %9424 = vmatprep.mubr.msk.f32.mxu0 %vm10767_vm10, %v14719_v38 }
 0x5f0   :  { %v4256_v60 = vpop.f32.mrb[194].mxu0 }
 0x5f1   :  { %9327 = vmatmul.mubr.f32.gmra.mrb[124].mxu1 %v13673_v0  ;;  %v9019_v36 = vpop.f32.mrb[195].mxu0 }
 0x5f2   :  { %9425 = vmatmul.mubr.f32.gmra.mrb[40].mxu0 %v13842_v30  ;;  %9329 = vmatprep.mubr.msk.f32.mxu1 %vm10767_vm10, %v14719_v38 }
 0x5f3   :  { %9427 = vmatprep.mubr.msk.f32.mxu0 %vm10767_vm10, %v14719_v38 }
 0x5f4   :  { %v4076_v35 = vpop.f32.mrb[20].mxu1  ;;  %v4261_v27 = vpop.f32.mrb[196].mxu0 }
 0x5f5   :  { %v13852_v62 = vadd.f32 %v4246_v5, %v4076_v35  ;;  %v8918_v22 = vpop.f32.mrb[21].mxu1  ;;  %9330 = vmatmul.mubr.f32.gmra.mrb[126].mxu1 %v13681_v49  ;;  %v9022_v39 = vpop.f32.mrb[197].mxu0 }
 0x5f6   :  { %9428 = vmatmul.mubr.f32.gmra.mrb[42].mxu0 %v13850_v23  ;;  %9332 = vmatprep.mubr.msk.f32.mxu1 %vm10767_vm10, %v14719_v38 }
 0x5f7   :  { %9430 = vmatprep.mubr.msk.f32.mxu0 %vm10767_vm10, %v14719_v38 }
 0x5f8   :  { %v4081_v28 = vpop.f32.mrb[22].mxu1  ;;  %v4266_v51 = vpop.f32.mrb[198].mxu0 }
 0x5f9   :  { %v13862_v21 = vadd.f32 %v4251_v3, %v4081_v28  ;;  %v8921_v6 = vpop.f32.mrb[23].mxu1  ;;  %9333 = vmatmul.mubr.f32.gmra.mrb[128].mxu1 %v13689_v53  ;;  %v9025_v47 = vpop.f32.mrb[199].mxu0  ;;  %v13910_v28 = vld [vmem:[#allocation3 + $0x9b] sm:$0xff] }
 0x5fa   :  { %9431 = vmatmul.mubr.f32.gmra.mrb[44].mxu0 %v13860_v56  ;;  %9335 = vmatprep.mubr.msk.f32.mxu1 %vm10767_vm10, %v14719_v38 }
 0x5fb   :  { %9433 = vmatprep.mubr.msk.f32.mxu0 %vm10767_vm10, %v14719_v38 }
 0x5fc   :  { %v4086_v46 = vpop.f32.mrb[24].mxu1  ;;  %v4271_v24 = vpop.f32.mrb[200].mxu0 }
 0x5fd   :  { %v13872_v41 = vadd.f32 %v4256_v60, %v4086_v46  ;;  %v8924_v16 = vpop.f32.mrb[25].mxu1  ;;  %9336 = vmatmul.mubr.f32.gmra.mrb[130].mxu1 %v13697_v45  ;;  %v9028_v20 = vpop.f32.mrb[201].mxu0  ;;  %v13900_v60 = vld [vmem:[#allocation3 + $0x93] sm:$0xff] }
 0x5fe   :  { %9434 = vmatmul.mubr.f32.gmra.mrb[46].mxu0 %v13870_v63  ;;  %9338 = vmatprep.mubr.msk.f32.mxu1 %vm10767_vm10, %v14719_v38  ;;  %v13920_v16 = vld [vmem:[#allocation3 + $0xa3] sm:$0xff] }
 0x5ff   :  { %9436 = vmatprep.mubr.msk.f32.mxu0 %vm10767_vm10, %v14719_v38 }
 0x600   :  { %v4091_v34 = vpop.f32.mrb[26].mxu1  ;;  %v4276_v59 = vpop.f32.mrb[202].mxu0 }
 0x601   :  { %v13882_v17 = vadd.f32 %v4261_v27, %v4091_v34  ;;  %v8927_v54 = vpop.f32.mrb[27].mxu1  ;;  %9339 = vmatmul.mubr.f32.gmra.mrb[132].mxu1 %v13705_v32  ;;  %v9031_v37 = vpop.f32.mrb[203].mxu0 }
 0x602   :  { %9437 = vmatmul.mubr.f32.gmra.mrb[48].mxu0 %v13880_v15  ;;  %9341 = vmatprep.mubr.msk.f32.mxu1 %vm10767_vm10, %v14719_v38 }
 0x603   :  { %9439 = vmatprep.mubr.msk.f32.mxu0 %vm10767_vm10, %v14719_v38 }
 0x604   :  { %v4096_v7 = vpop.f32.mrb[28].mxu1  ;;  %v4281_v18 = vpop.f32.mrb[204].mxu0 }
 0x605   :  { %v13892_v5 = vadd.f32 %v4266_v51, %v4096_v7  ;;  %v8930_v43 = vpop.f32.mrb[29].mxu1  ;;  %9342 = vmatmul.mubr.f32.gmra.mrb[134].mxu1 %v13713_v11  ;;  %v9034_v3 = vpop.f32.mrb[205].mxu0  ;;  %v13930_v7 = vld [vmem:[#allocation3 + $0xa2] sm:$0xff] }
 0x606   :  { %9440 = vmatmul.mubr.f32.gmra.mrb[50].mxu0 %v13890_v33  ;;  %9344 = vmatprep.mubr.msk.f32.mxu1 %vm10767_vm10, %v14719_v38  ;;  %14807 = vst [vmem:[#allocation16_spill] sm:$0xff] %v13930_v7  ;;  %v5057_v43 = vld [vmem:[#allocation3 + $0xab] sm:$0x3] }
 0x607   :  { %9442 = vmatprep.mubr.msk.f32.mxu0 %vm10767_vm10, %v14719_v38 }
 0x608   :  { %v4101_v52 = vpop.f32.mrb[30].mxu1  ;;  %v4286_v36 = vpop.f32.mrb[206].mxu0 }
 0x609   :  { %v13902_v35 = vadd.f32 %v4271_v24, %v4101_v52  ;;  %v8933_v27 = vpop.f32.mrb[31].mxu1  ;;  %9345 = vmatmul.mubr.f32.gmra.mrb[136].mxu1 %v13721_v48  ;;  %v9037_v22 = vpop.f32.mrb[207].mxu0 }
 0x60a   :  { %9443 = vmatmul.mubr.f32.gmra.mrb[52].mxu0 %v13900_v60  ;;  %9347 = vmatprep.mubr.msk.f32.mxu1 %vm10767_vm10, %v14719_v38  ;;  %v5746_v22 = vld [vmem:[#allocation9 + $0x400] sm:$0xff] }
 0x60b   :  { %9445 = vmatprep.mubr.msk.f32.mxu0 %vm10767_vm10, %v14719_v38 }
 0x60c   :  { %v4106_v39 = vpop.f32.mrb[32].mxu1  ;;  %v4291_v51 = vpop.f32.mrb[208].mxu0 }
 0x60d   :  { %v13912_v6 = vadd.f32 %v4276_v59, %v4106_v39  ;;  %v8936_v47 = vpop.f32.mrb[33].mxu1  ;;  %9348 = vmatmul.mubr.f32.gmra.mrb[138].mxu1 %v13729_v50  ;;  %v9040_v46 = vpop.f32.mrb[209].mxu0  ;;  %v5747_v39 = vld [vmem:[#allocation9 + $0x408] sm:$0xff] }
 0x60e   :  { %9446 = vmatmul.mubr.f32.gmra.mrb[54].mxu0 %v13910_v28  ;;  %9350 = vmatprep.mubr.msk.f32.mxu1 %vm10767_vm10, %v14719_v38  ;;  %v4828_v46 = vld [vmem:[#allocation3 + $0xaa] sm:$0x3] }
 0x60f   :  { %9448 = vmatprep.mubr.msk.f32.mxu0 %vm10767_vm10, %v14719_v38 }
 0x610   :  { %v4111_v24 = vpop.f32.mrb[34].mxu1  ;;  %v4296_v20 = vpop.f32.mrb[210].mxu0 }
 0x611   :  { %v13922_v34 = vadd.f32 %v4281_v18, %v4111_v24  ;;  %v8939_v59 = vpop.f32.mrb[35].mxu1  ;;  %9351 = vmatmul.mubr.f32.gmra.mrb[140].mxu1 %v13736_v19  ;;  %v9043_v54 = vpop.f32.mrb[211].mxu0 }
 0x612   :  { %9449 = vmatmul.mubr.f32.gmra.mrb[56].mxu0 %v13920_v16  ;;  %9353 = vmatprep.mubr.msk.f32.mxu1 %vm10767_vm10, %v14719_v38 }
 0x613   :  { %9451 = vmatprep.mubr.msk.f32.mxu0 %vm10767_vm10, %v14719_v38 }
 0x614   :  { %v4116_v37 = vpop.f32.mrb[36].mxu1  ;;  %v4301_v3 = vpop.f32.mrb[212].mxu0 }
 0x615   :  { %v13932_v52 = vadd.f32 %v4286_v36, %v4116_v37  ;;  %v8942_v18 = vpop.f32.mrb[37].mxu1  ;;  %9354 = vmatmul.mubr.f32.gmra.mrb[142].mxu1 %v13930_v7  ;;  %v9046_v27 = vpop.f32.mrb[213].mxu0  ;;  %v10381_v37 = vpack.c.bf16 %v5747_v39, %v5746_v22 }
 0x616   :  { %9452 = vmatmul.mubr.f32.gmra.mrb[58].mxu0 %v5057_v43  ;;  %9356 = vmatprep.mubr.msk.f32.mxu1 %vm10767_vm10, %v14719_v38  ;;  %v5748_v27 = vld [vmem:[#allocation9 + $0x410] sm:$0xff] }
 0x617   :  { %14808 = vst [vmem:[#allocation63_spill] sm:$0xff] %v13932_v52  ;;  %9581 = vmatprep.mubr.msk.f32.mxu0 %vm10767_vm10, %v14719_v38  ;;  %v5749_v52 = vld [vmem:[#allocation9 + $0x418] sm:$0xff] }
 0x618   :  { %v4121_v47 = vpop.f32.mrb[38].mxu1  ;;  %v4306_v24 = vpop.f32.mrb[214].mxu0  ;;  %v10384_v22 = vpack.c.bf16 %v5749_v52, %v5748_v27 }
 0x619   :  { %v13939_v59 = vadd.f32 %v4291_v51, %v4121_v47  ;;  %v8945_v36 = vpop.f32.mrb[39].mxu1  ;;  %9357 = vmatmul.mubr.f32.gmra.mrb[144].mxu1 %v4828_v46  ;;  %v9049_v54 = vpop.f32.mrb[215].mxu0  ;;  %v5751_v46 = vld [vmem:[#allocation9 + $0x428] sm:$0xff] }
 0x61a   :  { %9582 = vmatmul.mubr.f32.vlgmr.msra.gmra.mrb[60].mxu0 %v13747_v13  ;;  %9486 = vmatprep.mubr.msk.f32.mxu1 %vm10767_vm10, %v14719_v38 }
 0x61b   :  { %9584 = vmatprep.mubr.msk.f32.mxu0 %vm10767_vm10, %v14719_v38 }
 0x61c   :  { %v4126_v43 = vpop.f32.mrb[40].mxu1  ;;  %v4311_v18 = vpop.f32.mrb[216].mxu0 }
 0x61d   :  { %v13946_v7 = vadd.f32 %v4296_v20, %v4126_v43  ;;  %v8948_v51 = vpop.f32.mrb[41].mxu1  ;;  %9487 = vmatmul.mubr.f32.vlgmr.msra.gmra.mrb[146].mxu1 %v13588_v4  ;;  %v9052_v13 = vpop.f32.mrb[217].mxu0  ;;  %v5750_v20 = vld [vmem:[#allocation9 + $0x420] sm:$0xff]  ;;  %v5753_v43 = vld [vmem:[#allocation9 + $0x438] sm:$0xff] }
 0x61e   :  { %9585 = vmatmul.mubr.f32.gmra.mrb[62].mxu0 %v13757_v58  ;;  %10382 = vmatpush3.bf16.msra.mxu1 %v10381_v37  ;;  %v10387_v52 = vpack.c.bf16 %v5751_v46, %v5750_v20 }
 0x61f   :  { %9489 = vmatprep.mubr.msk.f32.mxu1 %vm10767_vm10, %v14719_v38  ;;  %9587 = vmatprep.mubr.msk.f32.mxu0 %vm10767_vm10, %v14719_v38 }
 0x620   :  { %10383 = vmatprep.subr.bf16.mxu1 %v14724_v42  ;;  %v4131_v39 = vpop.f32.mrb[42].mxu1  ;;  %v4316_v47 = vpop.f32.mrb[218].mxu0 }
 0x621   :  { %v13955_v36 = vadd.f32 %v4301_v3, %v4131_v39  ;;  %v8951_v4 = vpop.f32.mrb[43].mxu1  ;;  %9490 = vmatmul.mubr.f32.gmra.mrb[148].mxu1 %v13598_v31  ;;  %v9055_v58 = vpop.f32.mrb[219].mxu0  ;;  %v5752_v3 = vld [vmem:[#allocation9 + $0x430] sm:$0xff]  ;;  %v5755_v39 = vld [vmem:[#allocation9 + $0x448] sm:$0xff] }
 0x622   :  { %9588 = vmatmul.mubr.f32.gmra.mrb[64].mxu0 %v13766_v8  ;;  %9492 = vmatprep.mubr.msk.f32.mxu1 %vm10767_vm10, %v14719_v38  ;;  %v10390_v51 = vpack.c.bf16 %v5753_v43, %v5752_v3 }
 0x623   :  { %9590 = vmatprep.mubr.msk.f32.mxu0 %vm10767_vm10, %v14719_v38  ;;  %10385 = vmatpush3.bf16.msra.mxu1 %v10384_v22 }
 0x624   :  { %v4136_v54 = vpop.f32.mrb[44].mxu1  ;;  %v4321_v37 = vpop.f32.mrb[220].mxu0  ;;  %10386 = vmatprep.subr.bf16.mxu1 %v14724_v42 }
 0x625   :  { %v13964_v27 = vadd.f32 %v4306_v24, %v4136_v54  ;;  %v8954_v31 = vpop.f32.mrb[45].mxu1  ;;  %9493 = vmatmul.mubr.f32.gmra.mrb[150].mxu1 %v13608_v1  ;;  %v9058_v8 = vpop.f32.mrb[221].mxu0  ;;  %v5754_v24 = vld [vmem:[#allocation9 + $0x440] sm:$0xff] }
 0x626   :  { %9591 = vmatmul.mubr.f32.gmra.mrb[66].mxu0 %v13776_v25  ;;  %9495 = vmatprep.mubr.msk.f32.mxu1 %vm10767_vm10, %v14719_v38  ;;  %v10393_v46 = vpack.c.bf16 %v5755_v39, %v5754_v24  ;;  %v5759_v8 = vld [vmem:[#allocation9 + $0x468] sm:$0xff] }
 0x627   :  { %9593 = vmatprep.mubr.msk.f32.mxu0 %vm10767_vm10, %v14719_v38  ;;  %10388 = vmatpush3.bf16.msra.mxu1 %v10387_v52  ;;  %v5757_v52 = vld [vmem:[#allocation9 + $0x458] sm:$0xff] }
 0x628   :  { %v4141_v13 = vpop.f32.mrb[46].mxu1  ;;  %v4326_v22 = vpop.f32.mrb[222].mxu0  ;;  %10389 = vmatprep.subr.bf16.mxu1 %v14724_v42 }
 0x629   :  { %v13973_v20 = vadd.f32 %v4311_v18, %v4141_v13  ;;  %v8957_v1 = vpop.f32.mrb[47].mxu1  ;;  %9496 = vmatmul.mubr.f32.gmra.mrb[152].mxu1 %v13618_v55  ;;  %v9061_v25 = vpop.f32.mrb[223].mxu0  ;;  %v5756_v18 = vld [vmem:[#allocation9 + $0x450] sm:$0xff] }
 0x62a   :  { %9594 = vmatmul.mubr.f32.gmra.mrb[68].mxu0 %v13786_v9  ;;  %9498 = vmatprep.mubr.msk.f32.mxu1 %vm10767_vm10, %v14719_v38  ;;  %v10396_v3 = vpack.c.bf16 %v5757_v52, %v5756_v18  ;;  %v5761_v1 = vld [vmem:[#allocation9 + $0x478] sm:$0xff] }
 0x62b   :  { %9596 = vmatprep.mubr.msk.f32.mxu0 %vm10767_vm10, %v14719_v38  ;;  %10391 = vmatpush3.bf16.msra.mxu1 %v10390_v51 }
 0x62c   :  { %v4146_v4 = vpop.f32.mrb[48].mxu1  ;;  %v4331_v58 = vpop.f32.mrb[224].mxu0  ;;  %10392 = vmatprep.subr.bf16.mxu1 %v14724_v42 }
 0x62d   :  { %v13982_v54 = vadd.f32 %v4316_v47, %v4146_v4  ;;  %v8960_v55 = vpop.f32.mrb[49].mxu1  ;;  %9499 = vmatmul.mubr.f32.gmra.mrb[154].mxu1 %v13628_v57  ;;  %v9064_v9 = vpop.f32.mrb[225].mxu0  ;;  %v5758_v47 = vld [vmem:[#allocation9 + $0x460] sm:$0xff] }
 0x62e   :  { %9597 = vmatmul.mubr.f32.gmra.mrb[70].mxu0 %v13796_v10  ;;  %9501 = vmatprep.mubr.msk.f32.mxu1 %vm10767_vm10, %v14719_v38  ;;  %v10399_v13 = vpack.c.bf16 %v5759_v8, %v5758_v47 }
 0x62f   :  { %9599 = vmatprep.mubr.msk.f32.mxu0 %vm10767_vm10, %v14719_v38  ;;  %10394 = vmatpush3.bf16.msra.mxu1 %v10393_v46 }
 0x630   :  { %v4151_v43 = vpop.f32.mrb[50].mxu1  ;;  %v4336_v31 = vpop.f32.mrb[226].mxu0  ;;  %10395 = vmatprep.subr.bf16.mxu1 %v14724_v42 }
 0x631   :  { %v13991_v51 = vadd.f32 %v4321_v37, %v4151_v43  ;;  %v8963_v57 = vpop.f32.mrb[51].mxu1  ;;  %9502 = vmatmul.mubr.f32.gmra.mrb[156].mxu1 %v13638_v2  ;;  %v9067_v10 = vpop.f32.mrb[227].mxu0  ;;  %v5760_v37 = vld [vmem:[#allocation9 + $0x470] sm:$0xff] }
 0x632   :  { %9600 = vmatmul.mubr.f32.gmra.mrb[72].mxu0 %v13806_v40  ;;  %9504 = vmatprep.mubr.msk.f32.mxu1 %vm10767_vm10, %v14719_v38  ;;  %v10402_v46 = vpack.c.bf16 %v5761_v1, %v5760_v37 }
 0x633   :  { %9602 = vmatprep.mubr.msk.f32.mxu0 %vm10767_vm10, %v14719_v38  ;;  %10397 = vmatpush3.bf16.msra.mxu1 %v10396_v3 }
 0x634   :  { %v4156_v24 = vpop.f32.mrb[52].mxu1  ;;  %v4341_v39 = vpop.f32.mrb[228].mxu0  ;;  %10398 = vmatprep.subr.bf16.mxu1 %v14724_v42 }
 0x635   :  { %v14000_v25 = vadd.f32 %v4326_v22, %v4156_v24  ;;  %v8966_v2 = vpop.f32.mrb[53].mxu1  ;;  %9505 = vmatmul.mubr.f32.gmra.mrb[158].mxu1 %v13648_v29  ;;  %v9070_v40 = vpop.f32.mrb[229].mxu0 }
 0x636   :  { %9603 = vmatmul.mubr.f32.gmra.mrb[74].mxu0 %v13816_v44  ;;  %9507 = vmatprep.mubr.msk.f32.mxu1 %vm10767_vm10, %v14719_v38 }
 0x637   :  { %9605 = vmatprep.mubr.msk.f32.mxu0 %vm10767_vm10, %v14719_v38  ;;  %10400 = vmatpush3.bf16.msra.mxu1 %v10399_v13 }
 0x638   :  { %v4161_v4 = vpop.f32.mrb[54].mxu1  ;;  %10401 = vmatprep.subr.bf16.mxu1 %v14724_v42 }
 0x639   :  { %v14009_v18 = vadd.f32 %v4331_v58, %v4161_v4  ;;  %v8969_v22 = vpop.f32.mrb[55].mxu1  ;;  %9508 = vmatmul.mubr.f32.gmra.mrb[160].mxu1 %v13657_v14 }
 0x63a   :  { %9606 = vmatmul.mubr.f32.gmra.mrb[76].mxu0 %v13825_v12  ;;  %9510 = vmatprep.mubr.msk.f32.mxu1 %vm10767_vm10, %v14719_v38 }
 0x63b   :  { %9608 = vmatprep.mubr.msk.f32.mxu0 %vm10767_vm10, %v14719_v38  ;;  %10403 = vmatpush3.bf16.msra.mxu1 %v10402_v46 }
 0x63c   :  { %v4166_v29 = vpop.f32.mrb[56].mxu1  ;;  %10436 = vmatprep.subr.bf16.mxu1 %v14724_v42 }
 0x63d   :  { %v14018_v44 = vadd.f32 %v4336_v31, %v4166_v29  ;;  %v8972_v52 = vpop.f32.mrb[57].mxu1  ;;  %9511 = vmatmul.mubr.f32.gmra.mrb[162].mxu1 %v13665_v61 }
 0x63e   :  { %9609 = vmatmul.mubr.f32.gmra.mrb[78].mxu0 %v13834_v26  ;;  %9513 = vmatprep.mubr.msk.f32.mxu1 %vm10767_vm10, %v14719_v38 }
 0x63f   :  { %9611 = vmatprep.mubr.msk.f32.mxu0 %vm10767_vm10, %v14719_v38 }
 0x640   :  { %v4171_v14 = vpop.f32.mrb[58].mxu1 }
 0x641   :  { %v4346_v12 = vpop.f32.mrb[230].mxu0  ;;  %v14026_v58 = vadd.f32 %v4341_v39, %v4171_v14  ;;  %v8975_v55 = vpop.f32.mrb[59].mxu1  ;;  %9514 = vmatmul.mubr.f32.gmra.mrb[164].mxu1 %v13673_v0 }
 0x642   :  { %v9073_v9 = vpop.f32.mrb[231].mxu0  ;;  %9612 = vmatmul.mubr.f32.gmra.mrb[80].mxu0 %v13842_v30  ;;  %9516 = vmatprep.mubr.msk.f32.mxu1 %vm10767_vm10, %v14719_v38 }
 0x643   :  { %9614 = vmatprep.mubr.msk.f32.mxu0 %vm10767_vm10, %v14719_v38 }
 0x644   :  { %v4176_v61 = vpop.f32.mrb[60].mxu1 }
 0x645   :  { %v4683_v26 = vpop.f32.mrb[232].mxu0  ;;  %v14034_v3 = vadd.f32 %v4346_v12, %v4176_v61  ;;  %v8978_v43 = vpop.f32.mrb[61].mxu1  ;;  %9517 = vmatmul.mubr.f32.gmra.mrb[166].mxu1 %v13681_v49 }
 0x646   :  { %v9203_v31 = vpop.f32.mrb[233].mxu0  ;;  %9615 = vmatmul.mubr.f32.gmra.mrb[82].mxu0 %v13850_v23  ;;  %9519 = vmatprep.mubr.msk.f32.mxu1 %vm10767_vm10, %v14719_v38  ;;  %v5514_v43 = vld [vmem:[#allocation3 + $0xab] sm:$0xff] }
 0x647   :  { %9617 = vmatprep.mubr.msk.f32.mxu0 %vm10767_vm10, %v14719_v38 }
 0x648   :  { %v4454_v0 = vpop.f32.mrb[62].mxu1 }
 0x649   :  { %v4688_v30 = vpop.f32.mrb[234].mxu0  ;;  %v4558_v47 = vadd.f32 %v4454_v0, %v13852_v62  ;;  %v9108_v8 = vpop.f32.mrb[63].mxu1  ;;  %9520 = vmatmul.mubr.f32.gmra.mrb[168].mxu1 %v13689_v53 }
 0x64a   :  { %v9206_v57 = vpop.f32.mrb[235].mxu0  ;;  %9618 = vmatmul.mubr.f32.gmra.mrb[84].mxu0 %v13860_v56  ;;  %9522 = vmatprep.mubr.msk.f32.mxu1 %vm10767_vm10, %v14719_v38  ;;  %v5285_v8 = vld [vmem:[#allocation3 + $0xaa] sm:$0xff] }
 0x64b   :  { %9620 = vmatprep.mubr.msk.f32.mxu0 %vm10767_vm10, %v14719_v38  ;;  %v14049_v49 = vadd.f32 %v4683_v26, %v4558_v47  ;;  %v5515_v57 = vld [vmem:[#allocation3 + $0xb3] sm:$0x3] }
 0x64c   :  { %v4459_v23 = vpop.f32.mrb[64].mxu1 }
 0x64d   :  { %v4693_v10 = vpop.f32.mrb[236].mxu0  ;;  %v4559_v13 = vadd.f32 %v4459_v23, %v13862_v21  ;;  %v9111_v24 = vpop.f32.mrb[65].mxu1  ;;  %9523 = vmatmul.mubr.f32.gmra.mrb[170].mxu1 %v13697_v45  ;;  %v14810_v23 = vld [vmem:[#allocation63_spill] sm:$0xff] }
 0x64e   :  { %v9209_v62 = vpop.f32.mrb[237].mxu0  ;;  %9621 = vmatmul.mubr.f32.gmra.mrb[86].mxu0 %v13870_v63  ;;  %9525 = vmatprep.mubr.msk.f32.mxu1 %vm10767_vm10, %v14719_v38 }
 0x64f   :  { %9623 = vmatprep.mubr.msk.f32.mxu0 %vm10767_vm10, %v14719_v38  ;;  %v14058_v53 = vadd.f32 %v4688_v30, %v4559_v13  ;;  %v14809_v30 = vld [vmem:[#allocation16_spill] sm:$0xff] }
 0x650   :  { %v4464_v56 = vpop.f32.mrb[66].mxu1 }
 0x651   :  { %v4698_v39 = vpop.f32.mrb[238].mxu0  ;;  %v4560_v37 = vadd.f32 %v4464_v56, %v13872_v41  ;;  %v9114_v1 = vpop.f32.mrb[67].mxu1  ;;  %9526 = vmatmul.mubr.f32.gmra.mrb[172].mxu1 %v13705_v32 }
 0x652   :  { %v9212_v21 = vpop.f32.mrb[239].mxu0  ;;  %9624 = vmatmul.mubr.f32.gmra.mrb[88].mxu0 %v13880_v15  ;;  %9528 = vmatprep.mubr.msk.f32.mxu1 %vm10767_vm10, %v14719_v38 }
 0x653   :  { %9626 = vmatprep.mubr.msk.f32.mxu0 %vm10767_vm10, %v14719_v38  ;;  %v14067_v45 = vadd.f32 %v4693_v10, %v4560_v37 }
 0x654   :  { %v4469_v63 = vpop.f32.mrb[68].mxu1 }
 0x655   :  { %v4703_v2 = vpop.f32.mrb[240].mxu0  ;;  %v4561_v40 = vadd.f32 %v4469_v63, %v13882_v17  ;;  %v9117_v46 = vpop.f32.mrb[69].mxu1  ;;  %9529 = vmatmul.mubr.f32.gmra.mrb[174].mxu1 %v13713_v11 }
 0x656   :  { %v9215_v41 = vpop.f32.mrb[241].mxu0  ;;  %9627 = vmatmul.mubr.f32.gmra.mrb[90].mxu0 %v13890_v33  ;;  %9531 = vmatprep.mubr.msk.f32.mxu1 %vm10767_vm10, %v14719_v38  ;;  %v5724_v46 = vld [vmem:[#allocation3 + $0x14] sm:$0xff] }
 0x657   :  { %9629 = vmatprep.mubr.msk.f32.mxu0 %vm10767_vm10, %v14719_v38  ;;  %v14076_v32 = vadd.f32 %v4698_v39, %v4561_v40  ;;  %v5286_v39 = vld [vmem:[#allocation3 + $0xb2] sm:$0x3] }
 0x658   :  { %v4474_v15 = vpop.f32.mrb[70].mxu1 }
 0x659   :  { %v4708_v4 = vpop.f32.mrb[242].mxu0  ;;  %v4562_v22 = vadd.f32 %v4474_v15, %v13892_v5  ;;  %v9120_v29 = vpop.f32.mrb[71].mxu1  ;;  %9532 = vmatmul.mubr.f32.gmra.mrb[176].mxu1 %v13721_v48 }
 0x65a   :  { %v9218_v17 = vpop.f32.mrb[243].mxu0  ;;  %9630 = vmatmul.mubr.f32.gmra.mrb[92].mxu0 %v13900_v60  ;;  %9534 = vmatprep.mubr.msk.f32.mxu1 %vm10767_vm10, %v14719_v38 }
 0x65b   :  { %9632 = vmatprep.mubr.msk.f32.mxu0 %vm10767_vm10, %v14719_v38  ;;  %v14085_v11 = vadd.f32 %v4703_v2, %v4562_v22  ;;  %v5725_v17 = vld [vmem:[#allocation3 + $0x1c] sm:$0xff] }
 0x65c   :  { %v4479_v33 = vpop.f32.mrb[72].mxu1 }
 0x65d   :  { %v4713_v52 = vpop.f32.mrb[244].mxu0  ;;  %v4563_v14 = vadd.f32 %v4479_v33, %v13902_v35  ;;  %v9123_v12 = vpop.f32.mrb[73].mxu1  ;;  %9535 = vmatmul.mubr.f32.gmra.mrb[178].mxu1 %v13729_v50 }
 0x65e   :  { %v9221_v5 = vpop.f32.mrb[245].mxu0  ;;  %9633 = vmatmul.mubr.f32.gmra.mrb[94].mxu0 %v13910_v28  ;;  %9537 = vmatprep.mubr.msk.f32.mxu1 %vm10767_vm10, %v14719_v38 }
 0x65f   :  { %9635 = vmatprep.mubr.msk.f32.mxu0 %vm10767_vm10, %v14719_v38  ;;  %v14094_v48 = vadd.f32 %v4708_v4, %v4563_v14 }
 0x660   :  { %v4484_v60 = vpop.f32.mrb[74].mxu1 }
 0x661   :  { %v4718_v55 = vpop.f32.mrb[246].mxu0  ;;  %v4564_v9 = vadd.f32 %v4484_v60, %v13912_v6  ;;  %v9126_v61 = vpop.f32.mrb[75].mxu1  ;;  %9538 = vmatmul.mubr.f32.gmra.mrb[180].mxu1 %v13736_v19  ;;  %v5726_v60 = vld [vmem:[#allocation3 + $0x24] sm:$0xff] }
 0x662   :  { %v9224_v35 = vpop.f32.mrb[247].mxu0  ;;  %9636 = vmatmul.mubr.f32.gmra.mrb[96].mxu0 %v13920_v16  ;;  %9540 = vmatprep.mubr.msk.f32.mxu1 %vm10767_vm10, %v14719_v38 }
 0x663   :  { %9638 = vmatprep.mubr.msk.f32.mxu0 %vm10767_vm10, %v14719_v38  ;;  %v14103_v50 = vadd.f32 %v4713_v52, %v4564_v9 }
 0x664   :  { %v4489_v28 = vpop.f32.mrb[76].mxu1 }
 0x665   :  { %v4723_v26 = vpop.f32.mrb[248].mxu0  ;;  %v4565_v31 = vadd.f32 %v4489_v28, %v13922_v34  ;;  %v9129_v6 = vpop.f32.mrb[77].mxu1  ;;  %9541 = vmatmul.mubr.f32.gmra.mrb[182].mxu1 %v14809_v30 }
 0x666   :  { %v9227_v0 = vpop.f32.mrb[249].mxu0  ;;  %9639 = vmatmul.mubr.f32.gmra.mrb[98].mxu0 %v5514_v43  ;;  %9543 = vmatprep.mubr.msk.f32.mxu1 %vm10767_vm10, %v14719_v38 }
 0x667   :  { %9641 = vmatprep.mubr.msk.f32.mxu0 %vm10767_vm10, %v14719_v38  ;;  %v14111_v19 = vadd.f32 %v4718_v55, %v4565_v31 }
 0x668   :  { %v4494_v16 = vpop.f32.mrb[78].mxu1 }
 0x669   :  { %v4728_v47 = vpop.f32.mrb[250].mxu0  ;;  %v4566_v10 = vadd.f32 %v4494_v16, %v14810_v23  ;;  %v9132_v34 = vpop.f32.mrb[79].mxu1  ;;  %9544 = vmatmul.mubr.f32.gmra.mrb[184].mxu1 %v5285_v8  ;;  %v5728_v16 = vld [vmem:[#allocation3 + $0x34] sm:$0xff] }
 0x66a   :  { %v9230_v13 = vpop.f32.mrb[251].mxu0  ;;  %9642 = vmatmul.mubr.f32.gmra.mrb[100].mxu0 %v5515_v57  ;;  %9546 = vmatprep.mubr.msk.f32.mxu1 %vm10767_vm10, %v14719_v38  ;;  %v5729_v34 = vld [vmem:[#allocation3 + $0x3c] sm:$0xff] }
 0x66b   :  { %6359 = vmatprep.mubr.f32.mxu0 %v14719_v38  ;;  %v14117_v24 = vadd.f32 %v4723_v26, %v4566_v10  ;;  %v5727_v26 = vld [vmem:[#allocation3 + $0x2c] sm:$0xff] }
 0x66c   :  { %v4499_v62 = vpop.f32.mrb[80].mxu1 }
 0x66d   :  { %v4733_v56 = vpop.f32.mrb[252].mxu0  ;;  %v4567_v37 = vadd.f32 %v4499_v62, %v13939_v59  ;;  %v9135_v1 = vpop.f32.mrb[81].mxu1  ;;  %9547 = vmatmul.mubr.f32.gmra.mrb[186].mxu1 %v5286_v39 }
 0x66e   :  { %v9233_v21 = vpop.f32.mrb[253].mxu0  ;;  %9676 = vmatprep.mubr.msk.f32.mxu1 %vm10767_vm10, %v14719_v38  ;;  %v5730_v1 = vld [vmem:[#allocation3 + $0x44] sm:$0xff] }
 0x66f   :  { %v14122_v63 = vadd.f32 %v4728_v47, %v4567_v37 }
 0x670   :  { %v4504_v2 = vpop.f32.mrb[82].mxu1 }
 0x671   :  { %v4738_v40 = vpop.f32.mrb[254].mxu0  ;;  %v4568_v41 = vadd.f32 %v4504_v2, %v13946_v7  ;;  %v9138_v15 = vpop.f32.mrb[83].mxu1  ;;  %9677 = vmatmul.mubr.f32.vlgmr.msra.gmra.mrb[188].mxu1 %v5724_v46 }
 0x672   :  { %v9236_v4 = vpop.f32.mrb[255].mxu0  ;;  %9679 = vmatprep.mubr.msk.f32.mxu1 %vm10767_vm10, %v14719_v38  ;;  %v5731_v15 = vld [vmem:[#allocation3 + $0x4c] sm:$0xff] }
 0x673   :  { %v14127_v59 = vadd.f32 %v4733_v56, %v4568_v41 }
 0x674   :  { %v4509_v22 = vpop.f32.mrb[84].mxu1 }
 0x675   :  { %v4743_v29 = vpop.f32.mrb[0].mxu0  ;;  %v4569_v33 = vadd.f32 %v4509_v22, %v13955_v36  ;;  %v9141_v52 = vpop.f32.mrb[85].mxu1  ;;  %9680 = vmatmul.mubr.f32.gmra.mrb[190].mxu1 %v5725_v17 }
 0x676   :  { %v9239_v14 = vpop.f32.mrb[1].mxu0  ;;  %9682 = vmatprep.mubr.msk.f32.mxu1 %vm10767_vm10, %v14719_v38  ;;  %v5732_v52 = vld [vmem:[#allocation3 + $0x54] sm:$0xff] }
 0x677   :  { %v14132_v7 = vadd.f32 %v4738_v40, %v4569_v33 }
 0x678   :  { %v4514_v12 = vpop.f32.mrb[86].mxu1 }
 0x679   :  { %v4748_v5 = vpop.f32.mrb[2].mxu0  ;;  %v4570_v55 = vadd.f32 %v4514_v12, %v13964_v27  ;;  %v9144_v9 = vpop.f32.mrb[87].mxu1  ;;  %9683 = vmatmul.mubr.f32.gmra.mrb[192].mxu1 %v5726_v60 }
 0x67a   :  { %v9242_v61 = vpop.f32.mrb[3].mxu0  ;;  %9685 = vmatprep.mubr.msk.f32.mxu1 %vm10767_vm10, %v14719_v38  ;;  %v5733_v9 = vld [vmem:[#allocation3 + $0x5c] sm:$0xff] }
 0x67b   :  { %v14137_v36 = vadd.f32 %v4743_v29, %v4570_v55 }
 0x67c   :  { %v4519_v35 = vpop.f32.mrb[88].mxu1 }
 0x67d   :  { %v4753_v28 = vpop.f32.mrb[4].mxu0  ;;  %v4571_v43 = vadd.f32 %v4519_v35, %v13973_v20  ;;  %v9147_v31 = vpop.f32.mrb[89].mxu1  ;;  %9686 = vmatmul.mubr.f32.gmra.mrb[194].mxu1 %v5727_v26 }
 0x67e   :  { %v9245_v6 = vpop.f32.mrb[5].mxu0  ;;  %9688 = vmatprep.mubr.msk.f32.mxu1 %vm10767_vm10, %v14719_v38  ;;  %v5734_v31 = vld [vmem:[#allocation3 + $0x64] sm:$0xff] }
 0x67f   :  { %v14142_v27 = vadd.f32 %v4748_v5, %v4571_v43 }
 0x680   :  { %v4524_v0 = vpop.f32.mrb[90].mxu1 }
 0x681   :  { %v4758_v30 = vpop.f32.mrb[6].mxu0  ;;  %v4572_v47 = vadd.f32 %v4524_v0, %v13982_v54  ;;  %v9150_v8 = vpop.f32.mrb[91].mxu1  ;;  %9689 = vmatmul.mubr.f32.gmra.mrb[196].mxu1 %v5728_v16 }
 0x682   :  { %v9248_v57 = vpop.f32.mrb[7].mxu0  ;;  %9691 = vmatprep.mubr.msk.f32.mxu1 %vm10767_vm10, %v14719_v38  ;;  %v5735_v8 = vld [vmem:[#allocation3 + $0x6c] sm:$0xff] }
 0x683   :  { %v14147_v20 = vadd.f32 %v4753_v28, %v4572_v47 }
 0x684   :  { %v4529_v23 = vpop.f32.mrb[92].mxu1 }
 0x685   :  { %v4763_v10 = vpop.f32.mrb[8].mxu0  ;;  %v4573_v13 = vadd.f32 %v4529_v23, %v13991_v51  ;;  %v9153_v62 = vpop.f32.mrb[93].mxu1  ;;  %9692 = vmatmul.mubr.f32.gmra.mrb[198].mxu1 %v5729_v34 }
 0x686   :  { %v9251_v56 = vpop.f32.mrb[9].mxu0  ;;  %9694 = vmatprep.mubr.msk.f32.mxu1 %vm10767_vm10, %v14719_v38  ;;  %v5736_v62 = vld [vmem:[#allocation3 + $0x74] sm:$0xff] }
 0x687   :  { %v14152_v54 = vadd.f32 %v4758_v30, %v4573_v13 }
 0x688   :  { %v4534_v39 = vpop.f32.mrb[94].mxu1 }
 0x689   :  { %v4768_v37 = vpop.f32.mrb[10].mxu0  ;;  %v4574_v21 = vadd.f32 %v4534_v39, %v14000_v25  ;;  %v9156_v2 = vpop.f32.mrb[95].mxu1  ;;  %9695 = vmatmul.mubr.f32.gmra.mrb[200].mxu1 %v5730_v1 }
 0x68a   :  { %v9254_v40 = vpop.f32.mrb[11].mxu0  ;;  %9697 = vmatprep.mubr.msk.f32.mxu1 %vm10767_vm10, %v14719_v38  ;;  %v5737_v2 = vld [vmem:[#allocation3 + $0x7c] sm:$0xff] }
 0x68b   :  { %v14157_v51 = vadd.f32 %v4763_v10, %v4574_v21 }
 0x68c   :  { %v4539_v46 = vpop.f32.mrb[96].mxu1 }
 0x68d   :  { %v4773_v41 = vpop.f32.mrb[12].mxu0  ;;  %v4575_v4 = vadd.f32 %v4539_v46, %v14009_v18  ;;  %v9159_v22 = vpop.f32.mrb[97].mxu1  ;;  %9698 = vmatmul.mubr.f32.gmra.mrb[202].mxu1 %v5731_v15 }
 0x68e   :  { %v9257_v29 = vpop.f32.mrb[13].mxu0  ;;  %9700 = vmatprep.mubr.msk.f32.mxu1 %vm10767_vm10, %v14719_v38  ;;  %v5738_v22 = vld [vmem:[#allocation3 + $0x84] sm:$0xff] }
 0x68f   :  { %v14162_v25 = vadd.f32 %v4768_v37, %v4575_v4 }
 0x690   :  { %v4544_v17 = vpop.f32.mrb[98].mxu1 }
 0x691   :  { %v4778_v33 = vpop.f32.mrb[14].mxu0  ;;  %v4576_v14 = vadd.f32 %v4544_v17, %v14018_v44  ;;  %v9162_v12 = vpop.f32.mrb[99].mxu1  ;;  %9701 = vmatmul.mubr.f32.gmra.mrb[204].mxu1 %v5732_v52 }
 0x692   :  { %v9260_v5 = vpop.f32.mrb[15].mxu0  ;;  %9703 = vmatprep.mubr.msk.f32.mxu1 %vm10767_vm10, %v14719_v38  ;;  %v5739_v12 = vld [vmem:[#allocation3 + $0x8c] sm:$0xff] }
 0x693   :  { %v14167_v18 = vadd.f32 %v4773_v41, %v4576_v14 }
 0x694   :  { %v4549_v60 = vpop.f32.mrb[100].mxu1 }
 0x695   :  { %v4783_v55 = vpop.f32.mrb[16].mxu0  ;;  %v4577_v61 = vadd.f32 %v4549_v60, %v14026_v58  ;;  %v9165_v35 = vpop.f32.mrb[101].mxu1  ;;  %9704 = vmatmul.mubr.f32.gmra.mrb[206].mxu1 %v5733_v9 }
 0x696   :  { %v9263_v28 = vpop.f32.mrb[17].mxu0  ;;  %9706 = vmatprep.mubr.msk.f32.mxu1 %vm10767_vm10, %v14719_v38  ;;  %v5740_v35 = vld [vmem:[#allocation3 + $0x94] sm:$0xff] }
 0x697   :  { %v14172_v44 = vadd.f32 %v4778_v33, %v4577_v61 }
 0x698   :  { %v4554_v26 = vpop.f32.mrb[102].mxu1 }
 0x699   :  { %v5141_v43 = vpop.f32.mrb[18].mxu0  ;;  %v4578_v6 = vadd.f32 %v4554_v26, %v14034_v3  ;;  %v9168_v0 = vpop.f32.mrb[103].mxu1  ;;  %9707 = vmatmul.mubr.f32.gmra.mrb[208].mxu1 %v5734_v31 }
 0x69a   :  { %v9393_v30 = vpop.f32.mrb[19].mxu0  ;;  %9709 = vmatprep.mubr.msk.f32.mxu1 %vm10767_vm10, %v14719_v38  ;;  %v5741_v0 = vld [vmem:[#allocation3 + $0x9c] sm:$0xff] }
 0x69b   :  { %v14177_v58 = vadd.f32 %v4783_v55, %v4578_v6 }
 0x69c   :  { %v4912_v16 = vpop.f32.mrb[104].mxu1 }
 0x69d   :  { %v5146_v47 = vpop.f32.mrb[20].mxu0  ;;  %v5016_v57 = vadd.f32 %v4912_v16, %v14049_v49  ;;  %v9298_v23 = vpop.f32.mrb[105].mxu1  ;;  %9710 = vmatmul.mubr.f32.gmra.mrb[210].mxu1 %v5735_v8 }
 0x69e   :  { %v9396_v10 = vpop.f32.mrb[21].mxu0  ;;  %9712 = vmatprep.mubr.msk.f32.mxu1 %vm10767_vm10, %v14719_v38  ;;  %v5742_v23 = vld [vmem:[#allocation3 + $0xa4] sm:$0xff] }
 0x69f   :  { %v14182_v3 = vadd.f32 %v5141_v43, %v5016_v57 }
 0x6a0   :  { %v4917_v34 = vpop.f32.mrb[106].mxu1 }
 0x6a1   :  { %v5151_v13 = vpop.f32.mrb[22].mxu0  ;;  %v5017_v56 = vadd.f32 %v4917_v34, %v14058_v53  ;;  %v9301_v39 = vpop.f32.mrb[107].mxu1  ;;  %9713 = vmatmul.mubr.f32.gmra.mrb[212].mxu1 %v5736_v62 }
 0x6a2   :  { %v9399_v37 = vpop.f32.mrb[23].mxu0  ;;  %9715 = vmatprep.mubr.msk.f32.mxu1 %vm10767_vm10, %v14719_v38  ;;  %v5743_v39 = vld [vmem:[#allocation3 + $0xac] sm:$0xff] }
 0x6a3   :  { %v14187_v49 = vadd.f32 %v5146_v47, %v5017_v56 }
 0x6a4   :  { %v4922_v1 = vpop.f32.mrb[108].mxu1 }
 0x6a5   :  { %v5156_v21 = vpop.f32.mrb[24].mxu0  ;;  %v5018_v40 = vadd.f32 %v4922_v1, %v14067_v45  ;;  %v9304_v46 = vpop.f32.mrb[109].mxu1  ;;  %9716 = vmatmul.mubr.f32.gmra.mrb[214].mxu1 %v5737_v2 }
 0x6a6   :  { %v9402_v41 = vpop.f32.mrb[25].mxu0  ;;  %9718 = vmatprep.mubr.msk.f32.mxu1 %vm10767_vm10, %v14719_v38  ;;  %v5744_v46 = vld [vmem:[#allocation3 + $0xb4] sm:$0x3] }
 0x6a7   :  { %v14192_v53 = vadd.f32 %v5151_v13, %v5018_v40 }
 0x6a8   :  { %v4927_v15 = vpop.f32.mrb[110].mxu1 }
 0x6a9   :  { %v5161_v4 = vpop.f32.mrb[26].mxu0  ;;  %v5019_v29 = vadd.f32 %v4927_v15, %v14076_v32  ;;  %v9307_v17 = vpop.f32.mrb[111].mxu1  ;;  %9719 = vmatmul.mubr.f32.gmra.mrb[216].mxu1 %v5738_v22 }
 0x6aa   :  { %v9405_v33 = vpop.f32.mrb[27].mxu0  ;;  %9721 = vmatprep.mubr.msk.f32.mxu1 %vm10767_vm10, %v14719_v38 }
 0x6ab   :  { %v14197_v45 = vadd.f32 %v5156_v21, %v5019_v29 }
 0x6ac   :  { %v4932_v52 = vpop.f32.mrb[112].mxu1 }
 0x6ad   :  { %v5166_v14 = vpop.f32.mrb[28].mxu0  ;;  %v5020_v5 = vadd.f32 %v4932_v52, %v14085_v11  ;;  %v9310_v60 = vpop.f32.mrb[113].mxu1  ;;  %9722 = vmatmul.mubr.f32.gmra.mrb[218].mxu1 %v5739_v12 }
 0x6ae   :  { %v9408_v55 = vpop.f32.mrb[29].mxu0  ;;  %9724 = vmatprep.mubr.msk.f32.mxu1 %vm10767_vm10, %v14719_v38 }
 0x6af   :  { %v14202_v32 = vadd.f32 %v5161_v4, %v5020_v5 }
 0x6b0   :  { %v4937_v9 = vpop.f32.mrb[114].mxu1 }
 0x6b1   :  { %v5171_v61 = vpop.f32.mrb[30].mxu0  ;;  %v5021_v28 = vadd.f32 %v4937_v9, %v14094_v48  ;;  %v9313_v26 = vpop.f32.mrb[115].mxu1  ;;  %9725 = vmatmul.mubr.f32.gmra.mrb[220].mxu1 %v5740_v35 }
 0x6b2   :  { %v9411_v43 = vpop.f32.mrb[31].mxu0  ;;  %9727 = vmatprep.mubr.msk.f32.mxu1 %vm10767_vm10, %v14719_v38 }
 0x6b3   :  { %v14207_v11 = vadd.f32 %v5166_v14, %v5021_v28 }
 0x6b4   :  { %v4942_v31 = vpop.f32.mrb[116].mxu1 }
 0x6b5   :  { %v5176_v6 = vpop.f32.mrb[32].mxu0  ;;  %v5022_v30 = vadd.f32 %v4942_v31, %v14103_v50  ;;  %v9316_v16 = vpop.f32.mrb[117].mxu1  ;;  %9728 = vmatmul.mubr.f32.gmra.mrb[222].mxu1 %v5741_v0 }
 0x6b6   :  { %v9414_v47 = vpop.f32.mrb[33].mxu0  ;;  %9730 = vmatprep.mubr.msk.f32.mxu1 %vm10767_vm10, %v14719_v38 }
 0x6b7   :  { %v14212_v48 = vadd.f32 %v5171_v61, %v5022_v30 }
 0x6b8   :  { %v4947_v8 = vpop.f32.mrb[118].mxu1 }
 0x6b9   :  { %v5181_v57 = vpop.f32.mrb[34].mxu0  ;;  %v5023_v10 = vadd.f32 %v4947_v8, %v14111_v19  ;;  %v9319_v34 = vpop.f32.mrb[119].mxu1  ;;  %9731 = vmatmul.mubr.f32.gmra.mrb[224].mxu1 %v5742_v23 }
 0x6ba   :  { %v9417_v13 = vpop.f32.mrb[35].mxu0  ;;  %9733 = vmatprep.mubr.msk.f32.mxu1 %vm10767_vm10, %v14719_v38 }
 0x6bb   :  { %v14217_v50 = vadd.f32 %v5176_v6, %v5023_v10 }
 0x6bc   :  { %v4952_v62 = vpop.f32.mrb[120].mxu1 }
 0x6bd   :  { %v5186_v56 = vpop.f32.mrb[36].mxu0  ;;  %v5024_v37 = vadd.f32 %v4952_v62, %v14117_v24  ;;  %v9322_v1 = vpop.f32.mrb[121].mxu1  ;;  %9734 = vmatmul.mubr.f32.gmra.mrb[226].mxu1 %v5743_v39 }
 0x6be   :  { %v9420_v21 = vpop.f32.mrb[37].mxu0  ;;  %9736 = vmatprep.mubr.msk.f32.mxu1 %vm10767_vm10, %v14719_v38 }
 0x6bf   :  { %v14222_v19 = vadd.f32 %v5181_v57, %v5024_v37 }
 0x6c0   :  { %v4957_v2 = vpop.f32.mrb[122].mxu1 }
 0x6c1   :  { %v5191_v40 = vpop.f32.mrb[38].mxu0  ;;  %v5025_v41 = vadd.f32 %v4957_v2, %v14122_v63  ;;  %v9325_v15 = vpop.f32.mrb[123].mxu1  ;;  %9737 = vmatmul.mubr.f32.gmra.mrb[228].mxu1 %v5744_v46 }
 0x6c2   :  { %v9423_v4 = vpop.f32.mrb[39].mxu0  ;;  %9771 = vmatprep.mubr.msk.f32.mxu1 %vm10767_vm10, %v14719_v38 }
 0x6c3   :  { %v14227_v24 = vadd.f32 %v5186_v56, %v5025_v41 }
 0x6c4   :  { %v4962_v22 = vpop.f32.mrb[124].mxu1 }
 0x6c5   :  { %v5196_v29 = vpop.f32.mrb[40].mxu0  ;;  %v5026_v17 = vadd.f32 %v4962_v22, %v14127_v59  ;;  %v9328_v33 = vpop.f32.mrb[125].mxu1 }
 0x6c6   :  { %v9426_v52 = vpop.f32.mrb[41].mxu0 }
 0x6c7   :  { %v14230_v14 = vadd.f32 %v5191_v40, %v5026_v17 }
 0x6c8   :  { %v4967_v12 = vpop.f32.mrb[126].mxu1 }
 0x6c9   :  { %v5201_v5 = vpop.f32.mrb[42].mxu0  ;;  %v5027_v63 = vadd.f32 %v4967_v12, %v14132_v7  ;;  %v9331_v60 = vpop.f32.mrb[127].mxu1 }
 0x6ca   :  { %v9429_v55 = vpop.f32.mrb[43].mxu0 }
 0x6cb   :  { %v14233_v9 = vadd.f32 %v5196_v29, %v5027_v63 }
 0x6cc   :  { %v4972_v61 = vpop.f32.mrb[128].mxu1 }
 0x6cd   :  { %v5206_v35 = vpop.f32.mrb[44].mxu0  ;;  %v5028_v28 = vadd.f32 %v4972_v61, %v14137_v36  ;;  %v9334_v26 = vpop.f32.mrb[129].mxu1 }
 0x6ce   :  { %v9432_v43 = vpop.f32.mrb[45].mxu0 }
 0x6cf   :  { %v14236_v31 = vadd.f32 %v5201_v5, %v5028_v28 }
 0x6d0   :  { %v4977_v59 = vpop.f32.mrb[130].mxu1 }
 0x6d1   :  { %v5211_v6 = vpop.f32.mrb[46].mxu0  ;;  %v5029_v0 = vadd.f32 %v4977_v59, %v14142_v27  ;;  %v9337_v30 = vpop.f32.mrb[131].mxu1 }
 0x6d2   :  { %v9435_v16 = vpop.f32.mrb[47].mxu0 }
 0x6d3   :  { %v14239_v47 = vadd.f32 %v5206_v35, %v5029_v0 }
 0x6d4   :  { %v4982_v7 = vpop.f32.mrb[132].mxu1 }
 0x6d5   :  { %v5216_v8 = vpop.f32.mrb[48].mxu0  ;;  %v5030_v57 = vadd.f32 %v4982_v7, %v14147_v20  ;;  %v9340_v23 = vpop.f32.mrb[133].mxu1 }
 0x6d6   :  { %v9438_v10 = vpop.f32.mrb[49].mxu0 }
 0x6d7   :  { %v14242_v34 = vadd.f32 %v5211_v6, %v5030_v57 }
 0x6d8   :  { %v4987_v36 = vpop.f32.mrb[134].mxu1 }
 0x6d9   :  { %v5221_v13 = vpop.f32.mrb[50].mxu0  ;;  %v5031_v62 = vadd.f32 %v4987_v36, %v14152_v54  ;;  %v9343_v56 = vpop.f32.mrb[135].mxu1 }
 0x6da   :  { %v9441_v39 = vpop.f32.mrb[51].mxu0 }
 0x6db   :  { %v14245_v37 = vadd.f32 %v5216_v8, %v5031_v62 }
 0x6dc   :  { %v4992_v27 = vpop.f32.mrb[136].mxu1 }
 0x6dd   :  { %v5226_v1 = vpop.f32.mrb[52].mxu0  ;;  %v5032_v21 = vadd.f32 %v4992_v27, %v14157_v51  ;;  %v9346_v2 = vpop.f32.mrb[137].mxu1 }
 0x6de   :  { %v9444_v40 = vpop.f32.mrb[53].mxu0 }
 0x6df   :  { %v14248_v46 = vadd.f32 %v5221_v13, %v5032_v21 }
 0x6e0   :  { %v4997_v20 = vpop.f32.mrb[138].mxu1 }
 0x6e1   :  { %v5231_v41 = vpop.f32.mrb[54].mxu0  ;;  %v5033_v15 = vadd.f32 %v4997_v20, %v14162_v25  ;;  %v9349_v4 = vpop.f32.mrb[139].mxu1 }
 0x6e2   :  { %v9447_v22 = vpop.f32.mrb[55].mxu0 }
 0x6e3   :  { %v14251_v29 = vadd.f32 %v5226_v1, %v5033_v15 }
 0x6e4   :  { %v5002_v54 = vpop.f32.mrb[140].mxu1 }
 0x6e5   :  { %v5236_v17 = vpop.f32.mrb[56].mxu0  ;;  %v5034_v33 = vadd.f32 %v5002_v54, %v14167_v18  ;;  %v9352_v52 = vpop.f32.mrb[141].mxu1 }
 0x6e6   :  { %v9450_v12 = vpop.f32.mrb[57].mxu0 }
 0x6e7   :  { %v14254_v5 = vadd.f32 %v5231_v41, %v5034_v33 }
 0x6e8   :  { %v5007_v51 = vpop.f32.mrb[142].mxu1 }
 0x6e9   :  { %v5241_v63 = vpop.f32.mrb[58].mxu0  ;;  %v5035_v60 = vadd.f32 %v5007_v51, %v14172_v44  ;;  %v9355_v55 = vpop.f32.mrb[143].mxu1  ;;  %v6231_v44 = vld [vmem:[%s14679_s8 + $0x8] sm:$0xff] }
 0x6ea   :  { %v9453_v61 = vpop.f32.mrb[59].mxu0 }
 0x6eb   :  { %v14257_v35 = vadd.f32 %v5236_v17, %v5035_v60 }
 0x6ec   :  { %v5012_v25 = vpop.f32.mrb[144].mxu1 }
 0x6ed   :  { %v5599_v28 = vpop.f32.mrb[60].mxu0  ;;  %v5036_v26 = vadd.f32 %v5012_v25, %v14177_v58  ;;  %v9358_v43 = vpop.f32.mrb[145].mxu1  ;;  %v6234_v58 = vld [vmem:[%s14679_s8 + $0x20] sm:$0xff] }
 0x6ee   :  { %v9583_v59 = vpop.f32.mrb[61].mxu0  ;;  %v10404_v10 = vpack.c.bf16 %v6234_v58, %v6231_v44  ;;  %v6239_v58 = vld [vmem:[%s14679_s8 + $0x48] sm:$0xff] }
 0x6ef   :  { %v14260_v6 = vadd.f32 %v5241_v63, %v5036_v26  ;;  %v6232_v26 = vld [vmem:[%s14679_s8 + $0x10] sm:$0xff] }
 0x6f0   :  { %v5370_v18 = vpop.f32.mrb[146].mxu1  ;;  %10405 = vmatprep.subr.bf16.mxu0 %v10404_v10 }
 0x6f1   :  { %v5604_v0 = vpop.f32.mrb[62].mxu0  ;;  %v5474_v30 = vadd.f32 %v5370_v18, %v14182_v3  ;;  %v9488_v16 = vpop.f32.mrb[147].mxu1 }
 0x6f2   :  { %v9586_v7 = vpop.f32.mrb[63].mxu0  ;;  %v6240_v16 = vld [vmem:[%s14679_s8 + $0x50] sm:$0xff] }
 0x6f3   :  { %v14263_v8 = vadd.f32 %v5599_v28, %v5474_v30  ;;  %v6230_v28 = vld [vmem:[%s14679_s8] sm:$0xff]  ;;  %v6237_v30 = vld [vmem:[%s14679_s8 + $0x38] sm:$0xff] }
 0x6f4   :  { %v5375_v57 = vpop.f32.mrb[148].mxu1  ;;  %v10408_v44 = vpack.c.bf16 %v6240_v16, %v6237_v30 }
 0x6f5   :  { %v5609_v23 = vpop.f32.mrb[64].mxu0  ;;  %v5475_v36 = vadd.f32 %v5375_v57, %v14187_v49  ;;  %v9491_v13 = vpop.f32.mrb[149].mxu1 }
 0x6f6   :  { %v9589_v62 = vpop.f32.mrb[65].mxu0  ;;  %v6238_v13 = vld [vmem:[%s14679_s8 + $0x40] sm:$0xff] }
 0x6f7   :  { %v14272_v3 = vadd.f32 %v5604_v0, %v5475_v36  ;;  %v6235_v0 = vld [vmem:[%s14679_s8 + $0x28] sm:$0xff]  ;;  %v6241_v62 = vld [vmem:[%s14679_s8 + $0x58] sm:$0xff] }
 0x6f8   :  { %v5380_v56 = vpop.f32.mrb[150].mxu1  ;;  %v10437_v7 = vpack.c.bf16 %v6235_v0, %v6232_v26  ;;  %v6252_v0 = vld [vmem:[%s14679_s8 + $0xb0] sm:$0xff] }
 0x6f9   :  { %v5614_v39 = vpop.f32.mrb[66].mxu0  ;;  %v5476_v27 = vadd.f32 %v5380_v56, %v14192_v53  ;;  %v9494_v1 = vpop.f32.mrb[151].mxu1 }
 0x6fa   :  { %v9592_v21 = vpop.f32.mrb[67].mxu0  ;;  %10438 = vmatpush3.bf16.msra.mxu1 %v10437_v7  ;;  %v10440_v1 = vpack.c.bf16 %v6241_v62, %v6238_v13 }
 0x6fb   :  { %v14275_v2 = vadd.f32 %v5609_v23, %v5476_v27  ;;  %10439 = vmatprep.subr.bf16.mxu1 %v14724_v42 }
 0x6fc   :  { %v5385_v40 = vpop.f32.mrb[152].mxu1 }
 0x6fd   :  { %v5619_v20 = vpop.f32.mrb[68].mxu0  ;;  %v5477_v41 = vadd.f32 %v5385_v40, %v14197_v45  ;;  %v9497_v15 = vpop.f32.mrb[153].mxu1 }
 0x6fe   :  { %v9595_v4 = vpop.f32.mrb[69].mxu0  ;;  %10441 = vmatpush3.bf16.msra.mxu1 %v10440_v1  ;;  %v6250_v1 = vld [vmem:[%s14679_s8 + $0xa0] sm:$0xff] }
 0x6ff   :  { %v14278_v49 = vadd.f32 %v5614_v39, %v5477_v41  ;;  %10442 = vmatprep.subr.bf16.mxu1 %v14724_v42 }
 0x700   :  { %v5390_v22 = vpop.f32.mrb[154].mxu1 }
 0x701   :  { %v5624_v54 = vpop.f32.mrb[70].mxu0  ;;  %v5478_v17 = vadd.f32 %v5390_v22, %v14202_v32  ;;  %v9500_v33 = vpop.f32.mrb[155].mxu1  ;;  %v6233_v32 = vld [vmem:[%s14679_s8 + $0x18] sm:$0xff]  ;;  %v6243_v22 = vld [vmem:[%s14679_s8 + $0x68] sm:$0xff] }
 0x702   :  { %v9598_v52 = vpop.f32.mrb[71].mxu0  ;;  %v10406_v18 = vpack.c.bf16 %v6233_v32, %v6230_v28 }
 0x703   :  { %v14281_v12 = vadd.f32 %v5619_v20, %v5478_v17 }
 0x704   :  { %v5395_v53 = vpop.f32.mrb[156].mxu1  ;;  %10407 = vmatpush1.bf16.msra.mxu0 %v10406_v18 }
 0x705   :  { %v5629_v51 = vpop.f32.mrb[72].mxu0  ;;  %v5479_v63 = vadd.f32 %v5395_v53, %v14207_v11  ;;  %v9503_v60 = vpop.f32.mrb[157].mxu1  ;;  %10409 = vmatprep.subr.bf16.mxu0 %v10408_v44 }
 0x706   :  { %v9601_v55 = vpop.f32.mrb[73].mxu0 }
 0x707   :  { %v14284_v61 = vadd.f32 %v5624_v54, %v5479_v63  ;;  %v6242_v54 = vld [vmem:[%s14679_s8 + $0x60] sm:$0xff] }
 0x708   :  { %v5400_v45 = vpop.f32.mrb[158].mxu1 }
 0x709   :  { %v5634_v25 = vpop.f32.mrb[74].mxu0  ;;  %v5480_v11 = vadd.f32 %v5400_v45, %v14212_v48  ;;  %v9506_v43 = vpop.f32.mrb[159].mxu1  ;;  %v6236_v48 = vld [vmem:[%s14679_s8 + $0x30] sm:$0xff] }
 0x70a   :  { %v9604_v59 = vpop.f32.mrb[75].mxu0  ;;  %v10410_v23 = vpack.c.bf16 %v6239_v58, %v6236_v48  ;;  %v6244_v43 = vld [vmem:[%s14679_s8 + $0x70] sm:$0xff] }
 0x70b   :  { %v14311_v57 = vadd.f32 %v5629_v51, %v5480_v11  ;;  %v6247_v59 = vld [vmem:[%s14679_s8 + $0x88] sm:$0xff] }
 0x70c   :  { %v5405_v10 = vpop.f32.mrb[160].mxu1  ;;  %10411 = vmatpush1.bf16.msra.mxu0 %v10410_v23  ;;  %v10443_v18 = vpack.c.bf16 %v6247_v59, %v6244_v43  ;;  %v6248_v23 = vld [vmem:[%s14679_s8 + $0x90] sm:$0xff]  ;;  %v6255_v43 = vld [vmem:[%s14679_s8 + $0xc8] sm:$0xff] }
 0x70d   :  { %v5639_v36 = vpop.f32.mrb[76].mxu0  ;;  %v5481_v56 = vadd.f32 %v5405_v10, %v14217_v50  ;;  %v9509_v39 = vpop.f32.mrb[161].mxu1  ;;  %v6246_v50 = vld [vmem:[%s14679_s8 + $0x80] sm:$0xff]  ;;  %v6251_v10 = vld [vmem:[%s14679_s8 + $0xa8] sm:$0xff] }
 0x70e   :  { %v9607_v27 = vpop.f32.mrb[77].mxu0  ;;  %v10412_v17 = vpack.c.bf16 %v6246_v50, %v6243_v22  ;;  %10444 = vmatpush3.bf16.msra.mxu1 %v10443_v18 }
 0x70f   :  { %v14321_v21 = vadd.f32 %v5634_v25, %v5481_v56  ;;  %10445 = vmatprep.subr.bf16.mxu1 %v14724_v42 }
 0x710   :  { %v5410_v40 = vpop.f32.mrb[162].mxu1  ;;  %10413 = vmatprep.subr.bf16.mxu0 %v10412_v17 }
 0x711   :  { %v5644_v20 = vpop.f32.mrb[78].mxu0  ;;  %v5482_v41 = vadd.f32 %v5410_v40, %v14222_v19  ;;  %v9512_v15 = vpop.f32.mrb[163].mxu1  ;;  %v6245_v19 = vld [vmem:[%s14679_s8 + $0x78] sm:$0xff] }
 0x712   :  { %v9610_v4 = vpop.f32.mrb[79].mxu0  ;;  %v10414_v52 = vpack.c.bf16 %v6245_v19, %v6242_v54  ;;  %v6253_v40 = vld [vmem:[%s14679_s8 + $0xb8] sm:$0xff]  ;;  %v14378_v54 = vpop.permute.xlu1 %6030 }
 0x713   :  { %v14337_v33 = vadd.f32 %v5639_v36, %v5482_v41  ;;  %v10418_v36 = vpack.c.bf16 %v6251_v10, %v6248_v23  ;;  %v6261_v23 = vld [vmem:[%s14679_s8 + $0xf8] sm:$0xff]  ;;  %v6264_v10 = vld [vmem:[%s14679_s8 + $0x110] sm:$0xff] }
 0x714   :  { %v5415_v53 = vpop.f32.mrb[164].mxu1  ;;  %10415 = vmatpush1.bf16.msra.mxu0 %v10414_v52 }
 0x715   :  { %v5649_v51 = vpop.f32.mrb[80].mxu0  ;;  %v5483_v63 = vadd.f32 %v5415_v53, %v14227_v24  ;;  %v9515_v60 = vpop.f32.mrb[165].mxu1  ;;  %v6249_v24 = vld [vmem:[%s14679_s8 + $0x98] sm:$0xff] }
 0x716   :  { %v9613_v55 = vpop.f32.mrb[81].mxu0  ;;  %v10416_v30 = vpack.c.bf16 %v6252_v0, %v6249_v24  ;;  %v6257_v0 = vld [vmem:[%s14679_s8 + $0xd8] sm:$0xff] }
 0x717   :  { %v14340_v45 = vadd.f32 %v5644_v20, %v5483_v63  ;;  %v10446_v20 = vpack.c.bf16 %v6253_v40, %v6250_v1  ;;  %v6265_v40 = vld [vmem:[%s14679_s8 + $0x118] sm:$0xff] }
 0x718   :  { %v5420_v25 = vpop.f32.mrb[166].mxu1  ;;  %10417 = vmatprep.subr.bf16.mxu0 %v10416_v30  ;;  %v6256_v30 = vld [vmem:[%s14679_s8 + $0xd0] sm:$0xff] }
 0x719   :  { %v5654_v28 = vpop.f32.mrb[82].mxu0  ;;  %v5484_v32 = vadd.f32 %v5420_v25, %v14230_v14  ;;  %v9518_v26 = vpop.f32.mrb[167].mxu1  ;;  %10419 = vmatpush1.bf16.msra.mxu0 %v10418_v36  ;;  %10447 = vmatpush3.bf16.msra.mxu1 %v10446_v20  ;;  %v6267_v20 = vld [vmem:[%s14679_s8 + $0x128] sm:$0xff] }
 0x71a   :  { %v9616_v11 = vpop.f32.mrb[83].mxu0  ;;  %10448 = vmatprep.subr.bf16.mxu1 %v14724_v42  ;;  %v14386_v26 = vpop.permute.xlu1 %6045 }
 0x71b   :  { %v14355_v14 = vadd.f32 %v5649_v51, %v5484_v32 }
 0x71c   :  { %v5425_v16 = vpop.f32.mrb[168].mxu1 }
 0x71d   :  { %v5659_v7 = vpop.f32.mrb[84].mxu0  ;;  %v5485_v44 = vadd.f32 %v5425_v16, %v14233_v9  ;;  %v9521_v48 = vpop.f32.mrb[169].mxu1 }
 0x71e   :  { %v9619_v58 = vpop.f32.mrb[85].mxu0 }
 0x71f   :  { %v14365_v13 = vadd.f32 %v5654_v28, %v5485_v44  ;;  %v6259_v58 = vld [vmem:[%s14679_s8 + $0xe8] sm:$0xff] }
 0x720   :  { %v5430_v62 = vpop.f32.mrb[170].mxu1  ;;  %v10449_v36 = vpack.c.bf16 %v6259_v58, %v6256_v30  ;;  %v6275_v30 = vld [vmem:[%s14679_s8 + $0x168] sm:$0xff] }
 0x721   :  { %v5664_v56 = vpop.f32.mrb[86].mxu0  ;;  %v5486_v9 = vadd.f32 %v5430_v62, %v14236_v31  ;;  %v9524_v39 = vpop.f32.mrb[171].mxu1  ;;  %v10424_v62 = vpack.c.bf16 %v6264_v10, %v6261_v23 }
 0x722   :  { %v9622_v27 = vpop.f32.mrb[87].mxu0  ;;  %v14424_v39 = vpop.permute.xlu0 %6025  ;;  %10450 = vmatpush3.bf16.msra.mxu1 %v10449_v36 }
 0x723   :  { %v14374_v41 = vadd.f32 %v5659_v7, %v5486_v9  ;;  %v6262_v9 = vld [vmem:[%s14679_s8 + $0x100] sm:$0xff]  ;;  %10451 = vmatprep.subr.bf16.mxu1 %v14724_v42 }
 0x724   :  { %v5435_v15 = vpop.f32.mrb[172].mxu1 }
 0x725   :  { %v5669_v4 = vpop.f32.mrb[88].mxu0  ;;  %v5487_v22 = vadd.f32 %v5435_v15, %v14239_v47  ;;  %v9527_v50 = vpop.f32.mrb[173].mxu1  ;;  %v6270_v15 = vld [vmem:[%s14679_s8 + $0x140] sm:$0xff] }
 0x726   :  { %v9625_v31 = vpop.f32.mrb[89].mxu0  ;;  %v10452_v50 = vpack.c.bf16 %v6265_v40, %v6262_v9  ;;  %v6036_v58 = vpop.permute.xlu0 %6035 }
 0x727   :  { %v14380_v17 = vadd.f32 %v5664_v56, %v5487_v22  ;;  %v6263_v56 = vld [vmem:[%s14679_s8 + $0x108] sm:$0xff]  ;;  %v10428_v31 = vpack.c.bf16 %v6270_v15, %v6267_v20  ;;  %v6455_v15 = vld [vmem:[#allocation11 + $0x80] sm:$0xff] }
 0x728   :  { %v5440_v19 = vpop.f32.mrb[174].mxu1  ;;  %10453 = vmatpush3.bf16.msra.mxu1 %v10452_v50 }
 0x729   :  { %v5674_v52 = vpop.f32.mrb[90].mxu0  ;;  %v5488_v53 = vadd.f32 %v5440_v19, %v14242_v34  ;;  %v9530_v51 = vpop.f32.mrb[175].mxu1  ;;  %v6258_v34 = vld [vmem:[%s14679_s8 + $0xe0] sm:$0xff]  ;;  %10454 = vmatprep.subr.bf16.mxu1 %v14724_v42 }
 0x72a   :  { %v9628_v63 = vpop.f32.mrb[91].mxu0  ;;  %v10420_v18 = vpack.c.bf16 %v6258_v34, %v6255_v43  ;;  %v6266_v19 = vld [vmem:[%s14679_s8 + $0x120] sm:$0xff] }
 0x72b   :  { %v14383_v60 = vadd.f32 %v5669_v4, %v5488_v53  ;;  %v6268_v53 = vld [vmem:[%s14679_s8 + $0x130] sm:$0xff] }
 0x72c   :  { %v5445_v55 = vpop.f32.mrb[176].mxu1  ;;  %10421 = vmatprep.subr.bf16.mxu0 %v10420_v18 }
 0x72d   :  { %v5679_v25 = vpop.f32.mrb[92].mxu0  ;;  %v5489_v47 = vadd.f32 %v5445_v55, %v14245_v37  ;;  %v9533_v28 = vpop.f32.mrb[177].mxu1  ;;  %v6254_v37 = vld [vmem:[%s14679_s8 + $0xc0] sm:$0xff] }
 0x72e   :  { %v9631_v32 = vpop.f32.mrb[93].mxu0  ;;  %v10422_v48 = vpack.c.bf16 %v6257_v0, %v6254_v37  ;;  %v6276_v28 = vld [vmem:[%s14679_s8 + $0x170] sm:$0xff] }
 0x72f   :  { %v14388_v11 = vadd.f32 %v5674_v52, %v5489_v47  ;;  %v6269_v52 = vld [vmem:[%s14679_s8 + $0x138] sm:$0xff]  ;;  %v14457_v32 = vpop.permute.xlu1 %6055  ;;  %v6272_v0 = vld [vmem:[%s14679_s8 + $0x150] sm:$0xff] }
 0x730   :  { %v5450_v59 = vpop.f32.mrb[178].mxu1  ;;  %10423 = vmatpush1.bf16.msra.mxu0 %v10422_v48  ;;  %v6273_v47 = vld [vmem:[%s14679_s8 + $0x158] sm:$0xff]  ;;  %v10434_v10 = vpack.c.bf16 %v6275_v30, %v6272_v0 }
 0x731   :  { %v5684_v24 = vpop.f32.mrb[94].mxu0  ;;  %v5490_v16 = vadd.f32 %v5450_v59, %v14248_v46  ;;  %v9536_v7 = vpop.f32.mrb[179].mxu1  ;;  %v6260_v46 = vld [vmem:[%s14679_s8 + $0xf0] sm:$0xff]  ;;  %10425 = vmatprep.subr.bf16.mxu0 %v10424_v62  ;;  %v10432_v37 = vpack.c.bf16 %v6276_v28, %v6273_v47  ;;  %v6277_v48 = vld [vmem:[%s14679_s8 + $0x178] sm:$0xff] }
 0x732   :  { %v9634_v44 = vpop.f32.mrb[95].mxu0  ;;  %v10426_v1 = vpack.c.bf16 %v6263_v56, %v6260_v46 }
 0x733   :  { %v14426_v27 = vadd.f32 %v5679_v25, %v5490_v16  ;;  %v6271_v25 = vld [vmem:[%s14679_s8 + $0x148] sm:$0xff]  ;;  %v6274_v44 = vld [vmem:[%s14679_s8 + $0x160] sm:$0xff] }
 0x734   :  { %v5455_v4 = vpop.f32.mrb[180].mxu1  ;;  %10427 = vmatpush1.bf16.msra.mxu0 %v10426_v1  ;;  %v10455_v18 = vpack.c.bf16 %v6271_v25, %v6268_v53  ;;  %v14479_v1 = vpop.permute.xlu1 %6080 }
 0x735   :  { %v5689_v22 = vpop.f32.mrb[96].mxu0  ;;  %v5491_v51 = vadd.f32 %v5455_v4, %v14251_v29  ;;  %v9539_v63 = vpop.f32.mrb[181].mxu1  ;;  %v10430_v29 = vpack.c.bf16 %v6269_v52, %v6266_v19  ;;  %10429 = vmatprep.subr.bf16.mxu0 %v10428_v31  ;;  %v6456_v4 = vld [vmem:[#allocation11 + $0x88] sm:$0xff] }
 0x736   :  { %v9637_v55 = vpop.f32.mrb[97].mxu0  ;;  %10456 = vmatpush3.bf16.msra.mxu1 %v10455_v18  ;;  %v10460_v31 = vpack.c.bf16 %v6456_v4, %v6455_v15 }
 0x737   :  { %v14459_v43 = vadd.f32 %v5684_v24, %v5491_v51  ;;  %10457 = vmatprep.subr.bf16.mxu1 %v14724_v42  ;;  %v14492_v51 = vld [vmem:[%s14676_s5] ss:$0 sm:$0xff] }
 0x738   :  { %v5460_v34 = vpop.f32.mrb[182].mxu1  ;;  %10431 = vmatpush1.bf16.msra.mxu0 %v10430_v29  ;;  %v14487_v52 = vpop.permute.xlu1 %6090 }
 0x739   :  { %v5694_v59 = vpop.f32.mrb[98].mxu0  ;;  %v5492_v16 = vadd.f32 %v5460_v34, %v14254_v5  ;;  %v9542_v24 = vpop.f32.mrb[183].mxu1  ;;  %10433 = vmatprep.subr.bf16.mxu0 %v10432_v37  ;;  %v10458_v5 = vpack.c.bf16 %v6277_v48, %v6274_v44 }
 0x73a   :  { %v9640_v7 = vpop.f32.mrb[99].mxu0 }
 0x73b   :  { %v14475_v23 = vadd.f32 %v5689_v22, %v5492_v16  ;;  %10459 = vmatpush3.bf16.msra.mxu1 %v10458_v5 }
 0x73c   :  { %v5465_v36 = vpop.f32.mrb[184].mxu1  ;;  %10435 = vmatpush1.bf16.msra.mxu0 %v10434_v10  ;;  %10492 = vmatprep.subr.bf16.mxu1 %v14724_v42 }
 0x73d   :  { %v5699_v62 = vpop.f32.mrb[100].mxu0  ;;  %v5493_v46 = vadd.f32 %v5465_v36, %v14257_v35  ;;  %v9545_v56 = vpop.f32.mrb[185].mxu1  ;;  %10461 = vmatprep.subr.bf16.mxu0 %v10460_v31 }
 0x73e   :  { %v9643_v9 = vpop.f32.mrb[101].mxu0  ;;  %v6051_v35 = vpop.permute.xlu0 %6050 }
 0x73f   :  { %v14481_v40 = vadd.f32 %v5694_v59, %v5493_v46  ;;  %v14499_v59 = vpop.permute.xlu1 %6100 }
 0x740   :  { %v5470_v20 = vpop.f32.mrb[186].mxu1 }
 0x741   :  { %v5494_v22 = vadd.f32 %v5470_v20, %v14260_v6  ;;  %v9548_v50 = vpop.f32.mrb[187].mxu1 }
 0x742   :  { %v14496_v25 = vpop.permute.xlu0 %6075 }
 0x743   :  { %v14485_v19 = vadd.f32 %v5699_v62, %v5494_v22  ;;  %v14512_v44 = vpop.permute.xlu1 %6110 }
 0x744   :  { %v5828_v53 = vpop.f32.mrb[188].mxu1 }
 0x745   :  { %v5932_v63 = vadd.f32 %v5828_v53, %v14263_v8  ;;  %v9678_v55 = vpop.f32.mrb[189].mxu1 }
 0x746   :  { %v14506_v24 = vpop.permute.xlu0 %6085 }
 0x747   :  { %v5960_v6 = vadd.f32 %v14492_v51, %v5932_v63  ;;  %v6041_v20 = vpop.permute.xlu1 %6040 }
 0x748   :  { %v5833_v47 = vpop.f32.mrb[190].mxu1 }
 0x749   :  { %v5981_v28 = vmax.f32 %v5960_v6, 0.0  ;;  %v5933_v29 = vadd.f32 %v5833_v47, %v14272_v3  ;;  %v9681_v34 = vpop.f32.mrb[191].mxu1 }
 0x74b   :  { %v14502_v18 = vmul.f32 %v14424_v39, %v5981_v28  ;;  %v5961_v37 = vadd.f32 %v14492_v51, %v5933_v29 }
 0x74c   :  { %v5838_v0 = vpop.f32.mrb[192].mxu1 }
 0x74d   :  { %v5982_v30 = vmax.f32 %v5961_v37, 0.0  ;;  %v5934_v8 = vadd.f32 %v5838_v0, %v14275_v2  ;;  %v9684_v16 = vpop.f32.mrb[193].mxu1  ;;  %v14518_v2 = vpop.permute.xlu0 %6095 }
 0x74f   :  { %v14509_v7 = vmul.f32 %v14378_v54, %v5982_v30  ;;  %v5962_v3 = vadd.f32 %v14492_v51, %v5934_v8 }
 0x750   :  { %v5843_v48 = vpop.f32.mrb[194].mxu1 }
 0x751   :  { %v5983_v10 = vmax.f32 %v5962_v3, 0.0  ;;  %v5935_v39 = vadd.f32 %v5843_v48, %v14278_v49  ;;  %v9687_v36 = vpop.f32.mrb[195].mxu1  ;;  %v14525_v31 = vpop.permute.xlu0 %6105 }
 0x753   :  { %v14515_v62 = vmul.f32 %v6036_v58, %v5983_v10  ;;  %v5963_v5 = vadd.f32 %v14492_v51, %v5935_v39 }
 0x754   :  { %v5848_v46 = vpop.f32.mrb[196].mxu1 }
 0x755   :  { %v5984_v56 = vmax.f32 %v5963_v5, 0.0  ;;  %v5936_v54 = vadd.f32 %v5848_v46, %v14281_v12  ;;  %v9690_v9 = vpop.f32.mrb[197].mxu1  ;;  %v14532_v37 = vpop.permute.xlu0 %6125 }
 0x757   :  { %v14521_v15 = vmul.f32 %v6041_v20, %v5984_v56  ;;  %v5964_v4 = vadd.f32 %v14492_v51, %v5936_v54  ;;  %v6066_v54 = vpop.permute.xlu1 %6065 }
 0x758   :  { %v5853_v22 = vpop.f32.mrb[198].mxu1 }
 0x759   :  { %v5985_v50 = vmax.f32 %v5964_v4, 0.0  ;;  %v5937_v49 = vadd.f32 %v5853_v22, %v14284_v61  ;;  %v9693_v58 = vpop.f32.mrb[199].mxu1  ;;  %v6061_v39 = vpop.permute.xlu0 %6060 }
 0x75b   :  { %v6132_v53 = vmul.f32 %v14386_v26, %v5985_v50  ;;  %v5965_v63 = vadd.f32 %v14492_v51, %v5937_v49 }
 0x75c   :  { %v5858_v55 = vpop.f32.mrb[200].mxu1 }
 0x75d   :  { %v6181_v12 = vmax.f32 %v14502_v18, %v6132_v53  ;;  %v5986_v6 = vmax.f32 %v5965_v63, 0.0  ;;  %v5938_v47 = vadd.f32 %v5858_v55, %v14311_v57  ;;  %v9696_v28 = vpop.f32.mrb[201].mxu1  ;;  %v6071_v49 = vpop.permute.xlu0 %6070 }
 0x75f   :  { %v6133_v29 = vmul.f32 %v6051_v35, %v5986_v6  ;;  %v5966_v34 = vadd.f32 %v14492_v51, %v5938_v47 }
 0x760   :  { %v5863_v61 = vpop.f32.mrb[202].mxu1 }
 0x761   :  { %v6182_v0 = vmax.f32 %v14509_v7, %v6133_v29  ;;  %v5987_v30 = vmax.f32 %v5966_v34, 0.0  ;;  %v5939_v26 = vadd.f32 %v5863_v61, %v14321_v21  ;;  %v9699_v8 = vpop.f32.mrb[203].mxu1 }
 0x763   :  { %v6134_v16 = vmul.f32 %v14457_v32, %v5987_v30  ;;  %v5967_v18 = vadd.f32 %v14492_v51, %v5939_v26 }
 0x764   :  { %v5868_v3 = vpop.f32.mrb[204].mxu1 }
 0x765   :  { %v6183_v57 = vmax.f32 %v14515_v62, %v6134_v16  ;;  %v5988_v48 = vmax.f32 %v5967_v18, 0.0  ;;  %v5940_v35 = vadd.f32 %v5868_v3, %v14337_v33  ;;  %v9702_v10 = vpop.f32.mrb[205].mxu1 }
 0x767   :  { %v6135_v36 = vmul.f32 %v6061_v39, %v5988_v48  ;;  %v5968_v5 = vadd.f32 %v14492_v51, %v5940_v35 }
 0x768   :  { %v5873_v7 = vpop.f32.mrb[206].mxu1 }
 0x769   :  { %v6184_v46 = vmax.f32 %v14521_v15, %v6135_v36  ;;  %v5989_v21 = vmax.f32 %v5968_v5, 0.0  ;;  %v5941_v56 = vadd.f32 %v5873_v7, %v14340_v45  ;;  %v9705_v32 = vpop.f32.mrb[207].mxu1 }
 0x76b   :  { %v6136_v9 = vmul.f32 %v6066_v54, %v5989_v21  ;;  %v5969_v20 = vadd.f32 %v14492_v51, %v5941_v56 }
 0x76c   :  { %v5878_v62 = vpop.f32.mrb[208].mxu1 }
 0x76d   :  { %v6185_v4 = vmax.f32 %v6181_v12, %v6136_v9  ;;  %v5990_v22 = vmax.f32 %v5969_v20, 0.0  ;;  %v5942_v33 = vadd.f32 %v5878_v62, %v14355_v14  ;;  %v9708_v50 = vpop.f32.mrb[209].mxu1 }
 0x76f   :  { %v6137_v58 = vmul.f32 %v6071_v49, %v5990_v22  ;;  %v5970_v53 = vadd.f32 %v14492_v51, %v5942_v33 }
 0x770   :  { %v5883_v63 = vpop.f32.mrb[210].mxu1 }
 0x771   :  { %v6186_v15 = vmax.f32 %v6182_v0, %v6137_v58  ;;  %v5991_v55 = vmax.f32 %v5970_v53, 0.0  ;;  %v5943_v45 = vadd.f32 %v5883_v63, %v14365_v13  ;;  %v9711_v6 = vpop.f32.mrb[211].mxu1 }
 0x773   :  { %v6190_v47 = vmax.f32 %v6185_v4, %v6186_v15  ;;  %v6138_v28 = vmul.f32 %v14496_v25, %v5991_v55  ;;  %v5971_v29 = vadd.f32 %v14492_v51, %v5943_v45 }
 0x774   :  { %v5888_v12 = vpop.f32.mrb[212].mxu1 }
 0x775   :  { %6159 = vst [vmem:[#allocation4 + $0x50] sm:$0xff] %v6138_v28  ;;  %v5992_v34 = vmax.f32 %v5971_v29, 0.0  ;;  %v5944_v14 = vadd.f32 %v5888_v12, %v14374_v41  ;;  %v9714_v61 = vpop.f32.mrb[213].mxu1 }
 0x777   :  { %v6139_v30 = vmul.f32 %v14479_v1, %v5992_v34  ;;  %v5972_v26 = vadd.f32 %v14492_v51, %v5944_v14  ;;  %v6116_v34 = vpop.permute.xlu1 %6115 }
 0x778   :  { %v5893_v0 = vpop.f32.mrb[214].mxu1 }
 0x779   :  { %6160 = vst [vmem:[#allocation4 + $0x58] sm:$0xff] %v6139_v30  ;;  %v5993_v8 = vmax.f32 %v5972_v26, 0.0  ;;  %v5945_v13 = vadd.f32 %v5893_v0, %v14380_v17  ;;  %v9717_v16 = vpop.f32.mrb[215].mxu1 }
 0x77b   :  { %v6140_v25 = vmul.f32 %v14506_v24, %v5993_v8  ;;  %v5973_v18 = vadd.f32 %v14492_v51, %v5945_v13 }
 0x77c   :  { %v6180_v3 = vld [vmem:[#allocation4 + $0x50] sm:$0x1]  ;;  %v5898_v48 = vpop.f32.mrb[216].mxu1 }
 0x77d   :  { %v6188_v41 = vsel %vm6187_vm13, %v6180_v3, -inf  ;;  %6161 = vst [vmem:[#allocation4 + $0x60] sm:$0xff] %v6140_v25  ;;  %v5994_v35 = vmax.f32 %v5973_v18, 0.0  ;;  %v5946_v1 = vadd.f32 %v5898_v48, %v14383_v60  ;;  %v9720_v10 = vpop.f32.mrb[217].mxu1 }
 0x77e   :  { %v6189_v39 = vmax.f32 %v6183_v57, %v6188_v41 }
 0x77f   :  { %v6141_v36 = vmul.f32 %v14487_v52, %v5994_v35  ;;  %v5974_v17 = vadd.f32 %v14492_v51, %v5946_v1 }
 0x780   :  { %v6191_v5 = vmax.f32 %v6189_v39, %v6184_v46  ;;  %v5903_v7 = vpop.f32.mrb[218].mxu1  ;;  %v6200_v48 = vld [vmem:[#allocation4 + $0x51] sm:$0xff] }
 0x781   :  { %6162 = vst [vmem:[#allocation4 + $0x68] sm:$0xff] %v6141_v36  ;;  %v5995_v24 = vmax.f32 %v5974_v17, 0.0  ;;  %v5947_v21 = vadd.f32 %v5903_v7, %v14388_v11  ;;  %v9723_v56 = vpop.f32.mrb[219].mxu1 }
 0x782   :  { %v6192_v32 = vmax.f32 %v6190_v47, %v6191_v5 }
 0x783   :  { %v6142_v54 = vmul.f32 %v14518_v2, %v5995_v24  ;;  %v5975_v9 = vadd.f32 %v14492_v51, %v5947_v21 }
 0x784   :  { %v6193_v20 = vrot.slane %v6192_v32, 4  ;;  %v5908_v60 = vpop.f32.mrb[220].mxu1  ;;  %v6201_v41 = vld [vmem:[#allocation4 + $0x59] sm:$0xff] }
 0x785   :  { %6163 = vst [vmem:[#allocation4 + $0x70] sm:$0xff] %v6142_v54  ;;  %v5996_v57 = vmax.f32 %v5975_v9, 0.0  ;;  %v5948_v52 = vadd.f32 %v5908_v60, %v14426_v27  ;;  %v9726_v62 = vpop.f32.mrb[221].mxu1 }
 0x786   :  { %v6194_v4 = vmax.f32 %v6192_v32, %v6193_v20 }
 0x787   :  { %v6143_v46 = vmul.f32 %v14499_v59, %v5996_v57  ;;  %v5976_v22 = vadd.f32 %v14492_v51, %v5948_v52 }
 0x788   :  { %v6195_v33 = vrot.slane %v6194_v4, 2  ;;  %v5913_v11 = vpop.f32.mrb[222].mxu1  ;;  %v6202_v1 = vld [vmem:[#allocation4 + $0x61] sm:$0xff] }
 0x789   :  { %6164 = vst [vmem:[#allocation4 + $0x78] sm:$0xff] %v6143_v46  ;;  %v5997_v50 = vmax.f32 %v5976_v22, 0.0  ;;  %v5949_v2 = vadd.f32 %v5913_v11, %v14459_v43  ;;  %v9729_v49 = vpop.f32.mrb[223].mxu1  ;;  %v6439_v46 = vld [vmem:[#allocation11] sm:$0xff]  ;;  %v6440_v22 = vld [vmem:[#allocation11 + $0x8] sm:$0xff] }
 0x78a   :  { %v6196_v58 = vmax.f32 %v6194_v4, %v6195_v33  ;;  %v6471_v33 = vld [vmem:[#allocation11 + $0x100] sm:$0xff]  ;;  %v6472_v11 = vld [vmem:[#allocation11 + $0x108] sm:$0xff]  ;;  %v10462_v49 = vpack.c.bf16 %v6440_v22, %v6439_v46 }
 0x78b   :  { %v6144_v53 = vmul.f32 %v14525_v31, %v5997_v50  ;;  %v5977_v63 = vadd.f32 %v14492_v51, %v5949_v2  ;;  %v6457_v50 = vld [vmem:[#allocation11 + $0x90] sm:$0xff]  ;;  %v6458_v2 = vld [vmem:[#allocation11 + $0x98] sm:$0xff] }
 0x78c   :  { %v5918_v15 = vpop.f32.mrb[224].mxu1  ;;  %v6197_v27 = vrot.slane %v6196_v58, 1  ;;  %v6203_v7 = vld [vmem:[#allocation4 + $0x69] sm:$0xff] }
 0x78d   :  { %6165 = vst [vmem:[#allocation4 + $0x80] sm:$0xff] %v6144_v53  ;;  %v5998_v55 = vmax.f32 %v5977_v63, 0.0  ;;  %v5950_v59 = vadd.f32 %v5918_v15, %v14475_v23  ;;  %v9732_v45 = vpop.f32.mrb[225].mxu1  ;;  %v10464_v53 = vpack.c.bf16 %v6458_v2, %v6457_v50  ;;  %v6441_v63 = vld [vmem:[#allocation11 + $0x10] sm:$0xff]  ;;  %v6442_v15 = vld [vmem:[#allocation11 + $0x18] sm:$0xff] }
 0x78e   :  { %v6198_v6 = vmax.f32 %v6196_v58, %v6197_v27  ;;  %v10493_v58 = vpack.c.bf16 %v6472_v11, %v6471_v33  ;;  %v10466_v45 = vpack.c.bf16 %v6442_v15, %v6441_v63 }
 0x78f   :  { %v6145_v47 = vmul.f32 %v14512_v44, %v5998_v55  ;;  %v5978_v28 = vadd.f32 %v14492_v51, %v5950_v59  ;;  %v6121_v44 = vpop.permute.xlu0 %6120  ;;  %v6459_v55 = vld [vmem:[#allocation11 + $0xa0] sm:$0xff]  ;;  %v6460_v59 = vld [vmem:[#allocation11 + $0xa8] sm:$0xff] }
 0x790   :  { %v5923_v29 = vpop.f32.mrb[226].mxu1  ;;  %6199 = vst [vmem:[#allocation5] sm:$0x1] %v6198_v6  ;;  %v10468_v6 = vpack.c.bf16 %v6460_v59, %v6459_v55 }
 0x791   :  { %6166 = vst [vmem:[#allocation4 + $0x88] sm:$0xff] %v6145_v47  ;;  %v5999_v43 = vmax.f32 %v5978_v28, 0.0  ;;  %v5951_v31 = vadd.f32 %v5923_v29, %v14481_v40  ;;  %v9735_v12 = vpop.f32.mrb[227].mxu1  ;;  %v6204_v40 = vld [vmem:[#allocation4 + $0x71] sm:$0xff]  ;;  %v6461_v29 = vld [vmem:[#allocation11 + $0xb0] sm:$0xff] }
 0x792   :  { %v6211_v10 = vmax.f32 %v6200_v48, %v6204_v40  ;;  %v6443_v47 = vld [vmem:[#allocation11 + $0x20] sm:$0xff]  ;;  %v6444_v28 = vld [vmem:[#allocation11 + $0x28] sm:$0xff]  ;;  %v6465_v40 = vld [vmem:[#allocation11 + $0xd0] sm:$0xff] }
 0x793   :  { %v6146_v14 = vmul.f32 %v6116_v34, %v5999_v43  ;;  %v5979_v61 = vadd.f32 %v14492_v51, %v5951_v31  ;;  %v6462_v43 = vld [vmem:[#allocation11 + $0xb8] sm:$0xff]  ;;  %v10470_v31 = vpack.c.bf16 %v6444_v28, %v6443_v47  ;;  %v6445_v34 = vld [vmem:[#allocation11 + $0x30] sm:$0xff] }
 0x794   :  { %v5928_v30 = vpop.f32.mrb[228].mxu1  ;;  %v6205_v18 = vld [vmem:[#allocation4 + $0x79] sm:$0xff]  ;;  %v10472_v12 = vpack.c.bf16 %v6462_v43, %v6461_v29  ;;  %v6647_v28 = vld [vmem:[%s14683_s12 + $0x10] sm:$0xff]  ;;  %v6648_v43 = vld [vmem:[%s14683_s12 + $0x18] sm:$0xff] }
 0x795   :  { %6167 = vst [vmem:[#allocation4 + $0x90] sm:$0xff] %v6146_v14  ;;  %v6000_v23 = vmax.f32 %v5979_v61, 0.0  ;;  %v5952_v26 = vadd.f32 %v5928_v30, %v14485_v19  ;;  %v9738_v0 = vpop.f32.mrb[229].mxu1  ;;  %v6212_v39 = vmax.f32 %v6201_v41, %v6205_v18  ;;  %v6446_v14 = vld [vmem:[#allocation11 + $0x38] sm:$0xff]  ;;  %v6463_v30 = vld [vmem:[#allocation11 + $0xc0] sm:$0xff]  ;;  %v6449_v48 = vld [vmem:[#allocation11 + $0x50] sm:$0xff] }
 0x796   :  { %v10474_v61 = vpack.c.bf16 %v6446_v14, %v6445_v34  ;;  %v6447_v0 = vld [vmem:[#allocation11 + $0x40] sm:$0xff]  ;;  %v6466_v18 = vld [vmem:[#allocation11 + $0xd8] sm:$0xff] }
 0x797   :  { %v6147_v8 = vmul.f32 %v6121_v44, %v6000_v23  ;;  %v5980_v13 = vadd.f32 %v14492_v51, %v5952_v26  ;;  %v6464_v23 = vld [vmem:[#allocation11 + $0xc8] sm:$0xff]  ;;  %v6450_v41 = vld [vmem:[#allocation11 + $0x58] sm:$0xff] }
 0x798   :  { %v6206_v3 = vld [vmem:[#allocation4 + $0x81] sm:$0xff]  ;;  %v10476_v26 = vpack.c.bf16 %v6464_v23, %v6463_v30  ;;  %v6448_v44 = vld [vmem:[#allocation11 + $0x48] sm:$0xff] }
 0x799   :  { %6168 = vst [vmem:[#allocation4 + $0x98] sm:$0xff] %v6147_v8  ;;  %v6001_v16 = vmax.f32 %v5980_v13, 0.0  ;;  %v6213_v36 = vmax.f32 %v6202_v1, %v6206_v3  ;;  %v10478_v8 = vpack.c.bf16 %v6448_v44, %v6447_v0  ;;  %v6473_v13 = vld [vmem:[#allocation11 + $0x110] sm:$0xff]  ;;  %v10480_v3 = vpack.c.bf16 %v6466_v18, %v6465_v40  ;;  %v6475_v1 = vld [vmem:[#allocation11 + $0x120] sm:$0xff]  ;;  %v7210_v44 = vld [vmem:[%s14682_s11] ss:$0 sm:$0xff] }
 0x79a   :  { %v6646_v47 = vld [vmem:[%s14683_s12 + $0x8] sm:$0xff]  ;;  %v6651_v14 = vld [vmem:[%s14683_s12 + $0x30] sm:$0xff] }
 0x79b   :  { %v6148_v25 = vmul.f32 %v14532_v37, %v6001_v16  ;;  %v6474_v16 = vld [vmem:[#allocation11 + $0x118] sm:$0xff] }
 0x79c   :  { %v6207_v19 = vld [vmem:[#allocation4 + $0x89] sm:$0xff] }
 0x79d   :  { %6169 = vst [vmem:[#allocation4 + $0xa0] sm:$0x3] %v6148_v25  ;;  %v6214_v37 = vmax.f32 %v6203_v7, %v6207_v19  ;;  %v10496_v25 = vpack.c.bf16 %v6474_v16, %v6473_v13 }
 0x7a0   :  { %v6208_v35 = vld [vmem:[#allocation4 + $0x91] sm:$0xff] }
 0x7a1   :  { %v6215_v51 = vmax.f32 %v6211_v10, %v6208_v35  ;;  %v10482_v35 = vpack.c.bf16 %v6450_v41, %v6449_v48  ;;  %v6476_v10 = vld [vmem:[#allocation11 + $0x128] sm:$0xff]  ;;  %v6654_v41 = vld [vmem:[%s14683_s12 + $0x48] sm:$0xff] }
 0x7a2   :  { %v10499_v19 = vpack.c.bf16 %v6476_v10, %v6475_v1  ;;  %v6653_v48 = vld [vmem:[%s14683_s12 + $0x40] sm:$0xff]  ;;  %v6655_v1 = vld [vmem:[%s14683_s12 + $0x50] sm:$0xff]  ;;  %v6656_v10 = vld [vmem:[%s14683_s12 + $0x58] sm:$0xff] }
 0x7a4   :  { %v6209_v17 = vld [vmem:[#allocation4 + $0x99] sm:$0xff]  ;;  %v6210_v5 = vld [vmem:[#allocation4 + $0xa1] sm:$0x1] }
 0x7a5   :  { %v6216_v24 = vmax.f32 %v6212_v39, %v6209_v17  ;;  %v6217_v21 = vsel %vm6187_vm13, %v6210_v5, -inf  ;;  %v6467_v39 = vld [vmem:[#allocation11 + $0xe0] sm:$0xff]  ;;  %v6452_v5 = vld [vmem:[#allocation11 + $0x68] sm:$0xff] }
 0x7a6   :  { %v6218_v56 = vmax.f32 %v6213_v36, %v6217_v21  ;;  %v6468_v36 = vld [vmem:[#allocation11 + $0xe8] sm:$0xff]  ;;  %v6451_v17 = vld [vmem:[#allocation11 + $0x60] sm:$0xff]  ;;  %v6478_v21 = vld [vmem:[#allocation11 + $0x138] sm:$0xff] }
 0x7a7   :  { %v6219_v32 = vmax.f32 %v6215_v51, %v6216_v24  ;;  %v10484_v7 = vpack.c.bf16 %v6468_v36, %v6467_v39  ;;  %v10486_v51 = vpack.c.bf16 %v6452_v5, %v6451_v17  ;;  %v6477_v24 = vld [vmem:[#allocation11 + $0x130] sm:$0xff]  ;;  %v10520_v39 = vpack.c.bf16 %v6656_v10, %v6655_v1  ;;  %v6659_v5 = vld [vmem:[%s14683_s12 + $0x70] sm:$0xff] }
 0x7a8   :  { %v6220_v54 = vmax.f32 %v6218_v56, %v6214_v37  ;;  %v6469_v37 = vld [vmem:[#allocation11 + $0xf0] sm:$0xff]  ;;  %v6470_v56 = vld [vmem:[#allocation11 + $0xf8] sm:$0xff] }
 0x7a9   :  { %v6658_v36 = vld [vmem:[%s14683_s12 + $0x68] sm:$0xff] }
 0x7aa   :  { %v6221_v9 = vmax.f32 %v6219_v32, %v6220_v54  ;;  %v6453_v32 = vld [vmem:[#allocation11 + $0x70] sm:$0xff]  ;;  %v6454_v54 = vld [vmem:[#allocation11 + $0x78] sm:$0xff] }
 0x7ac   :  { %v6222_v20 = vrot.slane %v6221_v9, 4 }
 0x7ae   :  { %v6223_v60 = vmax.f32 %v6221_v9, %v6222_v20  ;;  %v10502_v9 = vpack.c.bf16 %v6478_v21, %v6477_v24  ;;  %v10488_v20 = vpack.c.bf16 %v6470_v56, %v6469_v37 }
 0x7b0   :  { %v6224_v57 = vrot.slane %v6223_v60, 2 }
 0x7b2   :  { %v6225_v52 = vmax.f32 %v6223_v60, %v6224_v57  ;;  %v10490_v60 = vpack.c.bf16 %v6454_v54, %v6453_v32  ;;  %v14811_v57 = vlaneseq  ;;  %v6661_v32 = vld [vmem:[%s14684_s13] sm:$0x1] }
 0x7b3   :  { %v6662_v54 = vsub.f32 1.0, %v6661_v32  ;;  %vm6739_vm0 = vcmp.gt.f32.partialorder %v6661_v32, 0.5 }
 0x7b4   :  { %v6226_v62 = vrot.slane %v6225_v52, 1 }
 0x7b6   :  { %v6227_v4 = vmax.f32 %v6225_v52, %v6226_v62  ;;  %v6281_v52 = vshrl.u32 %v14811_v57, 7 }
 0x7b8   :  { %6228 = vst [vmem:[#allocation5 + $0x1] sm:$0x1] %v6227_v4  ;;  %v6290_v62 = vsub.s32 2, %v6281_v52  ;;  %v6278_v4 = vld [vmem:[%s14680_s9] sm:$0x7]  ;;  %v14587_v46 = vsub.s32 0, %v6281_v52 }
 0x7b9   :  { %v6286_v22 = vsub.s32 1, %v6281_v52 }
 0x7ba   :  { %v6291_v33 = vrot.slane %v6278_v4, %v6290_v62  ;;  %v6283_v11 = vrot.slane %v6278_v4, %v14587_v46 }
 0x7bb   :  { %v6287_v50 = vrot.slane %v6278_v4, %v6286_v22 }
 0x7bf   :  { %v6229_v27 = vld [vmem:[#allocation5] sm:$0x3] }
 0x7c0   :  { %6360 = vmatmul.mubr.f32.vlgmr.msra.gmra.mrb[102].mxu0 %v6229_v27  ;;  %9772 = vmatmul.mubr.f32.vlgmr.msra.gmra.mrb[230].mxu1 %v6229_v27 }
 0x7c1   :  { %10463 = vmatpush3.bf16.msra.mxu0 %v10462_v49  ;;  %10494 = vmatpush3.bf16.msra.mxu1 %v10493_v58 }
 0x7c2   :  { %10465 = vmatprep.subr.bf16.mxu0 %v10464_v53  ;;  %10495 = vmatprep.subr.bf16.mxu1 %v14724_v42 }
 0x7c3   :  { %9790 = vmatprep.mubr.msk.f32.mxu1 %vm10767_vm10, %v14719_v38 }
 0x7c5   :  { %10467 = vmatpush3.bf16.msra.mxu0 %v10466_v45  ;;  %10497 = vmatpush3.bf16.msra.mxu1 %v10496_v25  ;;  %v7212_v25 = vld [vmem:[%s14685_s14] ss:$0 sm:$0xff] }
 0x7c6   :  { %10469 = vmatprep.subr.bf16.mxu0 %v10468_v6  ;;  %10498 = vmatprep.subr.bf16.mxu1 %v14724_v42  ;;  %v6645_v6 = vld [vmem:[%s14683_s12] sm:$0xff] }
 0x7c7   :  { %v10505_v29 = vpack.c.bf16 %v6646_v47, %v6645_v6 }
 0x7c9   :  { %10471 = vmatpush3.bf16.msra.mxu0 %v10470_v31  ;;  %10500 = vmatpush3.bf16.msra.mxu1 %v10499_v19  ;;  %v10508_v31 = vpack.c.bf16 %v6648_v43, %v6647_v28  ;;  %v6657_v19 = vld [vmem:[%s14683_s12 + $0x60] sm:$0xff] }
 0x7ca   :  { %10473 = vmatprep.subr.bf16.mxu0 %v10472_v12  ;;  %10501 = vmatprep.subr.bf16.mxu1 %v14724_v42  ;;  %v6650_v12 = vld [vmem:[%s14683_s12 + $0x28] sm:$0xff]  ;;  %v10523_v17 = vpack.c.bf16 %v6658_v36, %v6657_v19 }
 0x7cd   :  { %10475 = vmatpush3.bf16.msra.mxu0 %v10474_v61  ;;  %10503 = vmatpush3.bf16.msra.mxu1 %v10502_v9  ;;  %v6652_v61 = vld [vmem:[%s14683_s12 + $0x38] sm:$0xff]  ;;  %v6667_v9 = vrot.slane %v6662_v54, %v14587_v46 }
 0x7ce   :  { %10477 = vmatprep.subr.bf16.mxu0 %v10476_v26  ;;  %v10514_v30 = vpack.c.bf16 %v6652_v61, %v6651_v14 }
 0x7d1   :  { %10479 = vmatpush3.bf16.msra.mxu0 %v10478_v8 }
 0x7d2   :  { %10481 = vmatprep.subr.bf16.mxu0 %v10480_v3 }
 0x7d5   :  { %10483 = vmatpush3.bf16.msra.mxu0 %v10482_v35  ;;  %v10517_v35 = vpack.c.bf16 %v6654_v41, %v6653_v48 }
 0x7d6   :  { %10485 = vmatprep.subr.bf16.mxu0 %v10484_v7  ;;  %v6660_v7 = vld [vmem:[%s14683_s12 + $0x78] sm:$0xff] }
 0x7d9   :  { %10487 = vmatpush3.bf16.msra.mxu0 %v10486_v51  ;;  %v10526_v51 = vpack.c.bf16 %v6660_v7, %v6659_v5 }
 0x7da   :  { %10489 = vmatprep.subr.bf16.mxu0 %v10488_v20 }
 0x7dd   :  { %10491 = vmatpush3.bf16.msra.mxu0 %v10490_v60 }
 0x7de   :  { %10504 = vmatprep.subr.bf16.mxu0 %v14724_v42 }
 0x893   :  { %v6361_v2 = vpop.f32.mrb[102].mxu0  ;;  %v6432_v49 = vpop.f32.mrb[230].mxu1 }
 0x894   :  { %v6433_v58 = vadd.f32 %v6432_v49, %v6291_v33  ;;  %v6363_v53 = vpop.f32.mrb[103].mxu0  ;;  %v9773_v63 = vpop.f32.mrb[231].mxu1  ;;  %v6362_v15 = vadd.f32 %v6361_v2, %v6283_v11 }
 0x895   :  { %v6364_v27 = vadd.f32 %v6363_v53, %v6287_v50 }
 0x896   :  { %10653 = vtanh.f32 %v6433_v58 }
 0x897   :  { %10655 = vtanh.f32 %v6364_v27 }
 0x898   :  { %10657 = vtanh.f32 %v6362_v15 }
 0x8a0   :  { %v10654_v55 = vpop.eup %10653 }
 0x8a1   :  { %v10656_v59 = vpop.eup %10655  ;;  %9791 = vmatmul.mubr.msk.f32.vlgmr.msra.gmra.mrb[232].mxu1 %vm6486_vm14, %v10654_v55 }
 0x8a2   :  { %v10658_v45 = vpop.eup %10657  ;;  %6554 = vmatprep.mubr.f32.mxu0 %v10656_v59 }
 0x8a3   :  { %6555 = vmatmul.mubr.f32.vlgmr.msra.gmra.mrb[104].mxu0 %v10658_v45 }
 0x8a4   :  { %9825 = vmatprep.mubr.msk.f32.mxu0 %vm10767_vm10, %v14719_v38  ;;  %10506 = vmatpush3.bf16.msra.mxu0 %v10505_v29  ;;  %v6649_v38 = vld [vmem:[%s14683_s12 + $0x20] sm:$0xff]  ;;  %s10769_s12 = smov [#allocation12]  }
 0x8a5   :  { %10507 = vmatprep.subr.bf16.mxu0 %v14724_v42  ;;  %v10511_v34 = vpack.c.bf16 %v6650_v12, %v6649_v38  ;;  %s6758_s19 = sshll.u32 %s10769_s12, 4  ;;  %s6759_s19 = int_to_ptr.vmem [resolvable:$true] %s6758_s19 }
 0x8a6   :  { %s10729_s13 = scalar_lea.vmem %s6759_s19, 32  ;;  %p10734_p11 = scmp.lt.s32.totalorder %s6759_s19, %s6759_s19 }
 0x8a7   :  { %p10730_p10 = scmp.ne.s32.totalorder %s6759_s19, %s10729_s13  ;;  %p10735_p12 = scmp.lt.s32.totalorder %s10729_s13, %s10729_s13 }
 0x8a8   :  { %10509 = vmatpush3.bf16.msra.mxu0 %v10508_v31 }
 0x8a9   :  { %10510 = vmatprep.subr.bf16.mxu0 %v14724_v42  ;;  %p10736_p13 = por %p10735_p12, %p10734_p11 }
 0x8ab   :  { %p10737_p0 = pnand %p10736_p13, %p10730_p10 }
 0x8ac   :  { %10512 = vmatpush3.bf16.msra.mxu0 %v10511_v34 }
 0x8ad   :  { %10513 = vmatprep.subr.bf16.mxu0 %v14724_v42 }
 0x8b0   :  { %10515 = vmatpush3.bf16.msra.mxu0 %v10514_v30 }
 0x8b1   :  { %10516 = vmatprep.subr.bf16.mxu0 %v14724_v42 }
 0x8b4   :  { %10518 = vmatpush3.bf16.msra.mxu0 %v10517_v35 }
 0x8b5   :  { %10519 = vmatprep.subr.bf16.mxu0 %v14724_v42 }
 0x8b8   :  { %10521 = vmatpush3.bf16.msra.mxu0 %v10520_v39 }
 0x8b9   :  { %10522 = vmatprep.subr.bf16.mxu0 %v14724_v42 }
 0x8bc   :  { %10524 = vmatpush3.bf16.msra.mxu0 %v10523_v17 }
 0x8bd   :  { %10525 = vmatprep.subr.bf16.mxu0 %v14724_v42  ;;  %v14812_v42 = vmov 0  }
 0x8be   :  { %v6744_v52 = vsel %vm6739_vm0, 1, %v14812_v42 }
 0x8bf   :  { %v6748_v62 = vrot.slane %v6744_v52, %v14587_v46 }
 0x8c0   :  { %10527 = vmatpush3.bf16.msra.mxu0 %v10526_v51 }
 0x8c1   :  { %vm6749_vm1 = vcmp.eq.s32.totalorder %v6748_v62, 1 }
 0x974   :  { %v6626_v23 = vpop.f32.mrb[232].mxu1 }
 0x975   :  { %v9792_v26 = vpop.f32.mrb[233].mxu1 }
 0x976   :  { %v7946_v0 = vpop.f32.mrb[104].mxu0 }
 0x977   :  { %v7947_v8 = vpop.f32.mrb[105].mxu0 }
 0x978   :  { %v7948_v13 = vadd.f32 %v7947_v8, %v7946_v0 }
 0x97a   :  { %v6557_v16 = vadd.f32 %v7948_v13, %v7210_v44 }
 0x97c   :  { %v6627_v40 = vadd.f32 %v6626_v23, %v6557_v16 }
 0x97e   :  { %v6637_v18 = vadd.f32 %v7212_v25, %v6627_v40 }
 0x980   :  { %v6639_v3 = vsel %vm6638_vm15, %v6637_v18, -inf }
 0x981   :  { %6640 = vmax.xlane.f32.xlu1 %v6639_v3 }
 0xa0e   :  { %v6641_v24 = vpop.xlane.xlu1 %6640 }
 0xa0f   :  { %v6642_v21 = vsub.f32 %v6637_v18, %v6641_v24  ;;  %v6740_v22 = vsub.f32 %v6627_v40, %v6641_v24 }
 0xa11   :  { %v6643_v37 = vmul.f32 1.442695, %v6642_v21 }
 0xa13   :  { %10659 = vpow2.f32 %v6643_v37 }
 0xa1d   :  { %v10660_v56 = vpop.eup %10659 }
 0xa1e   :  { %9826 = vmatmul.mubr.f32.vlgmr.msra.gmra.mrb[106].mxu0 %v10660_v56 }
 0xaf1   :  { %v6735_v20 = vpop.f32.mrb[106].mxu0 }
 0xaf2   :  { %v6736_v60 = vadd.f32 %v6735_v20, %v6667_v9  ;;  %v9827_v57 = vpop.f32.mrb[107].mxu0 }
 0xaf4   :  { %10661 = vlog2.f32 %v6736_v60 }
 0xafe   :  { %v10662_v4 = vpop.eup %10661 }
 0xaff   :  { %v6742_v33 = vmul.f32 0.6931472, %v10662_v4 }
 0xb01   :  { %v6743_v11 = vsub.f32 %v6740_v22, %v6742_v33 }
 0xb03   :  { %v6750_v50 = vsel %vm6749_vm1, %v6743_v11, %v6627_v40 }
 0xb04   :  { %6751 = vst [vmem:[#allocation12] sm:$0x3] %v6750_v50 }
 0xb05   :  { %10740 = shalt.err (!%p10737_p0)
}
 0xb06   :  { %s10741_s30 = scalar_lea.hbm %s14686_s15, 32 }
 0xb07   :  { %p10742_p1 = scmp.ne.s32.totalorder %s14686_s15, %s10741_s30  ;;  %p10745_p2 = scmp.lt.u32.totalorder %s10741_s30, %s14686_s15 }
 0xb09   :  { %p10747_p3 = pnand %p10745_p2, %p10742_p1 }
 0xb0b   :  { %10750 = shalt.err (!%p10747_p3)
}
 0xb0c   :  { %6761 = dma.vmem_to_hbm [thread:$0]  %s6759_s19, 32, %s14686_s15, [#allocation8]  }
 0xb0d   :  { %10755 = dma.done.wait [#allocation8], 32  }
 0xb0e   :  { %10756 = vsyncadd [#allocation8], 4294967264 }
 0xb0f   :  { %6765 = vsyncpa [#allocation7], 1 }
 0xb10   :  { %6766 = vsyncpa [#allocation10], 1 }
 0xb11   :  { %6767 = vsyncpa [#allocation8], 1 }

</bundles_post_ra>
